<compile_context>
chip_gen: v7x
topology: tpu7x:2x2x1
jax: 0.10.0
libtpu: 0.0.40
codegen_flags: <defaults>
</compile_context>

<pallas_src>
import functools

import jax
import jax.numpy as jnp
from jax import lax
from jax.experimental import pallas as pl
from jax.experimental.pallas import tpu as pltpu


# Geometry of the 84x84x5 -> conv(8,s4) -> conv(4,s2) -> conv(3,s1) -> fc net,
# after stride factoring.  All per-layer grids are flattened with width 11.
_W0 = 11                  # width of every flattened grid
_RUN1 = 9 * _W0 + 10      # 109: conv1 run length (10x10 valid outputs / parity)
_RUN2 = 8 * _W0 + 9       # 97 : conv2 run length (9x9 valid outputs)
_RUN3 = 6 * _W0 + 7       # 73 : conv3 run length (7x7 valid outputs)


def _actor_kernel(x_ref, w1_ref, b1_ref, w2_ref, b2_ref, w3_ref, b3_ref,
                  fcw_ref, fcb_ref, o_ref, h1_ref, h2_ref, h3_ref):
    b_tile = x_ref.shape[0]
    num_out = o_ref.shape[-1]

    bias1 = b1_ref[...]
    bias2 = b2_ref[...]
    bias3 = b3_ref[...]

    def per_item(b, carry):
        # ---- conv1 (8x8, stride 4): stride-1 conv over the space-to-depth
        # input; the 4 output parities are lane-concatenated -> (109, 64) so
        # conv2 runs at K=64.
        parts = []
        for ph in range(2):
            for pw in range(2):
                acc = jnp.zeros((_RUN1, 16), jnp.float32)
                for gi in range(2):
                    for gj in range(2):
                        tr, tc = ph + gi, pw + gj
                        p, arow = tr % 2, tr // 2
                        q, bcol = tc % 2, tc // 2
                        off = arow * _W0 + bcol
                        slab = x_ref[b, p, q, off:off + _RUN1, :]     # (109, 80)
                        acc = acc + jnp.dot(slab, w1_ref[gi, gj],
                                            preferred_element_type=jnp.float32)
                parts.append(jnp.maximum(acc + bias1, 0.0))
        h1_ref[...] = jnp.concatenate(parts, axis=-1).astype(h1_ref.dtype)

        # ---- conv2 (4x4, stride 2): 4 shifted dots at K=64.
        acc2 = jnp.zeros((_RUN2, 32), jnp.float32)
        for arow in range(2):
            for bcol in range(2):
                off = arow * _W0 + bcol
                acc2 = acc2 + jnp.dot(h1_ref[off:off + _RUN2, :],     # (97, 64)
                                      w2_ref[arow, bcol],
                                      preferred_element_type=jnp.float32)
        h2_ref[...] = jnp.maximum(acc2 + bias2, 0.0).astype(h2_ref.dtype)

        # ---- conv3 (3x3, stride 1): 3 dots at K=96 (lane concat of the three
        # kj-shifted slabs).
        acc3 = jnp.zeros((_RUN3, 64), jnp.float32)
        for ki in range(3):
            base = ki * _W0
            wide = jnp.concatenate(
                [h2_ref[base + kj:base + kj + _RUN3, :] for kj in range(3)],
                axis=-1)                                              # (73, 96)
            acc3 = acc3 + jnp.dot(wide, w3_ref[ki],
                                  preferred_element_type=jnp.float32)
        h3_ref[b] = jnp.maximum(acc3 + bias3, 0.0).astype(h3_ref.dtype)
        return carry

    lax.fori_loop(0, b_tile, per_item, 0)

    # ---- fc over the 49 valid conv3 positions, batched over the whole tile:
    # 49 dots of (B_TILE, 64) x (64, num_out).  PyTorch's NCHW flatten order is
    # folded into the pre-permuted fc weight fcw[s, c, j].
    acc = jnp.zeros((b_tile, num_out), jnp.float32)
    for oh in range(7):
        for ow in range(7):
            r = oh * _W0 + ow          # position in the flat width-11 grid
            s = oh * 7 + ow            # logical 7x7 position
            acc = acc + jnp.dot(h3_ref[:, r, :], fcw_ref[s],
                                preferred_element_type=jnp.float32)
    o_ref[...] = acc + fcb_ref[...]


def _round_up(v, m):
    return (v + m - 1) // m * m


def _prep_input(x):
    """(N, 84, 84, 5) NHWC -> (N, 2, 2, 121, 80) bf16.

    Space-to-depth by 4 (conv1 stride) then a row/col parity split by 2
    (conv2 stride), zero-padded to 11x11 grids and flattened.  Pure
    permutation + pad, done in bf16 to halve the prep's HBM traffic.
    """
    n = x.shape[0]
    x = x.astype(jnp.bfloat16)
    x4 = x.reshape(n, 21, 4, 21, 4, 5).transpose(0, 1, 3, 2, 4, 5).reshape(n, 21, 21, 80)
    x4 = jnp.pad(x4, ((0, 0), (0, 1), (0, 1), (0, 0)))
    xp = x4.reshape(n, 11, 2, 11, 2, 80).transpose(0, 2, 4, 1, 3, 5)
    return xp.reshape(n, 2, 2, 121, 80)


def prep_params(params):
    """One-time layout/dtype prep of the PyTorch-layout parameters."""
    # conv1: W[o, c, 4*gi+ri, 4*gj+rj] -> w1[gi, gj, (ri, rj, c), o]
    w1 = params["conv1_w"].reshape(16, 5, 2, 4, 2, 4)
    w1 = w1.transpose(2, 4, 3, 5, 1, 0).reshape(2, 2, 80, 16)
    # conv2: W[o, c, 2a+p, 2b+q] -> w2[a, b, (p, q, c), o]   (K=64 fused)
    w2 = params["conv2_w"].reshape(32, 16, 2, 2, 2, 2)       # (o, c, a, p, b, q)
    w2 = w2.transpose(2, 4, 3, 5, 1, 0).reshape(2, 2, 64, 32)
    # conv3: W[o, c, ki, kj] -> w3[ki, (kj, c), o]           (K=96 fused)
    w3 = params["conv3_w"].transpose(2, 3, 1, 0).reshape(3, 96, 64)
    # fc: W[j, c*49 + s] -> fcw[s, c, j]   (s = oh*7 + ow, NCHW flatten order)
    num_out = params["fc_w"].shape[0]
    fcw = params["fc_w"].reshape(num_out, 64, 49).transpose(2, 1, 0)
    return {
        "w1": w1.astype(jnp.bfloat16),
        "b1": params["conv1_b"].reshape(1, 16).astype(jnp.float32),
        "w2": w2.astype(jnp.bfloat16),
        "b2": params["conv2_b"].reshape(1, 32).astype(jnp.float32),
        "w3": w3.astype(jnp.bfloat16),
        "b3": params["conv3_b"].reshape(1, 64).astype(jnp.float32),
        "fcw": fcw.astype(jnp.bfloat16),
        "fcb": params["fc_b"].reshape(1, num_out).astype(jnp.float32),
    }


def actor_forward(prepped, x_nhwc, b_tile=64):
    n = x_nhwc.shape[0]
    num_out = prepped["fcb"].shape[1]
    xp = _prep_input(x_nhwc)

    # Batch tile: multiple of 8 (output sublane alignment), padded batch.
    bt = _round_up(min(b_tile, n), 8)
    n_pad = _round_up(n, bt)
    if n_pad != n:
        xp = jnp.pad(xp, ((0, n_pad - n), (0, 0), (0, 0), (0, 0), (0, 0)))

    flops = 2 * n_pad * (16 * _RUN1 * 80 * 16 + 4 * _RUN2 * 64 * 32
                         + 3 * _RUN3 * 96 * 64 + 49 * 64 * num_out)
    bytes_accessed = int(xp.size) * 2 + n_pad * num_out * 4 + sum(
        int(v.size) * v.dtype.itemsize for v in prepped.values())

    out = pl.pallas_call(
        _actor_kernel,
        out_shape=jax.ShapeDtypeStruct((n_pad, num_out), jnp.float32),
        grid=(n_pad // bt,),
        in_specs=[
            pl.BlockSpec((bt, 2, 2, 121, 80), lambda i: (i, 0, 0, 0, 0)),
            pl.BlockSpec((2, 2, 80, 16), lambda i: (0, 0, 0, 0)),
            pl.BlockSpec((1, 16), lambda i: (0, 0)),
            pl.BlockSpec((2, 2, 64, 32), lambda i: (0, 0, 0, 0)),
            pl.BlockSpec((1, 32), lambda i: (0, 0)),
            pl.BlockSpec((3, 96, 64), lambda i: (0, 0, 0)),
            pl.BlockSpec((1, 64), lambda i: (0, 0)),
            pl.BlockSpec((49, 64, num_out), lambda i: (0, 0, 0)),
            pl.BlockSpec((1, num_out), lambda i: (0, 0)),
        ],
        out_specs=pl.BlockSpec((bt, num_out), lambda i: (i, 0)),
        scratch_shapes=[
            pltpu.VMEM((_RUN1, 64), jnp.bfloat16),        # h1 (parity-fused lanes)
            pltpu.VMEM((_RUN2, 32), jnp.bfloat16),        # h2
            pltpu.VMEM((bt, _RUN3, 64), jnp.bfloat16),    # h3 for the batched fc
        ],
        compiler_params=pltpu.CompilerParams(
            dimension_semantics=("parallel",),
            vmem_limit_bytes=32 * 1024 * 1024,
        ),
        cost_estimate=pl.CostEstimate(flops=flops, transcendentals=0,
                                      bytes_accessed=bytes_accessed),
    )(xp, prepped["w1"], prepped["b1"], prepped["w2"], prepped["b2"],
      prepped["w3"], prepped["b3"], prepped["fcw"], prepped["fcb"])

    mu = out[:n]
    logstd = jnp.zeros_like(mu)
    std = jnp.exp(logstd)
    return mu, std, logstd


def _reference_forward(params, x):
    """Pure-JAX f32 reference matching the PyTorch module semantics."""
    xt = jnp.transpose(x, (0, 3, 1, 2))

    def conv(inp, w, b, stride):
        out = jax.lax.conv_general_dilated(
            inp, w, window_strides=(stride, stride), padding="VALID",
            dimension_numbers=("NCHW", "OIHW", "NCHW"),
            precision=jax.lax.Precision.HIGHEST)
        return jax.nn.relu(out + b[None, :, None, None])

    h = conv(xt, params["conv1_w"], params["conv1_b"], 4)
    h = conv(h, params["conv2_w"], params["conv2_b"], 2)
    h = conv(h, params["conv3_w"], params["conv3_b"], 1)
    flat = h.reshape(h.shape[0], -1)
    return jnp.dot(flat, params["fc_w"].T,
                   precision=jax.lax.Precision.HIGHEST) + params["fc_b"]


def init_params(key, num_outputs):
    def uniform(k, shape, fan_in):
        bound = 1.0 / jnp.sqrt(jnp.float32(fan_in))
        return jax.random.uniform(k, shape, jnp.float32, -bound, bound)

    ks = jax.random.split(key, 8)
    p = {}
    p["conv1_w"] = uniform(ks[0], (16, 5, 8, 8), 5 * 8 * 8)
    p["conv1_b"] = uniform(ks[1], (16,), 5 * 8 * 8)
    p["conv2_w"] = uniform(ks[2], (32, 16, 4, 4), 16 * 4 * 4)
    p["conv2_b"] = uniform(ks[3], (32,), 16 * 4 * 4)
    p["conv3_w"] = uniform(ks[4], (64, 32, 3, 3), 32 * 3 * 3)
    p["conv3_b"] = uniform(ks[5], (64,), 32 * 3 * 3)
    p["fc_w"] = uniform(ks[6], (num_outputs, 7 * 7 * 64), 7 * 7 * 64) * 0.1
    p["fc_b"] = jnp.zeros((num_outputs,), jnp.float32)
    return p


if __name__ == "__main__":
    num_outputs = 6
    batch = 16
    key = jax.random.PRNGKey(0)
    pkey, xkey = jax.random.split(key)

    params = init_params(pkey, num_outputs)
    prepped = prep_params(params)                     # one-time weight prep
    # Input as fed to the PyTorch module (NHWC; permuted inside forward).
    # Spatial must be 84x84 so the fc input is 7*7*64, as the module requires.
    x = jax.random.normal(xkey, (batch, 84, 84, 5), jnp.float32)

    # b_tile=8 -> 2 items-tiles of 8 => 2 grid steps (exercises the pipeline
    # and the in-kernel item loop).  Default b_tile=64 for production batches.
    fwd = jax.jit(functools.partial(actor_forward, b_tile=8))
    mu, std, logstd = fwd(prepped, x)
    jax.block_until_ready((mu, std, logstd))

    # Correctness spot-check against a pure-JAX f32 reference (kernel runs in
    # bf16 with f32 accumulation, so use a loose tolerance).
    mu_ref = _reference_forward(params, x)
    err = float(jnp.max(jnp.abs(mu - mu_ref)))

    assert mu.shape == (batch, num_outputs)
    assert std.shape == (batch, num_outputs)
    assert logstd.shape == (batch, num_outputs)
    assert bool(jnp.all(std == 1.0)) and bool(jnp.all(logstd == 0.0))
    assert err < 2e-2, f"max |mu - mu_ref| = {err}"
    print("KERNEL_OK")
</pallas_src>

<mosaic_0001>
module attributes {stable_mosaic.version = 11 : i64} {
  func.func @_actor_kernel(%arg0: i32, %arg1: memref<8x2x2x121x80xbf16, #tpu.memory_space<vmem>>, %arg2: memref<2x2x80x16xbf16, #tpu.memory_space<vmem>>, %arg3: memref<1x16xf32, #tpu.memory_space<vmem>>, %arg4: memref<2x2x64x32xbf16, #tpu.memory_space<vmem>>, %arg5: memref<1x32xf32, #tpu.memory_space<vmem>>, %arg6: memref<3x96x64xbf16, #tpu.memory_space<vmem>>, %arg7: memref<1x64xf32, #tpu.memory_space<vmem>>, %arg8: memref<49x64x6xbf16, #tpu.memory_space<vmem>>, %arg9: memref<1x6xf32, #tpu.memory_space<vmem>>, %arg10: memref<8x6xf32, #tpu.memory_space<vmem>>, %arg11: memref<109x64xbf16, #tpu.memory_space<vmem>>, %arg12: memref<97x32xbf16, #tpu.memory_space<vmem>>, %arg13: memref<8x73x64xbf16, #tpu.memory_space<vmem>>) attributes {dimension_semantics = [#tpu.dimension_semantics<parallel>], iteration_bounds = array<i64: 2>, scalar_prefetch = 0 : i64, scratch_operands = 3 : i64, tpu.core_type = #tpu.core_type<tc>, window_params = [{transform_indices = @transform_0, window_bounds = array<i64: 8, 2, 2, 121, 80>}, {pipeline_mode = #tpu.pipeline_mode<synchronous>, transform_indices = @transform_1, window_bounds = array<i64: 2, 2, 80, 16>}, {pipeline_mode = #tpu.pipeline_mode<synchronous>, transform_indices = @transform_2, window_bounds = array<i64: 1, 16>}, {pipeline_mode = #tpu.pipeline_mode<synchronous>, transform_indices = @transform_3, window_bounds = array<i64: 2, 2, 64, 32>}, {pipeline_mode = #tpu.pipeline_mode<synchronous>, transform_indices = @transform_4, window_bounds = array<i64: 1, 32>}, {pipeline_mode = #tpu.pipeline_mode<synchronous>, transform_indices = @transform_5, window_bounds = array<i64: 3, 96, 64>}, {pipeline_mode = #tpu.pipeline_mode<synchronous>, transform_indices = @transform_6, window_bounds = array<i64: 1, 64>}, {pipeline_mode = #tpu.pipeline_mode<synchronous>, transform_indices = @transform_7, window_bounds = array<i64: 49, 64, 6>}, {pipeline_mode = #tpu.pipeline_mode<synchronous>, transform_indices = @transform_8, window_bounds = array<i64: 1, 6>}, {transform_indices = @transform_9, window_bounds = array<i64: 8, 6>}]} {
    %c0 = arith.constant 0 : index
    %c0_0 = arith.constant 0 : index
    %0 = vector.load %arg3[%c0, %c0_0] : memref<1x16xf32, #tpu.memory_space<vmem>>, vector<1x16xf32>
    %c0_1 = arith.constant 0 : index
    %c0_2 = arith.constant 0 : index
    %1 = vector.load %arg5[%c0_1, %c0_2] : memref<1x32xf32, #tpu.memory_space<vmem>>, vector<1x32xf32>
    %c0_3 = arith.constant 0 : index
    %c0_4 = arith.constant 0 : index
    %2 = vector.load %arg7[%c0_3, %c0_4] : memref<1x64xf32, #tpu.memory_space<vmem>>, vector<1x64xf32>
    %c0_i32 = arith.constant 0 : i32
    %c8_i32 = arith.constant 8 : i32
    %3 = arith.addi %c0_i32, %c8_i32 : i32
    %c1_i32 = arith.constant 1 : i32
    scf.for %arg14 = %c0_i32 to %3 step %c1_i32  : i32 {
      %cst_289 = arith.constant 0.000000e+00 : f32
      %303 = vector.broadcast %cst_289 : f32 to vector<109x16xf32>
      %304 = arith.index_cast %arg14 : i32 to index
      %c0_290 = arith.constant 0 : index
      %c0_291 = arith.constant 0 : index
      %c0_292 = arith.constant 0 : index
      %c0_293 = arith.constant 0 : index
      %305 = vector.load %arg1[%304, %c0_290, %c0_291, %c0_292, %c0_293] : memref<8x2x2x121x80xbf16, #tpu.memory_space<vmem>>, vector<1x1x1x109x80xbf16>
      %306 = vector.shape_cast %305 : vector<1x1x1x109x80xbf16> to vector<109x80xbf16>
      %c0_294 = arith.constant 0 : index
      %c0_295 = arith.constant 0 : index
      %c0_296 = arith.constant 0 : index
      %c0_297 = arith.constant 0 : index
      %307 = vector.load %arg2[%c0_294, %c0_295, %c0_296, %c0_297] : memref<2x2x80x16xbf16, #tpu.memory_space<vmem>>, vector<1x1x80x16xbf16>
      %308 = vector.shape_cast %307 : vector<1x1x80x16xbf16> to vector<80x16xbf16>
      %cst_298 = arith.constant dense<0.000000e+00> : vector<109x16xf32>
      %309 = tpu.matmul %306, %308, %cst_298 {dimension_numbers = #tpu.dot_dimension_numbers<[1], [0], [0], [1], [0, 0, 1, 1], [], []>} : vector<109x80xbf16>, vector<80x16xbf16>, vector<109x16xf32> -> vector<109x16xf32>
      %310 = arith.addf %303, %309 : vector<109x16xf32>
      %311 = arith.index_cast %arg14 : i32 to index
      %c0_299 = arith.constant 0 : index
      %c1_300 = arith.constant 1 : index
      %c0_301 = arith.constant 0 : index
      %c0_302 = arith.constant 0 : index
      %312 = vector.load %arg1[%311, %c0_299, %c1_300, %c0_301, %c0_302] : memref<8x2x2x121x80xbf16, #tpu.memory_space<vmem>>, vector<1x1x1x109x80xbf16>
      %313 = vector.shape_cast %312 : vector<1x1x1x109x80xbf16> to vector<109x80xbf16>
      %c0_303 = arith.constant 0 : index
      %c1_304 = arith.constant 1 : index
      %c0_305 = arith.constant 0 : index
      %c0_306 = arith.constant 0 : index
      %314 = vector.load %arg2[%c0_303, %c1_304, %c0_305, %c0_306] : memref<2x2x80x16xbf16, #tpu.memory_space<vmem>>, vector<1x1x80x16xbf16>
      %315 = vector.shape_cast %314 : vector<1x1x80x16xbf16> to vector<80x16xbf16>
      %cst_307 = arith.constant dense<0.000000e+00> : vector<109x16xf32>
      %316 = tpu.matmul %313, %315, %cst_307 {dimension_numbers = #tpu.dot_dimension_numbers<[1], [0], [0], [1], [0, 0, 1, 1], [], []>} : vector<109x80xbf16>, vector<80x16xbf16>, vector<109x16xf32> -> vector<109x16xf32>
      %317 = arith.addf %310, %316 : vector<109x16xf32>
      %318 = arith.index_cast %arg14 : i32 to index
      %c1_308 = arith.constant 1 : index
      %c0_309 = arith.constant 0 : index
      %c0_310 = arith.constant 0 : index
      %c0_311 = arith.constant 0 : index
      %319 = vector.load %arg1[%318, %c1_308, %c0_309, %c0_310, %c0_311] : memref<8x2x2x121x80xbf16, #tpu.memory_space<vmem>>, vector<1x1x1x109x80xbf16>
      %320 = vector.shape_cast %319 : vector<1x1x1x109x80xbf16> to vector<109x80xbf16>
      %c1_312 = arith.constant 1 : index
      %c0_313 = arith.constant 0 : index
      %c0_314 = arith.constant 0 : index
      %c0_315 = arith.constant 0 : index
      %321 = vector.load %arg2[%c1_312, %c0_313, %c0_314, %c0_315] : memref<2x2x80x16xbf16, #tpu.memory_space<vmem>>, vector<1x1x80x16xbf16>
      %322 = vector.shape_cast %321 : vector<1x1x80x16xbf16> to vector<80x16xbf16>
      %cst_316 = arith.constant dense<0.000000e+00> : vector<109x16xf32>
      %323 = tpu.matmul %320, %322, %cst_316 {dimension_numbers = #tpu.dot_dimension_numbers<[1], [0], [0], [1], [0, 0, 1, 1], [], []>} : vector<109x80xbf16>, vector<80x16xbf16>, vector<109x16xf32> -> vector<109x16xf32>
      %324 = arith.addf %317, %323 : vector<109x16xf32>
      %325 = arith.index_cast %arg14 : i32 to index
      %c1_317 = arith.constant 1 : index
      %c1_318 = arith.constant 1 : index
      %c0_319 = arith.constant 0 : index
      %c0_320 = arith.constant 0 : index
      %326 = vector.load %arg1[%325, %c1_317, %c1_318, %c0_319, %c0_320] : memref<8x2x2x121x80xbf16, #tpu.memory_space<vmem>>, vector<1x1x1x109x80xbf16>
      %327 = vector.shape_cast %326 : vector<1x1x1x109x80xbf16> to vector<109x80xbf16>
      %c1_321 = arith.constant 1 : index
      %c1_322 = arith.constant 1 : index
      %c0_323 = arith.constant 0 : index
      %c0_324 = arith.constant 0 : index
      %328 = vector.load %arg2[%c1_321, %c1_322, %c0_323, %c0_324] : memref<2x2x80x16xbf16, #tpu.memory_space<vmem>>, vector<1x1x80x16xbf16>
      %329 = vector.shape_cast %328 : vector<1x1x80x16xbf16> to vector<80x16xbf16>
      %cst_325 = arith.constant dense<0.000000e+00> : vector<109x16xf32>
      %330 = tpu.matmul %327, %329, %cst_325 {dimension_numbers = #tpu.dot_dimension_numbers<[1], [0], [0], [1], [0, 0, 1, 1], [], []>} : vector<109x80xbf16>, vector<80x16xbf16>, vector<109x16xf32> -> vector<109x16xf32>
      %331 = arith.addf %324, %330 : vector<109x16xf32>
      %332 = vector.broadcast %0 : vector<1x16xf32> to vector<109x16xf32>
      %333 = arith.addf %331, %332 : vector<109x16xf32>
      %cst_326 = arith.constant 0.000000e+00 : f32
      %334 = vector.broadcast %cst_326 : f32 to vector<109x16xf32>
      %335 = arith.maximumf %333, %334 : vector<109x16xf32>
      %cst_327 = arith.constant 0.000000e+00 : f32
      %336 = vector.broadcast %cst_327 : f32 to vector<109x16xf32>
      %337 = arith.index_cast %arg14 : i32 to index
      %c0_328 = arith.constant 0 : index
      %c1_329 = arith.constant 1 : index
      %c0_330 = arith.constant 0 : index
      %c0_331 = arith.constant 0 : index
      %338 = vector.load %arg1[%337, %c0_328, %c1_329, %c0_330, %c0_331] : memref<8x2x2x121x80xbf16, #tpu.memory_space<vmem>>, vector<1x1x1x109x80xbf16>
      %339 = vector.shape_cast %338 : vector<1x1x1x109x80xbf16> to vector<109x80xbf16>
      %c0_332 = arith.constant 0 : index
      %c0_333 = arith.constant 0 : index
      %c0_334 = arith.constant 0 : index
      %c0_335 = arith.constant 0 : index
      %340 = vector.load %arg2[%c0_332, %c0_333, %c0_334, %c0_335] : memref<2x2x80x16xbf16, #tpu.memory_space<vmem>>, vector<1x1x80x16xbf16>
      %341 = vector.shape_cast %340 : vector<1x1x80x16xbf16> to vector<80x16xbf16>
      %cst_336 = arith.constant dense<0.000000e+00> : vector<109x16xf32>
      %342 = tpu.matmul %339, %341, %cst_336 {dimension_numbers = #tpu.dot_dimension_numbers<[1], [0], [0], [1], [0, 0, 1, 1], [], []>} : vector<109x80xbf16>, vector<80x16xbf16>, vector<109x16xf32> -> vector<109x16xf32>
      %343 = arith.addf %336, %342 : vector<109x16xf32>
      %344 = arith.index_cast %arg14 : i32 to index
      %c0_337 = arith.constant 0 : index
      %c0_338 = arith.constant 0 : index
      %c1_339 = arith.constant 1 : index
      %c0_340 = arith.constant 0 : index
      %345 = vector.load %arg1[%344, %c0_337, %c0_338, %c1_339, %c0_340] : memref<8x2x2x121x80xbf16, #tpu.memory_space<vmem>>, vector<1x1x1x109x80xbf16>
      %346 = vector.shape_cast %345 : vector<1x1x1x109x80xbf16> to vector<109x80xbf16>
      %c0_341 = arith.constant 0 : index
      %c1_342 = arith.constant 1 : index
      %c0_343 = arith.constant 0 : index
      %c0_344 = arith.constant 0 : index
      %347 = vector.load %arg2[%c0_341, %c1_342, %c0_343, %c0_344] : memref<2x2x80x16xbf16, #tpu.memory_space<vmem>>, vector<1x1x80x16xbf16>
      %348 = vector.shape_cast %347 : vector<1x1x80x16xbf16> to vector<80x16xbf16>
      %cst_345 = arith.constant dense<0.000000e+00> : vector<109x16xf32>
      %349 = tpu.matmul %346, %348, %cst_345 {dimension_numbers = #tpu.dot_dimension_numbers<[1], [0], [0], [1], [0, 0, 1, 1], [], []>} : vector<109x80xbf16>, vector<80x16xbf16>, vector<109x16xf32> -> vector<109x16xf32>
      %350 = arith.addf %343, %349 : vector<109x16xf32>
      %351 = arith.index_cast %arg14 : i32 to index
      %c1_346 = arith.constant 1 : index
      %c1_347 = arith.constant 1 : index
      %c0_348 = arith.constant 0 : index
      %c0_349 = arith.constant 0 : index
      %352 = vector.load %arg1[%351, %c1_346, %c1_347, %c0_348, %c0_349] : memref<8x2x2x121x80xbf16, #tpu.memory_space<vmem>>, vector<1x1x1x109x80xbf16>
      %353 = vector.shape_cast %352 : vector<1x1x1x109x80xbf16> to vector<109x80xbf16>
      %c1_350 = arith.constant 1 : index
      %c0_351 = arith.constant 0 : index
      %c0_352 = arith.constant 0 : index
      %c0_353 = arith.constant 0 : index
      %354 = vector.load %arg2[%c1_350, %c0_351, %c0_352, %c0_353] : memref<2x2x80x16xbf16, #tpu.memory_space<vmem>>, vector<1x1x80x16xbf16>
      %355 = vector.shape_cast %354 : vector<1x1x80x16xbf16> to vector<80x16xbf16>
      %cst_354 = arith.constant dense<0.000000e+00> : vector<109x16xf32>
      %356 = tpu.matmul %353, %355, %cst_354 {dimension_numbers = #tpu.dot_dimension_numbers<[1], [0], [0], [1], [0, 0, 1, 1], [], []>} : vector<109x80xbf16>, vector<80x16xbf16>, vector<109x16xf32> -> vector<109x16xf32>
      %357 = arith.addf %350, %356 : vector<109x16xf32>
      %358 = arith.index_cast %arg14 : i32 to index
      %c1_355 = arith.constant 1 : index
      %c0_356 = arith.constant 0 : index
      %c1_357 = arith.constant 1 : index
      %c0_358 = arith.constant 0 : index
      %359 = vector.load %arg1[%358, %c1_355, %c0_356, %c1_357, %c0_358] : memref<8x2x2x121x80xbf16, #tpu.memory_space<vmem>>, vector<1x1x1x109x80xbf16>
      %360 = vector.shape_cast %359 : vector<1x1x1x109x80xbf16> to vector<109x80xbf16>
      %c1_359 = arith.constant 1 : index
      %c1_360 = arith.constant 1 : index
      %c0_361 = arith.constant 0 : index
      %c0_362 = arith.constant 0 : index
      %361 = vector.load %arg2[%c1_359, %c1_360, %c0_361, %c0_362] : memref<2x2x80x16xbf16, #tpu.memory_space<vmem>>, vector<1x1x80x16xbf16>
      %362 = vector.shape_cast %361 : vector<1x1x80x16xbf16> to vector<80x16xbf16>
      %cst_363 = arith.constant dense<0.000000e+00> : vector<109x16xf32>
      %363 = tpu.matmul %360, %362, %cst_363 {dimension_numbers = #tpu.dot_dimension_numbers<[1], [0], [0], [1], [0, 0, 1, 1], [], []>} : vector<109x80xbf16>, vector<80x16xbf16>, vector<109x16xf32> -> vector<109x16xf32>
      %364 = arith.addf %357, %363 : vector<109x16xf32>
      %365 = vector.broadcast %0 : vector<1x16xf32> to vector<109x16xf32>
      %366 = arith.addf %364, %365 : vector<109x16xf32>
      %cst_364 = arith.constant 0.000000e+00 : f32
      %367 = vector.broadcast %cst_364 : f32 to vector<109x16xf32>
      %368 = arith.maximumf %366, %367 : vector<109x16xf32>
      %cst_365 = arith.constant 0.000000e+00 : f32
      %369 = vector.broadcast %cst_365 : f32 to vector<109x16xf32>
      %370 = arith.index_cast %arg14 : i32 to index
      %c1_366 = arith.constant 1 : index
      %c0_367 = arith.constant 0 : index
      %c0_368 = arith.constant 0 : index
      %c0_369 = arith.constant 0 : index
      %371 = vector.load %arg1[%370, %c1_366, %c0_367, %c0_368, %c0_369] : memref<8x2x2x121x80xbf16, #tpu.memory_space<vmem>>, vector<1x1x1x109x80xbf16>
      %372 = vector.shape_cast %371 : vector<1x1x1x109x80xbf16> to vector<109x80xbf16>
      %c0_370 = arith.constant 0 : index
      %c0_371 = arith.constant 0 : index
      %c0_372 = arith.constant 0 : index
      %c0_373 = arith.constant 0 : index
      %373 = vector.load %arg2[%c0_370, %c0_371, %c0_372, %c0_373] : memref<2x2x80x16xbf16, #tpu.memory_space<vmem>>, vector<1x1x80x16xbf16>
      %374 = vector.shape_cast %373 : vector<1x1x80x16xbf16> to vector<80x16xbf16>
      %cst_374 = arith.constant dense<0.000000e+00> : vector<109x16xf32>
      %375 = tpu.matmul %372, %374, %cst_374 {dimension_numbers = #tpu.dot_dimension_numbers<[1], [0], [0], [1], [0, 0, 1, 1], [], []>} : vector<109x80xbf16>, vector<80x16xbf16>, vector<109x16xf32> -> vector<109x16xf32>
      %376 = arith.addf %369, %375 : vector<109x16xf32>
      %377 = arith.index_cast %arg14 : i32 to index
      %c1_375 = arith.constant 1 : index
      %c1_376 = arith.constant 1 : index
      %c0_377 = arith.constant 0 : index
      %c0_378 = arith.constant 0 : index
      %378 = vector.load %arg1[%377, %c1_375, %c1_376, %c0_377, %c0_378] : memref<8x2x2x121x80xbf16, #tpu.memory_space<vmem>>, vector<1x1x1x109x80xbf16>
      %379 = vector.shape_cast %378 : vector<1x1x1x109x80xbf16> to vector<109x80xbf16>
      %c0_379 = arith.constant 0 : index
      %c1_380 = arith.constant 1 : index
      %c0_381 = arith.constant 0 : index
      %c0_382 = arith.constant 0 : index
      %380 = vector.load %arg2[%c0_379, %c1_380, %c0_381, %c0_382] : memref<2x2x80x16xbf16, #tpu.memory_space<vmem>>, vector<1x1x80x16xbf16>
      %381 = vector.shape_cast %380 : vector<1x1x80x16xbf16> to vector<80x16xbf16>
      %cst_383 = arith.constant dense<0.000000e+00> : vector<109x16xf32>
      %382 = tpu.matmul %379, %381, %cst_383 {dimension_numbers = #tpu.dot_dimension_numbers<[1], [0], [0], [1], [0, 0, 1, 1], [], []>} : vector<109x80xbf16>, vector<80x16xbf16>, vector<109x16xf32> -> vector<109x16xf32>
      %383 = arith.addf %376, %382 : vector<109x16xf32>
      %384 = arith.index_cast %arg14 : i32 to index
      %c0_384 = arith.constant 0 : index
      %c0_385 = arith.constant 0 : index
      %c11_386 = arith.constant 11 : index
      %c0_387 = arith.constant 0 : index
      %385 = vector.load %arg1[%384, %c0_384, %c0_385, %c11_386, %c0_387] : memref<8x2x2x121x80xbf16, #tpu.memory_space<vmem>>, vector<1x1x1x109x80xbf16>
      %386 = vector.shape_cast %385 : vector<1x1x1x109x80xbf16> to vector<109x80xbf16>
      %c1_388 = arith.constant 1 : index
      %c0_389 = arith.constant 0 : index
      %c0_390 = arith.constant 0 : index
      %c0_391 = arith.constant 0 : index
      %387 = vector.load %arg2[%c1_388, %c0_389, %c0_390, %c0_391] : memref<2x2x80x16xbf16, #tpu.memory_space<vmem>>, vector<1x1x80x16xbf16>
      %388 = vector.shape_cast %387 : vector<1x1x80x16xbf16> to vector<80x16xbf16>
      %cst_392 = arith.constant dense<0.000000e+00> : vector<109x16xf32>
      %389 = tpu.matmul %386, %388, %cst_392 {dimension_numbers = #tpu.dot_dimension_numbers<[1], [0], [0], [1], [0, 0, 1, 1], [], []>} : vector<109x80xbf16>, vector<80x16xbf16>, vector<109x16xf32> -> vector<109x16xf32>
      %390 = arith.addf %383, %389 : vector<109x16xf32>
      %391 = arith.index_cast %arg14 : i32 to index
      %c0_393 = arith.constant 0 : index
      %c1_394 = arith.constant 1 : index
      %c11_395 = arith.constant 11 : index
      %c0_396 = arith.constant 0 : index
      %392 = vector.load %arg1[%391, %c0_393, %c1_394, %c11_395, %c0_396] : memref<8x2x2x121x80xbf16, #tpu.memory_space<vmem>>, vector<1x1x1x109x80xbf16>
      %393 = vector.shape_cast %392 : vector<1x1x1x109x80xbf16> to vector<109x80xbf16>
      %c1_397 = arith.constant 1 : index
      %c1_398 = arith.constant 1 : index
      %c0_399 = arith.constant 0 : index
      %c0_400 = arith.constant 0 : index
      %394 = vector.load %arg2[%c1_397, %c1_398, %c0_399, %c0_400] : memref<2x2x80x16xbf16, #tpu.memory_space<vmem>>, vector<1x1x80x16xbf16>
      %395 = vector.shape_cast %394 : vector<1x1x80x16xbf16> to vector<80x16xbf16>
      %cst_401 = arith.constant dense<0.000000e+00> : vector<109x16xf32>
      %396 = tpu.matmul %393, %395, %cst_401 {dimension_numbers = #tpu.dot_dimension_numbers<[1], [0], [0], [1], [0, 0, 1, 1], [], []>} : vector<109x80xbf16>, vector<80x16xbf16>, vector<109x16xf32> -> vector<109x16xf32>
      %397 = arith.addf %390, %396 : vector<109x16xf32>
      %398 = vector.broadcast %0 : vector<1x16xf32> to vector<109x16xf32>
      %399 = arith.addf %397, %398 : vector<109x16xf32>
      %cst_402 = arith.constant 0.000000e+00 : f32
      %400 = vector.broadcast %cst_402 : f32 to vector<109x16xf32>
      %401 = arith.maximumf %399, %400 : vector<109x16xf32>
      %cst_403 = arith.constant 0.000000e+00 : f32
      %402 = vector.broadcast %cst_403 : f32 to vector<109x16xf32>
      %403 = arith.index_cast %arg14 : i32 to index
      %c1_404 = arith.constant 1 : index
      %c1_405 = arith.constant 1 : index
      %c0_406 = arith.constant 0 : index
      %c0_407 = arith.constant 0 : index
      %404 = vector.load %arg1[%403, %c1_404, %c1_405, %c0_406, %c0_407] : memref<8x2x2x121x80xbf16, #tpu.memory_space<vmem>>, vector<1x1x1x109x80xbf16>
      %405 = vector.shape_cast %404 : vector<1x1x1x109x80xbf16> to vector<109x80xbf16>
      %c0_408 = arith.constant 0 : index
      %c0_409 = arith.constant 0 : index
      %c0_410 = arith.constant 0 : index
      %c0_411 = arith.constant 0 : index
      %406 = vector.load %arg2[%c0_408, %c0_409, %c0_410, %c0_411] : memref<2x2x80x16xbf16, #tpu.memory_space<vmem>>, vector<1x1x80x16xbf16>
      %407 = vector.shape_cast %406 : vector<1x1x80x16xbf16> to vector<80x16xbf16>
      %cst_412 = arith.constant dense<0.000000e+00> : vector<109x16xf32>
      %408 = tpu.matmul %405, %407, %cst_412 {dimension_numbers = #tpu.dot_dimension_numbers<[1], [0], [0], [1], [0, 0, 1, 1], [], []>} : vector<109x80xbf16>, vector<80x16xbf16>, vector<109x16xf32> -> vector<109x16xf32>
      %409 = arith.addf %402, %408 : vector<109x16xf32>
      %410 = arith.index_cast %arg14 : i32 to index
      %c1_413 = arith.constant 1 : index
      %c0_414 = arith.constant 0 : index
      %c1_415 = arith.constant 1 : index
      %c0_416 = arith.constant 0 : index
      %411 = vector.load %arg1[%410, %c1_413, %c0_414, %c1_415, %c0_416] : memref<8x2x2x121x80xbf16, #tpu.memory_space<vmem>>, vector<1x1x1x109x80xbf16>
      %412 = vector.shape_cast %411 : vector<1x1x1x109x80xbf16> to vector<109x80xbf16>
      %c0_417 = arith.constant 0 : index
      %c1_418 = arith.constant 1 : index
      %c0_419 = arith.constant 0 : index
      %c0_420 = arith.constant 0 : index
      %413 = vector.load %arg2[%c0_417, %c1_418, %c0_419, %c0_420] : memref<2x2x80x16xbf16, #tpu.memory_space<vmem>>, vector<1x1x80x16xbf16>
      %414 = vector.shape_cast %413 : vector<1x1x80x16xbf16> to vector<80x16xbf16>
      %cst_421 = arith.constant dense<0.000000e+00> : vector<109x16xf32>
      %415 = tpu.matmul %412, %414, %cst_421 {dimension_numbers = #tpu.dot_dimension_numbers<[1], [0], [0], [1], [0, 0, 1, 1], [], []>} : vector<109x80xbf16>, vector<80x16xbf16>, vector<109x16xf32> -> vector<109x16xf32>
      %416 = arith.addf %409, %415 : vector<109x16xf32>
      %417 = arith.index_cast %arg14 : i32 to index
      %c0_422 = arith.constant 0 : index
      %c1_423 = arith.constant 1 : index
      %c11_424 = arith.constant 11 : index
      %c0_425 = arith.constant 0 : index
      %418 = vector.load %arg1[%417, %c0_422, %c1_423, %c11_424, %c0_425] : memref<8x2x2x121x80xbf16, #tpu.memory_space<vmem>>, vector<1x1x1x109x80xbf16>
      %419 = vector.shape_cast %418 : vector<1x1x1x109x80xbf16> to vector<109x80xbf16>
      %c1_426 = arith.constant 1 : index
      %c0_427 = arith.constant 0 : index
      %c0_428 = arith.constant 0 : index
      %c0_429 = arith.constant 0 : index
      %420 = vector.load %arg2[%c1_426, %c0_427, %c0_428, %c0_429] : memref<2x2x80x16xbf16, #tpu.memory_space<vmem>>, vector<1x1x80x16xbf16>
      %421 = vector.shape_cast %420 : vector<1x1x80x16xbf16> to vector<80x16xbf16>
      %cst_430 = arith.constant dense<0.000000e+00> : vector<109x16xf32>
      %422 = tpu.matmul %419, %421, %cst_430 {dimension_numbers = #tpu.dot_dimension_numbers<[1], [0], [0], [1], [0, 0, 1, 1], [], []>} : vector<109x80xbf16>, vector<80x16xbf16>, vector<109x16xf32> -> vector<109x16xf32>
      %423 = arith.addf %416, %422 : vector<109x16xf32>
      %424 = arith.index_cast %arg14 : i32 to index
      %c0_431 = arith.constant 0 : index
      %c0_432 = arith.constant 0 : index
      %c12_433 = arith.constant 12 : index
      %c0_434 = arith.constant 0 : index
      %425 = vector.load %arg1[%424, %c0_431, %c0_432, %c12_433, %c0_434] : memref<8x2x2x121x80xbf16, #tpu.memory_space<vmem>>, vector<1x1x1x109x80xbf16>
      %426 = vector.shape_cast %425 : vector<1x1x1x109x80xbf16> to vector<109x80xbf16>
      %c1_435 = arith.constant 1 : index
      %c1_436 = arith.constant 1 : index
      %c0_437 = arith.constant 0 : index
      %c0_438 = arith.constant 0 : index
      %427 = vector.load %arg2[%c1_435, %c1_436, %c0_437, %c0_438] : memref<2x2x80x16xbf16, #tpu.memory_space<vmem>>, vector<1x1x80x16xbf16>
      %428 = vector.shape_cast %427 : vector<1x1x80x16xbf16> to vector<80x16xbf16>
      %cst_439 = arith.constant dense<0.000000e+00> : vector<109x16xf32>
      %429 = tpu.matmul %426, %428, %cst_439 {dimension_numbers = #tpu.dot_dimension_numbers<[1], [0], [0], [1], [0, 0, 1, 1], [], []>} : vector<109x80xbf16>, vector<80x16xbf16>, vector<109x16xf32> -> vector<109x16xf32>
      %430 = arith.addf %423, %429 : vector<109x16xf32>
      %431 = vector.broadcast %0 : vector<1x16xf32> to vector<109x16xf32>
      %432 = arith.addf %430, %431 : vector<109x16xf32>
      %cst_440 = arith.constant 0.000000e+00 : f32
      %433 = vector.broadcast %cst_440 : f32 to vector<109x16xf32>
      %434 = arith.maximumf %432, %433 : vector<109x16xf32>
      %435 = tpu.concatenate %335, %368, %401, %434 in 1 : vector<109x16xf32>, vector<109x16xf32>, vector<109x16xf32>, vector<109x16xf32> -> vector<109x64xf32>
      %436 = arith.truncf %435 : vector<109x64xf32> to vector<109x64xbf16>
      %c0_441 = arith.constant 0 : index
      %c0_442 = arith.constant 0 : index
      %437 = vector.load %arg11[%c0_441, %c0_442] : memref<109x64xbf16, #tpu.memory_space<vmem>>, vector<109x64xbf16>
      tpu.vector_store %arg11[%c0_441, %c0_442], %436 {strides = array<i32>} : memref<109x64xbf16, #tpu.memory_space<vmem>>, vector<109x64xbf16>,
      %cst_443 = arith.constant 0.000000e+00 : f32
      %438 = vector.broadcast %cst_443 : f32 to vector<97x32xf32>
      %c0_444 = arith.constant 0 : index
      %c0_445 = arith.constant 0 : index
      %439 = vector.load %arg11[%c0_444, %c0_445] : memref<109x64xbf16, #tpu.memory_space<vmem>>, vector<97x64xbf16>
      %c0_446 = arith.constant 0 : index
      %c0_447 = arith.constant 0 : index
      %c0_448 = arith.constant 0 : index
      %c0_449 = arith.constant 0 : index
      %440 = vector.load %arg4[%c0_446, %c0_447, %c0_448, %c0_449] : memref<2x2x64x32xbf16, #tpu.memory_space<vmem>>, vector<1x1x64x32xbf16>
      %441 = vector.shape_cast %440 : vector<1x1x64x32xbf16> to vector<64x32xbf16>
      %cst_450 = arith.constant dense<0.000000e+00> : vector<97x32xf32>
      %442 = tpu.matmul %439, %441, %cst_450 {dimension_numbers = #tpu.dot_dimension_numbers<[1], [0], [0], [1], [0, 0, 1, 1], [], []>} : vector<97x64xbf16>, vector<64x32xbf16>, vector<97x32xf32> -> vector<97x32xf32>
      %443 = arith.addf %438, %442 : vector<97x32xf32>
      %c1_451 = arith.constant 1 : index
      %c0_452 = arith.constant 0 : index
      %444 = vector.load %arg11[%c1_451, %c0_452] : memref<109x64xbf16, #tpu.memory_space<vmem>>, vector<97x64xbf16>
      %c0_453 = arith.constant 0 : index
      %c1_454 = arith.constant 1 : index
      %c0_455 = arith.constant 0 : index
      %c0_456 = arith.constant 0 : index
      %445 = vector.load %arg4[%c0_453, %c1_454, %c0_455, %c0_456] : memref<2x2x64x32xbf16, #tpu.memory_space<vmem>>, vector<1x1x64x32xbf16>
      %446 = vector.shape_cast %445 : vector<1x1x64x32xbf16> to vector<64x32xbf16>
      %cst_457 = arith.constant dense<0.000000e+00> : vector<97x32xf32>
      %447 = tpu.matmul %444, %446, %cst_457 {dimension_numbers = #tpu.dot_dimension_numbers<[1], [0], [0], [1], [0, 0, 1, 1], [], []>} : vector<97x64xbf16>, vector<64x32xbf16>, vector<97x32xf32> -> vector<97x32xf32>
      %448 = arith.addf %443, %447 : vector<97x32xf32>
      %c11_458 = arith.constant 11 : index
      %c0_459 = arith.constant 0 : index
      %449 = vector.load %arg11[%c11_458, %c0_459] : memref<109x64xbf16, #tpu.memory_space<vmem>>, vector<97x64xbf16>
      %c1_460 = arith.constant 1 : index
      %c0_461 = arith.constant 0 : index
      %c0_462 = arith.constant 0 : index
      %c0_463 = arith.constant 0 : index
      %450 = vector.load %arg4[%c1_460, %c0_461, %c0_462, %c0_463] : memref<2x2x64x32xbf16, #tpu.memory_space<vmem>>, vector<1x1x64x32xbf16>
      %451 = vector.shape_cast %450 : vector<1x1x64x32xbf16> to vector<64x32xbf16>
      %cst_464 = arith.constant dense<0.000000e+00> : vector<97x32xf32>
      %452 = tpu.matmul %449, %451, %cst_464 {dimension_numbers = #tpu.dot_dimension_numbers<[1], [0], [0], [1], [0, 0, 1, 1], [], []>} : vector<97x64xbf16>, vector<64x32xbf16>, vector<97x32xf32> -> vector<97x32xf32>
      %453 = arith.addf %448, %452 : vector<97x32xf32>
      %c12_465 = arith.constant 12 : index
      %c0_466 = arith.constant 0 : index
      %454 = vector.load %arg11[%c12_465, %c0_466] : memref<109x64xbf16, #tpu.memory_space<vmem>>, vector<97x64xbf16>
      %c1_467 = arith.constant 1 : index
      %c1_468 = arith.constant 1 : index
      %c0_469 = arith.constant 0 : index
      %c0_470 = arith.constant 0 : index
      %455 = vector.load %arg4[%c1_467, %c1_468, %c0_469, %c0_470] : memref<2x2x64x32xbf16, #tpu.memory_space<vmem>>, vector<1x1x64x32xbf16>
      %456 = vector.shape_cast %455 : vector<1x1x64x32xbf16> to vector<64x32xbf16>
      %cst_471 = arith.constant dense<0.000000e+00> : vector<97x32xf32>
      %457 = tpu.matmul %454, %456, %cst_471 {dimension_numbers = #tpu.dot_dimension_numbers<[1], [0], [0], [1], [0, 0, 1, 1], [], []>} : vector<97x64xbf16>, vector<64x32xbf16>, vector<97x32xf32> -> vector<97x32xf32>
      %458 = arith.addf %453, %457 : vector<97x32xf32>
      %459 = vector.broadcast %1 : vector<1x32xf32> to vector<97x32xf32>
      %460 = arith.addf %458, %459 : vector<97x32xf32>
      %cst_472 = arith.constant 0.000000e+00 : f32
      %461 = vector.broadcast %cst_472 : f32 to vector<97x32xf32>
      %462 = arith.maximumf %460, %461 : vector<97x32xf32>
      %463 = arith.truncf %462 : vector<97x32xf32> to vector<97x32xbf16>
      %c0_473 = arith.constant 0 : index
      %c0_474 = arith.constant 0 : index
      %464 = vector.load %arg12[%c0_473, %c0_474] : memref<97x32xbf16, #tpu.memory_space<vmem>>, vector<97x32xbf16>
      tpu.vector_store %arg12[%c0_473, %c0_474], %463 {strides = array<i32>} : memref<97x32xbf16, #tpu.memory_space<vmem>>, vector<97x32xbf16>,
      %cst_475 = arith.constant 0.000000e+00 : f32
      %465 = vector.broadcast %cst_475 : f32 to vector<73x64xf32>
      %c0_476 = arith.constant 0 : index
      %c0_477 = arith.constant 0 : index
      %466 = vector.load %arg12[%c0_476, %c0_477] : memref<97x32xbf16, #tpu.memory_space<vmem>>, vector<73x32xbf16>
      %c1_478 = arith.constant 1 : index
      %c0_479 = arith.constant 0 : index
      %467 = vector.load %arg12[%c1_478, %c0_479] : memref<97x32xbf16, #tpu.memory_space<vmem>>, vector<73x32xbf16>
      %c2_480 = arith.constant 2 : index
      %c0_481 = arith.constant 0 : index
      %468 = vector.load %arg12[%c2_480, %c0_481] : memref<97x32xbf16, #tpu.memory_space<vmem>>, vector<73x32xbf16>
      %469 = tpu.concatenate %466, %467, %468 in 1 : vector<73x32xbf16>, vector<73x32xbf16>, vector<73x32xbf16> -> vector<73x96xbf16>
      %c0_482 = arith.constant 0 : index
      %c0_483 = arith.constant 0 : index
      %c0_484 = arith.constant 0 : index
      %470 = vector.load %arg6[%c0_482, %c0_483, %c0_484] : memref<3x96x64xbf16, #tpu.memory_space<vmem>>, vector<1x96x64xbf16>
      %471 = vector.shape_cast %470 : vector<1x96x64xbf16> to vector<96x64xbf16>
      %cst_485 = arith.constant dense<0.000000e+00> : vector<73x64xf32>
      %472 = tpu.matmul %469, %471, %cst_485 {dimension_numbers = #tpu.dot_dimension_numbers<[1], [0], [0], [1], [0, 0, 1, 1], [], []>} : vector<73x96xbf16>, vector<96x64xbf16>, vector<73x64xf32> -> vector<73x64xf32>
      %473 = arith.addf %465, %472 : vector<73x64xf32>
      %c11_486 = arith.constant 11 : index
      %c0_487 = arith.constant 0 : index
      %474 = vector.load %arg12[%c11_486, %c0_487] : memref<97x32xbf16, #tpu.memory_space<vmem>>, vector<73x32xbf16>
      %c12_488 = arith.constant 12 : index
      %c0_489 = arith.constant 0 : index
      %475 = vector.load %arg12[%c12_488, %c0_489] : memref<97x32xbf16, #tpu.memory_space<vmem>>, vector<73x32xbf16>
      %c13_490 = arith.constant 13 : index
      %c0_491 = arith.constant 0 : index
      %476 = vector.load %arg12[%c13_490, %c0_491] : memref<97x32xbf16, #tpu.memory_space<vmem>>, vector<73x32xbf16>
      %477 = tpu.concatenate %474, %475, %476 in 1 : vector<73x32xbf16>, vector<73x32xbf16>, vector<73x32xbf16> -> vector<73x96xbf16>
      %c1_492 = arith.constant 1 : index
      %c0_493 = arith.constant 0 : index
      %c0_494 = arith.constant 0 : index
      %478 = vector.load %arg6[%c1_492, %c0_493, %c0_494] : memref<3x96x64xbf16, #tpu.memory_space<vmem>>, vector<1x96x64xbf16>
      %479 = vector.shape_cast %478 : vector<1x96x64xbf16> to vector<96x64xbf16>
      %cst_495 = arith.constant dense<0.000000e+00> : vector<73x64xf32>
      %480 = tpu.matmul %477, %479, %cst_495 {dimension_numbers = #tpu.dot_dimension_numbers<[1], [0], [0], [1], [0, 0, 1, 1], [], []>} : vector<73x96xbf16>, vector<96x64xbf16>, vector<73x64xf32> -> vector<73x64xf32>
      %481 = arith.addf %473, %480 : vector<73x64xf32>
      %c22_496 = arith.constant 22 : index
      %c0_497 = arith.constant 0 : index
      %482 = vector.load %arg12[%c22_496, %c0_497] : memref<97x32xbf16, #tpu.memory_space<vmem>>, vector<73x32xbf16>
      %c23_498 = arith.constant 23 : index
      %c0_499 = arith.constant 0 : index
      %483 = vector.load %arg12[%c23_498, %c0_499] : memref<97x32xbf16, #tpu.memory_space<vmem>>, vector<73x32xbf16>
      %c24_500 = arith.constant 24 : index
      %c0_501 = arith.constant 0 : index
      %484 = vector.load %arg12[%c24_500, %c0_501] : memref<97x32xbf16, #tpu.memory_space<vmem>>, vector<73x32xbf16>
      %485 = tpu.concatenate %482, %483, %484 in 1 : vector<73x32xbf16>, vector<73x32xbf16>, vector<73x32xbf16> -> vector<73x96xbf16>
      %c2_502 = arith.constant 2 : index
      %c0_503 = arith.constant 0 : index
      %c0_504 = arith.constant 0 : index
      %486 = vector.load %arg6[%c2_502, %c0_503, %c0_504] : memref<3x96x64xbf16, #tpu.memory_space<vmem>>, vector<1x96x64xbf16>
      %487 = vector.shape_cast %486 : vector<1x96x64xbf16> to vector<96x64xbf16>
      %cst_505 = arith.constant dense<0.000000e+00> : vector<73x64xf32>
      %488 = tpu.matmul %485, %487, %cst_505 {dimension_numbers = #tpu.dot_dimension_numbers<[1], [0], [0], [1], [0, 0, 1, 1], [], []>} : vector<73x96xbf16>, vector<96x64xbf16>, vector<73x64xf32> -> vector<73x64xf32>
      %489 = arith.addf %481, %488 : vector<73x64xf32>
      %490 = vector.broadcast %2 : vector<1x64xf32> to vector<73x64xf32>
      %491 = arith.addf %489, %490 : vector<73x64xf32>
      %cst_506 = arith.constant 0.000000e+00 : f32
      %492 = vector.broadcast %cst_506 : f32 to vector<73x64xf32>
      %493 = arith.maximumf %491, %492 : vector<73x64xf32>
      %494 = arith.truncf %493 : vector<73x64xf32> to vector<73x64xbf16>
      %495 = arith.index_cast %arg14 : i32 to index
      %c0_507 = arith.constant 0 : index
      %c0_508 = arith.constant 0 : index
      %496 = vector.load %arg13[%495, %c0_507, %c0_508] : memref<8x73x64xbf16, #tpu.memory_space<vmem>>, vector<1x73x64xbf16>
      %497 = vector.shape_cast %496 : vector<1x73x64xbf16> to vector<73x64xbf16>
      %498 = vector.shape_cast %494 : vector<73x64xbf16> to vector<1x73x64xbf16>
      tpu.vector_store %arg13[%495, %c0_507, %c0_508], %498 {strides = array<i32>} : memref<8x73x64xbf16, #tpu.memory_space<vmem>>, vector<1x73x64xbf16>,
    }
    %c8_i32_5 = arith.constant 8 : i32
    %cst = arith.constant 0.000000e+00 : f32
    %4 = vector.broadcast %cst : f32 to vector<8x6xf32>
    %c0_6 = arith.constant 0 : index
    %c0_7 = arith.constant 0 : index
    %c0_8 = arith.constant 0 : index
    %5 = vector.load %arg13[%c0_6, %c0_7, %c0_8] : memref<8x73x64xbf16, #tpu.memory_space<vmem>>, vector<8x1x64xbf16>
    %6 = vector.shape_cast %5 : vector<8x1x64xbf16> to vector<8x64xbf16>
    %c0_9 = arith.constant 0 : index
    %c0_10 = arith.constant 0 : index
    %c0_11 = arith.constant 0 : index
    %7 = vector.load %arg8[%c0_9, %c0_10, %c0_11] : memref<49x64x6xbf16, #tpu.memory_space<vmem>>, vector<1x64x6xbf16>
    %8 = vector.shape_cast %7 : vector<1x64x6xbf16> to vector<64x6xbf16>
    %cst_12 = arith.constant dense<0.000000e+00> : vector<8x6xf32>
    %9 = tpu.matmul %6, %8, %cst_12 {dimension_numbers = #tpu.dot_dimension_numbers<[1], [0], [0], [1], [0, 0, 1, 1], [], []>} : vector<8x64xbf16>, vector<64x6xbf16>, vector<8x6xf32> -> vector<8x6xf32>
    %10 = arith.addf %4, %9 : vector<8x6xf32>
    %c0_13 = arith.constant 0 : index
    %c1 = arith.constant 1 : index
    %c0_14 = arith.constant 0 : index
    %11 = vector.load %arg13[%c0_13, %c1, %c0_14] : memref<8x73x64xbf16, #tpu.memory_space<vmem>>, vector<8x1x64xbf16>
    %12 = vector.shape_cast %11 : vector<8x1x64xbf16> to vector<8x64xbf16>
    %c1_15 = arith.constant 1 : index
    %c0_16 = arith.constant 0 : index
    %c0_17 = arith.constant 0 : index
    %13 = vector.load %arg8[%c1_15, %c0_16, %c0_17] : memref<49x64x6xbf16, #tpu.memory_space<vmem>>, vector<1x64x6xbf16>
    %14 = vector.shape_cast %13 : vector<1x64x6xbf16> to vector<64x6xbf16>
    %cst_18 = arith.constant dense<0.000000e+00> : vector<8x6xf32>
    %15 = tpu.matmul %12, %14, %cst_18 {dimension_numbers = #tpu.dot_dimension_numbers<[1], [0], [0], [1], [0, 0, 1, 1], [], []>} : vector<8x64xbf16>, vector<64x6xbf16>, vector<8x6xf32> -> vector<8x6xf32>
    %16 = arith.addf %10, %15 : vector<8x6xf32>
    %c0_19 = arith.constant 0 : index
    %c2 = arith.constant 2 : index
    %c0_20 = arith.constant 0 : index
    %17 = vector.load %arg13[%c0_19, %c2, %c0_20] : memref<8x73x64xbf16, #tpu.memory_space<vmem>>, vector<8x1x64xbf16>
    %18 = vector.shape_cast %17 : vector<8x1x64xbf16> to vector<8x64xbf16>
    %c2_21 = arith.constant 2 : index
    %c0_22 = arith.constant 0 : index
    %c0_23 = arith.constant 0 : index
    %19 = vector.load %arg8[%c2_21, %c0_22, %c0_23] : memref<49x64x6xbf16, #tpu.memory_space<vmem>>, vector<1x64x6xbf16>
    %20 = vector.shape_cast %19 : vector<1x64x6xbf16> to vector<64x6xbf16>
    %cst_24 = arith.constant dense<0.000000e+00> : vector<8x6xf32>
    %21 = tpu.matmul %18, %20, %cst_24 {dimension_numbers = #tpu.dot_dimension_numbers<[1], [0], [0], [1], [0, 0, 1, 1], [], []>} : vector<8x64xbf16>, vector<64x6xbf16>, vector<8x6xf32> -> vector<8x6xf32>
    %22 = arith.addf %16, %21 : vector<8x6xf32>
    %c0_25 = arith.constant 0 : index
    %c3 = arith.constant 3 : index
    %c0_26 = arith.constant 0 : index
    %23 = vector.load %arg13[%c0_25, %c3, %c0_26] : memref<8x73x64xbf16, #tpu.memory_space<vmem>>, vector<8x1x64xbf16>
    %24 = vector.shape_cast %23 : vector<8x1x64xbf16> to vector<8x64xbf16>
    %c3_27 = arith.constant 3 : index
    %c0_28 = arith.constant 0 : index
    %c0_29 = arith.constant 0 : index
    %25 = vector.load %arg8[%c3_27, %c0_28, %c0_29] : memref<49x64x6xbf16, #tpu.memory_space<vmem>>, vector<1x64x6xbf16>
    %26 = vector.shape_cast %25 : vector<1x64x6xbf16> to vector<64x6xbf16>
    %cst_30 = arith.constant dense<0.000000e+00> : vector<8x6xf32>
    %27 = tpu.matmul %24, %26, %cst_30 {dimension_numbers = #tpu.dot_dimension_numbers<[1], [0], [0], [1], [0, 0, 1, 1], [], []>} : vector<8x64xbf16>, vector<64x6xbf16>, vector<8x6xf32> -> vector<8x6xf32>
    %28 = arith.addf %22, %27 : vector<8x6xf32>
    %c0_31 = arith.constant 0 : index
    %c4 = arith.constant 4 : index
    %c0_32 = arith.constant 0 : index
    %29 = vector.load %arg13[%c0_31, %c4, %c0_32] : memref<8x73x64xbf16, #tpu.memory_space<vmem>>, vector<8x1x64xbf16>
    %30 = vector.shape_cast %29 : vector<8x1x64xbf16> to vector<8x64xbf16>
    %c4_33 = arith.constant 4 : index
    %c0_34 = arith.constant 0 : index
    %c0_35 = arith.constant 0 : index
    %31 = vector.load %arg8[%c4_33, %c0_34, %c0_35] : memref<49x64x6xbf16, #tpu.memory_space<vmem>>, vector<1x64x6xbf16>
    %32 = vector.shape_cast %31 : vector<1x64x6xbf16> to vector<64x6xbf16>
    %cst_36 = arith.constant dense<0.000000e+00> : vector<8x6xf32>
    %33 = tpu.matmul %30, %32, %cst_36 {dimension_numbers = #tpu.dot_dimension_numbers<[1], [0], [0], [1], [0, 0, 1, 1], [], []>} : vector<8x64xbf16>, vector<64x6xbf16>, vector<8x6xf32> -> vector<8x6xf32>
    %34 = arith.addf %28, %33 : vector<8x6xf32>
    %c0_37 = arith.constant 0 : index
    %c5 = arith.constant 5 : index
    %c0_38 = arith.constant 0 : index
    %35 = vector.load %arg13[%c0_37, %c5, %c0_38] : memref<8x73x64xbf16, #tpu.memory_space<vmem>>, vector<8x1x64xbf16>
    %36 = vector.shape_cast %35 : vector<8x1x64xbf16> to vector<8x64xbf16>
    %c5_39 = arith.constant 5 : index
    %c0_40 = arith.constant 0 : index
    %c0_41 = arith.constant 0 : index
    %37 = vector.load %arg8[%c5_39, %c0_40, %c0_41] : memref<49x64x6xbf16, #tpu.memory_space<vmem>>, vector<1x64x6xbf16>
    %38 = vector.shape_cast %37 : vector<1x64x6xbf16> to vector<64x6xbf16>
    %cst_42 = arith.constant dense<0.000000e+00> : vector<8x6xf32>
    %39 = tpu.matmul %36, %38, %cst_42 {dimension_numbers = #tpu.dot_dimension_numbers<[1], [0], [0], [1], [0, 0, 1, 1], [], []>} : vector<8x64xbf16>, vector<64x6xbf16>, vector<8x6xf32> -> vector<8x6xf32>
    %40 = arith.addf %34, %39 : vector<8x6xf32>
    %c0_43 = arith.constant 0 : index
    %c6 = arith.constant 6 : index
    %c0_44 = arith.constant 0 : index
    %41 = vector.load %arg13[%c0_43, %c6, %c0_44] : memref<8x73x64xbf16, #tpu.memory_space<vmem>>, vector<8x1x64xbf16>
    %42 = vector.shape_cast %41 : vector<8x1x64xbf16> to vector<8x64xbf16>
    %c6_45 = arith.constant 6 : index
    %c0_46 = arith.constant 0 : index
    %c0_47 = arith.constant 0 : index
    %43 = vector.load %arg8[%c6_45, %c0_46, %c0_47] : memref<49x64x6xbf16, #tpu.memory_space<vmem>>, vector<1x64x6xbf16>
    %44 = vector.shape_cast %43 : vector<1x64x6xbf16> to vector<64x6xbf16>
    %cst_48 = arith.constant dense<0.000000e+00> : vector<8x6xf32>
    %45 = tpu.matmul %42, %44, %cst_48 {dimension_numbers = #tpu.dot_dimension_numbers<[1], [0], [0], [1], [0, 0, 1, 1], [], []>} : vector<8x64xbf16>, vector<64x6xbf16>, vector<8x6xf32> -> vector<8x6xf32>
    %46 = arith.addf %40, %45 : vector<8x6xf32>
    %c0_49 = arith.constant 0 : index
    %c11 = arith.constant 11 : index
    %c0_50 = arith.constant 0 : index
    %47 = vector.load %arg13[%c0_49, %c11, %c0_50] : memref<8x73x64xbf16, #tpu.memory_space<vmem>>, vector<8x1x64xbf16>
    %48 = vector.shape_cast %47 : vector<8x1x64xbf16> to vector<8x64xbf16>
    %c7 = arith.constant 7 : index
    %c0_51 = arith.constant 0 : index
    %c0_52 = arith.constant 0 : index
    %49 = vector.load %arg8[%c7, %c0_51, %c0_52] : memref<49x64x6xbf16, #tpu.memory_space<vmem>>, vector<1x64x6xbf16>
    %50 = vector.shape_cast %49 : vector<1x64x6xbf16> to vector<64x6xbf16>
    %cst_53 = arith.constant dense<0.000000e+00> : vector<8x6xf32>
    %51 = tpu.matmul %48, %50, %cst_53 {dimension_numbers = #tpu.dot_dimension_numbers<[1], [0], [0], [1], [0, 0, 1, 1], [], []>} : vector<8x64xbf16>, vector<64x6xbf16>, vector<8x6xf32> -> vector<8x6xf32>
    %52 = arith.addf %46, %51 : vector<8x6xf32>
    %c0_54 = arith.constant 0 : index
    %c12 = arith.constant 12 : index
    %c0_55 = arith.constant 0 : index
    %53 = vector.load %arg13[%c0_54, %c12, %c0_55] : memref<8x73x64xbf16, #tpu.memory_space<vmem>>, vector<8x1x64xbf16>
    %54 = vector.shape_cast %53 : vector<8x1x64xbf16> to vector<8x64xbf16>
    %c8 = arith.constant 8 : index
    %c0_56 = arith.constant 0 : index
    %c0_57 = arith.constant 0 : index
    %55 = vector.load %arg8[%c8, %c0_56, %c0_57] : memref<49x64x6xbf16, #tpu.memory_space<vmem>>, vector<1x64x6xbf16>
    %56 = vector.shape_cast %55 : vector<1x64x6xbf16> to vector<64x6xbf16>
    %cst_58 = arith.constant dense<0.000000e+00> : vector<8x6xf32>
    %57 = tpu.matmul %54, %56, %cst_58 {dimension_numbers = #tpu.dot_dimension_numbers<[1], [0], [0], [1], [0, 0, 1, 1], [], []>} : vector<8x64xbf16>, vector<64x6xbf16>, vector<8x6xf32> -> vector<8x6xf32>
    %58 = arith.addf %52, %57 : vector<8x6xf32>
    %c0_59 = arith.constant 0 : index
    %c13 = arith.constant 13 : index
    %c0_60 = arith.constant 0 : index
    %59 = vector.load %arg13[%c0_59, %c13, %c0_60] : memref<8x73x64xbf16, #tpu.memory_space<vmem>>, vector<8x1x64xbf16>
    %60 = vector.shape_cast %59 : vector<8x1x64xbf16> to vector<8x64xbf16>
    %c9 = arith.constant 9 : index
    %c0_61 = arith.constant 0 : index
    %c0_62 = arith.constant 0 : index
    %61 = vector.load %arg8[%c9, %c0_61, %c0_62] : memref<49x64x6xbf16, #tpu.memory_space<vmem>>, vector<1x64x6xbf16>
    %62 = vector.shape_cast %61 : vector<1x64x6xbf16> to vector<64x6xbf16>
    %cst_63 = arith.constant dense<0.000000e+00> : vector<8x6xf32>
    %63 = tpu.matmul %60, %62, %cst_63 {dimension_numbers = #tpu.dot_dimension_numbers<[1], [0], [0], [1], [0, 0, 1, 1], [], []>} : vector<8x64xbf16>, vector<64x6xbf16>, vector<8x6xf32> -> vector<8x6xf32>
    %64 = arith.addf %58, %63 : vector<8x6xf32>
    %c0_64 = arith.constant 0 : index
    %c14 = arith.constant 14 : index
    %c0_65 = arith.constant 0 : index
    %65 = vector.load %arg13[%c0_64, %c14, %c0_65] : memref<8x73x64xbf16, #tpu.memory_space<vmem>>, vector<8x1x64xbf16>
    %66 = vector.shape_cast %65 : vector<8x1x64xbf16> to vector<8x64xbf16>
    %c10 = arith.constant 10 : index
    %c0_66 = arith.constant 0 : index
    %c0_67 = arith.constant 0 : index
    %67 = vector.load %arg8[%c10, %c0_66, %c0_67] : memref<49x64x6xbf16, #tpu.memory_space<vmem>>, vector<1x64x6xbf16>
    %68 = vector.shape_cast %67 : vector<1x64x6xbf16> to vector<64x6xbf16>
    %cst_68 = arith.constant dense<0.000000e+00> : vector<8x6xf32>
    %69 = tpu.matmul %66, %68, %cst_68 {dimension_numbers = #tpu.dot_dimension_numbers<[1], [0], [0], [1], [0, 0, 1, 1], [], []>} : vector<8x64xbf16>, vector<64x6xbf16>, vector<8x6xf32> -> vector<8x6xf32>
    %70 = arith.addf %64, %69 : vector<8x6xf32>
    %c0_69 = arith.constant 0 : index
    %c15 = arith.constant 15 : index
    %c0_70 = arith.constant 0 : index
    %71 = vector.load %arg13[%c0_69, %c15, %c0_70] : memref<8x73x64xbf16, #tpu.memory_space<vmem>>, vector<8x1x64xbf16>
    %72 = vector.shape_cast %71 : vector<8x1x64xbf16> to vector<8x64xbf16>
    %c11_71 = arith.constant 11 : index
    %c0_72 = arith.constant 0 : index
    %c0_73 = arith.constant 0 : index
    %73 = vector.load %arg8[%c11_71, %c0_72, %c0_73] : memref<49x64x6xbf16, #tpu.memory_space<vmem>>, vector<1x64x6xbf16>
    %74 = vector.shape_cast %73 : vector<1x64x6xbf16> to vector<64x6xbf16>
    %cst_74 = arith.constant dense<0.000000e+00> : vector<8x6xf32>
    %75 = tpu.matmul %72, %74, %cst_74 {dimension_numbers = #tpu.dot_dimension_numbers<[1], [0], [0], [1], [0, 0, 1, 1], [], []>} : vector<8x64xbf16>, vector<64x6xbf16>, vector<8x6xf32> -> vector<8x6xf32>
    %76 = arith.addf %70, %75 : vector<8x6xf32>
    %c0_75 = arith.constant 0 : index
    %c16 = arith.constant 16 : index
    %c0_76 = arith.constant 0 : index
    %77 = vector.load %arg13[%c0_75, %c16, %c0_76] : memref<8x73x64xbf16, #tpu.memory_space<vmem>>, vector<8x1x64xbf16>
    %78 = vector.shape_cast %77 : vector<8x1x64xbf16> to vector<8x64xbf16>
    %c12_77 = arith.constant 12 : index
    %c0_78 = arith.constant 0 : index
    %c0_79 = arith.constant 0 : index
    %79 = vector.load %arg8[%c12_77, %c0_78, %c0_79] : memref<49x64x6xbf16, #tpu.memory_space<vmem>>, vector<1x64x6xbf16>
    %80 = vector.shape_cast %79 : vector<1x64x6xbf16> to vector<64x6xbf16>
    %cst_80 = arith.constant dense<0.000000e+00> : vector<8x6xf32>
    %81 = tpu.matmul %78, %80, %cst_80 {dimension_numbers = #tpu.dot_dimension_numbers<[1], [0], [0], [1], [0, 0, 1, 1], [], []>} : vector<8x64xbf16>, vector<64x6xbf16>, vector<8x6xf32> -> vector<8x6xf32>
    %82 = arith.addf %76, %81 : vector<8x6xf32>
    %c0_81 = arith.constant 0 : index
    %c17 = arith.constant 17 : index
    %c0_82 = arith.constant 0 : index
    %83 = vector.load %arg13[%c0_81, %c17, %c0_82] : memref<8x73x64xbf16, #tpu.memory_space<vmem>>, vector<8x1x64xbf16>
    %84 = vector.shape_cast %83 : vector<8x1x64xbf16> to vector<8x64xbf16>
    %c13_83 = arith.constant 13 : index
    %c0_84 = arith.constant 0 : index
    %c0_85 = arith.constant 0 : index
    %85 = vector.load %arg8[%c13_83, %c0_84, %c0_85] : memref<49x64x6xbf16, #tpu.memory_space<vmem>>, vector<1x64x6xbf16>
    %86 = vector.shape_cast %85 : vector<1x64x6xbf16> to vector<64x6xbf16>
    %cst_86 = arith.constant dense<0.000000e+00> : vector<8x6xf32>
    %87 = tpu.matmul %84, %86, %cst_86 {dimension_numbers = #tpu.dot_dimension_numbers<[1], [0], [0], [1], [0, 0, 1, 1], [], []>} : vector<8x64xbf16>, vector<64x6xbf16>, vector<8x6xf32> -> vector<8x6xf32>
    %88 = arith.addf %82, %87 : vector<8x6xf32>
    %c0_87 = arith.constant 0 : index
    %c22 = arith.constant 22 : index
    %c0_88 = arith.constant 0 : index
    %89 = vector.load %arg13[%c0_87, %c22, %c0_88] : memref<8x73x64xbf16, #tpu.memory_space<vmem>>, vector<8x1x64xbf16>
    %90 = vector.shape_cast %89 : vector<8x1x64xbf16> to vector<8x64xbf16>
    %c14_89 = arith.constant 14 : index
    %c0_90 = arith.constant 0 : index
    %c0_91 = arith.constant 0 : index
    %91 = vector.load %arg8[%c14_89, %c0_90, %c0_91] : memref<49x64x6xbf16, #tpu.memory_space<vmem>>, vector<1x64x6xbf16>
    %92 = vector.shape_cast %91 : vector<1x64x6xbf16> to vector<64x6xbf16>
    %cst_92 = arith.constant dense<0.000000e+00> : vector<8x6xf32>
    %93 = tpu.matmul %90, %92, %cst_92 {dimension_numbers = #tpu.dot_dimension_numbers<[1], [0], [0], [1], [0, 0, 1, 1], [], []>} : vector<8x64xbf16>, vector<64x6xbf16>, vector<8x6xf32> -> vector<8x6xf32>
    %94 = arith.addf %88, %93 : vector<8x6xf32>
    %c0_93 = arith.constant 0 : index
    %c23 = arith.constant 23 : index
    %c0_94 = arith.constant 0 : index
    %95 = vector.load %arg13[%c0_93, %c23, %c0_94] : memref<8x73x64xbf16, #tpu.memory_space<vmem>>, vector<8x1x64xbf16>
    %96 = vector.shape_cast %95 : vector<8x1x64xbf16> to vector<8x64xbf16>
    %c15_95 = arith.constant 15 : index
    %c0_96 = arith.constant 0 : index
    %c0_97 = arith.constant 0 : index
    %97 = vector.load %arg8[%c15_95, %c0_96, %c0_97] : memref<49x64x6xbf16, #tpu.memory_space<vmem>>, vector<1x64x6xbf16>
    %98 = vector.shape_cast %97 : vector<1x64x6xbf16> to vector<64x6xbf16>
    %cst_98 = arith.constant dense<0.000000e+00> : vector<8x6xf32>
    %99 = tpu.matmul %96, %98, %cst_98 {dimension_numbers = #tpu.dot_dimension_numbers<[1], [0], [0], [1], [0, 0, 1, 1], [], []>} : vector<8x64xbf16>, vector<64x6xbf16>, vector<8x6xf32> -> vector<8x6xf32>
    %100 = arith.addf %94, %99 : vector<8x6xf32>
    %c0_99 = arith.constant 0 : index
    %c24 = arith.constant 24 : index
    %c0_100 = arith.constant 0 : index
    %101 = vector.load %arg13[%c0_99, %c24, %c0_100] : memref<8x73x64xbf16, #tpu.memory_space<vmem>>, vector<8x1x64xbf16>
    %102 = vector.shape_cast %101 : vector<8x1x64xbf16> to vector<8x64xbf16>
    %c16_101 = arith.constant 16 : index
    %c0_102 = arith.constant 0 : index
    %c0_103 = arith.constant 0 : index
    %103 = vector.load %arg8[%c16_101, %c0_102, %c0_103] : memref<49x64x6xbf16, #tpu.memory_space<vmem>>, vector<1x64x6xbf16>
    %104 = vector.shape_cast %103 : vector<1x64x6xbf16> to vector<64x6xbf16>
    %cst_104 = arith.constant dense<0.000000e+00> : vector<8x6xf32>
    %105 = tpu.matmul %102, %104, %cst_104 {dimension_numbers = #tpu.dot_dimension_numbers<[1], [0], [0], [1], [0, 0, 1, 1], [], []>} : vector<8x64xbf16>, vector<64x6xbf16>, vector<8x6xf32> -> vector<8x6xf32>
    %106 = arith.addf %100, %105 : vector<8x6xf32>
    %c0_105 = arith.constant 0 : index
    %c25 = arith.constant 25 : index
    %c0_106 = arith.constant 0 : index
    %107 = vector.load %arg13[%c0_105, %c25, %c0_106] : memref<8x73x64xbf16, #tpu.memory_space<vmem>>, vector<8x1x64xbf16>
    %108 = vector.shape_cast %107 : vector<8x1x64xbf16> to vector<8x64xbf16>
    %c17_107 = arith.constant 17 : index
    %c0_108 = arith.constant 0 : index
    %c0_109 = arith.constant 0 : index
    %109 = vector.load %arg8[%c17_107, %c0_108, %c0_109] : memref<49x64x6xbf16, #tpu.memory_space<vmem>>, vector<1x64x6xbf16>
    %110 = vector.shape_cast %109 : vector<1x64x6xbf16> to vector<64x6xbf16>
    %cst_110 = arith.constant dense<0.000000e+00> : vector<8x6xf32>
    %111 = tpu.matmul %108, %110, %cst_110 {dimension_numbers = #tpu.dot_dimension_numbers<[1], [0], [0], [1], [0, 0, 1, 1], [], []>} : vector<8x64xbf16>, vector<64x6xbf16>, vector<8x6xf32> -> vector<8x6xf32>
    %112 = arith.addf %106, %111 : vector<8x6xf32>
    %c0_111 = arith.constant 0 : index
    %c26 = arith.constant 26 : index
    %c0_112 = arith.constant 0 : index
    %113 = vector.load %arg13[%c0_111, %c26, %c0_112] : memref<8x73x64xbf16, #tpu.memory_space<vmem>>, vector<8x1x64xbf16>
    %114 = vector.shape_cast %113 : vector<8x1x64xbf16> to vector<8x64xbf16>
    %c18 = arith.constant 18 : index
    %c0_113 = arith.constant 0 : index
    %c0_114 = arith.constant 0 : index
    %115 = vector.load %arg8[%c18, %c0_113, %c0_114] : memref<49x64x6xbf16, #tpu.memory_space<vmem>>, vector<1x64x6xbf16>
    %116 = vector.shape_cast %115 : vector<1x64x6xbf16> to vector<64x6xbf16>
    %cst_115 = arith.constant dense<0.000000e+00> : vector<8x6xf32>
    %117 = tpu.matmul %114, %116, %cst_115 {dimension_numbers = #tpu.dot_dimension_numbers<[1], [0], [0], [1], [0, 0, 1, 1], [], []>} : vector<8x64xbf16>, vector<64x6xbf16>, vector<8x6xf32> -> vector<8x6xf32>
    %118 = arith.addf %112, %117 : vector<8x6xf32>
    %c0_116 = arith.constant 0 : index
    %c27 = arith.constant 27 : index
    %c0_117 = arith.constant 0 : index
    %119 = vector.load %arg13[%c0_116, %c27, %c0_117] : memref<8x73x64xbf16, #tpu.memory_space<vmem>>, vector<8x1x64xbf16>
    %120 = vector.shape_cast %119 : vector<8x1x64xbf16> to vector<8x64xbf16>
    %c19 = arith.constant 19 : index
    %c0_118 = arith.constant 0 : index
    %c0_119 = arith.constant 0 : index
    %121 = vector.load %arg8[%c19, %c0_118, %c0_119] : memref<49x64x6xbf16, #tpu.memory_space<vmem>>, vector<1x64x6xbf16>
    %122 = vector.shape_cast %121 : vector<1x64x6xbf16> to vector<64x6xbf16>
    %cst_120 = arith.constant dense<0.000000e+00> : vector<8x6xf32>
    %123 = tpu.matmul %120, %122, %cst_120 {dimension_numbers = #tpu.dot_dimension_numbers<[1], [0], [0], [1], [0, 0, 1, 1], [], []>} : vector<8x64xbf16>, vector<64x6xbf16>, vector<8x6xf32> -> vector<8x6xf32>
    %124 = arith.addf %118, %123 : vector<8x6xf32>
    %c0_121 = arith.constant 0 : index
    %c28 = arith.constant 28 : index
    %c0_122 = arith.constant 0 : index
    %125 = vector.load %arg13[%c0_121, %c28, %c0_122] : memref<8x73x64xbf16, #tpu.memory_space<vmem>>, vector<8x1x64xbf16>
    %126 = vector.shape_cast %125 : vector<8x1x64xbf16> to vector<8x64xbf16>
    %c20 = arith.constant 20 : index
    %c0_123 = arith.constant 0 : index
    %c0_124 = arith.constant 0 : index
    %127 = vector.load %arg8[%c20, %c0_123, %c0_124] : memref<49x64x6xbf16, #tpu.memory_space<vmem>>, vector<1x64x6xbf16>
    %128 = vector.shape_cast %127 : vector<1x64x6xbf16> to vector<64x6xbf16>
    %cst_125 = arith.constant dense<0.000000e+00> : vector<8x6xf32>
    %129 = tpu.matmul %126, %128, %cst_125 {dimension_numbers = #tpu.dot_dimension_numbers<[1], [0], [0], [1], [0, 0, 1, 1], [], []>} : vector<8x64xbf16>, vector<64x6xbf16>, vector<8x6xf32> -> vector<8x6xf32>
    %130 = arith.addf %124, %129 : vector<8x6xf32>
    %c0_126 = arith.constant 0 : index
    %c33 = arith.constant 33 : index
    %c0_127 = arith.constant 0 : index
    %131 = vector.load %arg13[%c0_126, %c33, %c0_127] : memref<8x73x64xbf16, #tpu.memory_space<vmem>>, vector<8x1x64xbf16>
    %132 = vector.shape_cast %131 : vector<8x1x64xbf16> to vector<8x64xbf16>
    %c21 = arith.constant 21 : index
    %c0_128 = arith.constant 0 : index
    %c0_129 = arith.constant 0 : index
    %133 = vector.load %arg8[%c21, %c0_128, %c0_129] : memref<49x64x6xbf16, #tpu.memory_space<vmem>>, vector<1x64x6xbf16>
    %134 = vector.shape_cast %133 : vector<1x64x6xbf16> to vector<64x6xbf16>
    %cst_130 = arith.constant dense<0.000000e+00> : vector<8x6xf32>
    %135 = tpu.matmul %132, %134, %cst_130 {dimension_numbers = #tpu.dot_dimension_numbers<[1], [0], [0], [1], [0, 0, 1, 1], [], []>} : vector<8x64xbf16>, vector<64x6xbf16>, vector<8x6xf32> -> vector<8x6xf32>
    %136 = arith.addf %130, %135 : vector<8x6xf32>
    %c0_131 = arith.constant 0 : index
    %c34 = arith.constant 34 : index
    %c0_132 = arith.constant 0 : index
    %137 = vector.load %arg13[%c0_131, %c34, %c0_132] : memref<8x73x64xbf16, #tpu.memory_space<vmem>>, vector<8x1x64xbf16>
    %138 = vector.shape_cast %137 : vector<8x1x64xbf16> to vector<8x64xbf16>
    %c22_133 = arith.constant 22 : index
    %c0_134 = arith.constant 0 : index
    %c0_135 = arith.constant 0 : index
    %139 = vector.load %arg8[%c22_133, %c0_134, %c0_135] : memref<49x64x6xbf16, #tpu.memory_space<vmem>>, vector<1x64x6xbf16>
    %140 = vector.shape_cast %139 : vector<1x64x6xbf16> to vector<64x6xbf16>
    %cst_136 = arith.constant dense<0.000000e+00> : vector<8x6xf32>
    %141 = tpu.matmul %138, %140, %cst_136 {dimension_numbers = #tpu.dot_dimension_numbers<[1], [0], [0], [1], [0, 0, 1, 1], [], []>} : vector<8x64xbf16>, vector<64x6xbf16>, vector<8x6xf32> -> vector<8x6xf32>
    %142 = arith.addf %136, %141 : vector<8x6xf32>
    %c0_137 = arith.constant 0 : index
    %c35 = arith.constant 35 : index
    %c0_138 = arith.constant 0 : index
    %143 = vector.load %arg13[%c0_137, %c35, %c0_138] : memref<8x73x64xbf16, #tpu.memory_space<vmem>>, vector<8x1x64xbf16>
    %144 = vector.shape_cast %143 : vector<8x1x64xbf16> to vector<8x64xbf16>
    %c23_139 = arith.constant 23 : index
    %c0_140 = arith.constant 0 : index
    %c0_141 = arith.constant 0 : index
    %145 = vector.load %arg8[%c23_139, %c0_140, %c0_141] : memref<49x64x6xbf16, #tpu.memory_space<vmem>>, vector<1x64x6xbf16>
    %146 = vector.shape_cast %145 : vector<1x64x6xbf16> to vector<64x6xbf16>
    %cst_142 = arith.constant dense<0.000000e+00> : vector<8x6xf32>
    %147 = tpu.matmul %144, %146, %cst_142 {dimension_numbers = #tpu.dot_dimension_numbers<[1], [0], [0], [1], [0, 0, 1, 1], [], []>} : vector<8x64xbf16>, vector<64x6xbf16>, vector<8x6xf32> -> vector<8x6xf32>
    %148 = arith.addf %142, %147 : vector<8x6xf32>
    %c0_143 = arith.constant 0 : index
    %c36 = arith.constant 36 : index
    %c0_144 = arith.constant 0 : index
    %149 = vector.load %arg13[%c0_143, %c36, %c0_144] : memref<8x73x64xbf16, #tpu.memory_space<vmem>>, vector<8x1x64xbf16>
    %150 = vector.shape_cast %149 : vector<8x1x64xbf16> to vector<8x64xbf16>
    %c24_145 = arith.constant 24 : index
    %c0_146 = arith.constant 0 : index
    %c0_147 = arith.constant 0 : index
    %151 = vector.load %arg8[%c24_145, %c0_146, %c0_147] : memref<49x64x6xbf16, #tpu.memory_space<vmem>>, vector<1x64x6xbf16>
    %152 = vector.shape_cast %151 : vector<1x64x6xbf16> to vector<64x6xbf16>
    %cst_148 = arith.constant dense<0.000000e+00> : vector<8x6xf32>
    %153 = tpu.matmul %150, %152, %cst_148 {dimension_numbers = #tpu.dot_dimension_numbers<[1], [0], [0], [1], [0, 0, 1, 1], [], []>} : vector<8x64xbf16>, vector<64x6xbf16>, vector<8x6xf32> -> vector<8x6xf32>
    %154 = arith.addf %148, %153 : vector<8x6xf32>
    %c0_149 = arith.constant 0 : index
    %c37 = arith.constant 37 : index
    %c0_150 = arith.constant 0 : index
    %155 = vector.load %arg13[%c0_149, %c37, %c0_150] : memref<8x73x64xbf16, #tpu.memory_space<vmem>>, vector<8x1x64xbf16>
    %156 = vector.shape_cast %155 : vector<8x1x64xbf16> to vector<8x64xbf16>
    %c25_151 = arith.constant 25 : index
    %c0_152 = arith.constant 0 : index
    %c0_153 = arith.constant 0 : index
    %157 = vector.load %arg8[%c25_151, %c0_152, %c0_153] : memref<49x64x6xbf16, #tpu.memory_space<vmem>>, vector<1x64x6xbf16>
    %158 = vector.shape_cast %157 : vector<1x64x6xbf16> to vector<64x6xbf16>
    %cst_154 = arith.constant dense<0.000000e+00> : vector<8x6xf32>
    %159 = tpu.matmul %156, %158, %cst_154 {dimension_numbers = #tpu.dot_dimension_numbers<[1], [0], [0], [1], [0, 0, 1, 1], [], []>} : vector<8x64xbf16>, vector<64x6xbf16>, vector<8x6xf32> -> vector<8x6xf32>
    %160 = arith.addf %154, %159 : vector<8x6xf32>
    %c0_155 = arith.constant 0 : index
    %c38 = arith.constant 38 : index
    %c0_156 = arith.constant 0 : index
    %161 = vector.load %arg13[%c0_155, %c38, %c0_156] : memref<8x73x64xbf16, #tpu.memory_space<vmem>>, vector<8x1x64xbf16>
    %162 = vector.shape_cast %161 : vector<8x1x64xbf16> to vector<8x64xbf16>
    %c26_157 = arith.constant 26 : index
    %c0_158 = arith.constant 0 : index
    %c0_159 = arith.constant 0 : index
    %163 = vector.load %arg8[%c26_157, %c0_158, %c0_159] : memref<49x64x6xbf16, #tpu.memory_space<vmem>>, vector<1x64x6xbf16>
    %164 = vector.shape_cast %163 : vector<1x64x6xbf16> to vector<64x6xbf16>
    %cst_160 = arith.constant dense<0.000000e+00> : vector<8x6xf32>
    %165 = tpu.matmul %162, %164, %cst_160 {dimension_numbers = #tpu.dot_dimension_numbers<[1], [0], [0], [1], [0, 0, 1, 1], [], []>} : vector<8x64xbf16>, vector<64x6xbf16>, vector<8x6xf32> -> vector<8x6xf32>
    %166 = arith.addf %160, %165 : vector<8x6xf32>
    %c0_161 = arith.constant 0 : index
    %c39 = arith.constant 39 : index
    %c0_162 = arith.constant 0 : index
    %167 = vector.load %arg13[%c0_161, %c39, %c0_162] : memref<8x73x64xbf16, #tpu.memory_space<vmem>>, vector<8x1x64xbf16>
    %168 = vector.shape_cast %167 : vector<8x1x64xbf16> to vector<8x64xbf16>
    %c27_163 = arith.constant 27 : index
    %c0_164 = arith.constant 0 : index
    %c0_165 = arith.constant 0 : index
    %169 = vector.load %arg8[%c27_163, %c0_164, %c0_165] : memref<49x64x6xbf16, #tpu.memory_space<vmem>>, vector<1x64x6xbf16>
    %170 = vector.shape_cast %169 : vector<1x64x6xbf16> to vector<64x6xbf16>
    %cst_166 = arith.constant dense<0.000000e+00> : vector<8x6xf32>
    %171 = tpu.matmul %168, %170, %cst_166 {dimension_numbers = #tpu.dot_dimension_numbers<[1], [0], [0], [1], [0, 0, 1, 1], [], []>} : vector<8x64xbf16>, vector<64x6xbf16>, vector<8x6xf32> -> vector<8x6xf32>
    %172 = arith.addf %166, %171 : vector<8x6xf32>
    %c0_167 = arith.constant 0 : index
    %c44 = arith.constant 44 : index
    %c0_168 = arith.constant 0 : index
    %173 = vector.load %arg13[%c0_167, %c44, %c0_168] : memref<8x73x64xbf16, #tpu.memory_space<vmem>>, vector<8x1x64xbf16>
    %174 = vector.shape_cast %173 : vector<8x1x64xbf16> to vector<8x64xbf16>
    %c28_169 = arith.constant 28 : index
    %c0_170 = arith.constant 0 : index
    %c0_171 = arith.constant 0 : index
    %175 = vector.load %arg8[%c28_169, %c0_170, %c0_171] : memref<49x64x6xbf16, #tpu.memory_space<vmem>>, vector<1x64x6xbf16>
    %176 = vector.shape_cast %175 : vector<1x64x6xbf16> to vector<64x6xbf16>
    %cst_172 = arith.constant dense<0.000000e+00> : vector<8x6xf32>
    %177 = tpu.matmul %174, %176, %cst_172 {dimension_numbers = #tpu.dot_dimension_numbers<[1], [0], [0], [1], [0, 0, 1, 1], [], []>} : vector<8x64xbf16>, vector<64x6xbf16>, vector<8x6xf32> -> vector<8x6xf32>
    %178 = arith.addf %172, %177 : vector<8x6xf32>
    %c0_173 = arith.constant 0 : index
    %c45 = arith.constant 45 : index
    %c0_174 = arith.constant 0 : index
    %179 = vector.load %arg13[%c0_173, %c45, %c0_174] : memref<8x73x64xbf16, #tpu.memory_space<vmem>>, vector<8x1x64xbf16>
    %180 = vector.shape_cast %179 : vector<8x1x64xbf16> to vector<8x64xbf16>
    %c29 = arith.constant 29 : index
    %c0_175 = arith.constant 0 : index
    %c0_176 = arith.constant 0 : index
    %181 = vector.load %arg8[%c29, %c0_175, %c0_176] : memref<49x64x6xbf16, #tpu.memory_space<vmem>>, vector<1x64x6xbf16>
    %182 = vector.shape_cast %181 : vector<1x64x6xbf16> to vector<64x6xbf16>
    %cst_177 = arith.constant dense<0.000000e+00> : vector<8x6xf32>
    %183 = tpu.matmul %180, %182, %cst_177 {dimension_numbers = #tpu.dot_dimension_numbers<[1], [0], [0], [1], [0, 0, 1, 1], [], []>} : vector<8x64xbf16>, vector<64x6xbf16>, vector<8x6xf32> -> vector<8x6xf32>
    %184 = arith.addf %178, %183 : vector<8x6xf32>
    %c0_178 = arith.constant 0 : index
    %c46 = arith.constant 46 : index
    %c0_179 = arith.constant 0 : index
    %185 = vector.load %arg13[%c0_178, %c46, %c0_179] : memref<8x73x64xbf16, #tpu.memory_space<vmem>>, vector<8x1x64xbf16>
    %186 = vector.shape_cast %185 : vector<8x1x64xbf16> to vector<8x64xbf16>
    %c30 = arith.constant 30 : index
    %c0_180 = arith.constant 0 : index
    %c0_181 = arith.constant 0 : index
    %187 = vector.load %arg8[%c30, %c0_180, %c0_181] : memref<49x64x6xbf16, #tpu.memory_space<vmem>>, vector<1x64x6xbf16>
    %188 = vector.shape_cast %187 : vector<1x64x6xbf16> to vector<64x6xbf16>
    %cst_182 = arith.constant dense<0.000000e+00> : vector<8x6xf32>
    %189 = tpu.matmul %186, %188, %cst_182 {dimension_numbers = #tpu.dot_dimension_numbers<[1], [0], [0], [1], [0, 0, 1, 1], [], []>} : vector<8x64xbf16>, vector<64x6xbf16>, vector<8x6xf32> -> vector<8x6xf32>
    %190 = arith.addf %184, %189 : vector<8x6xf32>
    %c0_183 = arith.constant 0 : index
    %c47 = arith.constant 47 : index
    %c0_184 = arith.constant 0 : index
    %191 = vector.load %arg13[%c0_183, %c47, %c0_184] : memref<8x73x64xbf16, #tpu.memory_space<vmem>>, vector<8x1x64xbf16>
    %192 = vector.shape_cast %191 : vector<8x1x64xbf16> to vector<8x64xbf16>
    %c31 = arith.constant 31 : index
    %c0_185 = arith.constant 0 : index
    %c0_186 = arith.constant 0 : index
    %193 = vector.load %arg8[%c31, %c0_185, %c0_186] : memref<49x64x6xbf16, #tpu.memory_space<vmem>>, vector<1x64x6xbf16>
    %194 = vector.shape_cast %193 : vector<1x64x6xbf16> to vector<64x6xbf16>
    %cst_187 = arith.constant dense<0.000000e+00> : vector<8x6xf32>
    %195 = tpu.matmul %192, %194, %cst_187 {dimension_numbers = #tpu.dot_dimension_numbers<[1], [0], [0], [1], [0, 0, 1, 1], [], []>} : vector<8x64xbf16>, vector<64x6xbf16>, vector<8x6xf32> -> vector<8x6xf32>
    %196 = arith.addf %190, %195 : vector<8x6xf32>
    %c0_188 = arith.constant 0 : index
    %c48 = arith.constant 48 : index
    %c0_189 = arith.constant 0 : index
    %197 = vector.load %arg13[%c0_188, %c48, %c0_189] : memref<8x73x64xbf16, #tpu.memory_space<vmem>>, vector<8x1x64xbf16>
    %198 = vector.shape_cast %197 : vector<8x1x64xbf16> to vector<8x64xbf16>
    %c32 = arith.constant 32 : index
    %c0_190 = arith.constant 0 : index
    %c0_191 = arith.constant 0 : index
    %199 = vector.load %arg8[%c32, %c0_190, %c0_191] : memref<49x64x6xbf16, #tpu.memory_space<vmem>>, vector<1x64x6xbf16>
    %200 = vector.shape_cast %199 : vector<1x64x6xbf16> to vector<64x6xbf16>
    %cst_192 = arith.constant dense<0.000000e+00> : vector<8x6xf32>
    %201 = tpu.matmul %198, %200, %cst_192 {dimension_numbers = #tpu.dot_dimension_numbers<[1], [0], [0], [1], [0, 0, 1, 1], [], []>} : vector<8x64xbf16>, vector<64x6xbf16>, vector<8x6xf32> -> vector<8x6xf32>
    %202 = arith.addf %196, %201 : vector<8x6xf32>
    %c0_193 = arith.constant 0 : index
    %c49 = arith.constant 49 : index
    %c0_194 = arith.constant 0 : index
    %203 = vector.load %arg13[%c0_193, %c49, %c0_194] : memref<8x73x64xbf16, #tpu.memory_space<vmem>>, vector<8x1x64xbf16>
    %204 = vector.shape_cast %203 : vector<8x1x64xbf16> to vector<8x64xbf16>
    %c33_195 = arith.constant 33 : index
    %c0_196 = arith.constant 0 : index
    %c0_197 = arith.constant 0 : index
    %205 = vector.load %arg8[%c33_195, %c0_196, %c0_197] : memref<49x64x6xbf16, #tpu.memory_space<vmem>>, vector<1x64x6xbf16>
    %206 = vector.shape_cast %205 : vector<1x64x6xbf16> to vector<64x6xbf16>
    %cst_198 = arith.constant dense<0.000000e+00> : vector<8x6xf32>
    %207 = tpu.matmul %204, %206, %cst_198 {dimension_numbers = #tpu.dot_dimension_numbers<[1], [0], [0], [1], [0, 0, 1, 1], [], []>} : vector<8x64xbf16>, vector<64x6xbf16>, vector<8x6xf32> -> vector<8x6xf32>
    %208 = arith.addf %202, %207 : vector<8x6xf32>
    %c0_199 = arith.constant 0 : index
    %c50 = arith.constant 50 : index
    %c0_200 = arith.constant 0 : index
    %209 = vector.load %arg13[%c0_199, %c50, %c0_200] : memref<8x73x64xbf16, #tpu.memory_space<vmem>>, vector<8x1x64xbf16>
    %210 = vector.shape_cast %209 : vector<8x1x64xbf16> to vector<8x64xbf16>
    %c34_201 = arith.constant 34 : index
    %c0_202 = arith.constant 0 : index
    %c0_203 = arith.constant 0 : index
    %211 = vector.load %arg8[%c34_201, %c0_202, %c0_203] : memref<49x64x6xbf16, #tpu.memory_space<vmem>>, vector<1x64x6xbf16>
    %212 = vector.shape_cast %211 : vector<1x64x6xbf16> to vector<64x6xbf16>
    %cst_204 = arith.constant dense<0.000000e+00> : vector<8x6xf32>
    %213 = tpu.matmul %210, %212, %cst_204 {dimension_numbers = #tpu.dot_dimension_numbers<[1], [0], [0], [1], [0, 0, 1, 1], [], []>} : vector<8x64xbf16>, vector<64x6xbf16>, vector<8x6xf32> -> vector<8x6xf32>
    %214 = arith.addf %208, %213 : vector<8x6xf32>
    %c0_205 = arith.constant 0 : index
    %c55 = arith.constant 55 : index
    %c0_206 = arith.constant 0 : index
    %215 = vector.load %arg13[%c0_205, %c55, %c0_206] : memref<8x73x64xbf16, #tpu.memory_space<vmem>>, vector<8x1x64xbf16>
    %216 = vector.shape_cast %215 : vector<8x1x64xbf16> to vector<8x64xbf16>
    %c35_207 = arith.constant 35 : index
    %c0_208 = arith.constant 0 : index
    %c0_209 = arith.constant 0 : index
    %217 = vector.load %arg8[%c35_207, %c0_208, %c0_209] : memref<49x64x6xbf16, #tpu.memory_space<vmem>>, vector<1x64x6xbf16>
    %218 = vector.shape_cast %217 : vector<1x64x6xbf16> to vector<64x6xbf16>
    %cst_210 = arith.constant dense<0.000000e+00> : vector<8x6xf32>
    %219 = tpu.matmul %216, %218, %cst_210 {dimension_numbers = #tpu.dot_dimension_numbers<[1], [0], [0], [1], [0, 0, 1, 1], [], []>} : vector<8x64xbf16>, vector<64x6xbf16>, vector<8x6xf32> -> vector<8x6xf32>
    %220 = arith.addf %214, %219 : vector<8x6xf32>
    %c0_211 = arith.constant 0 : index
    %c56 = arith.constant 56 : index
    %c0_212 = arith.constant 0 : index
    %221 = vector.load %arg13[%c0_211, %c56, %c0_212] : memref<8x73x64xbf16, #tpu.memory_space<vmem>>, vector<8x1x64xbf16>
    %222 = vector.shape_cast %221 : vector<8x1x64xbf16> to vector<8x64xbf16>
    %c36_213 = arith.constant 36 : index
    %c0_214 = arith.constant 0 : index
    %c0_215 = arith.constant 0 : index
    %223 = vector.load %arg8[%c36_213, %c0_214, %c0_215] : memref<49x64x6xbf16, #tpu.memory_space<vmem>>, vector<1x64x6xbf16>
    %224 = vector.shape_cast %223 : vector<1x64x6xbf16> to vector<64x6xbf16>
    %cst_216 = arith.constant dense<0.000000e+00> : vector<8x6xf32>
    %225 = tpu.matmul %222, %224, %cst_216 {dimension_numbers = #tpu.dot_dimension_numbers<[1], [0], [0], [1], [0, 0, 1, 1], [], []>} : vector<8x64xbf16>, vector<64x6xbf16>, vector<8x6xf32> -> vector<8x6xf32>
    %226 = arith.addf %220, %225 : vector<8x6xf32>
    %c0_217 = arith.constant 0 : index
    %c57 = arith.constant 57 : index
    %c0_218 = arith.constant 0 : index
    %227 = vector.load %arg13[%c0_217, %c57, %c0_218] : memref<8x73x64xbf16, #tpu.memory_space<vmem>>, vector<8x1x64xbf16>
    %228 = vector.shape_cast %227 : vector<8x1x64xbf16> to vector<8x64xbf16>
    %c37_219 = arith.constant 37 : index
    %c0_220 = arith.constant 0 : index
    %c0_221 = arith.constant 0 : index
    %229 = vector.load %arg8[%c37_219, %c0_220, %c0_221] : memref<49x64x6xbf16, #tpu.memory_space<vmem>>, vector<1x64x6xbf16>
    %230 = vector.shape_cast %229 : vector<1x64x6xbf16> to vector<64x6xbf16>
    %cst_222 = arith.constant dense<0.000000e+00> : vector<8x6xf32>
    %231 = tpu.matmul %228, %230, %cst_222 {dimension_numbers = #tpu.dot_dimension_numbers<[1], [0], [0], [1], [0, 0, 1, 1], [], []>} : vector<8x64xbf16>, vector<64x6xbf16>, vector<8x6xf32> -> vector<8x6xf32>
    %232 = arith.addf %226, %231 : vector<8x6xf32>
    %c0_223 = arith.constant 0 : index
    %c58 = arith.constant 58 : index
    %c0_224 = arith.constant 0 : index
    %233 = vector.load %arg13[%c0_223, %c58, %c0_224] : memref<8x73x64xbf16, #tpu.memory_space<vmem>>, vector<8x1x64xbf16>
    %234 = vector.shape_cast %233 : vector<8x1x64xbf16> to vector<8x64xbf16>
    %c38_225 = arith.constant 38 : index
    %c0_226 = arith.constant 0 : index
    %c0_227 = arith.constant 0 : index
    %235 = vector.load %arg8[%c38_225, %c0_226, %c0_227] : memref<49x64x6xbf16, #tpu.memory_space<vmem>>, vector<1x64x6xbf16>
    %236 = vector.shape_cast %235 : vector<1x64x6xbf16> to vector<64x6xbf16>
    %cst_228 = arith.constant dense<0.000000e+00> : vector<8x6xf32>
    %237 = tpu.matmul %234, %236, %cst_228 {dimension_numbers = #tpu.dot_dimension_numbers<[1], [0], [0], [1], [0, 0, 1, 1], [], []>} : vector<8x64xbf16>, vector<64x6xbf16>, vector<8x6xf32> -> vector<8x6xf32>
    %238 = arith.addf %232, %237 : vector<8x6xf32>
    %c0_229 = arith.constant 0 : index
    %c59 = arith.constant 59 : index
    %c0_230 = arith.constant 0 : index
    %239 = vector.load %arg13[%c0_229, %c59, %c0_230] : memref<8x73x64xbf16, #tpu.memory_space<vmem>>, vector<8x1x64xbf16>
    %240 = vector.shape_cast %239 : vector<8x1x64xbf16> to vector<8x64xbf16>
    %c39_231 = arith.constant 39 : index
    %c0_232 = arith.constant 0 : index
    %c0_233 = arith.constant 0 : index
    %241 = vector.load %arg8[%c39_231, %c0_232, %c0_233] : memref<49x64x6xbf16, #tpu.memory_space<vmem>>, vector<1x64x6xbf16>
    %242 = vector.shape_cast %241 : vector<1x64x6xbf16> to vector<64x6xbf16>
    %cst_234 = arith.constant dense<0.000000e+00> : vector<8x6xf32>
    %243 = tpu.matmul %240, %242, %cst_234 {dimension_numbers = #tpu.dot_dimension_numbers<[1], [0], [0], [1], [0, 0, 1, 1], [], []>} : vector<8x64xbf16>, vector<64x6xbf16>, vector<8x6xf32> -> vector<8x6xf32>
    %244 = arith.addf %238, %243 : vector<8x6xf32>
    %c0_235 = arith.constant 0 : index
    %c60 = arith.constant 60 : index
    %c0_236 = arith.constant 0 : index
    %245 = vector.load %arg13[%c0_235, %c60, %c0_236] : memref<8x73x64xbf16, #tpu.memory_space<vmem>>, vector<8x1x64xbf16>
    %246 = vector.shape_cast %245 : vector<8x1x64xbf16> to vector<8x64xbf16>
    %c40 = arith.constant 40 : index
    %c0_237 = arith.constant 0 : index
    %c0_238 = arith.constant 0 : index
    %247 = vector.load %arg8[%c40, %c0_237, %c0_238] : memref<49x64x6xbf16, #tpu.memory_space<vmem>>, vector<1x64x6xbf16>
    %248 = vector.shape_cast %247 : vector<1x64x6xbf16> to vector<64x6xbf16>
    %cst_239 = arith.constant dense<0.000000e+00> : vector<8x6xf32>
    %249 = tpu.matmul %246, %248, %cst_239 {dimension_numbers = #tpu.dot_dimension_numbers<[1], [0], [0], [1], [0, 0, 1, 1], [], []>} : vector<8x64xbf16>, vector<64x6xbf16>, vector<8x6xf32> -> vector<8x6xf32>
    %250 = arith.addf %244, %249 : vector<8x6xf32>
    %c0_240 = arith.constant 0 : index
    %c61 = arith.constant 61 : index
    %c0_241 = arith.constant 0 : index
    %251 = vector.load %arg13[%c0_240, %c61, %c0_241] : memref<8x73x64xbf16, #tpu.memory_space<vmem>>, vector<8x1x64xbf16>
    %252 = vector.shape_cast %251 : vector<8x1x64xbf16> to vector<8x64xbf16>
    %c41 = arith.constant 41 : index
    %c0_242 = arith.constant 0 : index
    %c0_243 = arith.constant 0 : index
    %253 = vector.load %arg8[%c41, %c0_242, %c0_243] : memref<49x64x6xbf16, #tpu.memory_space<vmem>>, vector<1x64x6xbf16>
    %254 = vector.shape_cast %253 : vector<1x64x6xbf16> to vector<64x6xbf16>
    %cst_244 = arith.constant dense<0.000000e+00> : vector<8x6xf32>
    %255 = tpu.matmul %252, %254, %cst_244 {dimension_numbers = #tpu.dot_dimension_numbers<[1], [0], [0], [1], [0, 0, 1, 1], [], []>} : vector<8x64xbf16>, vector<64x6xbf16>, vector<8x6xf32> -> vector<8x6xf32>
    %256 = arith.addf %250, %255 : vector<8x6xf32>
    %c0_245 = arith.constant 0 : index
    %c66 = arith.constant 66 : index
    %c0_246 = arith.constant 0 : index
    %257 = vector.load %arg13[%c0_245, %c66, %c0_246] : memref<8x73x64xbf16, #tpu.memory_space<vmem>>, vector<8x1x64xbf16>
    %258 = vector.shape_cast %257 : vector<8x1x64xbf16> to vector<8x64xbf16>
    %c42 = arith.constant 42 : index
    %c0_247 = arith.constant 0 : index
    %c0_248 = arith.constant 0 : index
    %259 = vector.load %arg8[%c42, %c0_247, %c0_248] : memref<49x64x6xbf16, #tpu.memory_space<vmem>>, vector<1x64x6xbf16>
    %260 = vector.shape_cast %259 : vector<1x64x6xbf16> to vector<64x6xbf16>
    %cst_249 = arith.constant dense<0.000000e+00> : vector<8x6xf32>
    %261 = tpu.matmul %258, %260, %cst_249 {dimension_numbers = #tpu.dot_dimension_numbers<[1], [0], [0], [1], [0, 0, 1, 1], [], []>} : vector<8x64xbf16>, vector<64x6xbf16>, vector<8x6xf32> -> vector<8x6xf32>
    %262 = arith.addf %256, %261 : vector<8x6xf32>
    %c0_250 = arith.constant 0 : index
    %c67 = arith.constant 67 : index
    %c0_251 = arith.constant 0 : index
    %263 = vector.load %arg13[%c0_250, %c67, %c0_251] : memref<8x73x64xbf16, #tpu.memory_space<vmem>>, vector<8x1x64xbf16>
    %264 = vector.shape_cast %263 : vector<8x1x64xbf16> to vector<8x64xbf16>
    %c43 = arith.constant 43 : index
    %c0_252 = arith.constant 0 : index
    %c0_253 = arith.constant 0 : index
    %265 = vector.load %arg8[%c43, %c0_252, %c0_253] : memref<49x64x6xbf16, #tpu.memory_space<vmem>>, vector<1x64x6xbf16>
    %266 = vector.shape_cast %265 : vector<1x64x6xbf16> to vector<64x6xbf16>
    %cst_254 = arith.constant dense<0.000000e+00> : vector<8x6xf32>
    %267 = tpu.matmul %264, %266, %cst_254 {dimension_numbers = #tpu.dot_dimension_numbers<[1], [0], [0], [1], [0, 0, 1, 1], [], []>} : vector<8x64xbf16>, vector<64x6xbf16>, vector<8x6xf32> -> vector<8x6xf32>
    %268 = arith.addf %262, %267 : vector<8x6xf32>
    %c0_255 = arith.constant 0 : index
    %c68 = arith.constant 68 : index
    %c0_256 = arith.constant 0 : index
    %269 = vector.load %arg13[%c0_255, %c68, %c0_256] : memref<8x73x64xbf16, #tpu.memory_space<vmem>>, vector<8x1x64xbf16>
    %270 = vector.shape_cast %269 : vector<8x1x64xbf16> to vector<8x64xbf16>
    %c44_257 = arith.constant 44 : index
    %c0_258 = arith.constant 0 : index
    %c0_259 = arith.constant 0 : index
    %271 = vector.load %arg8[%c44_257, %c0_258, %c0_259] : memref<49x64x6xbf16, #tpu.memory_space<vmem>>, vector<1x64x6xbf16>
    %272 = vector.shape_cast %271 : vector<1x64x6xbf16> to vector<64x6xbf16>
    %cst_260 = arith.constant dense<0.000000e+00> : vector<8x6xf32>
    %273 = tpu.matmul %270, %272, %cst_260 {dimension_numbers = #tpu.dot_dimension_numbers<[1], [0], [0], [1], [0, 0, 1, 1], [], []>} : vector<8x64xbf16>, vector<64x6xbf16>, vector<8x6xf32> -> vector<8x6xf32>
    %274 = arith.addf %268, %273 : vector<8x6xf32>
    %c0_261 = arith.constant 0 : index
    %c69 = arith.constant 69 : index
    %c0_262 = arith.constant 0 : index
    %275 = vector.load %arg13[%c0_261, %c69, %c0_262] : memref<8x73x64xbf16, #tpu.memory_space<vmem>>, vector<8x1x64xbf16>
    %276 = vector.shape_cast %275 : vector<8x1x64xbf16> to vector<8x64xbf16>
    %c45_263 = arith.constant 45 : index
    %c0_264 = arith.constant 0 : index
    %c0_265 = arith.constant 0 : index
    %277 = vector.load %arg8[%c45_263, %c0_264, %c0_265] : memref<49x64x6xbf16, #tpu.memory_space<vmem>>, vector<1x64x6xbf16>
    %278 = vector.shape_cast %277 : vector<1x64x6xbf16> to vector<64x6xbf16>
    %cst_266 = arith.constant dense<0.000000e+00> : vector<8x6xf32>
    %279 = tpu.matmul %276, %278, %cst_266 {dimension_numbers = #tpu.dot_dimension_numbers<[1], [0], [0], [1], [0, 0, 1, 1], [], []>} : vector<8x64xbf16>, vector<64x6xbf16>, vector<8x6xf32> -> vector<8x6xf32>
    %280 = arith.addf %274, %279 : vector<8x6xf32>
    %c0_267 = arith.constant 0 : index
    %c70 = arith.constant 70 : index
    %c0_268 = arith.constant 0 : index
    %281 = vector.load %arg13[%c0_267, %c70, %c0_268] : memref<8x73x64xbf16, #tpu.memory_space<vmem>>, vector<8x1x64xbf16>
    %282 = vector.shape_cast %281 : vector<8x1x64xbf16> to vector<8x64xbf16>
    %c46_269 = arith.constant 46 : index
    %c0_270 = arith.constant 0 : index
    %c0_271 = arith.constant 0 : index
    %283 = vector.load %arg8[%c46_269, %c0_270, %c0_271] : memref<49x64x6xbf16, #tpu.memory_space<vmem>>, vector<1x64x6xbf16>
    %284 = vector.shape_cast %283 : vector<1x64x6xbf16> to vector<64x6xbf16>
    %cst_272 = arith.constant dense<0.000000e+00> : vector<8x6xf32>
    %285 = tpu.matmul %282, %284, %cst_272 {dimension_numbers = #tpu.dot_dimension_numbers<[1], [0], [0], [1], [0, 0, 1, 1], [], []>} : vector<8x64xbf16>, vector<64x6xbf16>, vector<8x6xf32> -> vector<8x6xf32>
    %286 = arith.addf %280, %285 : vector<8x6xf32>
    %c0_273 = arith.constant 0 : index
    %c71 = arith.constant 71 : index
    %c0_274 = arith.constant 0 : index
    %287 = vector.load %arg13[%c0_273, %c71, %c0_274] : memref<8x73x64xbf16, #tpu.memory_space<vmem>>, vector<8x1x64xbf16>
    %288 = vector.shape_cast %287 : vector<8x1x64xbf16> to vector<8x64xbf16>
    %c47_275 = arith.constant 47 : index
    %c0_276 = arith.constant 0 : index
    %c0_277 = arith.constant 0 : index
    %289 = vector.load %arg8[%c47_275, %c0_276, %c0_277] : memref<49x64x6xbf16, #tpu.memory_space<vmem>>, vector<1x64x6xbf16>
    %290 = vector.shape_cast %289 : vector<1x64x6xbf16> to vector<64x6xbf16>
    %cst_278 = arith.constant dense<0.000000e+00> : vector<8x6xf32>
    %291 = tpu.matmul %288, %290, %cst_278 {dimension_numbers = #tpu.dot_dimension_numbers<[1], [0], [0], [1], [0, 0, 1, 1], [], []>} : vector<8x64xbf16>, vector<64x6xbf16>, vector<8x6xf32> -> vector<8x6xf32>
    %292 = arith.addf %286, %291 : vector<8x6xf32>
    %c0_279 = arith.constant 0 : index
    %c72 = arith.constant 72 : index
    %c0_280 = arith.constant 0 : index
    %293 = vector.load %arg13[%c0_279, %c72, %c0_280] : memref<8x73x64xbf16, #tpu.memory_space<vmem>>, vector<8x1x64xbf16>
    %294 = vector.shape_cast %293 : vector<8x1x64xbf16> to vector<8x64xbf16>
    %c48_281 = arith.constant 48 : index
    %c0_282 = arith.constant 0 : index
    %c0_283 = arith.constant 0 : index
    %295 = vector.load %arg8[%c48_281, %c0_282, %c0_283] : memref<49x64x6xbf16, #tpu.memory_space<vmem>>, vector<1x64x6xbf16>
    %296 = vector.shape_cast %295 : vector<1x64x6xbf16> to vector<64x6xbf16>
    %cst_284 = arith.constant dense<0.000000e+00> : vector<8x6xf32>
    %297 = tpu.matmul %294, %296, %cst_284 {dimension_numbers = #tpu.dot_dimension_numbers<[1], [0], [0], [1], [0, 0, 1, 1], [], []>} : vector<8x64xbf16>, vector<64x6xbf16>, vector<8x6xf32> -> vector<8x6xf32>
    %298 = arith.addf %292, %297 : vector<8x6xf32>
    %c0_285 = arith.constant 0 : index
    %c0_286 = arith.constant 0 : index
    %299 = vector.load %arg9[%c0_285, %c0_286] : memref<1x6xf32, #tpu.memory_space<vmem>>, vector<1x6xf32>
    %300 = vector.broadcast %299 : vector<1x6xf32> to vector<8x6xf32>
    %301 = arith.addf %298, %300 : vector<8x6xf32>
    %c0_287 = arith.constant 0 : index
    %c0_288 = arith.constant 0 : index
    %302 = vector.load %arg10[%c0_287, %c0_288] : memref<8x6xf32, #tpu.memory_space<vmem>>, vector<8x6xf32>
    tpu.vector_store %arg10[%c0_287, %c0_288], %301 {strides = array<i32>} : memref<8x6xf32, #tpu.memory_space<vmem>>, vector<8x6xf32>,
    return
  }
  func.func @transform_0(%arg0: i32) -> (i32, i32, i32, i32, i32) {
    %c0_i32 = arith.constant 0 : i32
    %c0_i32_0 = arith.constant 0 : i32
    %c0_i32_1 = arith.constant 0 : i32
    %c0_i32_2 = arith.constant 0 : i32
    %c0_i32_3 = arith.constant 0 : i32
    return %arg0, %c0_i32, %c0_i32_0, %c0_i32_1, %c0_i32_2 : i32, i32, i32, i32, i32
  }
  func.func @transform_1(%arg0: i32) -> (i32, i32, i32, i32) {
    %c0_i32 = arith.constant 0 : i32
    %c0_i32_0 = arith.constant 0 : i32
    %c0_i32_1 = arith.constant 0 : i32
    %c0_i32_2 = arith.constant 0 : i32
    %c0_i32_3 = arith.constant 0 : i32
    return %c0_i32, %c0_i32_0, %c0_i32_1, %c0_i32_2 : i32, i32, i32, i32
  }
  func.func @transform_2(%arg0: i32) -> (i32, i32) {
    %c0_i32 = arith.constant 0 : i32
    %c0_i32_0 = arith.constant 0 : i32
    %c0_i32_1 = arith.constant 0 : i32
    return %c0_i32, %c0_i32_0 : i32, i32
  }
  func.func @transform_3(%arg0: i32) -> (i32, i32, i32, i32) {
    %c0_i32 = arith.constant 0 : i32
    %c0_i32_0 = arith.constant 0 : i32
    %c0_i32_1 = arith.constant 0 : i32
    %c0_i32_2 = arith.constant 0 : i32
    %c0_i32_3 = arith.constant 0 : i32
    return %c0_i32, %c0_i32_0, %c0_i32_1, %c0_i32_2 : i32, i32, i32, i32
  }
  func.func @transform_4(%arg0: i32) -> (i32, i32) {
    %c0_i32 = arith.constant 0 : i32
    %c0_i32_0 = arith.constant 0 : i32
    %c0_i32_1 = arith.constant 0 : i32
    return %c0_i32, %c0_i32_0 : i32, i32
  }
  func.func @transform_5(%arg0: i32) -> (i32, i32, i32) {
    %c0_i32 = arith.constant 0 : i32
    %c0_i32_0 = arith.constant 0 : i32
    %c0_i32_1 = arith.constant 0 : i32
    %c0_i32_2 = arith.constant 0 : i32
    return %c0_i32, %c0_i32_0, %c0_i32_1 : i32, i32, i32
  }
  func.func @transform_6(%arg0: i32) -> (i32, i32) {
    %c0_i32 = arith.constant 0 : i32
    %c0_i32_0 = arith.constant 0 : i32
    %c0_i32_1 = arith.constant 0 : i32
    return %c0_i32, %c0_i32_0 : i32, i32
  }
  func.func @transform_7(%arg0: i32) -> (i32, i32, i32) {
    %c0_i32 = arith.constant 0 : i32
    %c0_i32_0 = arith.constant 0 : i32
    %c0_i32_1 = arith.constant 0 : i32
    %c0_i32_2 = arith.constant 0 : i32
    return %c0_i32, %c0_i32_0, %c0_i32_1 : i32, i32, i32
  }
  func.func @transform_8(%arg0: i32) -> (i32, i32) {
    %c0_i32 = arith.constant 0 : i32
    %c0_i32_0 = arith.constant 0 : i32
    %c0_i32_1 = arith.constant 0 : i32
    return %c0_i32, %c0_i32_0 : i32, i32
  }
  func.func @transform_9(%arg0: i32) -> (i32, i32) {
    %c0_i32 = arith.constant 0 : i32
    %c0_i32_0 = arith.constant 0 : i32
    return %arg0, %c0_i32 : i32, i32
  }
}

</mosaic_0001>

<bundles_post_ra>
// kernel: actor_forward.1
= control target key start
LH: loop header
LB: loop body
LE: loop exit
PB: predicated region body
PF: predicated region fallthrough
CT: control target
= control target key end

     0   :  { %s14934_s30 = smov 0   ;;  %s18361_s0 = inlined_call_operand.vmem [shape: bf16[16,2,2,121,80], index: 0, kind: input, shape index: {}]   ;;  %s18362_s1 = inlined_call_operand.vmem [shape: bf16[2,2,80,16], index: 1, kind: input, shape index: {}]   ;;  %s18363_s2 = inlined_call_operand.vmem [shape: f32[1,16], index: 2, kind: input, shape index: {}]   ;;  %s18364_s3 = inlined_call_operand.vmem [shape: bf16[2,2,64,32], index: 3, kind: input, shape index: {}]   ;;  %s18365_s4 = inlined_call_operand.vmem [shape: f32[1,32], index: 4, kind: input, shape index: {}]   ;;  %s18366_s5 = inlined_call_operand.vmem [shape: bf16[3,96,64], index: 5, kind: input, shape index: {}]   ;;  %s18367_s6 = inlined_call_operand.vmem [shape: f32[1,64], index: 6, kind: input, shape index: {}]   ;;  %s18368_s7 = inlined_call_operand.vmem [shape: bf16[49,64,6], index: 7, kind: input, shape index: {}]   ;;  %s18369_s8 = inlined_call_operand.vmem [shape: f32[1,6], index: 8, kind: input, shape index: {}]   ;;  %s18370_s9 = inlined_call_operand.vmem [shape: f32[16,6], index: 9, kind: output, shape index: {}]  }
   0x1 LB: > { %s10805_s10 = sadd.s32 4294967295, %s14870_s30   ;;  %p10809_p0 = scmp.ge.s32.totalorder %s14870_s30, 1  ;;  %s14870_s30 = sphi %s14934_s30, %s19_s30  }
   0x2   : > { %p289_p1 = scmp.lt.s32.totalorder %s14870_s30, 3 }
   0x4   : > { %p290_p2 = pnand %p10809_p0, %p289_p1 }
   0x5   : > { %s10810_s11 = sshll.u32 (!%p290_p2), %s10805_s10, 3  ;;  %p332_p3 = scmp.lt.s32.totalorder (!%p290_p2), %s10805_s10, 1  ;;  %v14945_v0 = vld [vmem:[%s18363_s2] ss:$0 sm:$0xff] (!%p290_p2) }
   0x6   : > { %293 = sbr.rel (%p290_p2) target bundleno = 2178 (0x882), region = 56  ;;  %v14950_v1 = vld [vmem:[%s18365_s4] ss:$0 sm:$0xff] (!%p290_p2)  ;;  %p326_p4 = scmp.lt.s32.totalorder (!%p290_p2), %s10810_s11, 15 }
   0x7   : > { %v14955_v2 = vld [vmem:[%s18367_s6] ss:$0 sm:$0xff] (!%p290_p2)  ;;  %s14967_s26 = smov (!%p290_p2), 0  }
   0xd   : > { %s18374_s10 = smov (!%p332_p3, %s10805_s10), 1  ;;  %s18376_s11 = smov (!%p326_p4, %s10810_s11), 15 }
   0xe   : > { %s10813_s18 = sshll.u32 %s18374_s10, 3  ;;  %s12152_s19 = sshll.u32 %s18376_s11, 8 }
   0xf   : > { %s14960_s22 = scalar_lea.vmem %s18370_s9, %s10813_s18  ;;  %s14965_s25 = scalar_lea.vmem %s18361_s0, %s12152_s19 }
  0x10 LB: >> { %v14975_v3 = vld [vmem:[%s18362_s1 + $0x28] sm:$0xff]   ;;  %v14876_v4 = vmov 0.0   ;;  %v14984_v5 = vld [vmem:[%s18362_s1 + $0x30] sm:$0xff]   ;;  %s12153_s11 = sshll.u32 %s14874_s26, 8  ;;  %vm14877_vm0 = vmmov 0   ;;  %v15001_v6 = vld [vmem:[%s18362_s1 + $0x38] sm:$0xff]   ;;  %s14874_s26 = sphi %s14967_s26, %s345_s26  }
  0x11   : >> { %12709 = vmatprep.subr.bf16.mxu0 %v14876_v4  ;;  %14145 = vmatprep.subr.bf16.mxu1 %v14876_v4  ;;  %s14994_s12 = scalar_lea.vmem %s14965_s25, %s12153_s11  ;;  %v15010_v7 = vld [vmem:[%s18362_s1 + $0x40] sm:$0xff]   ;;  %v15019_v8 = vld [vmem:[%s18362_s1 + $0x48] sm:$0xff]   ;;  %vm466_vm1 = vcmask 654336   ;;  %v15041_v12 = vld [vmem:[%s18362_s1 + $0x50] sm:$0xff]   ;;  %vm1220_vm2 = vsmask.f32 7424 }
  0x12   : >> { %12710 = vmatpush3.bf16.msra.mxu0 %v14975_v3  ;;  %14150 = vmatpush3.bf16.msra.mxu1 %v14975_v3  ;;  %v15024_v9 = vld [vmem:[%s14994_s12 + $0x40] sm:$0xff]   ;;  %v15027_v10 = vld [vmem:[%s14994_s12 + $0x68] sm:$0xff]   ;;  %v15065_v16 = vld [vmem:[%s18362_s1 + $0x10] sm:$0xff]   ;;  %vm1998_vm3 = vsmask.f32 6400  ;;  %vm2782_vm4 = vcmask 1045504  }
  0x13   : >> { %12711 = vmatprep.subr.bf16.mxu0 %v14876_v4  ;;  %14146 = vmatprep.subr.bf16.mxu1 %v14876_v4  ;;  %v15034_v11 = vld [vmem:[%s18362_s1] sm:$0xff]   ;;  %v15051_v13 = vld [vmem:[%s18362_s1 + $0x8] sm:$0xff]   ;;  %v15071_v17 = vld [vmem:[%s18362_s1 + $0x58] sm:$0xff]   ;;  %s14878_s28 = smov 16   ;;  %s14880_s27 = smov 48   ;;  %vm3118_vm5 = vcmask 130048  }
  0x14   : >> { %12719 = vmatprep.mubr.msk.bf16.mxu0 %vm14877_vm0, %v14876_v4  ;;  %12739 = vmatprep.mubr.msk.bf16.mxu1 %vm14877_vm0, %v14876_v4  ;;  %v15057_v14 = vld [vmem:[%s14994_s12 + $0x48] sm:$0xff]   ;;  %v14284_v15 = vld [vmem:[%s14994_s12] sm:$0xff]   ;;  %v15074_v18 = vld [vmem:[%s14994_s12 + $0x70] sm:$0x7f]   ;;  %vm3133_vm6 = vcmask 261120   ;;  %vm3148_vm7 = vcmask 392192  }
  0x15   : >> { %v15079_v19 = vld [vmem:[%s14994_s12 + $0x8] sm:$0xff]   ;;  %v1223_v20 = vshll.u32 %v14284_v15, 16  ;;  %v15085_v21 = vld [vmem:[%s18362_s1 + $0x18] sm:$0xff]   ;;  %v15092_v23 = vld [vmem:[%s18362_s1 + $0x60] sm:$0xff]   ;;  %v1221_v25 = vshrl.u32 %v14284_v15, 16  ;;  %vm3219_vm8 = vcmask 519168  }
  0x16   : >> { %12712 = vmatpush3.bf16.msra.mxu0 %v14984_v5  ;;  %14151 = vmatpush3.bf16.msra.mxu1 %v14984_v5  ;;  %v1227_v22 = vshll.u32 %v15079_v19, 16  ;;  %v15099_v24 = vld [vmem:[%s14994_s12 + $0x10] sm:$0xff]   ;;  %v15111_v28 = vld [vmem:[%s14994_s12 + $0x18] sm:$0xff]   ;;  %v15117_v30 = vld [vmem:[%s18362_s1 + $0x20] sm:$0xff]   ;;  %v1231_v32 = vshrl.u32 %v15079_v19, 16  ;;  %vm3380_vm9 = vcmask 523264  }
  0x17   : >> { %12713 = vmatprep.subr.bf16.mxu0 %v14876_v4  ;;  %14147 = vmatprep.subr.bf16.mxu1 %v14876_v4  ;;  %v1225_v26 = vrot.slane %v1223_v20, 1  ;;  %v15106_v27 = vld [vmem:[%s14994_s12 + $0x50] sm:$0xff]   ;;  %v1234_v29 = vshll.u32 %v15099_v24, 16  ;;  %v15125_v33 = vld [vmem:[%s18362_s1 + $0x68] sm:$0xff]   ;;  %v15128_v34 = vld [vmem:[%s14994_s12 + $0x20] sm:$0xff]   ;;  %v1241_v35 = vshll.u32 %v15111_v28, 16 }
  0x18   : >> { %v1229_v31 = vrot.slane %v1227_v22, 1  ;;  %v15134_v36 = vld [vmem:[%s14994_s12 + $0x28] sm:$0xff]   ;;  %v1238_v37 = vshrl.u32 %v15099_v24, 16  ;;  %v1248_v39 = vshll.u32 %v15128_v34, 16  ;;  %v15142_v40 = vld [vmem:[%s18362_s1 + $0x78] sm:$0xff]   ;;  %v1245_v41 = vshrl.u32 %v15111_v28, 16 }
  0x19   : >> { %v1236_v38 = vrot.slane %v1234_v29, 1  ;;  %v1255_v42 = vshll.u32 %v15134_v36, 16  ;;  %v15151_v43 = vld [vmem:[%s18362_s1 + $0x70] sm:$0xff]   ;;  %v1243_v44 = vrot.slane %v1241_v35, 1  ;;  %v1252_v45 = vshrl.u32 %v15128_v34, 16  ;;  %v15167_v51 = vld [vmem:[%s14994_s12 + $0x58] sm:$0xff]  }
  0x1a   : >> { %12714 = vmatpush3.bf16.msra.mxu0 %v15001_v6  ;;  %14152 = vmatpush3.bf16.msra.mxu1 %v15001_v6  ;;  %v15158_v46 = vld [vmem:[%s14994_s12 + $0x30] sm:$0x7f]   ;;  %v1250_v47 = vrot.slane %v1248_v39, 1  ;;  %v1259_v48 = vshrl.u32 %v15134_v36, 16  ;;  %v1226_v52 = vor.u32 %v1225_v26, %v1221_v25  ;;  %v1233_v53 = vor.u32 %v1231_v32, %v1229_v31  ;;  %v15175_v56 = vld [vmem:[%s18362_s1 + $0x80] sm:$0xff]   ;;  %v15229_v29 = vld [vmem:[%s18362_s1 + $0x98] sm:$0xff]  }
  0x1b   : >> { %12715 = vmatprep.subr.bf16.mxu0 %v14876_v4  ;;  %14148 = vmatprep.subr.bf16.mxu1 %v14876_v4  ;;  %v1257_v49 = vrot.slane %v1255_v42, 1  ;;  %v1262_v50 = vshll.u32 %v15158_v46, 16  ;;  %v1240_v54 = vor.u32 %v1238_v37, %v1236_v38  ;;  %v1247_v55 = vor.u32 %v1245_v41, %v1243_v44  ;;  %v15212_v25 = vld [vmem:[%s14994_s12 + $0x60] sm:$0xff]   ;;  %v15218_v26 = vld [vmem:[%s18362_s1 + $0x90] sm:$0xff]   ;;  %v15310_v35 = vld [vmem:[%s14994_s12 + $0xa8] sm:$0xff]   ;;  %s14881_s24 = smov 64  }
  0x1c   : >> { %v1254_v57 = vor.u32 %v1252_v45, %v1250_v47  ;;  %v15185_v60 = vsel %vm1220_vm2, %v1226_v52, %v1229_v31  ;;  %v15188_v61 = vsel %vm1220_vm2, %v1233_v53, %v1236_v38  ;;  %v15252_v31 = vld [vmem:[%s14994_s12 + $0x88] sm:$0xff]   ;;  %v15296_v32 = vld [vmem:[%s14994_s12 + $0xa0] sm:$0xff]   ;;  %v15328_v37 = vld [vmem:[%s14994_s12 + $0xb0] sm:$0x7f]   ;;  %v1266_v45 = vshrl.u32 %v15158_v46, 16  ;;  %s12194_s15 = smul.u32 40, %s14874_s26 }
  0x1d   : >> { %v1261_v58 = vor.u32 %v1259_v48, %v1257_v49  ;;  %v15179_v59 = vrot.slane %v1262_v50, 1  ;;  %v15191_v62 = vsel %vm1220_vm2, %v1240_v54, %v1243_v44  ;;  %v15194_v63 = vsel %vm1220_vm2, %v1247_v55, %v1250_v47  ;;  %v15337_v38 = vld [vmem:[%s14994_s12 + $0xd0] sm:$0xff]   ;;  %v15352_v39 = vld [vmem:[%s14994_s12 + $0xd8] sm:$0xff]   ;;  %v15367_v41 = vld [vmem:[%s14994_s12 + $0xe0] sm:$0xff]   ;;  %s345_s26 = sadd.s32 1, %s14874_s26  }
  0x1e   : >> { %12716 = vmatpush3.bf16.msra.mxu0 %v15010_v7  ;;  %14153 = vmatpush3.bf16.msra.mxu1 %v15010_v7  ;;  %v15205_v20 = vsel %vm1220_vm2, %v1254_v57, %v1257_v49  ;;  %v15382_v42 = vld [vmem:[%s14994_s12 + $0xe8] sm:$0xff]   ;;  %v15395_v44 = vld [vmem:[%s14994_s12 + $0xf0] sm:$0x7f]   ;;  %v1598_v53 = vshll.u32 %v15296_v32, 16  ;;  %v1605_v57 = vshll.u32 %v15310_v35, 16  ;;  %vm3233_vm10 = vcmask 518144  }
  0x1f   : >> { %12717 = vmatprep.subr.bf16.mxu0 %v14876_v4  ;;  %14149 = vmatprep.subr.bf16.mxu1 %v14876_v4  ;;  %v15209_v22 = vsel %vm1220_vm2, %v1261_v58, %v15179_v59  ;;  %vm3234_vm11 = vsmask.f32 2304  ;;  %vm4140_vm13 = vcmask 257024   ;;  %vm4251_vm14 = vcmask 1046528   ;;  %s17016_s16 = scalar_lea.vmem [#allocation4], %s12194_s15  ;;  %p342_p5 = scmp.ge.s32.totalorder %s345_s26, 8  }
  0x20   : >> { %v1600_v54 = vrot.slane %v1598_v53, 1  ;;  %vm3235_vm12 = vmand %vm3233_vm10, %vm3234_vm11  ;;  %vm4153_vm15 = vcmask 253952   ;;  %vm5149_vm10 = vcmask (%p342_p5), 1042434   ;;  %vm5152_vm11 = vcmask (%p342_p5), 1043459  }
  0x22   : >> { %12718 = vmatpush3.bf16.msra.mxu0 %v15019_v8  ;;  %14154 = vmatpush3.bf16.msra.mxu1 %v15019_v8 }
  0x23   : >> { %12747 = vmatprep.subr.bf16.mxu1 %v14876_v4  ;;  %12785 = vmatprep.subr.bf16.mxu0 %v14876_v4 }
  0x25   : >> { %12720 = vmatmul.mubr.msk.bf16.vlgmr.msra.gmra.mrb[0].mxu0 %vm466_vm1, %v15024_v9  ;;  %12740 = vmatmul.mubr.msk.bf16.vlgmr.msra.gmra.mrb[0].mxu1 %vm466_vm1, %v15027_v10 }
  0x26   : >> { %12748 = vmatpush3.bf16.msra.mxu1 %v15034_v11  ;;  %12723 = vmatprep.mubr.msk.bf16.mxu0 %vm14877_vm0, %v14876_v4 }
  0x27   : >> { %12749 = vmatprep.subr.bf16.mxu1 %v14876_v4  ;;  %12743 = vmatprep.mubr.msk.bf16.mxu1 %vm14877_vm0, %v14876_v4 }
  0x28   : >> { %12786 = vmatpush3.bf16.msra.mxu0 %v15041_v12 }
  0x29   : >> { %12787 = vmatprep.subr.bf16.mxu0 %v14876_v4 }
  0x2a   : >> { %12750 = vmatpush3.bf16.msra.mxu1 %v15051_v13 }
  0x2b   : >> { %12751 = vmatprep.subr.bf16.mxu1 %v14876_v4 }
  0x2c   : >> { %12788 = vmatpush3.bf16.msra.mxu0 %v15071_v17 }
  0x2d   : >> { %12724 = vmatmul.mubr.msk.bf16.gmra.mrb[4].mxu0 %vm466_vm1, %v15057_v14  ;;  %12744 = vmatmul.mubr.msk.bf16.gmra.mrb[4].mxu1 %vm466_vm1, %v15074_v18 }
  0x2e   : >> { %12752 = vmatpush3.bf16.msra.mxu1 %v15065_v16  ;;  %12727 = vmatprep.mubr.msk.bf16.mxu0 %vm14877_vm0, %v14876_v4 }
  0x2f   : >> { %12753 = vmatprep.subr.bf16.mxu1 %v14876_v4  ;;  %12757 = vmatprep.mubr.msk.bf16.mxu1 %vm14877_vm0, %v14876_v4 }
  0x30   : >> { %12789 = vmatprep.subr.bf16.mxu0 %v14876_v4 }
  0x31   : >> { %12790 = vmatpush3.bf16.msra.mxu0 %v15092_v23 }
  0x32   : >> { %12754 = vmatpush3.bf16.msra.mxu1 %v15085_v21  ;;  %12791 = vmatprep.subr.bf16.mxu0 %v14876_v4 }
  0x33   : >> { %12755 = vmatprep.subr.bf16.mxu1 %v14876_v4 }
  0x35   : >> { %12728 = vmatmul.mubr.msk.bf16.gmra.mrb[8].mxu0 %vm466_vm1, %v15106_v27 }
  0x36   : >> { %12756 = vmatpush3.bf16.msra.mxu1 %v15117_v30  ;;  %12731 = vmatprep.mubr.msk.bf16.mxu0 %vm14877_vm0, %v14876_v4 }
  0x37   : >> { %12823 = vmatprep.subr.bf16.mxu1 %v14876_v4  ;;  %12792 = vmatpush3.bf16.msra.mxu0 %v15125_v33 }
  0x38   : >> { %12793 = vmatprep.subr.bf16.mxu0 %v14876_v4 }
  0x39   : >> { %12758 = vmatmul.mubr.msk.bf16.vlgmr.msra.gmra.mrb[8].mxu1 %vm466_vm1, %v14284_v15  ;;  %v15202_v15 = vld [vmem:[%s18362_s1 + $0x88] sm:$0xff]  }
  0x3a   : >> { %12824 = vmatpush3.bf16.msra.mxu1 %v15142_v40  ;;  %12761 = vmatprep.mubr.msk.bf16.mxu1 %vm14877_vm0, %v14876_v4 }
  0x3b   : >> { %12825 = vmatprep.subr.bf16.mxu1 %v14876_v4  ;;  %12794 = vmatpush3.bf16.msra.mxu0 %v15151_v43 }
  0x3c   : >> { %12861 = vmatprep.subr.bf16.mxu0 %v14876_v4 }
  0x3d   : >> { %12732 = vmatmul.mubr.msk.bf16.gmra.mrb[12].mxu0 %vm466_vm1, %v15167_v51 }
  0x3e   : >> { %12735 = vmatprep.mubr.msk.bf16.mxu0 %vm14877_vm0, %v14876_v4  ;;  %12826 = vmatpush3.bf16.msra.mxu1 %v15175_v56 }
  0x3f   : >> { %12827 = vmatprep.subr.bf16.mxu1 %v14876_v4 }
  0x41   : >> { %12762 = vmatmul.mubr.msk.bf16.gmra.mrb[12].mxu1 %vm466_vm1, %v15079_v19  ;;  %v15237_v19 = vld [vmem:[%s14994_s12 + $0x80] sm:$0xff]  }
  0x42   : >> { %12765 = vmatprep.mubr.msk.bf16.mxu1 %vm14877_vm0, %v14876_v4  ;;  %12828 = vmatpush3.bf16.msra.mxu1 %v15202_v15 }
  0x43   : >> { %12829 = vmatprep.subr.bf16.mxu1 %v14876_v4 }
  0x45   : >> { %12736 = vmatmul.mubr.msk.bf16.gmra.mrb[16].mxu0 %vm466_vm1, %v15212_v25 }
  0x46   : >> { %12795 = vmatprep.mubr.msk.bf16.mxu0 %vm14877_vm0, %v14876_v4  ;;  %12830 = vmatpush3.bf16.msra.mxu1 %v15218_v26 }
  0x47   : >> { %12831 = vmatprep.subr.bf16.mxu1 %v14876_v4 }
  0x49   : >> { %12766 = vmatmul.mubr.msk.bf16.gmra.mrb[16].mxu1 %vm466_vm1, %v15099_v24  ;;  %v15267_v24 = vld [vmem:[%s14994_s12 + $0x90] sm:$0xff]  }
  0x4a   : >> { %12769 = vmatprep.mubr.msk.bf16.mxu1 %vm14877_vm0, %v14876_v4  ;;  %12832 = vmatpush3.bf16.msra.mxu1 %v15229_v29 }
  0x4b   : >> { %12899 = vmatprep.subr.bf16.mxu1 %v14876_v4 }
  0x4d   : >> { %12796 = vmatmul.mubr.msk.bf16.vlgmr.msra.gmra.mrb[20].mxu0 %vm466_vm1, %v15237_v19 }
  0x4e   : >> { %12799 = vmatprep.mubr.msk.bf16.mxu0 %vm14877_vm0, %v14876_v4  ;;  %12862 = vmatpush3.bf16.msra.mxu0 %v14975_v3 }
  0x4f   : >> { %12863 = vmatprep.subr.bf16.mxu0 %v14876_v4 }
  0x51   : >> { %12770 = vmatmul.mubr.msk.bf16.gmra.mrb[20].mxu1 %vm466_vm1, %v15111_v28  ;;  %v15282_v28 = vld [vmem:[%s14994_s12 + $0x98] sm:$0xff]  }
  0x52   : >> { %12773 = vmatprep.mubr.msk.bf16.mxu1 %vm14877_vm0, %v14876_v4  ;;  %12864 = vmatpush3.bf16.msra.mxu0 %v14984_v5  ;;  %v1591_v49 = vshll.u32 %v15282_v28, 16  ;;  %v1595_v52 = vshrl.u32 %v15282_v28, 16 }
  0x53   : >> { %12865 = vmatprep.subr.bf16.mxu0 %v14876_v4 }
  0x55   : >> { %12800 = vmatmul.mubr.msk.bf16.gmra.mrb[24].mxu0 %vm466_vm1, %v15252_v31 }
  0x56   : >> { %12803 = vmatprep.mubr.msk.bf16.mxu0 %vm14877_vm0, %v14876_v4  ;;  %12866 = vmatpush3.bf16.msra.mxu0 %v15001_v6 }
  0x57   : >> { %12867 = vmatprep.subr.bf16.mxu0 %v14876_v4 }
  0x59   : >> { %12774 = vmatmul.mubr.msk.bf16.gmra.mrb[24].mxu1 %vm466_vm1, %v15128_v34  ;;  %v15303_v34 = vld [vmem:[%s14994_s12 + $0xc0] sm:$0xff]  }
  0x5a   : >> { %12777 = vmatprep.mubr.msk.bf16.mxu1 %vm14877_vm0, %v14876_v4  ;;  %12868 = vmatpush3.bf16.msra.mxu0 %v15010_v7 }
  0x5b   : >> { %12869 = vmatprep.subr.bf16.mxu0 %v14876_v4 }
  0x5d   : >> { %12804 = vmatmul.mubr.msk.bf16.gmra.mrb[28].mxu0 %vm466_vm1, %v15267_v24 }
  0x5e   : >> { %12807 = vmatprep.mubr.msk.bf16.mxu0 %vm14877_vm0, %v14876_v4  ;;  %12870 = vmatpush3.bf16.msra.mxu0 %v15019_v8 }
  0x5f   : >> { %12937 = vmatprep.subr.bf16.mxu0 %v14876_v4 }
  0x61   : >> { %12778 = vmatmul.mubr.msk.bf16.gmra.mrb[28].mxu1 %vm466_vm1, %v15134_v36  ;;  %v15319_v36 = vld [vmem:[%s14994_s12 + $0xc8] sm:$0xff]  }
  0x62   : >> { %12781 = vmatprep.mubr.msk.bf16.mxu1 %vm14877_vm0, %v14876_v4 }
  0x65   : >> { %12808 = vmatmul.mubr.msk.bf16.gmra.mrb[32].mxu0 %vm466_vm1, %v15282_v28 }
  0x66   : >> { %12811 = vmatprep.mubr.msk.bf16.mxu0 %vm14877_vm0, %v14876_v4 }
  0x69   : >> { %12782 = vmatmul.mubr.msk.bf16.gmra.mrb[32].mxu1 %vm466_vm1, %v15158_v46  ;;  %v1584_v46 = vshll.u32 %v15267_v24, 16 }
  0x6a   : >> { %12833 = vmatprep.mubr.msk.bf16.mxu1 %vm14877_vm0, %v14876_v4 }
  0x6b   : >> { %v1586_v47 = vrot.slane %v1584_v46, 1 }
  0x6d   : >> { %12812 = vmatmul.mubr.msk.bf16.gmra.mrb[36].mxu0 %vm466_vm1, %v15296_v32 }
  0x6e   : >> { %12815 = vmatprep.mubr.msk.bf16.mxu0 %vm14877_vm0, %v14876_v4 }
  0x71   : >> { %12834 = vmatmul.mubr.msk.bf16.vlgmr.msra.gmra.mrb[36].mxu1 %vm466_vm1, %v15303_v34 }
  0x72   : >> { %12900 = vmatpush3.bf16.msra.mxu1 %v15034_v11  ;;  %12837 = vmatprep.mubr.msk.bf16.mxu1 %vm14877_vm0, %v14876_v4 }
  0x73   : >> { %12901 = vmatprep.subr.bf16.mxu1 %v14876_v4 }
  0x75   : >> { %12816 = vmatmul.mubr.msk.bf16.gmra.mrb[40].mxu0 %vm466_vm1, %v15310_v35 }
  0x76   : >> { %12819 = vmatprep.mubr.msk.bf16.mxu0 %vm14877_vm0, %v14876_v4  ;;  %12902 = vmatpush3.bf16.msra.mxu1 %v15051_v13 }
  0x77   : >> { %12903 = vmatprep.subr.bf16.mxu1 %v14876_v4 }
  0x79   : >> { %12838 = vmatmul.mubr.msk.bf16.gmra.mrb[40].mxu1 %vm466_vm1, %v15319_v36 }
  0x7a   : >> { %12841 = vmatprep.mubr.msk.bf16.mxu1 %vm14877_vm0, %v14876_v4  ;;  %12904 = vmatpush3.bf16.msra.mxu1 %v15065_v16 }
  0x7b   : >> { %12905 = vmatprep.subr.bf16.mxu1 %v14876_v4 }
  0x7d   : >> { %12820 = vmatmul.mubr.msk.bf16.gmra.mrb[44].mxu0 %vm466_vm1, %v15328_v37 }
  0x7e   : >> { %12871 = vmatprep.mubr.msk.bf16.mxu0 %vm14877_vm0, %v14876_v4  ;;  %12906 = vmatpush3.bf16.msra.mxu1 %v15085_v21 }
  0x7f   : >> { %12907 = vmatprep.subr.bf16.mxu1 %v14876_v4 }
  0x81   : >> { %12842 = vmatmul.mubr.msk.bf16.gmra.mrb[44].mxu1 %vm466_vm1, %v15337_v38 }
  0x82   : >> { %12845 = vmatprep.mubr.msk.bf16.mxu1 %vm14877_vm0, %v14876_v4  ;;  %12908 = vmatpush3.bf16.msra.mxu1 %v15117_v30 }
  0x83   : >> { %12975 = vmatprep.subr.bf16.mxu1 %v14876_v4 }
  0x85   : >> { %12872 = vmatmul.mubr.msk.bf16.vlgmr.msra.gmra.mrb[48].mxu0 %vm466_vm1, %v15185_v60 }
  0x86   : >> { %12875 = vmatprep.mubr.msk.bf16.mxu0 %vm14877_vm0, %v14876_v4  ;;  %12938 = vmatpush3.bf16.msra.mxu0 %v15041_v12 }
  0x87   : >> { %12939 = vmatprep.subr.bf16.mxu0 %v14876_v4 }
  0x89   : >> { %12846 = vmatmul.mubr.msk.bf16.gmra.mrb[48].mxu1 %vm466_vm1, %v15352_v39 }
  0x8a   : >> { %12849 = vmatprep.mubr.msk.bf16.mxu1 %vm14877_vm0, %v14876_v4  ;;  %12940 = vmatpush3.bf16.msra.mxu0 %v15071_v17 }
  0x8b   : >> { %12941 = vmatprep.subr.bf16.mxu0 %v14876_v4 }
  0x8d   : >> { %12876 = vmatmul.mubr.msk.bf16.gmra.mrb[52].mxu0 %vm466_vm1, %v15188_v61 }
  0x8e   : >> { %12879 = vmatprep.mubr.msk.bf16.mxu0 %vm14877_vm0, %v14876_v4  ;;  %12942 = vmatpush3.bf16.msra.mxu0 %v15092_v23 }
  0x8f   : >> { %12943 = vmatprep.subr.bf16.mxu0 %v14876_v4 }
  0x91   : >> { %12850 = vmatmul.mubr.msk.bf16.gmra.mrb[52].mxu1 %vm466_vm1, %v15367_v41 }
  0x92   : >> { %12853 = vmatprep.mubr.msk.bf16.mxu1 %vm14877_vm0, %v14876_v4  ;;  %12944 = vmatpush3.bf16.msra.mxu0 %v15125_v33 }
  0x93   : >> { %12945 = vmatprep.subr.bf16.mxu0 %v14876_v4 }
  0x95   : >> { %12880 = vmatmul.mubr.msk.bf16.gmra.mrb[56].mxu0 %vm466_vm1, %v15191_v62 }
  0x96   : >> { %12883 = vmatprep.mubr.msk.bf16.mxu0 %vm14877_vm0, %v14876_v4  ;;  %12946 = vmatpush3.bf16.msra.mxu0 %v15151_v43 }
  0x97   : >> { %13013 = vmatprep.subr.bf16.mxu0 %v14876_v4 }
  0x99   : >> { %12854 = vmatmul.mubr.msk.bf16.gmra.mrb[56].mxu1 %vm466_vm1, %v15382_v42 }
  0x9a   : >> { %12857 = vmatprep.mubr.msk.bf16.mxu1 %vm14877_vm0, %v14876_v4 }
  0x9d   : >> { %12884 = vmatmul.mubr.msk.bf16.gmra.mrb[60].mxu0 %vm466_vm1, %v15194_v63  ;;  %v1607_v63 = vrot.slane %v1605_v57, 1 }
  0x9e   : >> { %12887 = vmatprep.mubr.msk.bf16.mxu0 %vm14877_vm0, %v14876_v4 }
  0xa1   : >> { %12858 = vmatmul.mubr.msk.bf16.gmra.mrb[60].mxu1 %vm466_vm1, %v15395_v44 }
  0xa2   : >> { %12909 = vmatprep.mubr.msk.bf16.mxu1 %vm14877_vm0, %v14876_v4 }
  0xa5   : >> { %12888 = vmatmul.mubr.msk.bf16.gmra.mrb[64].mxu0 %vm466_vm1, %v15205_v20 }
  0xa6   : >> { %12891 = vmatprep.mubr.msk.bf16.mxu0 %vm14877_vm0, %v14876_v4 }
  0xa9   : >> { %12910 = vmatmul.mubr.msk.bf16.vlgmr.msra.gmra.mrb[64].mxu1 %vm466_vm1, %v15024_v9  ;;  %v1268_v9 = vor.u32 %v1266_v45, %v15179_v59  ;;  %v1612_v45 = vshll.u32 %v15328_v37, 16 }
  0xaa   : >> { %12976 = vmatpush3.bf16.msra.mxu1 %v15142_v40  ;;  %12913 = vmatprep.mubr.msk.bf16.mxu1 %vm14877_vm0, %v14876_v4 }
  0xab   : >> { %12977 = vmatprep.subr.bf16.mxu1 %v14876_v4 }
  0xad   : >> { %12892 = vmatmul.mubr.msk.bf16.gmra.mrb[68].mxu0 %vm466_vm1, %v15209_v22 }
  0xae   : >> { %12895 = vmatprep.mubr.msk.bf16.mxu0 %vm14877_vm0, %v14876_v4  ;;  %12978 = vmatpush3.bf16.msra.mxu1 %v15175_v56 }
  0xaf   : >> { %12979 = vmatprep.subr.bf16.mxu1 %v14876_v4 }
  0xb1   : >> { %12914 = vmatmul.mubr.msk.bf16.gmra.mrb[68].mxu1 %vm466_vm1, %v15057_v14 }
  0xb2   : >> { %12917 = vmatprep.mubr.msk.bf16.mxu1 %vm14877_vm0, %v14876_v4  ;;  %12980 = vmatpush3.bf16.msra.mxu1 %v15202_v15 }
  0xb3   : >> { %12981 = vmatprep.subr.bf16.mxu1 %v14876_v4 }
  0xb5   : >> { %12896 = vmatmul.mubr.msk.bf16.gmra.mrb[72].mxu0 %vm466_vm1, %v1268_v9 }
  0xb6   : >> { %12947 = vmatprep.mubr.msk.bf16.mxu0 %vm14877_vm0, %v14876_v4  ;;  %12982 = vmatpush3.bf16.msra.mxu1 %v15218_v26 }
  0xb7   : >> { %12983 = vmatprep.subr.bf16.mxu1 %v14876_v4 }
  0xb9   : >> { %12918 = vmatmul.mubr.msk.bf16.gmra.mrb[72].mxu1 %vm466_vm1, %v15106_v27  ;;  %v1581_v27 = vshrl.u32 %v15252_v31, 16 }
  0xba   : >> { %12921 = vmatprep.mubr.msk.bf16.mxu1 %vm14877_vm0, %v14876_v4  ;;  %12984 = vmatpush3.bf16.msra.mxu1 %v15229_v29 }
  0xbb   : >> { %13051 = vmatprep.subr.bf16.mxu1 %v14876_v4 }
  0xbd   : >> { %12948 = vmatmul.mubr.msk.bf16.vlgmr.msra.gmra.mrb[76].mxu0 %vm466_vm1, %v15303_v34 }
  0xbe   : >> { %12951 = vmatprep.mubr.msk.bf16.mxu0 %vm14877_vm0, %v14876_v4  ;;  %13014 = vmatpush3.bf16.msra.mxu0 %v14975_v3  ;;  %v1573_v3 = vshll.u32 %v15237_v19, 16 }
  0xbf   : >> { %13015 = vmatprep.subr.bf16.mxu0 %v14876_v4 }
  0xc1   : >> { %12922 = vmatmul.mubr.msk.bf16.gmra.mrb[76].mxu1 %vm466_vm1, %v15167_v51  ;;  %v1593_v51 = vrot.slane %v1591_v49, 1 }
  0xc2   : >> { %12925 = vmatprep.mubr.msk.bf16.mxu1 %vm14877_vm0, %v14876_v4  ;;  %13016 = vmatpush3.bf16.msra.mxu0 %v14984_v5  ;;  %v1571_v5 = vshrl.u32 %v15237_v19, 16 }
  0xc3   : >> { %13017 = vmatprep.subr.bf16.mxu0 %v14876_v4 }
  0xc5   : >> { %12952 = vmatmul.mubr.msk.bf16.gmra.mrb[80].mxu0 %vm466_vm1, %v15319_v36 }
  0xc6   : >> { %12955 = vmatprep.mubr.msk.bf16.mxu0 %vm14877_vm0, %v14876_v4  ;;  %13018 = vmatpush3.bf16.msra.mxu0 %v15001_v6  ;;  %v1575_v6 = vrot.slane %v1573_v3, 1 }
  0xc7   : >> { %13019 = vmatprep.subr.bf16.mxu0 %v14876_v4 }
  0xc9   : >> { %12926 = vmatmul.mubr.msk.bf16.gmra.mrb[80].mxu1 %vm466_vm1, %v15212_v25 }
  0xca   : >> { %12929 = vmatprep.mubr.msk.bf16.mxu1 %vm14877_vm0, %v14876_v4  ;;  %13020 = vmatpush3.bf16.msra.mxu0 %v15010_v7  ;;  %v1577_v7 = vshll.u32 %v15252_v31, 16 }
  0xcb   : >> { %13021 = vmatprep.subr.bf16.mxu0 %v14876_v4 }
  0xcd   : >> { %12956 = vmatmul.mubr.msk.bf16.gmra.mrb[84].mxu0 %vm466_vm1, %v15337_v38 }
  0xce   : >> { %12959 = vmatprep.mubr.msk.bf16.mxu0 %vm14877_vm0, %v14876_v4  ;;  %13022 = vmatpush3.bf16.msra.mxu0 %v15019_v8  ;;  %v1576_v8 = vor.u32 %v1575_v6, %v1571_v5 }
  0xcf   : >> { %13089 = vmatprep.subr.bf16.mxu0 %v14876_v4 }
  0xd1   : >> { %12930 = vmatmul.mubr.msk.bf16.gmra.mrb[84].mxu1 %vm466_vm1, %v15027_v10  ;;  %v1579_v10 = vrot.slane %v1577_v7, 1  ;;  %v1614_v7 = vrot.slane %v1612_v45, 1 }
  0xd2   : >> { %12933 = vmatprep.mubr.msk.bf16.mxu1 %vm14877_vm0, %v14876_v4 }
  0xd3   : >> { %v15486_v14 = vsel %vm1220_vm2, %v1576_v8, %v1579_v10 }
  0xd5   : >> { %12960 = vmatmul.mubr.msk.bf16.gmra.mrb[88].mxu0 %vm466_vm1, %v15352_v39 }
  0xd6   : >> { %12963 = vmatprep.mubr.msk.bf16.mxu0 %vm14877_vm0, %v14876_v4 }
  0xd9   : >> { %12934 = vmatmul.mubr.msk.bf16.gmra.mrb[88].mxu1 %vm466_vm1, %v15074_v18  ;;  %v1583_v18 = vor.u32 %v1581_v27, %v1579_v10 }
  0xda   : >> { %12985 = vmatprep.mubr.msk.bf16.mxu1 %vm14877_vm0, %v14876_v4 }
  0xdb   : >> { %v15501_v48 = vsel %vm1220_vm2, %v1583_v18, %v1586_v47 }
  0xdd   : >> { %12964 = vmatmul.mubr.msk.bf16.gmra.mrb[92].mxu0 %vm466_vm1, %v15367_v41 }
  0xde   : >> { %12967 = vmatprep.mubr.msk.bf16.mxu0 %vm14877_vm0, %v14876_v4 }
  0xe1   : >> { %12986 = vmatmul.mubr.msk.bf16.vlgmr.msra.gmra.mrb[92].mxu1 %vm466_vm1, %v15486_v14 }
  0xe2   : >> { %13052 = vmatpush3.bf16.msra.mxu1 %v15034_v11  ;;  %12989 = vmatprep.mubr.msk.bf16.mxu1 %vm14877_vm0, %v14876_v4  ;;  %v1588_v11 = vshrl.u32 %v15267_v24, 16 }
  0xe3   : >> { %13053 = vmatprep.subr.bf16.mxu1 %v14876_v4 }
  0xe4   : >> { %v1590_v50 = vor.u32 %v1588_v11, %v1586_v47 }
  0xe5   : >> { %12968 = vmatmul.mubr.msk.bf16.gmra.mrb[96].mxu0 %vm466_vm1, %v15382_v42 }
  0xe6   : >> { %12971 = vmatprep.mubr.msk.bf16.mxu0 %vm14877_vm0, %v14876_v4  ;;  %13054 = vmatpush3.bf16.msra.mxu1 %v15051_v13  ;;  %v15518_v13 = vsel %vm1220_vm2, %v1590_v50, %v1593_v51 }
  0xe7   : >> { %13055 = vmatprep.subr.bf16.mxu1 %v14876_v4 }
  0xe9   : >> { %12990 = vmatmul.mubr.msk.bf16.gmra.mrb[96].mxu1 %vm466_vm1, %v15501_v48 }
  0xea   : >> { %12993 = vmatprep.mubr.msk.bf16.mxu1 %vm14877_vm0, %v14876_v4  ;;  %13056 = vmatpush3.bf16.msra.mxu1 %v15065_v16  ;;  %v1597_v16 = vor.u32 %v1595_v52, %v1593_v51 }
  0xeb   : >> { %13057 = vmatprep.subr.bf16.mxu1 %v14876_v4 }
  0xec   : >> { %v15535_v55 = vsel %vm1220_vm2, %v1597_v16, %v1600_v54 }
  0xed   : >> { %12972 = vmatmul.mubr.msk.bf16.gmra.mrb[100].mxu0 %vm466_vm1, %v15395_v44 }
  0xee   : >> { %13023 = vmatprep.mubr.msk.bf16.mxu0 %vm14877_vm0, %v14876_v4  ;;  %13058 = vmatpush3.bf16.msra.mxu1 %v15085_v21  ;;  %v1602_v21 = vshrl.u32 %v15296_v32, 16 }
  0xef   : >> { %13059 = vmatprep.subr.bf16.mxu1 %v14876_v4 }
  0xf0   : >> { %v1604_v62 = vor.u32 %v1602_v21, %v1600_v54 }
  0xf1   : >> { %12994 = vmatmul.mubr.msk.bf16.gmra.mrb[100].mxu1 %vm466_vm1, %v15518_v13 }
  0xf2   : >> { %12997 = vmatprep.mubr.msk.bf16.mxu1 %vm14877_vm0, %v14876_v4  ;;  %13060 = vmatpush3.bf16.msra.mxu1 %v15117_v30  ;;  %v15556_v25 = vsel %vm1220_vm2, %v1604_v62, %v1607_v63 }
  0xf3   : >> { %13127 = vmatprep.subr.bf16.mxu1 %v14876_v4 }
  0xf5   : >> { %13024 = vmatmul.mubr.msk.bf16.vlgmr.msra.gmra.mrb[104].mxu0 %vm466_vm1, %v15303_v34  ;;  %v1609_v34 = vshrl.u32 %v15310_v35, 16 }
  0xf6   : >> { %13027 = vmatprep.mubr.msk.bf16.mxu0 %vm14877_vm0, %v14876_v4  ;;  %13090 = vmatpush3.bf16.msra.mxu0 %v15041_v12 }
  0xf7   : >> { %13091 = vmatprep.subr.bf16.mxu0 %v14876_v4  ;;  %v1611_v6 = vor.u32 %v1609_v34, %v1607_v63  ;;  %v14318_v34 = vld [vmem:[%s14994_s12 + $0xc] sm:$0xff]  }
  0xf8   : >> { %v15543_v30 = vpop.f32.mrb[0].mxu1  ;;  %v522_v58 = vpop.f32.mrb[0].mxu0 }
  0xf9   : >> { %v12741_v59 = vpop.f32.mrb[1].mxu1  ;;  %12998 = vmatmul.mubr.msk.bf16.gmra.mrb[104].mxu1 %vm466_vm1, %v15535_v55  ;;  %v12721_v60 = vpop.f32.mrb[1].mxu0  ;;  %v15577_v27 = vsel %vm1220_vm2, %v1611_v6, %v1614_v7 }
  0xfa   : >> { %v15547_v61 = vpop.f32.mrb[2].mxu1  ;;  %13001 = vmatprep.mubr.msk.bf16.mxu1 %vm14877_vm0, %v14876_v4  ;;  %v525_v20 = vpop.f32.mrb[2].mxu0  ;;  %13092 = vmatpush3.bf16.msra.mxu0 %v15071_v17 }
  0xfb   : >> { %v12742_v12 = vpop.f32.mrb[3].mxu1  ;;  %v12722_v22 = vpop.f32.mrb[3].mxu0  ;;  %13093 = vmatprep.subr.bf16.mxu0 %v14876_v4 }
  0xfd   : >> { %13028 = vmatmul.mubr.msk.bf16.gmra.mrb[108].mxu0 %vm466_vm1, %v15319_v36 }
  0xfe   : >> { %13031 = vmatprep.mubr.msk.bf16.mxu0 %vm14877_vm0, %v14876_v4  ;;  %13094 = vmatpush3.bf16.msra.mxu0 %v15092_v23 }
  0xff   : >> { %13095 = vmatprep.subr.bf16.mxu0 %v14876_v4 }
 0x100   : >> { %v15564_v17 = vpop.f32.mrb[4].mxu1  ;;  %v530_v9 = vpop.f32.mrb[4].mxu0 }
 0x101   : >> { %13002 = vmatmul.mubr.msk.bf16.gmra.mrb[108].mxu1 %vm466_vm1, %v15556_v25  ;;  %v12745_v36 = vpop.f32.mrb[5].mxu1  ;;  %v12725_v3 = vpop.f32.mrb[5].mxu0 }
 0x102   : >> { %v15568_v5 = vpop.f32.mrb[6].mxu1  ;;  %13005 = vmatprep.mubr.msk.bf16.mxu1 %vm14877_vm0, %v14876_v4  ;;  %v533_v8 = vpop.f32.mrb[6].mxu0  ;;  %13096 = vmatpush3.bf16.msra.mxu0 %v15125_v33  ;;  %v1616_v33 = vshrl.u32 %v15328_v37, 16 }
 0x103   : >> { %v12746_v23 = vpop.f32.mrb[7].mxu1  ;;  %v12726_v10 = vpop.f32.mrb[7].mxu0  ;;  %13097 = vmatprep.subr.bf16.mxu0 %v14876_v4 }
 0x105   : >> { %13032 = vmatmul.mubr.msk.bf16.gmra.mrb[112].mxu0 %vm466_vm1, %v15337_v38 }
 0x106   : >> { %13035 = vmatprep.mubr.msk.bf16.mxu0 %vm14877_vm0, %v14876_v4  ;;  %13098 = vmatpush3.bf16.msra.mxu0 %v15151_v43  ;;  %v15590_v43 = vor.u32 %v1616_v33, %v1614_v7  ;;  %v2008_v7 = vshrl.u32 %v14318_v34, 16 }
 0x107   : >> { %13165 = vmatprep.subr.bf16.mxu0 %v14876_v4 }
 0x108   : >> { %v538_v46 = vpop.f32.mrb[8].mxu0 }
 0x109   : >> { %13006 = vmatmul.mubr.msk.bf16.gmra.mrb[112].mxu1 %vm466_vm1, %v15577_v27  ;;  %v12729_v18 = vpop.f32.mrb[9].mxu0 }
 0x10a   : >> { %13009 = vmatprep.mubr.msk.bf16.mxu1 %vm14877_vm0, %v14876_v4  ;;  %v541_v38 = vpop.f32.mrb[10].mxu0 }
 0x10b   : >> { %v12730_v47 = vpop.f32.mrb[11].mxu0 }
 0x10c   : >> { %v697_v11 = vpop.f32.mrb[8].mxu1 }
 0x10d   : >> { %v698_v49 = vadd.f32 %v697_v11, %v522_v58  ;;  %v12759_v50 = vpop.f32.mrb[9].mxu1  ;;  %13036 = vmatmul.mubr.msk.bf16.gmra.mrb[116].mxu0 %vm466_vm1, %v15352_v39  ;;  %v2010_v11 = vrot.slane %v2008_v7, 1 }
 0x10e   : >> { %v700_v51 = vpop.f32.mrb[10].mxu1  ;;  %13039 = vmatprep.mubr.msk.bf16.mxu0 %vm14877_vm0, %v14876_v4 }
 0x10f   : >> { %v701_v52 = vadd.f32 %v700_v51, %v525_v20  ;;  %v12760_v53 = vpop.f32.mrb[11].mxu1 }
 0x110   : >> { %v546_v16 = vpop.f32.mrb[12].mxu0 }
 0x111   : >> { %13010 = vmatmul.mubr.msk.bf16.gmra.mrb[116].mxu1 %vm466_vm1, %v15590_v43  ;;  %v12733_v54 = vpop.f32.mrb[13].mxu0 }
 0x112   : >> { %13061 = vmatprep.mubr.msk.bf16.mxu1 %vm14877_vm0, %v14876_v4  ;;  %v549_v21 = vpop.f32.mrb[14].mxu0 }
 0x113   : >> { %v12734_v57 = vpop.f32.mrb[15].mxu0 }
 0x114   : >> { %v705_v39 = vpop.f32.mrb[12].mxu1 }
 0x115   : >> { %v706_v58 = vadd.f32 %v705_v39, %v530_v9  ;;  %v12763_v59 = vpop.f32.mrb[13].mxu1  ;;  %13040 = vmatmul.mubr.msk.bf16.gmra.mrb[120].mxu0 %vm466_vm1, %v15367_v41  ;;  %v14317_v41 = vld [vmem:[%s14994_s12 + $0x4] sm:$0xfe]  }
 0x116   : >> { %v708_v60 = vpop.f32.mrb[14].mxu1  ;;  %13043 = vmatprep.mubr.msk.bf16.mxu0 %vm14877_vm0, %v14876_v4  ;;  %v2003_v6 = vshll.u32 %v14317_v41, 16 }
 0x117   : >> { %v15602_v62 = vadd.f32 %v708_v60, %v533_v8  ;;  %v12764_v63 = vpop.f32.mrb[15].mxu1  ;;  %v2011_v8 = vshll.u32 %v14318_v34, 16 }
 0x118   : >> { %v15604_v20 = vpop.f32.mrb[16].mxu0  ;;  %v2005_v47 = vrot.slane %v2003_v6, 2 }
 0x119   : >> { %13062 = vmatmul.mubr.msk.bf16.vlgmr.msra.gmra.mrb[120].mxu1 %vm466_vm1, %v15237_v19  ;;  %v12737_v12 = vpop.f32.mrb[17].mxu0  ;;  %v2013_v50 = vrot.slane %v2011_v8, 2 }
 0x11a   : >> { %13128 = vmatpush3.bf16.msra.mxu1 %v15142_v40  ;;  %v15609_v22 = vpop.f32.mrb[18].mxu0  ;;  %13065 = vmatprep.mubr.msk.bf16.mxu1 %vm14877_vm0, %v14876_v4  ;;  %v2000_v40 = vshrl.u32 %v14317_v41, 16 }
 0x11b   : >> { %v12738_v45 = vpop.f32.mrb[19].mxu0  ;;  %13129 = vmatprep.subr.bf16.mxu1 %v14876_v4  ;;  %v2014_v59 = vor.u32 %v2013_v50, %v2010_v11  ;;  %v14321_v11 = vld [vmem:[%s14994_s12 + $0x24] sm:$0xff]   ;;  %v14414_v50 = vld [vmem:[%s18362_s1 + $0x30] sm:$0xff]  }
 0x11c   : >> { %v713_v9 = vpop.f32.mrb[16].mxu1  ;;  %v14320_v45 = vld [vmem:[%s14994_s12 + $0x1c] sm:$0xff]  }
 0x11d   : >> { %v15616_v36 = vadd.f32 %v713_v9, %v538_v46  ;;  %v12767_v3 = vpop.f32.mrb[17].mxu1  ;;  %13044 = vmatmul.mubr.msk.bf16.gmra.mrb[124].mxu0 %vm466_vm1, %v15382_v42  ;;  %v2026_v7 = vshrl.u32 %v14320_v45, 16 }
 0x11e   : >> { %v716_v19 = vpop.f32.mrb[18].mxu1  ;;  %13047 = vmatprep.mubr.msk.bf16.mxu0 %vm14877_vm0, %v14876_v4  ;;  %13130 = vmatpush3.bf16.msra.mxu1 %v15175_v56  ;;  %v2002_v56 = vrot.slane %v2000_v40, 1 }
 0x11f   : >> { %v15623_v23 = vadd.f32 %v716_v19, %v541_v38  ;;  %v12768_v10 = vpop.f32.mrb[19].mxu1  ;;  %13131 = vmatprep.subr.bf16.mxu1 %v14876_v4  ;;  %v14319_v38 = vld [vmem:[%s14994_s12 + $0x14] sm:$0xff]  }
 0x120   : >> { %v900_v46 = vpop.f32.mrb[20].mxu0  ;;  %v2006_v39 = vor.u32 %v2005_v47, %v2002_v56  ;;  %v2028_v47 = vrot.slane %v2026_v7, 1  ;;  %v14324_v7 = vld [vmem:[%s14994_s12 + $0x4c] sm:$0xff]  }
 0x121   : >> { %v15626_v33 = vadd.f32 %v900_v46, %v698_v49  ;;  %v12797_v42 = vpop.f32.mrb[21].mxu0  ;;  %13066 = vmatmul.mubr.msk.bf16.gmra.mrb[124].mxu1 %vm466_vm1, %v15252_v31 }
 0x122   : >> { %v903_v18 = vpop.f32.mrb[22].mxu0  ;;  %13069 = vmatprep.mubr.msk.bf16.mxu1 %vm14877_vm0, %v14876_v4  ;;  %13132 = vmatpush3.bf16.msra.mxu1 %v15202_v15  ;;  %v2017_v15 = vshrl.u32 %v14319_v38, 16  ;;  %v2015_v34 = vsel %vm1998_vm3, %v2006_v39, %v2014_v59  ;;  %v2035_v39 = vshrl.u32 %v14321_v11, 16 }
 0x123   : >> { %v15634_v51 = vadd.f32 %v903_v18, %v701_v52  ;;  %v12798_v53 = vpop.f32.mrb[23].mxu0  ;;  %13133 = vmatprep.subr.bf16.mxu1 %v14876_v4  ;;  %v2020_v52 = vshll.u32 %v14319_v38, 16 }
 0x124   : >> { %v721_v49 = vpop.f32.mrb[20].mxu1 }
 0x125   : >> { %v15637_v54 = vadd.f32 %v721_v49, %v546_v16  ;;  %v12771_v31 = vpop.f32.mrb[21].mxu1  ;;  %13048 = vmatmul.mubr.msk.bf16.gmra.mrb[128].mxu0 %vm466_vm1, %v15395_v44 }
 0x126   : >> { %v724_v57 = vpop.f32.mrb[22].mxu1  ;;  %13099 = vmatprep.mubr.msk.bf16.mxu0 %vm14877_vm0, %v14876_v4  ;;  %13134 = vmatpush3.bf16.msra.mxu1 %v15218_v26  ;;  %v2019_v26 = vrot.slane %v2017_v15, 1 }
 0x127   : >> { %v15644_v60 = vadd.f32 %v724_v57, %v549_v21  ;;  %v12772_v63 = vpop.f32.mrb[23].mxu1  ;;  %13135 = vmatprep.subr.bf16.mxu1 %v14876_v4  ;;  %v2022_v21 = vrot.slane %v2020_v52, 2 }
 0x128   : >> { %v908_v16 = vpop.f32.mrb[24].mxu0  ;;  %v14322_v63 = vld [vmem:[%s14994_s12 + $0x2c] sm:$0xff]  }
 0x129   : >> { %v15647_v12 = vadd.f32 %v908_v16, %v706_v58  ;;  %v12801_v44 = vpop.f32.mrb[25].mxu0  ;;  %13070 = vmatmul.mubr.msk.bf16.gmra.mrb[128].mxu1 %vm466_vm1, %v15267_v24  ;;  %v2023_v6 = vor.u32 %v2022_v21, %v2019_v26  ;;  %v14416_v21 = vld [vmem:[%s18362_s1 + $0x40] sm:$0xff]  }
 0x12a   : >> { %v911_v41 = vpop.f32.mrb[26].mxu0  ;;  %13073 = vmatprep.mubr.msk.bf16.mxu1 %vm14877_vm0, %v14876_v4  ;;  %13136 = vmatpush3.bf16.msra.mxu1 %v15229_v29  ;;  %v2029_v29 = vshll.u32 %v14320_v45, 16 }
 0x12b   : >> { %v15657_v9 = vadd.f32 %v911_v41, %v15602_v62  ;;  %v12802_v58 = vpop.f32.mrb[27].mxu0  ;;  %13203 = vmatprep.subr.bf16.mxu1 %v14876_v4  ;;  %v14413_v62 = vld [vmem:[%s18362_s1 + $0x28] sm:$0xff]   ;;  %v2024_v56 = vsel %vm1998_vm3, %v2014_v59, %v2023_v6  ;;  %v2038_v59 = vshll.u32 %v14321_v11, 16  ;;  %v2243_v11 = vshrl.u32 %v14324_v7, 16 }
 0x12c   : >> { %v729_v3 = vpop.f32.mrb[24].mxu1  ;;  %v2044_v58 = vshrl.u32 %v14322_v63, 16 }
 0x12d   : >> { %v15661_v24 = vadd.f32 %v729_v3, %v15604_v20  ;;  %v12775_v19 = vpop.f32.mrb[25].mxu1  ;;  %13100 = vmatmul.mubr.msk.bf16.vlgmr.msra.gmra.mrb[132].mxu0 %vm466_vm1, %v2015_v34  ;;  %v2040_v26 = vrot.slane %v2038_v59, 2  ;;  %v2047_v3 = vshll.u32 %v14322_v63, 16 }
 0x12e   : >> { %v732_v40 = vpop.f32.mrb[26].mxu1  ;;  %13103 = vmatprep.mubr.msk.bf16.mxu0 %vm14877_vm0, %v14876_v4  ;;  %13166 = vmatpush3.bf16.msra.mxu0 %v14413_v62  ;;  %v14323_v19 = vld [vmem:[%s14994_s12 + $0x44] sm:$0xfe]  }
 0x12f   : >> { %v15670_v8 = vadd.f32 %v732_v40, %v15609_v22  ;;  %v12776_v20 = vpop.f32.mrb[27].mxu1  ;;  %13167 = vmatprep.subr.bf16.mxu0 %v14876_v4  ;;  %v2031_v22 = vrot.slane %v2029_v29, 2  ;;  %v14417_v62 = vld [vmem:[%s18362_s1 + $0x48] sm:$0xff]  }
 0x130   : >> { %v916_v10 = vpop.f32.mrb[28].mxu0 }
 0x131   : >> { %v15674_v46 = vadd.f32 %v916_v10, %v15616_v36  ;;  %v12805_v42 = vpop.f32.mrb[29].mxu0  ;;  %13074 = vmatmul.mubr.msk.bf16.gmra.mrb[132].mxu1 %vm466_vm1, %v15282_v28  ;;  %v2032_v57 = vor.u32 %v2031_v22, %v2028_v47  ;;  %v2238_v22 = vshll.u32 %v14323_v19, 16 }
 0x132   : >> { %v919_v18 = vpop.f32.mrb[30].mxu0  ;;  %13077 = vmatprep.mubr.msk.bf16.mxu1 %vm14877_vm0, %v14876_v4  ;;  %13168 = vmatpush3.bf16.msra.mxu0 %v14414_v50  ;;  %v2046_v42 = vrot.slane %v2044_v58, 1  ;;  %v2246_v50 = vshll.u32 %v14324_v7, 16 }
 0x133   : >> { %v15686_v36 = vadd.f32 %v919_v18, %v15623_v23  ;;  %v12806_v38 = vpop.f32.mrb[31].mxu0  ;;  %13169 = vmatprep.subr.bf16.mxu0 %v14876_v4  ;;  %v14415_v23 = vld [vmem:[%s18362_s1 + $0x38] sm:$0xff]   ;;  %v2033_v34 = vsel %vm1998_vm3, %v2023_v6, %v2032_v57  ;;  %v2049_v18 = vrot.slane %v2047_v3, 2 }
 0x134   : >> { %v737_v28 = vpop.f32.mrb[28].mxu1  ;;  %v2248_v63 = vrot.slane %v2246_v50, 2 }
 0x135   : >> { %v15690_v53 = vadd.f32 %v737_v28, %v15543_v30  ;;  %v12779_v49 = vpop.f32.mrb[29].mxu1  ;;  %13104 = vmatmul.mubr.msk.bf16.gmra.mrb[136].mxu0 %vm466_vm1, %v2024_v56  ;;  %v2235_v56 = vshrl.u32 %v14323_v19, 16 }
 0x136   : >> { %v740_v31 = vpop.f32.mrb[30].mxu1  ;;  %13107 = vmatprep.mubr.msk.bf16.mxu0 %vm14877_vm0, %v14876_v4  ;;  %13170 = vmatpush3.bf16.msra.mxu0 %v14415_v23  ;;  %v14325_v49 = vld [vmem:[%s14994_s12 + $0x34] sm:$0xff]  }
 0x137   : >> { %v15699_v15 = vadd.f32 %v740_v31, %v15547_v61  ;;  %v12780_v30 = vpop.f32.mrb[31].mxu1  ;;  %13171 = vmatprep.subr.bf16.mxu0 %v14876_v4  ;;  %v2037_v61 = vrot.slane %v2035_v39, 1  ;;  %v2237_v23 = vrot.slane %v2235_v56, 1 }
 0x138   : >> { %v924_v52 = vpop.f32.mrb[32].mxu0 }
 0x139   : >> { %v15704_v16 = vadd.f32 %v924_v52, %v15637_v54  ;;  %v12809_v44 = vpop.f32.mrb[33].mxu0  ;;  %13078 = vmatmul.mubr.msk.bf16.gmra.mrb[136].mxu1 %vm466_vm1, %v15296_v32  ;;  %v2240_v52 = vrot.slane %v2238_v22, 2  ;;  %v14327_v22 = vld [vmem:[%s14994_s12 + $0x5c] sm:$0xff]  }
 0x13a   : >> { %v927_v41 = vpop.f32.mrb[34].mxu0  ;;  %13081 = vmatprep.mubr.msk.bf16.mxu1 %vm14877_vm0, %v14876_v4  ;;  %13172 = vmatpush3.bf16.msra.mxu0 %v14416_v21 }
 0x13b   : >> { %v15715_v54 = vadd.f32 %v927_v41, %v15644_v60  ;;  %v12810_v45 = vpop.f32.mrb[35].mxu0  ;;  %13173 = vmatprep.subr.bf16.mxu0 %v14876_v4  ;;  %v2041_v60 = vor.u32 %v2040_v26, %v2037_v61  ;;  %v2053_v41 = vshrl.u32 %v14325_v49, 16 }
 0x13c   : >> { %v745_v32 = vpop.f32.mrb[32].mxu1 }
 0x13d   : >> { %v15720_v40 = vadd.f32 %v745_v32, %v15564_v17  ;;  %v12783_v6 = vpop.f32.mrb[33].mxu1  ;;  %13108 = vmatmul.mubr.msk.bf16.gmra.mrb[140].mxu0 %vm466_vm1, %v2033_v34  ;;  %v2042_v28 = vsel %vm1998_vm3, %v2032_v57, %v2041_v60  ;;  %v2245_v57 = vrot.slane %v2243_v11, 1  ;;  %v2056_v34 = vshll.u32 %v14325_v49, 16  ;;  %v14418_v49 = vld [vmem:[%s18362_s1] sm:$0xff]  }
 0x13e   : >> { %v748_v29 = vpop.f32.mrb[34].mxu1  ;;  %13111 = vmatprep.mubr.msk.bf16.mxu0 %vm14877_vm0, %v14876_v4  ;;  %13174 = vmatpush3.bf16.msra.mxu0 %v14417_v62  ;;  %v2241_v32 = vor.u32 %v2240_v52, %v2237_v23  ;;  %v2055_v6 = vrot.slane %v2053_v41, 1  ;;  %v2264_v23 = vshll.u32 %v14327_v22, 16  ;;  %v14419_v41 = vld [vmem:[%s18362_s1 + $0x8] sm:$0xff]  }
 0x13f   : >> { %v15730_v20 = vadd.f32 %v748_v29, %v15568_v5  ;;  %v12784_v17 = vpop.f32.mrb[35].mxu1  ;;  %13241 = vmatprep.subr.bf16.mxu0 %v14876_v4  ;;  %v2249_v58 = vor.u32 %v2248_v63, %v2245_v57 }
 0x140   : >> { %v932_v10 = vpop.f32.mrb[36].mxu0 }
 0x141   : >> { %v12813_v47 = vpop.f32.mrb[37].mxu0  ;;  %13082 = vmatmul.mubr.msk.bf16.gmra.mrb[140].mxu1 %vm466_vm1, %v15310_v35  ;;  %v15736_v38 = vadd.f32 %v932_v10, %v15661_v24  ;;  %v2050_v35 = vor.u32 %v2049_v18, %v2046_v42  ;;  %v15771_v42 = vsel %vm1998_vm3, %v2241_v32, %v2249_v58 }
 0x142   : >> { %v935_v5 = vpop.f32.mrb[38].mxu0  ;;  %13085 = vmatprep.mubr.msk.bf16.mxu1 %vm14877_vm0, %v14876_v4 }
 0x143   : >> { %v12814_v31 = vpop.f32.mrb[39].mxu0  ;;  %v15743_v39 = vadd.f32 %v935_v5, %v15670_v8  ;;  %v14326_v8 = vld [vmem:[%s14994_s12 + $0x54] sm:$0xff]   ;;  %v2051_v45 = vsel %vm1998_vm3, %v2041_v60, %v2050_v35 }
 0x144   : >> { %v1117_v59 = vpop.f32.mrb[36].mxu1  ;;  %v2252_v7 = vshrl.u32 %v14326_v8, 16  ;;  %v2255_v29 = vshll.u32 %v14326_v8, 16  ;;  %v14328_v8 = vld [vmem:[%s14994_s12 + $0x64] sm:$0xff]  }
 0x145   : >> { %v15746_v30 = vadd.f32 %v1117_v59, %v15626_v33  ;;  %v12835_v24 = vpop.f32.mrb[37].mxu1  ;;  %13112 = vmatmul.mubr.msk.bf16.gmra.mrb[144].mxu0 %vm466_vm1, %v2042_v28  ;;  %v2261_v59 = vshrl.u32 %v14327_v22, 16  ;;  %v2270_v32 = vshrl.u32 %v14328_v8, 16 }
 0x146   : >> { %v1120_v44 = vpop.f32.mrb[38].mxu1  ;;  %13115 = vmatprep.mubr.msk.bf16.mxu0 %vm14877_vm0, %v14876_v4  ;;  %v2254_v56 = vrot.slane %v2252_v7, 1  ;;  %v2257_v47 = vrot.slane %v2255_v29, 2 }
 0x147   : >> { %v15753_v61 = vadd.f32 %v1120_v44, %v15634_v51  ;;  %v12836_v26 = vpop.f32.mrb[39].mxu1  ;;  %v2058_v51 = vrot.slane %v2056_v34, 2  ;;  %v2266_v34 = vrot.slane %v2264_v23, 2 }
 0x148   : >> { %v940_v21 = vpop.f32.mrb[40].mxu0 }
 0x149   : >> { %v12817_v33 = vpop.f32.mrb[41].mxu0  ;;  %13086 = vmatmul.mubr.msk.bf16.gmra.mrb[144].mxu1 %vm466_vm1, %v15328_v37  ;;  %v15759_v3 = vadd.f32 %v940_v21, %v15690_v53  ;;  %v2059_v18 = vor.u32 %v2058_v51, %v2055_v6 }
 0x14a   : >> { %v943_v19 = vpop.f32.mrb[42].mxu0  ;;  %13137 = vmatprep.mubr.msk.bf16.mxu1 %vm14877_vm0, %v14876_v4 }
 0x14b   : >> { %v12818_v62 = vpop.f32.mrb[43].mxu0  ;;  %v15764_v17 = vadd.f32 %v943_v19, %v15699_v15  ;;  %v2060_v31 = vsel %vm1998_vm3, %v2050_v35, %v2059_v18 }
 0x14c   : >> { %v1125_v37 = vpop.f32.mrb[40].mxu1 }
 0x14d   : >> { %v15767_v60 = vadd.f32 %v1125_v37, %v15647_v12  ;;  %v12839_v10 = vpop.f32.mrb[41].mxu1  ;;  %13116 = vmatmul.mubr.msk.bf16.gmra.mrb[148].mxu0 %vm466_vm1, %v2051_v45 }
 0x14e   : >> { %v1128_v53 = vpop.f32.mrb[42].mxu1  ;;  %13119 = vmatprep.mubr.msk.bf16.mxu0 %vm14877_vm0, %v14876_v4  ;;  %v2272_v10 = vrot.slane %v2270_v32, 1 }
 0x14f   : >> { %v15777_v15 = vadd.f32 %v1128_v53, %v15657_v9  ;;  %v12840_v11 = vpop.f32.mrb[43].mxu1  ;;  %v2258_v9 = vor.u32 %v2257_v47, %v2254_v56  ;;  %v14329_v56 = vld [vmem:[%s14994_s12 + $0x6c] sm:$0xff]   ;;  %v14421_v47 = vld [vmem:[%s18362_s1 + $0x18] sm:$0xff]  }
 0x150   : >> { %v948_v12 = vpop.f32.mrb[44].mxu0 }
 0x151   : >> { %v12821_v50 = vpop.f32.mrb[45].mxu0  ;;  %13138 = vmatmul.mubr.msk.bf16.vlgmr.msra.gmra.mrb[148].mxu1 %vm466_vm1, %v15771_v42  ;;  %v15782_v5 = vadd.f32 %v948_v12, %v15720_v40  ;;  %v15799_v44 = vsel %vm1998_vm3, %v2249_v58, %v2258_v9  ;;  %v2273_v58 = vshll.u32 %v14328_v8, 16 }
 0x152   : >> { %v951_v28 = vpop.f32.mrb[46].mxu0  ;;  %13204 = vmatpush3.bf16.msra.mxu1 %v14418_v49  ;;  %13141 = vmatprep.mubr.msk.bf16.mxu1 %vm14877_vm0, %v14876_v4  ;;  %v2279_v50 = vshrl.u32 %v14329_v56, 16 }
 0x153   : >> { %13205 = vmatprep.subr.bf16.mxu1 %v14876_v4  ;;  %v12822_v24 = vpop.f32.mrb[47].mxu0  ;;  %v15792_v40 = vadd.f32 %v951_v28, %v15730_v20  ;;  %v2263_v20 = vrot.slane %v2261_v59, 1  ;;  %v2275_v53 = vrot.slane %v2273_v58, 2  ;;  %v2282_v28 = vshll.u32 %v14329_v56, 16  ;;  %v14425_v56 = vld [vmem:[%s18362_s1 + $0x60] sm:$0xff]  }
 0x154   : >> { %v1133_v52 = vpop.f32.mrb[44].mxu1 }
 0x155   : >> { %v15795_v57 = vadd.f32 %v1133_v52, %v15674_v46  ;;  %v12843_v63 = vpop.f32.mrb[45].mxu1  ;;  %13120 = vmatmul.mubr.msk.bf16.gmra.mrb[152].mxu0 %vm466_vm1, %v2060_v31  ;;  %v2267_v45 = vor.u32 %v2266_v34, %v2263_v20  ;;  %v2276_v12 = vor.u32 %v2275_v53, %v2272_v10  ;;  %v14423_v20 = vld [vmem:[%s18362_s1 + $0x50] sm:$0xff]  }
 0x156   : >> { %v1136_v35 = vpop.f32.mrb[46].mxu1  ;;  %13123 = vmatprep.mubr.msk.bf16.mxu0 %vm14877_vm0, %v14876_v4  ;;  %13206 = vmatpush3.bf16.msra.mxu1 %v14419_v41  ;;  %v2281_v63 = vrot.slane %v2279_v50, 1  ;;  %v14330_v41 = vld [vmem:[%s14994_s12 + $0x74] sm:$0xff]  }
 0x157   : >> { %v15808_v46 = vadd.f32 %v1136_v35, %v15686_v36  ;;  %v12844_v26 = vpop.f32.mrb[47].mxu1  ;;  %13207 = vmatprep.subr.bf16.mxu1 %v14876_v4  ;;  %v14420_v36 = vld [vmem:[%s18362_s1 + $0x10] sm:$0xff]   ;;  %v15828_v37 = vsel %vm1998_vm3, %v2258_v9, %v2267_v45  ;;  %v15858_v52 = vsel %vm1998_vm3, %v2267_v45, %v2276_v12  ;;  %v2284_v35 = vrot.slane %v2282_v28, 2 }
 0x158   : >> { %v15811_v21 = vpop.f32.mrb[48].mxu0  ;;  %v2291_v45 = vshll.u32 %v14330_v41, 16 }
 0x159   : >> { %13142 = vmatmul.mubr.msk.bf16.gmra.mrb[152].mxu1 %vm466_vm1, %v15799_v44  ;;  %v12873_v33 = vpop.f32.mrb[49].mxu0  ;;  %v2285_v26 = vor.u32 %v2284_v35, %v2281_v63 }
 0x15a   : >> { %13145 = vmatprep.mubr.msk.bf16.mxu1 %vm14877_vm0, %v14876_v4  ;;  %13208 = vmatpush3.bf16.msra.mxu1 %v14420_v36  ;;  %v15820_v19 = vpop.f32.mrb[50].mxu0  ;;  %v2288_v33 = vshrl.u32 %v14330_v41, 16  ;;  %v2293_v53 = vrot.slane %v2291_v45, 2 }
 0x15b   : >> { %13209 = vmatprep.subr.bf16.mxu1 %v14876_v4  ;;  %v12874_v6 = vpop.f32.mrb[51].mxu0 }
 0x15c   : >> { %v1141_v51 = vpop.f32.mrb[48].mxu1  ;;  %v2290_v10 = vrot.slane %v2288_v33, 1 }
 0x15d   : >> { %v15824_v7 = vadd.f32 %v1141_v51, %v15704_v16  ;;  %v12847_v29 = vpop.f32.mrb[49].mxu1  ;;  %13124 = vmatmul.mubr.msk.bf16.gmra.mrb[156].mxu0 %vm466_vm1, %v2059_v18 }
 0x15e   : >> { %v1144_v62 = vpop.f32.mrb[50].mxu1  ;;  %13175 = vmatprep.mubr.msk.bf16.mxu0 %vm14877_vm0, %v14876_v4  ;;  %13210 = vmatpush3.bf16.msra.mxu1 %v14421_v47 }
 0x15f   : >> { %v15837_v16 = vadd.f32 %v1144_v62, %v15715_v54  ;;  %v12848_v22 = vpop.f32.mrb[51].mxu1  ;;  %13211 = vmatprep.subr.bf16.mxu1 %v14876_v4  ;;  %v14422_v54 = vld [vmem:[%s18362_s1 + $0x20] sm:$0xff]   ;;  %v15888_v62 = vsel %vm1998_vm3, %v2276_v12, %v2285_v26 }
 0x160   : >> { %v15840_v18 = vpop.f32.mrb[52].mxu0 }
 0x161   : >> { %13146 = vmatmul.mubr.msk.bf16.gmra.mrb[156].mxu1 %vm466_vm1, %v15828_v37  ;;  %v12877_v11 = vpop.f32.mrb[53].mxu0 }
 0x162   : >> { %13149 = vmatprep.mubr.msk.bf16.mxu1 %vm14877_vm0, %v14876_v4  ;;  %v15846_v49 = vpop.f32.mrb[54].mxu0  ;;  %13212 = vmatpush3.bf16.msra.mxu1 %v14422_v54  ;;  %v15905_v11 = vor.u32 %v2293_v53, %v2290_v10 }
 0x163   : >> { %v12878_v31 = vpop.f32.mrb[55].mxu0  ;;  %13279 = vmatprep.subr.bf16.mxu1 %v14876_v4 }
 0x164   : >> { %v1149_v9 = vpop.f32.mrb[52].mxu1 }
 0x165   : >> { %v15853_v59 = vadd.f32 %v1149_v9, %v15736_v38  ;;  %v12851_v23 = vpop.f32.mrb[53].mxu1  ;;  %13176 = vmatmul.mubr.msk.bf16.vlgmr.msra.gmra.mrb[160].mxu0 %vm466_vm1, %v15486_v14 }
 0x166   : >> { %v1152_v24 = vpop.f32.mrb[54].mxu1  ;;  %13179 = vmatprep.mubr.msk.bf16.mxu0 %vm14877_vm0, %v14876_v4  ;;  %13242 = vmatpush3.bf16.msra.mxu0 %v14423_v20  ;;  %v15920_v23 = vsel %vm1998_vm3, %v2285_v26, %v15905_v11 }
 0x167   : >> { %v15867_v38 = vadd.f32 %v1152_v24, %v15743_v39  ;;  %v12852_v34 = vpop.f32.mrb[55].mxu1  ;;  %13243 = vmatprep.subr.bf16.mxu0 %v14876_v4  ;;  %v14424_v39 = vld [vmem:[%s18362_s1 + $0x58] sm:$0xff]   ;;  %v14427_v24 = vld [vmem:[%s18362_s1 + $0x70] sm:$0xff]  }
 0x168   : >> { %v15870_v14 = vpop.f32.mrb[56].mxu0 }
 0x169   : >> { %13150 = vmatmul.mubr.msk.bf16.gmra.mrb[160].mxu1 %vm466_vm1, %v15858_v52  ;;  %v12881_v8 = vpop.f32.mrb[57].mxu0 }
 0x16a   : >> { %13153 = vmatprep.mubr.msk.bf16.mxu1 %vm14877_vm0, %v14876_v4  ;;  %v15876_v32 = vpop.f32.mrb[58].mxu0  ;;  %13244 = vmatpush3.bf16.msra.mxu0 %v14424_v39 }
 0x16b   : >> { %v12882_v58 = vpop.f32.mrb[59].mxu0  ;;  %13245 = vmatprep.subr.bf16.mxu0 %v14876_v4 }
 0x16c   : >> { %v1157_v36 = vpop.f32.mrb[56].mxu1 }
 0x16d   : >> { %v15883_v6 = vadd.f32 %v1157_v36, %v15759_v3  ;;  %v12855_v51 = vpop.f32.mrb[57].mxu1  ;;  %13180 = vmatmul.mubr.msk.bf16.gmra.mrb[164].mxu0 %vm466_vm1, %v15501_v48 }
 0x16e   : >> { %v1160_v29 = vpop.f32.mrb[58].mxu1  ;;  %13183 = vmatprep.mubr.msk.bf16.mxu0 %vm14877_vm0, %v14876_v4  ;;  %13246 = vmatpush3.bf16.msra.mxu0 %v14425_v56 }
 0x16f   : >> { %v15896_v3 = vadd.f32 %v1160_v29, %v15764_v17  ;;  %v12856_v47 = vpop.f32.mrb[59].mxu1  ;;  %13247 = vmatprep.subr.bf16.mxu0 %v14876_v4  ;;  %v14426_v17 = vld [vmem:[%s18362_s1 + $0x68] sm:$0xff]  }
 0x170   : >> { %v15899_v48 = vpop.f32.mrb[60].mxu0  ;;  %v14428_v47 = vld [vmem:[%s14994_s12 + $0xc0] sm:$0xff]  }
 0x171   : >> { %13154 = vmatmul.mubr.msk.bf16.gmra.mrb[164].mxu1 %vm466_vm1, %v15888_v62  ;;  %v12885_v22 = vpop.f32.mrb[61].mxu0 }
 0x172   : >> { %13157 = vmatprep.mubr.msk.bf16.mxu1 %vm14877_vm0, %v14876_v4  ;;  %v15907_v12 = vpop.f32.mrb[62].mxu0  ;;  %13248 = vmatpush3.bf16.msra.mxu0 %v14426_v17 }
 0x173   : >> { %v12886_v50 = vpop.f32.mrb[63].mxu0  ;;  %13249 = vmatprep.subr.bf16.mxu0 %v14876_v4 }
 0x174   : >> { %v1165_v28 = vpop.f32.mrb[60].mxu1 }
 0x175   : >> { %v15914_v54 = vadd.f32 %v1165_v28, %v15782_v5  ;;  %v12859_v31 = vpop.f32.mrb[61].mxu1  ;;  %13184 = vmatmul.mubr.msk.bf16.gmra.mrb[168].mxu0 %vm466_vm1, %v15518_v13 }
 0x176   : >> { %v1168_v9 = vpop.f32.mrb[62].mxu1  ;;  %13187 = vmatprep.mubr.msk.bf16.mxu0 %vm14877_vm0, %v14876_v4  ;;  %13250 = vmatpush3.bf16.msra.mxu0 %v14427_v24 }
 0x177   : >> { %v15928_v5 = vadd.f32 %v1168_v9, %v15792_v40  ;;  %v12860_v63 = vpop.f32.mrb[63].mxu1  ;;  %13317 = vmatprep.subr.bf16.mxu0 %v14876_v4  ;;  %v14430_v9 = vld [vmem:[%s18362_s1 + $0x80] sm:$0xff]  }
 0x178   : >> { %v15931_v13 = vpop.f32.mrb[64].mxu0 }
 0x179   : >> { %13158 = vmatmul.mubr.msk.bf16.gmra.mrb[168].mxu1 %vm466_vm1, %v15920_v23  ;;  %v12889_v35 = vpop.f32.mrb[65].mxu0 }
 0x17a   : >> { %13161 = vmatprep.mubr.msk.bf16.mxu1 %vm14877_vm0, %v14876_v4  ;;  %v15937_v41 = vpop.f32.mrb[66].mxu0 }
 0x17b   : >> { %v12890_v20 = vpop.f32.mrb[67].mxu0 }
 0x17c   : >> { %v1413_v34 = vpop.f32.mrb[64].mxu1 }
 0x17d   : >> { %v1414_v8 = vadd.f32 %v1413_v34, %v15811_v21  ;;  %v12911_v40 = vpop.f32.mrb[65].mxu1  ;;  %13188 = vmatmul.mubr.msk.bf16.gmra.mrb[172].mxu0 %vm466_vm1, %v15535_v55  ;;  %v14431_v34 = vld [vmem:[%s14994_s12 + $0xc8] sm:$0xff]  }
 0x17e   : >> { %v1416_v26 = vpop.f32.mrb[66].mxu1  ;;  %13191 = vmatprep.mubr.msk.bf16.mxu0 %vm14877_vm0, %v14876_v4  ;;  %v14432_v40 = vld [vmem:[%s18362_s1 + $0x88] sm:$0xff]  }
 0x17f   : >> { %v1417_v33 = vadd.f32 %v1416_v26, %v15820_v19  ;;  %v12912_v45 = vpop.f32.mrb[67].mxu1 }
 0x180   : >> { %v15945_v39 = vpop.f32.mrb[68].mxu0 }
 0x181   : >> { %13162 = vmatmul.mubr.msk.bf16.gmra.mrb[172].mxu1 %vm466_vm1, %v15905_v11  ;;  %v12893_v58 = vpop.f32.mrb[69].mxu0 }
 0x182   : >> { %13213 = vmatprep.mubr.msk.bf16.mxu1 %vm14877_vm0, %v14876_v4  ;;  %v15951_v21 = vpop.f32.mrb[70].mxu0 }
 0x183   : >> { %v12894_v55 = vpop.f32.mrb[71].mxu0 }
 0x184   : >> { %v1421_v36 = vpop.f32.mrb[68].mxu1 }
 0x185   : >> { %v1422_v51 = vadd.f32 %v1421_v36, %v15840_v18  ;;  %v12915_v29 = vpop.f32.mrb[69].mxu1  ;;  %13192 = vmatmul.mubr.msk.bf16.gmra.mrb[176].mxu0 %vm466_vm1, %v15556_v25  ;;  %v14429_v18 = vld [vmem:[%s18362_s1 + $0x78] sm:$0xff]  }
 0x186   : >> { %v1424_v19 = vpop.f32.mrb[70].mxu1  ;;  %13195 = vmatprep.mubr.msk.bf16.mxu0 %vm14877_vm0, %v14876_v4 }
 0x187   : >> { %v1425_v10 = vadd.f32 %v1424_v19, %v15846_v49  ;;  %v12916_v53 = vpop.f32.mrb[71].mxu1 }
 0x188   : >> { %v15959_v56 = vpop.f32.mrb[72].mxu0 }
 0x189   : >> { %13214 = vmatmul.mubr.msk.bf16.vlgmr.msra.gmra.mrb[176].mxu1 %vm466_vm1, %v14428_v47  ;;  %v12897_v22 = vpop.f32.mrb[73].mxu0  ;;  %v14434_v47 = vld [vmem:[%s14994_s12 + $0xd0] sm:$0xff]  }
 0x18a   : >> { %13280 = vmatpush3.bf16.msra.mxu1 %v14429_v18  ;;  %v15966_v17 = vpop.f32.mrb[74].mxu0  ;;  %13217 = vmatprep.mubr.msk.bf16.mxu1 %vm14877_vm0, %v14876_v4  ;;  %v14435_v22 = vld [vmem:[%s18362_s1 + $0x98] sm:$0xff]  }
 0x18b   : >> { %v12898_v25 = vpop.f32.mrb[75].mxu0  ;;  %13281 = vmatprep.subr.bf16.mxu1 %v14876_v4 }
 0x18c   : >> { %v1429_v49 = vpop.f32.mrb[72].mxu1 }
 0x18d   : >> { %v1430_v50 = vadd.f32 %v1429_v49, %v15870_v14  ;;  %v12919_v28 = vpop.f32.mrb[73].mxu1  ;;  %13196 = vmatmul.mubr.msk.bf16.gmra.mrb[180].mxu0 %vm466_vm1, %v15577_v27 }
 0x18e   : >> { %v1432_v31 = vpop.f32.mrb[74].mxu1  ;;  %13199 = vmatprep.mubr.msk.bf16.mxu0 %vm14877_vm0, %v14876_v4  ;;  %13282 = vmatpush3.bf16.msra.mxu1 %v14430_v9 }
 0x18f   : >> { %v1433_v24 = vadd.f32 %v1432_v31, %v15876_v32  ;;  %v12920_v63 = vpop.f32.mrb[75].mxu1  ;;  %13283 = vmatprep.subr.bf16.mxu1 %v14876_v4 }
 0x190   : >> { %v1502_v35 = vpop.f32.mrb[76].mxu0 }
 0x191   : >> { %v15981_v14 = vadd.f32 %v1502_v35, %v1414_v8  ;;  %v12949_v20 = vpop.f32.mrb[77].mxu0  ;;  %13218 = vmatmul.mubr.msk.bf16.gmra.mrb[180].mxu1 %vm466_vm1, %v14431_v34 }
 0x192   : >> { %v1505_v27 = vpop.f32.mrb[78].mxu0  ;;  %13221 = vmatprep.mubr.msk.bf16.mxu1 %vm14877_vm0, %v14876_v4  ;;  %13284 = vmatpush3.bf16.msra.mxu1 %v14432_v40  ;;  %v14436_v20 = vld [vmem:[%s14994_s12 + $0xd8] sm:$0xff]  }
 0x193   : >> { %v15990_v32 = vadd.f32 %v1505_v27, %v1417_v33  ;;  %v12950_v26 = vpop.f32.mrb[79].mxu0  ;;  %13285 = vmatprep.subr.bf16.mxu1 %v14876_v4  ;;  %v14433_v33 = vld [vmem:[%s18362_s1 + $0x90] sm:$0xff]  }
 0x194   : >> { %v1437_v8 = vpop.f32.mrb[76].mxu1 }
 0x195   : >> { %v1438_v45 = vadd.f32 %v1437_v8, %v15899_v48  ;;  %v12923_v58 = vpop.f32.mrb[77].mxu1  ;;  %13200 = vmatmul.mubr.msk.bf16.gmra.mrb[184].mxu0 %vm466_vm1, %v15590_v43 }
 0x196   : >> { %v1440_v55 = vpop.f32.mrb[78].mxu1  ;;  %13251 = vmatprep.mubr.msk.bf16.mxu0 %vm14877_vm0, %v14876_v4  ;;  %13286 = vmatpush3.bf16.msra.mxu1 %v14433_v33  ;;  %v14437_v33 = vld [vmem:[%s14994_s12 + $0xe0] sm:$0xff]  }
 0x197   : >> { %v1441_v36 = vadd.f32 %v1440_v55, %v15907_v12  ;;  %v12924_v29 = vpop.f32.mrb[79].mxu1  ;;  %13287 = vmatprep.subr.bf16.mxu1 %v14876_v4 }
 0x198   : >> { %v1510_v19 = vpop.f32.mrb[80].mxu0 }
 0x199   : >> { %v16003_v48 = vadd.f32 %v1510_v19, %v1422_v51  ;;  %v12953_v53 = vpop.f32.mrb[81].mxu0  ;;  %13222 = vmatmul.mubr.msk.bf16.gmra.mrb[184].mxu1 %vm466_vm1, %v14434_v47 }
 0x19a   : >> { %v1513_v43 = vpop.f32.mrb[82].mxu0  ;;  %13225 = vmatprep.mubr.msk.bf16.mxu1 %vm14877_vm0, %v14876_v4  ;;  %13288 = vmatpush3.bf16.msra.mxu1 %v14435_v22 }
 0x19b   : >> { %v16012_v12 = vadd.f32 %v1513_v43, %v1425_v10  ;;  %v12954_v18 = vpop.f32.mrb[83].mxu0  ;;  %13353 = vmatprep.subr.bf16.mxu1 %v14876_v4 }
 0x19c   : >> { %v1445_v51 = vpop.f32.mrb[80].mxu1 }
 0x19d   : >> { %v1446_v25 = vadd.f32 %v1445_v51, %v15931_v13  ;;  %v12927_v49 = vpop.f32.mrb[81].mxu1  ;;  %13252 = vmatmul.mubr.msk.bf16.vlgmr.msra.gmra.mrb[188].mxu0 %vm466_vm1, %v15771_v42  ;;  %v14438_v51 = vld [vmem:[%s14994_s12 + $0xe8] sm:$0xff]  }
 0x19e   : >> { %v1448_v28 = vpop.f32.mrb[82].mxu1  ;;  %13255 = vmatprep.mubr.msk.bf16.mxu0 %vm14877_vm0, %v14876_v4 }
 0x19f   : >> { %v1449_v31 = vadd.f32 %v1448_v28, %v15937_v41  ;;  %v12928_v9 = vpop.f32.mrb[83].mxu1 }
 0x1a0   : >> { %v1518_v63 = vpop.f32.mrb[84].mxu0 }
 0x1a1   : >> { %v16021_v10 = vadd.f32 %v1518_v63, %v1430_v50  ;;  %v12957_v35 = vpop.f32.mrb[85].mxu0  ;;  %13226 = vmatmul.mubr.msk.bf16.gmra.mrb[188].mxu1 %vm466_vm1, %v14436_v20  ;;  %v14331_v63 = vld [vmem:[%s14994_s12 + $0x4] sm:$0xfc]  }
 0x1a2   : >> { %v1521_v13 = vpop.f32.mrb[86].mxu0  ;;  %13229 = vmatprep.mubr.msk.bf16.mxu1 %vm14877_vm0, %v14876_v4  ;;  %v14332_v35 = vld [vmem:[%s14994_s12 + $0xc] sm:$0xff]  }
 0x1a3   : >> { %v16027_v42 = vadd.f32 %v1521_v13, %v1433_v24  ;;  %v12958_v34 = vpop.f32.mrb[87].mxu0 }
 0x1a4   : >> { %v1453_v27 = vpop.f32.mrb[84].mxu1 }
 0x1a5   : >> { %v1454_v40 = vadd.f32 %v1453_v27, %v15945_v39  ;;  %v12931_v41 = vpop.f32.mrb[85].mxu1  ;;  %13256 = vmatmul.mubr.msk.bf16.gmra.mrb[192].mxu0 %vm466_vm1, %v15799_v44 }
 0x1a6   : >> { %v1456_v50 = vpop.f32.mrb[86].mxu1  ;;  %13259 = vmatprep.mubr.msk.bf16.mxu0 %vm14877_vm0, %v14876_v4 }
 0x1a7   : >> { %v1457_v26 = vadd.f32 %v1456_v50, %v15951_v21  ;;  %v12932_v8 = vpop.f32.mrb[87].mxu1  ;;  %v14439_v50 = vld [vmem:[%s14994_s12 + $0xf0] sm:$0x7f]  }
 0x1a8   : >> { %v1526_v58 = vpop.f32.mrb[88].mxu0  ;;  %v2783_v8 = vrot.slane %v14331_v63, 2 }
 0x1a9   : >> { %v16035_v55 = vadd.f32 %v1526_v58, %v1438_v45  ;;  %v12961_v24 = vpop.f32.mrb[89].mxu0  ;;  %13230 = vmatmul.mubr.msk.bf16.gmra.mrb[192].mxu1 %vm466_vm1, %v14437_v33  ;;  %v2784_v58 = vrot.slane %v14332_v35, 2 }
 0x1aa   : >> { %v1529_v39 = vpop.f32.mrb[90].mxu0  ;;  %13233 = vmatprep.mubr.msk.bf16.mxu1 %vm14877_vm0, %v14876_v4 }
 0x1ab   : >> { %v16041_v44 = vadd.f32 %v1529_v39, %v1441_v36  ;;  %v12962_v29 = vpop.f32.mrb[91].mxu0 }
 0x1ac   : >> { %v1461_v19 = vpop.f32.mrb[88].mxu1 }
 0x1ad   : >> { %v1462_v53 = vadd.f32 %v1461_v19, %v15959_v56  ;;  %v12935_v21 = vpop.f32.mrb[89].mxu1  ;;  %13260 = vmatmul.mubr.msk.bf16.gmra.mrb[196].mxu0 %vm466_vm1, %v15828_v37 }
 0x1ae   : >> { %v1464_v45 = vpop.f32.mrb[90].mxu1  ;;  %13263 = vmatprep.mubr.msk.bf16.mxu0 %vm14877_vm0, %v14876_v4 }
 0x1af   : >> { %v1465_v47 = vadd.f32 %v1464_v45, %v15966_v17  ;;  %v12936_v43 = vpop.f32.mrb[91].mxu1 }
 0x1b0   : >> { %v1534_v22 = vpop.f32.mrb[92].mxu0  ;;  %v2785_v43 = vsel %vm2782_vm4, %v2783_v8, %v2784_v58 }
 0x1b1   : >> { %v16049_v36 = vadd.f32 %v1534_v22, %v1446_v25  ;;  %v12965_v18 = vpop.f32.mrb[93].mxu0  ;;  %13234 = vmatmul.mubr.msk.bf16.gmra.mrb[196].mxu1 %vm466_vm1, %v14438_v51  ;;  %v14333_v22 = vld [vmem:[%s14994_s12 + $0x14] sm:$0xff]  }
 0x1b2   : >> { %v1537_v56 = vpop.f32.mrb[94].mxu0  ;;  %13237 = vmatprep.mubr.msk.bf16.mxu1 %vm14877_vm0, %v14876_v4 }
 0x1b3   : >> { %v16055_v37 = vadd.f32 %v1537_v56, %v1449_v31  ;;  %v12966_v49 = vpop.f32.mrb[95].mxu0 }
 0x1b4   : >> { %v1674_v28 = vpop.f32.mrb[92].mxu1 }
 0x1b5   : >> { %v1729_v17 = vadd.f32 %v1674_v28, %v15981_v14  ;;  %v12987_v9 = vpop.f32.mrb[93].mxu1  ;;  %13264 = vmatmul.mubr.msk.bf16.gmra.mrb[200].mxu0 %vm466_vm1, %v15858_v52 }
 0x1b6   : >> { %v1677_v25 = vpop.f32.mrb[94].mxu1  ;;  %13267 = vmatprep.mubr.msk.bf16.mxu0 %vm14877_vm0, %v14876_v4 }
 0x1b7   : >> { %v1743_v20 = vadd.f32 %v14945_v0, %v1729_v17  ;;  %v1730_v31 = vadd.f32 %v1677_v25, %v15990_v32  ;;  %v12988_v13 = vpop.f32.mrb[95].mxu1  ;;  %v2786_v17 = vrot.slane %v14333_v22, 2 }
 0x1b8   : >> { %v1542_v34 = vpop.f32.mrb[96].mxu0 }
 0x1b9   : >> { %v1744_v27 = vadd.f32 %v14945_v0, %v1730_v31  ;;  %v16067_v41 = vadd.f32 %v1542_v34, %v1454_v40  ;;  %v12969_v14 = vpop.f32.mrb[97].mxu0  ;;  %13238 = vmatmul.mubr.msk.bf16.gmra.mrb[200].mxu1 %vm466_vm1, %v14439_v50  ;;  %v1757_v24 = vmax.f32 %v1743_v20, 0.0  ;;  %v2787_v34 = vsel %vm2782_vm4, %v2784_v58, %v2786_v17 }
 0x1ba   : >> { %v1545_v52 = vpop.f32.mrb[98].mxu0  ;;  %13289 = vmatprep.mubr.msk.bf16.mxu1 %vm14877_vm0, %v14876_v4 }
 0x1bb   : >> { %v1758_v33 = vmax.f32 %v1744_v27, 0.0  ;;  %v16073_v32 = vadd.f32 %v1545_v52, %v1457_v26  ;;  %v12970_v39 = vpop.f32.mrb[99].mxu0  ;;  %v14334_v27 = vld [vmem:[%s14994_s12 + $0x1c] sm:$0xff]  }
 0x1bc   : >> { %v1682_v29 = vpop.f32.mrb[96].mxu1  ;;  %v2788_v8 = vrot.slane %v14334_v27, 2 }
 0x1bd   : >> { %v1731_v40 = vadd.f32 %v1682_v29, %v16003_v48  ;;  %v12991_v19 = vpop.f32.mrb[97].mxu1  ;;  %13268 = vmatmul.mubr.msk.bf16.gmra.mrb[204].mxu0 %vm466_vm1, %v15888_v62  ;;  %v14179_v21 = vpack.i.bf16 %v1758_v33, %v1757_v24 }
 0x1be   : >> { %v1685_v45 = vpop.f32.mrb[98].mxu1  ;;  %13271 = vmatprep.mubr.msk.bf16.mxu0 %vm14877_vm0, %v14876_v4 }
 0x1bf   : >> { %v1745_v26 = vadd.f32 %v14945_v0, %v1731_v40  ;;  %v1732_v18 = vadd.f32 %v1685_v45, %v16012_v12  ;;  %14180 = vrot.lane.b32.xlu0 %v14179_v21, %s14878_s28  ;;  %v12992_v48 = vpop.f32.mrb[99].mxu1  ;;  %v2789_v45 = vsel %vm2782_vm4, %v2786_v17, %v2788_v8 }
 0x1c0   : >> { %v1550_v51 = vpop.f32.mrb[100].mxu0 }
 0x1c1   : >> { %v1746_v56 = vadd.f32 %v14945_v0, %v1732_v18  ;;  %v16086_v62 = vadd.f32 %v1550_v51, %v1462_v53  ;;  %v12973_v49 = vpop.f32.mrb[101].mxu0  ;;  %13290 = vmatmul.mubr.msk.bf16.vlgmr.msra.gmra.mrb[204].mxu1 %vm466_vm1, %v2785_v43  ;;  %v1759_v9 = vmax.f32 %v1745_v26, 0.0  ;;  %v14335_v43 = vld [vmem:[%s14994_s12 + $0x24] sm:$0xff]  }
 0x1c2   : >> { %v1553_v28 = vpop.f32.mrb[102].mxu0  ;;  %13293 = vmatprep.mubr.msk.bf16.mxu1 %vm14877_vm0, %v14876_v4  ;;  %v2790_v51 = vrot.slane %v14335_v43, 2 }
 0x1c3   : >> { %v1760_v12 = vmax.f32 %v1746_v56, 0.0  ;;  %v16091_v25 = vadd.f32 %v1553_v28, %v1465_v47  ;;  %v12974_v63 = vpop.f32.mrb[103].mxu0 }
 0x1c4   : >> { %v1690_v35 = vpop.f32.mrb[100].mxu1 }
 0x1c5   : >> { %v1733_v20 = vadd.f32 %v1690_v35, %v16021_v10  ;;  %v12995_v31 = vpop.f32.mrb[101].mxu1  ;;  %13272 = vmatmul.mubr.msk.bf16.gmra.mrb[208].mxu0 %vm466_vm1, %v15920_v23  ;;  %v14184_v53 = vpack.i.bf16 %v1760_v12, %v1759_v9 }
 0x1c6   : >> { %v1693_v13 = vpop.f32.mrb[102].mxu1  ;;  %13275 = vmatprep.mubr.msk.bf16.mxu0 %vm14877_vm0, %v14876_v4  ;;  %v14336_v31 = vld [vmem:[%s14994_s12 + $0x2c] sm:$0xff]  }
 0x1c7   : >> { %v1747_v14 = vadd.f32 %v14945_v0, %v1733_v20  ;;  %v1734_v47 = vadd.f32 %v1693_v13, %v16027_v42  ;;  %14185 = vrot.lane.b32.xlu1 %v14184_v53, %s14878_s28  ;;  %v12996_v50 = vpop.f32.mrb[103].mxu1  ;;  %v2791_v20 = vsel %vm2782_vm4, %v2788_v8, %v2790_v51 }
 0x1c8   : >> { %v16103_v10 = vpop.f32.mrb[104].mxu0 }
 0x1c9   : >> { %v1748_v52 = vadd.f32 %v14945_v0, %v1734_v47  ;;  %13294 = vmatmul.mubr.msk.bf16.gmra.mrb[208].mxu1 %vm466_vm1, %v2787_v34  ;;  %v13025_v23 = vpop.f32.mrb[105].mxu0  ;;  %v1761_v24 = vmax.f32 %v1747_v14, 0.0 }
 0x1ca   : >> { %13297 = vmatprep.mubr.msk.bf16.mxu1 %vm14877_vm0, %v14876_v4  ;;  %v16109_v58 = vpop.f32.mrb[106].mxu0 }
 0x1cb   : >> { %v1762_v33 = vmax.f32 %v1748_v52, 0.0  ;;  %v13026_v42 = vpop.f32.mrb[107].mxu0 }
 0x1cc   : >> { %v1698_v39 = vpop.f32.mrb[104].mxu1 }
 0x1cd   : >> { %v16111_v29 = vpack.i.bf16 %v1762_v33, %v1761_v24  ;;  %v1735_v40 = vadd.f32 %v1698_v39, %v16035_v55  ;;  %v12999_v19 = vpop.f32.mrb[105].mxu1  ;;  %13276 = vmatmul.mubr.msk.bf16.gmra.mrb[212].mxu0 %vm466_vm1, %v15905_v11 }
 0x1ce   : >> { %v1701_v21 = vpop.f32.mrb[106].mxu1  ;;  %13325 = vmatprep.mubr.msk.bf16.mxu0 %vm14877_vm0, %v14876_v4  ;;  %v14337_v19 = vld [vmem:[%s14994_s12 + $0x34] sm:$0xff]  }
 0x1cf   : >> { %v1749_v22 = vadd.f32 %v14945_v0, %v1735_v40  ;;  %v1736_v26 = vadd.f32 %v1701_v21, %v16041_v44  ;;  %v13000_v18 = vpop.f32.mrb[107].mxu1 }
 0x1d0   : >> { %v16122_v48 = vpop.f32.mrb[108].mxu0 }
 0x1d1   : >> { %v1750_v55 = vadd.f32 %v14945_v0, %v1736_v26  ;;  %13298 = vmatmul.mubr.msk.bf16.gmra.mrb[212].mxu1 %vm466_vm1, %v2789_v45  ;;  %v13029_v11 = vpop.f32.mrb[109].mxu0  ;;  %v1763_v49 = vmax.f32 %v1749_v22, 0.0 }
 0x1d2   : >> { %13301 = vmatprep.mubr.msk.bf16.mxu1 %vm14877_vm0, %v14876_v4  ;;  %v16128_v56 = vpop.f32.mrb[110].mxu0 }
 0x1d3   : >> { %v1764_v28 = vmax.f32 %v1750_v55, 0.0  ;;  %v13030_v17 = vpop.f32.mrb[111].mxu0 }
 0x1d4   : >> { %v1706_v9 = vpop.f32.mrb[108].mxu1 }
 0x1d5   : >> { %v16130_v44 = vpack.i.bf16 %v1764_v28, %v1763_v49  ;;  %v1737_v12 = vadd.f32 %v1706_v9, %v16049_v36  ;;  %v13003_v63 = vpop.f32.mrb[109].mxu1  ;;  %v2792_v36 = vrot.slane %v14336_v31, 2 }
 0x1d6   : >> { %v1709_v35 = vpop.f32.mrb[110].mxu1 }
 0x1d7   : >> { %v1751_v53 = vadd.f32 %v14945_v0, %v1737_v12  ;;  %v1738_v13 = vadd.f32 %v1709_v35, %v16055_v37  ;;  %v13004_v34 = vpop.f32.mrb[111].mxu1  ;;  %v2793_v40 = vsel %vm2782_vm4, %v2790_v51, %v2792_v36  ;;  %v14338_v35 = vld [vmem:[%s14994_s12 + $0x3c] ss:$0 sps:$4 sm:$0x11]   ;;  %s14879_s12 = smov 32  }
 0x1d8   : >> { %v16137_v27 = vpop.f32.mrb[112].mxu0  ;;  %v2796_v34 = vrot.slane %v14338_v35, 2 }
 0x1d9   : >> { %v1752_v14 = vadd.f32 %v14945_v0, %v1738_v13  ;;  %13302 = vmatmul.mubr.msk.bf16.gmra.mrb[216].mxu1 %vm466_vm1, %v2791_v20  ;;  %v13033_v47 = vpop.f32.mrb[113].mxu0  ;;  %v1765_v52 = vmax.f32 %v1751_v53, 0.0 }
 0x1da   : >> { %13305 = vmatprep.mubr.msk.bf16.mxu1 %vm14877_vm0, %v14876_v4  ;;  %v16143_v50 = vpop.f32.mrb[114].mxu0 }
 0x1db   : >> { %v1766_v23 = vmax.f32 %v1752_v14, 0.0  ;;  %v13034_v8 = vpop.f32.mrb[115].mxu0 }
 0x1dc   : >> { %v1714_v24 = vpop.f32.mrb[112].mxu1 }
 0x1dd   : >> { %v16145_v37 = vpack.i.bf16 %v1766_v23, %v1765_v52  ;;  %v1739_v33 = vadd.f32 %v1714_v24, %v16067_v41  ;;  %v13007_v42 = vpop.f32.mrb[113].mxu1  ;;  %v2794_v41 = vrot.slane %v14337_v19, 2 }
 0x1de   : >> { %v1717_v39 = vpop.f32.mrb[114].mxu1 }
 0x1df   : >> { %v1753_v21 = vadd.f32 %v14945_v0, %v1739_v33  ;;  %v1740_v45 = vadd.f32 %v1717_v39, %v16073_v32  ;;  %v13008_v43 = vpop.f32.mrb[115].mxu1  ;;  %v2795_v63 = vsel %vm2782_vm4, %v2792_v36, %v2794_v41  ;;  %v2797_v8 = vsel %vm2782_vm4, %v2794_v41, %v2796_v34 }
 0x1e0   : >> { %v1829_v22 = vpop.f32.mrb[116].mxu0 }
 0x1e1   : >> { %v1754_v26 = vadd.f32 %v14945_v0, %v1740_v45  ;;  %13306 = vmatmul.mubr.msk.bf16.gmra.mrb[220].mxu1 %vm466_vm1, %v2793_v40  ;;  %v13037_v18 = vpop.f32.mrb[117].mxu0  ;;  %v1767_v11 = vmax.f32 %v1753_v21, 0.0 }
 0x1e2   : >> { %13309 = vmatprep.mubr.msk.bf16.mxu1 %vm14877_vm0, %v14876_v4  ;;  %v1832_v55 = vpop.f32.mrb[118].mxu0 }
 0x1e3   : >> { %v1768_v51 = vmax.f32 %v1754_v26, 0.0  ;;  %v13038_v49 = vpop.f32.mrb[119].mxu0 }
 0x1e4   : >> { %v1722_v28 = vpop.f32.mrb[116].mxu1 }
 0x1e5   : >> { %v16156_v17 = vpack.i.bf16 %v1768_v51, %v1767_v11  ;;  %v16159_v32 = vadd.f32 %v1722_v28, %v16086_v62  ;;  %v13011_v9 = vpop.f32.mrb[117].mxu1 }
 0x1e6   : >> { %v1725_v12 = vpop.f32.mrb[118].mxu1 }
 0x1e7   : >> { %v16164_v20 = vadd.f32 %v1725_v12, %v16091_v25  ;;  %v13012_v31 = vpop.f32.mrb[119].mxu1 }
 0x1e8   : >> { %v1837_v53 = vpop.f32.mrb[120].mxu0 }
 0x1e9   : >> { %13310 = vmatmul.mubr.msk.bf16.gmra.mrb[224].mxu1 %vm466_vm1, %v2795_v63  ;;  %v13041_v13 = vpop.f32.mrb[121].mxu0 }
 0x1ea   : >> { %13313 = vmatprep.mubr.msk.bf16.mxu1 %vm14877_vm0, %v14876_v4  ;;  %v1840_v14 = vpop.f32.mrb[122].mxu0 }
 0x1eb   : >> { %v13042_v62 = vpop.f32.mrb[123].mxu0 }
 0x1ec   : >> { %v1894_v47 = vpop.f32.mrb[120].mxu1 }
 0x1ed   : >> { %v1895_v52 = vadd.f32 %v1894_v47, %v16103_v10  ;;  %v13063_v23 = vpop.f32.mrb[121].mxu1 }
 0x1ee   : >> { %v1897_v36 = vpop.f32.mrb[122].mxu1 }
 0x1ef   : >> { %v1898_v25 = vadd.f32 %v1897_v36, %v16109_v58  ;;  %v13064_v24 = vpop.f32.mrb[123].mxu1 }
 0x1f0   : >> { %v1845_v33 = vpop.f32.mrb[124].mxu0 }
 0x1f1   : >> { %13314 = vmatmul.mubr.msk.bf16.gmra.mrb[228].mxu1 %vm466_vm1, %v2797_v8  ;;  %v13045_v42 = vpop.f32.mrb[125].mxu0  ;;  %vm4154_vm1 = vsmask.f32 256 }
 0x1f2   : >> { %v1848_v39 = vpop.f32.mrb[126].mxu0  ;;  %13361 = vmatprep.mubr.msk.bf16.mxu1 %vm14877_vm0, %v14876_v4 }
 0x1f3   : >> { %v13046_v40 = vpop.f32.mrb[127].mxu0 }
 0x1f4   : >> { %v1902_v19 = vpop.f32.mrb[124].mxu1 }
 0x1f5   : >> { %v1903_v21 = vadd.f32 %v1902_v19, %v16122_v48  ;;  %v13067_v10 = vpop.f32.mrb[125].mxu1 }
 0x1f6   : >> { %v1905_v45 = vpop.f32.mrb[126].mxu1 }
 0x1f7   : >> { %v1906_v43 = vadd.f32 %v1905_v45, %v16128_v56  ;;  %v13068_v26 = vpop.f32.mrb[127].mxu1 }
 0x1f8   : >> { %v1853_v18 = vpop.f32.mrb[128].mxu0 }
 0x1f9   : >> { %v13049_v58 = vpop.f32.mrb[129].mxu0 }
 0x1fa   : >> { %v1856_v41 = vpop.f32.mrb[130].mxu0 }
 0x1fb   : >> { %v13050_v11 = vpop.f32.mrb[131].mxu0 }
 0x1fc   : >> { %v1910_v51 = vpop.f32.mrb[128].mxu1 }
 0x1fd   : >> { %v1911_v49 = vadd.f32 %v1910_v51, %v16137_v27  ;;  %v13071_v28 = vpop.f32.mrb[129].mxu1 }
 0x1fe   : >> { %v1913_v9 = vpop.f32.mrb[130].mxu1 }
 0x1ff   : >> { %v1914_v12 = vadd.f32 %v1913_v9, %v16143_v50  ;;  %v13072_v63 = vpop.f32.mrb[131].mxu1 }
 0x200   : >> { %v2116_v35 = vpop.f32.mrb[132].mxu0 }
 0x201   : >> { %v2171_v31 = vadd.f32 %v2116_v35, %v1895_v52  ;;  %v13101_v48 = vpop.f32.mrb[133].mxu0 }
 0x202   : >> { %v2119_v13 = vpop.f32.mrb[134].mxu0 }
 0x203   : >> { %v2172_v34 = vadd.f32 %v2119_v13, %v1898_v25  ;;  %v13102_v62 = vpop.f32.mrb[135].mxu0 }
 0x204   : >> { %v1918_v56 = vpop.f32.mrb[132].mxu1 }
 0x205   : >> { %v1919_v47 = vadd.f32 %v1918_v56, %v1829_v22  ;;  %v13075_v23 = vpop.f32.mrb[133].mxu1 }
 0x206   : >> { %v1921_v36 = vpop.f32.mrb[134].mxu1 }
 0x207   : >> { %v1922_v8 = vadd.f32 %v1921_v36, %v1832_v55  ;;  %v13076_v24 = vpop.f32.mrb[135].mxu1 }
 0x208   : >> { %v2124_v42 = vpop.f32.mrb[136].mxu0 }
 0x209   : >> { %v2173_v40 = vadd.f32 %v2124_v42, %v1903_v21  ;;  %v13105_v27 = vpop.f32.mrb[137].mxu0 }
 0x20a   : >> { %v2127_v19 = vpop.f32.mrb[138].mxu0 }
 0x20b   : >> { %v2174_v10 = vadd.f32 %v2127_v19, %v1906_v43  ;;  %v13106_v45 = vpop.f32.mrb[139].mxu0 }
 0x20c   : >> { %v1926_v50 = vpop.f32.mrb[136].mxu1 }
 0x20d   : >> { %v1927_v26 = vadd.f32 %v1926_v50, %v1837_v53  ;;  %v13079_v58 = vpop.f32.mrb[137].mxu1 }
 0x20e   : >> { %v1929_v52 = vpop.f32.mrb[138].mxu1 }
 0x20f   : >> { %v1930_v11 = vadd.f32 %v1929_v52, %v1840_v14  ;;  %v13080_v51 = vpop.f32.mrb[139].mxu1 }
 0x210   : >> { %v2132_v25 = vpop.f32.mrb[140].mxu0 }
 0x211   : >> { %v16179_v28 = vadd.f32 %v2132_v25, %v1911_v49  ;;  %v13109_v22 = vpop.f32.mrb[141].mxu0 }
 0x212   : >> { %v2135_v9 = vpop.f32.mrb[142].mxu0 }
 0x213   : >> { %v16181_v63 = vadd.f32 %v2135_v9, %v1914_v12  ;;  %v13110_v55 = vpop.f32.mrb[143].mxu0 }
 0x214   : >> { %v1934_v35 = vpop.f32.mrb[140].mxu1 }
 0x215   : >> { %v1935_v21 = vadd.f32 %v1934_v35, %v1845_v33  ;;  %v13083_v48 = vpop.f32.mrb[141].mxu1 }
 0x216   : >> { %v1937_v13 = vpop.f32.mrb[142].mxu1 }
 0x217   : >> { %v1938_v43 = vadd.f32 %v1937_v13, %v1848_v39  ;;  %v13084_v62 = vpop.f32.mrb[143].mxu1 }
 0x218   : >> { %v2140_v56 = vpop.f32.mrb[144].mxu0 }
 0x219   : >> { %v16183_v53 = vadd.f32 %v2140_v56, %v1919_v47  ;;  %v13113_v23 = vpop.f32.mrb[145].mxu0 }
 0x21a   : >> { %v2143_v14 = vpop.f32.mrb[146].mxu0 }
 0x21b   : >> { %v16185_v36 = vadd.f32 %v2143_v14, %v1922_v8  ;;  %v13114_v49 = vpop.f32.mrb[147].mxu0 }
 0x21c   : >> { %v1942_v24 = vpop.f32.mrb[144].mxu1 }
 0x21d   : >> { %v1943_v42 = vadd.f32 %v1942_v24, %v1853_v18  ;;  %v13087_v27 = vpop.f32.mrb[145].mxu1 }
 0x21e   : >> { %v1945_v12 = vpop.f32.mrb[146].mxu1 }
 0x21f   : >> { %v1946_v19 = vadd.f32 %v1945_v12, %v1856_v41  ;;  %v13088_v45 = vpop.f32.mrb[147].mxu1 }
 0x220   : >> { %v2148_v50 = vpop.f32.mrb[148].mxu0 }
 0x221   : >> { %v16187_v33 = vadd.f32 %v2148_v50, %v1927_v26  ;;  %v13117_v58 = vpop.f32.mrb[149].mxu0 }
 0x222   : >> { %v2151_v39 = vpop.f32.mrb[150].mxu0 }
 0x223   : >> { %v16189_v52 = vadd.f32 %v2151_v39, %v1930_v11  ;;  %v13118_v47 = vpop.f32.mrb[151].mxu0 }
 0x224   : >> { %v2351_v51 = vpop.f32.mrb[148].mxu1 }
 0x225   : >> { %v2406_v25 = vadd.f32 %v2351_v51, %v2171_v31  ;;  %v13139_v22 = vpop.f32.mrb[149].mxu1 }
 0x226   : >> { %v2354_v8 = vpop.f32.mrb[150].mxu1 }
 0x227   : >> { %v2420_v9 = vadd.f32 %v14945_v0, %v2406_v25  ;;  %v2407_v55 = vadd.f32 %v2354_v8, %v2172_v34  ;;  %v13140_v18 = vpop.f32.mrb[151].mxu1 }
 0x228   : >> { %v2156_v35 = vpop.f32.mrb[152].mxu0 }
 0x229   : >> { %v2421_v41 = vadd.f32 %v14945_v0, %v2407_v55  ;;  %v16193_v48 = vadd.f32 %v2156_v35, %v1935_v21  ;;  %v13121_v26 = vpop.f32.mrb[153].mxu0  ;;  %v2434_v62 = vmax.f32 %v2420_v9, 0.0 }
 0x22a   : >> { %v2159_v13 = vpop.f32.mrb[154].mxu0 }
 0x22b   : >> { %v2435_v56 = vmax.f32 %v2421_v41, 0.0  ;;  %v16195_v11 = vadd.f32 %v2159_v13, %v1938_v43  ;;  %v13122_v23 = vpop.f32.mrb[155].mxu0 }
 0x22c   : >> { %v2359_v14 = vpop.f32.mrb[152].mxu1 }
 0x22d   : >> { %v14189_v31 = vpack.i.bf16 %v2435_v56, %v2434_v62  ;;  %v2408_v49 = vadd.f32 %v2359_v14, %v2173_v40  ;;  %v13143_v24 = vpop.f32.mrb[153].mxu1 }
 0x22e   : >> { %v2362_v27 = vpop.f32.mrb[154].mxu1 }
 0x22f   : >> { %v2422_v34 = vadd.f32 %v14945_v0, %v2408_v49  ;;  %v2409_v12 = vadd.f32 %v2362_v27, %v2174_v10  ;;  %14190 = vrot.lane.b32.xlu0 %v14189_v31, %s14879_s12  ;;  %v13144_v21 = vpop.f32.mrb[155].mxu1 }
 0x230   : >> { %v2164_v45 = vpop.f32.mrb[156].mxu0 }
 0x231   : >> { %v2423_v50 = vadd.f32 %v14945_v0, %v2409_v12  ;;  %v16200_v58 = vadd.f32 %v2164_v45, %v1943_v42  ;;  %v13125_v43 = vpop.f32.mrb[157].mxu0  ;;  %v2436_v47 = vmax.f32 %v2422_v34, 0.0 }
 0x232   : >> { %v2167_v39 = vpop.f32.mrb[158].mxu0 }
 0x233   : >> { %v2437_v51 = vmax.f32 %v2423_v50, 0.0  ;;  %v16202_v25 = vadd.f32 %v2167_v39, %v1946_v19  ;;  %v13126_v40 = vpop.f32.mrb[159].mxu0 }
 0x234   : >> { %v2367_v22 = vpop.f32.mrb[156].mxu1 }
 0x235   : >> { %v14194_v8 = vpack.i.bf16 %v2437_v51, %v2436_v47  ;;  %v2410_v10 = vadd.f32 %v2367_v22, %v16179_v28  ;;  %v13147_v9 = vpop.f32.mrb[157].mxu1 }
 0x236   : >> { %v2370_v55 = vpop.f32.mrb[158].mxu1 }
 0x237   : >> { %v2424_v18 = vadd.f32 %v14945_v0, %v2410_v10  ;;  %v2411_v35 = vadd.f32 %v2370_v55, %v16181_v63  ;;  %14195 = vrot.lane.b32.xlu0 %v14194_v8, %s14879_s12  ;;  %v13148_v42 = vpop.f32.mrb[159].mxu1 }
 0x238   : >> { %v16208_v41 = vpop.f32.mrb[160].mxu0 }
 0x239   : >> { %v2425_v26 = vadd.f32 %v14945_v0, %v2411_v35  ;;  %v13177_v19 = vpop.f32.mrb[161].mxu0  ;;  %v2438_v62 = vmax.f32 %v2424_v18, 0.0 }
 0x23a   : >> { %v16211_v13 = vpop.f32.mrb[162].mxu0 }
 0x23b   : >> { %v2439_v56 = vmax.f32 %v2425_v26, 0.0  ;;  %14210 = vrot.lane.b32.xlu0 %v16111_v29, %s14878_s28  ;;  %v13178_v28 = vpop.f32.mrb[163].mxu0 }
 0x23c   : >> { %v2375_v23 = vpop.f32.mrb[160].mxu1 }
 0x23d   : >> { %v16215_v14 = vpack.i.bf16 %v2439_v56, %v2438_v62  ;;  %v2412_v63 = vadd.f32 %v2375_v23, %v16183_v53  ;;  %v13151_v31 = vpop.f32.mrb[161].mxu1 }
 0x23e   : >> { %v2378_v49 = vpop.f32.mrb[162].mxu1 }
 0x23f   : >> { %v2426_v24 = vadd.f32 %v14945_v0, %v2412_v63  ;;  %v2413_v27 = vadd.f32 %v2378_v49, %v16185_v36  ;;  %v13152_v34 = vpop.f32.mrb[163].mxu1 }
 0x240   : >> { %v16220_v12 = vpop.f32.mrb[164].mxu0 }
 0x241   : >> { %v2427_v21 = vadd.f32 %v14945_v0, %v2413_v27  ;;  %v13181_v45 = vpop.f32.mrb[165].mxu0  ;;  %v2440_v29 = vmax.f32 %v2426_v24, 0.0 }
 0x242   : >> { %v16223_v50 = vpop.f32.mrb[166].mxu0 }
 0x243   : >> { %v2441_v43 = vmax.f32 %v2427_v21, 0.0  ;;  %v13182_v39 = vpop.f32.mrb[167].mxu0 }
 0x244   : >> { %v2383_v47 = vpop.f32.mrb[164].mxu1 }
 0x245   : >> { %v16225_v51 = vpack.i.bf16 %v2441_v43, %v2440_v29  ;;  %v2414_v53 = vadd.f32 %v2383_v47, %v16187_v33  ;;  %v13155_v40 = vpop.f32.mrb[165].mxu1  ;;  %v14340_v43 = vld [vmem:[%s18364_s3] sm:$0xff]  }
 0x246   : >> { %v2386_v22 = vpop.f32.mrb[166].mxu1  ;;  %13354 = vmatpush3.bf16.msra.mxu1 %v14340_v43  ;;  %v14341_v40 = vld [vmem:[%s18364_s3 + $0x28] sm:$0xff]  }
 0x247   : >> { %v2428_v36 = vadd.f32 %v14945_v0, %v2414_v53  ;;  %v2415_v8 = vadd.f32 %v2386_v22, %v16189_v52  ;;  %v13156_v10 = vpop.f32.mrb[167].mxu1  ;;  %v14342_v22 = vld [vmem:[%s18364_s3 + $0x8] sm:$0xff]   ;;  %13355 = vmatprep.subr.bf16.mxu1 %v14876_v4 }
 0x248   : >> { %v16230_v9 = vpop.f32.mrb[168].mxu0 }
 0x249   : >> { %v2429_v55 = vadd.f32 %v14945_v0, %v2415_v8  ;;  %v13185_v18 = vpop.f32.mrb[169].mxu0  ;;  %v2442_v42 = vmax.f32 %v2428_v36, 0.0 }
 0x24a   : >> { %v16233_v35 = vpop.f32.mrb[170].mxu0  ;;  %13356 = vmatpush3.bf16.msra.mxu1 %v14342_v22 }
 0x24b   : >> { %v2443_v26 = vmax.f32 %v2429_v55, 0.0  ;;  %v13186_v19 = vpop.f32.mrb[171].mxu0  ;;  %13357 = vmatprep.subr.bf16.mxu1 %v14876_v4 }
 0x24c   : >> { %v2391_v62 = vpop.f32.mrb[168].mxu1 }
 0x24d   : >> { %v16235_v56 = vpack.i.bf16 %v2443_v26, %v2442_v42  ;;  %v2416_v33 = vadd.f32 %v2391_v62, %v16193_v48  ;;  %v13159_v28 = vpop.f32.mrb[169].mxu1  ;;  %v14339_v48 = vld [vmem:[%s18364_s3 + $0x20] sm:$0xff]  }
 0x24e   : >> { %v2394_v23 = vpop.f32.mrb[170].mxu1  ;;  %13318 = vmatpush3.bf16.msra.mxu0 %v14339_v48 }
 0x24f   : >> { %v2430_v52 = vadd.f32 %v14945_v0, %v2416_v33  ;;  %v2417_v63 = vadd.f32 %v2394_v23, %v16195_v11  ;;  %v13160_v31 = vpop.f32.mrb[171].mxu1  ;;  %13319 = vmatprep.subr.bf16.mxu0 %v14876_v4 }
 0x250   : >> { %v16240_v49 = vpop.f32.mrb[172].mxu0 }
 0x251   : >> { %v2431_v24 = vadd.f32 %v14945_v0, %v2417_v63  ;;  %v13189_v27 = vpop.f32.mrb[173].mxu0  ;;  %v2444_v21 = vmax.f32 %v2430_v52, 0.0 }
 0x252   : >> { %v16243_v34 = vpop.f32.mrb[174].mxu0  ;;  %13320 = vmatpush3.bf16.msra.mxu0 %v14341_v40 }
 0x253   : >> { %v2445_v45 = vmax.f32 %v2431_v24, 0.0  ;;  %v13190_v29 = vpop.f32.mrb[175].mxu0  ;;  %13321 = vmatprep.subr.bf16.mxu0 %v14876_v4 }
 0x254   : >> { %v2399_v11 = vpop.f32.mrb[172].mxu1 }
 0x255   : >> { %v16251_v39 = vpack.i.bf16 %v2445_v45, %v2444_v21  ;;  %v16254_v47 = vadd.f32 %v2399_v11, %v16200_v58  ;;  %v13163_v53 = vpop.f32.mrb[173].mxu1 }
 0x256   : >> { %v2402_v36 = vpop.f32.mrb[174].mxu1 }
 0x257   : >> { %v16265_v8 = vadd.f32 %v2402_v36, %v16202_v25  ;;  %v13164_v58 = vpop.f32.mrb[175].mxu1 }
 0x258   : >> { %v2514_v10 = vpop.f32.mrb[176].mxu0 }
 0x259   : >> { %v13193_v55 = vpop.f32.mrb[177].mxu0 }
 0x25a   : >> { %v2517_v18 = vpop.f32.mrb[178].mxu0 }
 0x25b   : >> { %v13194_v42 = vpop.f32.mrb[179].mxu0 }
 0x25c   : >> { %v2571_v26 = vpop.f32.mrb[176].mxu1 }
 0x25d   : >> { %v2572_v19 = vadd.f32 %v2571_v26, %v16208_v41  ;;  %v13215_v62 = vpop.f32.mrb[177].mxu1 }
 0x25e   : >> { %v2574_v33 = vpop.f32.mrb[178].mxu1 }
 0x25f   : >> { %v2575_v28 = vadd.f32 %v2574_v33, %v16211_v13  ;;  %v13216_v25 = vpop.f32.mrb[179].mxu1 }
 0x260   : >> { %v2522_v23 = vpop.f32.mrb[180].mxu0 }
 0x261   : >> { %v13197_v52 = vpop.f32.mrb[181].mxu0 }
 0x262   : >> { %v2525_v63 = vpop.f32.mrb[182].mxu0 }
 0x263   : >> { %v13198_v31 = vpop.f32.mrb[183].mxu0 }
 0x264   : >> { %v2579_v24 = vpop.f32.mrb[180].mxu1 }
 0x265   : >> { %v2580_v27 = vadd.f32 %v2579_v24, %v16220_v12  ;;  %v13219_v21 = vpop.f32.mrb[181].mxu1 }
 0x266   : >> { %v2582_v45 = vpop.f32.mrb[182].mxu1 }
 0x267   : >> { %v2583_v29 = vadd.f32 %v2582_v45, %v16223_v50  ;;  %v13220_v48 = vpop.f32.mrb[183].mxu1 }
 0x268   : >> { %v2530_v43 = vpop.f32.mrb[184].mxu0 }
 0x269   : >> { %v13201_v11 = vpop.f32.mrb[185].mxu0 }
 0x26a   : >> { %v2533_v41 = vpop.f32.mrb[186].mxu0 }
 0x26b   : >> { %v13202_v53 = vpop.f32.mrb[187].mxu0 }
 0x26c   : >> { %v2587_v40 = vpop.f32.mrb[184].mxu1 }
 0x26d   : >> { %v2588_v13 = vadd.f32 %v2587_v40, %v16230_v9  ;;  %v13223_v22 = vpop.f32.mrb[185].mxu1 }
 0x26e   : >> { %v2590_v36 = vpop.f32.mrb[186].mxu1 }
 0x26f   : >> { %v2591_v58 = vadd.f32 %v2590_v36, %v16233_v35  ;;  %v13224_v55 = vpop.f32.mrb[187].mxu1 }
 0x270   : >> { %v2660_v42 = vpop.f32.mrb[188].mxu0 }
 0x271   : >> { %v2715_v26 = vadd.f32 %v2660_v42, %v2572_v19  ;;  %v13253_v12 = vpop.f32.mrb[189].mxu0 }
 0x272   : >> { %v2663_v62 = vpop.f32.mrb[190].mxu0 }
 0x273   : >> { %v2716_v33 = vadd.f32 %v2663_v62, %v2575_v28  ;;  %v13254_v25 = vpop.f32.mrb[191].mxu0 }
 0x274   : >> { %v2595_v50 = vpop.f32.mrb[188].mxu1 }
 0x275   : >> { %v2596_v52 = vadd.f32 %v2595_v50, %v16240_v49  ;;  %v13227_v31 = vpop.f32.mrb[189].mxu1 }
 0x276   : >> { %v2598_v24 = vpop.f32.mrb[190].mxu1 }
 0x277   : >> { %v2599_v21 = vadd.f32 %v2598_v24, %v16243_v34  ;;  %v13228_v45 = vpop.f32.mrb[191].mxu1 }
 0x278   : >> { %v2668_v9 = vpop.f32.mrb[192].mxu0 }
 0x279   : >> { %v16277_v48 = vadd.f32 %v2668_v9, %v2580_v27  ;;  %v13257_v11 = vpop.f32.mrb[193].mxu0 }
 0x27a   : >> { %v2671_v35 = vpop.f32.mrb[194].mxu0 }
 0x27b   : >> { %v16279_v53 = vadd.f32 %v2671_v35, %v2583_v29  ;;  %v13258_v19 = vpop.f32.mrb[195].mxu0 }
 0x27c   : >> { %v2603_v40 = vpop.f32.mrb[192].mxu1 }
 0x27d   : >> { %v2604_v22 = vadd.f32 %v2603_v40, %v2514_v10  ;;  %v13231_v28 = vpop.f32.mrb[193].mxu1 }
 0x27e   : >> { %v2606_v36 = vpop.f32.mrb[194].mxu1 }
 0x27f   : >> { %v2607_v55 = vadd.f32 %v2606_v36, %v2517_v18  ;;  %v13232_v42 = vpop.f32.mrb[195].mxu1 }
 0x280   : >> { %v2676_v49 = vpop.f32.mrb[196].mxu0 }
 0x281   : >> { %v16281_v12 = vadd.f32 %v2676_v49, %v2588_v13  ;;  %v13261_v62 = vpop.f32.mrb[197].mxu0 }
 0x282   : >> { %v2679_v34 = vpop.f32.mrb[198].mxu0 }
 0x283   : >> { %v16283_v25 = vadd.f32 %v2679_v34, %v2591_v58  ;;  %v13262_v27 = vpop.f32.mrb[199].mxu0 }
 0x284   : >> { %v2611_v50 = vpop.f32.mrb[196].mxu1 }
 0x285   : >> { %v2612_v31 = vadd.f32 %v2611_v50, %v2522_v23  ;;  %v13235_v24 = vpop.f32.mrb[197].mxu1 }
 0x286   : >> { %v2614_v29 = vpop.f32.mrb[198].mxu1 }
 0x287   : >> { %v2615_v45 = vadd.f32 %v2614_v29, %v2525_v63  ;;  %v13236_v9 = vpop.f32.mrb[199].mxu1 }
 0x288   : >> { %v2684_v11 = vpop.f32.mrb[200].mxu0 }
 0x289   : >> { %v16285_v10 = vadd.f32 %v2684_v11, %v2596_v52  ;;  %v13265_v35 = vpop.f32.mrb[201].mxu0 }
 0x28a   : >> { %v2687_v18 = vpop.f32.mrb[202].mxu0 }
 0x28b   : >> { %v16287_v19 = vadd.f32 %v2687_v18, %v2599_v21  ;;  %v13266_v13 = vpop.f32.mrb[203].mxu0 }
 0x28c   : >> { %v2619_v40 = vpop.f32.mrb[200].mxu1 }
 0x28d   : >> { %v2620_v28 = vadd.f32 %v2619_v40, %v2530_v43  ;;  %v13239_v36 = vpop.f32.mrb[201].mxu1 }
 0x28e   : >> { %v2622_v58 = vpop.f32.mrb[202].mxu1 }
 0x28f   : >> { %v2623_v42 = vadd.f32 %v2622_v58, %v2533_v41  ;;  %v13240_v49 = vpop.f32.mrb[203].mxu1  ;;  %v14343_v41 = vld [vmem:[%s18364_s3 + $0x30] sm:$0xff]  }
 0x290   : >> { %v2692_v62 = vpop.f32.mrb[204].mxu0  ;;  %13322 = vmatpush3.bf16.msra.mxu0 %v14343_v41  ;;  %v14345_v49 = vld [vmem:[%s18364_s3 + $0x18] sm:$0xff]  }
 0x291   : >> { %v16289_v23 = vadd.f32 %v2692_v62, %v2604_v22  ;;  %v13269_v34 = vpop.f32.mrb[205].mxu0  ;;  %v14344_v22 = vld [vmem:[%s18364_s3 + $0x10] sm:$0xff]   ;;  %13323 = vmatprep.subr.bf16.mxu0 %v14876_v4 }
 0x292   : >> { %v2695_v63 = vpop.f32.mrb[206].mxu0  ;;  %13358 = vmatpush3.bf16.msra.mxu1 %v14344_v22 }
 0x293   : >> { %v16291_v27 = vadd.f32 %v2695_v63, %v2607_v55  ;;  %v13270_v52 = vpop.f32.mrb[207].mxu0  ;;  %13359 = vmatprep.subr.bf16.mxu1 %v14876_v4 }
 0x294   : >> { %v2853_v50 = vpop.f32.mrb[204].mxu1 }
 0x295   : >> { %v2908_v24 = vadd.f32 %v2853_v50, %v2715_v26  ;;  %v13291_v29 = vpop.f32.mrb[205].mxu1 }
 0x296   : >> { %v2856_v21 = vpop.f32.mrb[206].mxu1  ;;  %13360 = vmatpush3.bf16.msra.mxu1 %v14345_v49 }
 0x297   : >> { %v2922_v9 = vadd.f32 %v14945_v0, %v2908_v24  ;;  %v2909_v11 = vadd.f32 %v2856_v21, %v2716_v33  ;;  %v13292_v43 = vpop.f32.mrb[207].mxu1  ;;  %13425 = vmatprep.subr.bf16.mxu1 %v14876_v4  ;;  %v14346_v21 = vld [vmem:[%s18364_s3 + $0x38] sm:$0xff]  }
 0x298   : >> { %v2700_v35 = vpop.f32.mrb[208].mxu0  ;;  %13324 = vmatpush3.bf16.msra.mxu0 %v14346_v21 }
 0x299   : >> { %v2923_v55 = vadd.f32 %v14945_v0, %v2909_v11  ;;  %v16301_v18 = vadd.f32 %v2700_v35, %v2612_v31  ;;  %v13273_v26 = vpop.f32.mrb[209].mxu0  ;;  %v2936_v33 = vmax.f32 %v2922_v9, 0.0  ;;  %13389 = vmatprep.subr.bf16.mxu0 %v14876_v4 }
 0x29a   : >> { %v2703_v13 = vpop.f32.mrb[210].mxu0 }
 0x29b   : >> { %v2937_v40 = vmax.f32 %v2923_v55, 0.0  ;;  %v16305_v36 = vadd.f32 %v2703_v13, %v2615_v45  ;;  %v13274_v58 = vpop.f32.mrb[211].mxu0 }
 0x29c   : >> { %v2861_v62 = vpop.f32.mrb[208].mxu1 }
 0x29d   : >> { %v14199_v31 = vpack.i.bf16 %v2937_v40, %v2936_v33  ;;  %v2910_v34 = vadd.f32 %v2861_v62, %v16277_v48  ;;  %v13295_v63 = vpop.f32.mrb[209].mxu1 }
 0x29e   : >> { %v2864_v52 = vpop.f32.mrb[210].mxu1 }
 0x29f   : >> { %v2924_v50 = vadd.f32 %v14945_v0, %v2910_v34  ;;  %v2911_v24 = vadd.f32 %v2864_v52, %v16279_v53  ;;  %14200 = vrot.lane.b32.xlu1 %v14199_v31, %s14880_s27  ;;  %v13296_v45 = vpop.f32.mrb[211].mxu1 }
 0x2a0   : >> { %v2708_v29 = vpop.f32.mrb[212].mxu0 }
 0x2a1   : >> { %v2925_v48 = vadd.f32 %v14945_v0, %v2911_v24  ;;  %v16319_v9 = vadd.f32 %v2708_v29, %v2620_v28  ;;  %v13277_v11 = vpop.f32.mrb[213].mxu0  ;;  %v2938_v41 = vmax.f32 %v2924_v50, 0.0 }
 0x2a2   : >> { %v2711_v43 = vpop.f32.mrb[214].mxu0 }
 0x2a3   : >> { %v2939_v22 = vmax.f32 %v2925_v48, 0.0  ;;  %v16321_v35 = vadd.f32 %v2711_v43, %v2623_v42  ;;  %v13278_v53 = vpop.f32.mrb[215].mxu0 }
 0x2a4   : >> { %v2869_v55 = vpop.f32.mrb[212].mxu1 }
 0x2a5   : >> { %v14204_v26 = vpack.i.bf16 %v2939_v22, %v2938_v41  ;;  %v2912_v13 = vadd.f32 %v2869_v55, %v16281_v12  ;;  %v13299_v33 = vpop.f32.mrb[213].mxu1 }
 0x2a6   : >> { %v2872_v40 = vpop.f32.mrb[214].mxu1 }
 0x2a7   : >> { %v2926_v58 = vadd.f32 %v14945_v0, %v2912_v13  ;;  %v2913_v28 = vadd.f32 %v2872_v40, %v16283_v25  ;;  %14205 = vrot.lane.b32.xlu1 %v14204_v26, %s14880_s27  ;;  %v13300_v49 = vpop.f32.mrb[215].mxu1 }
 0x2a9   : >> { %v2927_v62 = vadd.f32 %v14945_v0, %v2913_v28  ;;  %v2940_v42 = vmax.f32 %v2926_v58, 0.0  ;;  %v1755_v28 = vadd.f32 %v14945_v0, %v16159_v32 }
 0x2ab   : >> { %v2941_v31 = vmax.f32 %v2927_v62, 0.0  ;;  %14215 = vrot.lane.b32.xlu1 %v16215_v14, %s14879_s12 }
 0x2ac   : >> { %v2877_v34 = vpop.f32.mrb[216].mxu1 }
 0x2ad   : >> { %v14219_v63 = vpack.i.bf16 %v2941_v31, %v2940_v42  ;;  %v2914_v12 = vadd.f32 %v2877_v34, %v16285_v10  ;;  %v13303_v52 = vpop.f32.mrb[217].mxu1  ;;  %v1769_v42 = vmax.f32 %v1755_v28, 0.0 }
 0x2ae   : >> { %v2880_v50 = vpop.f32.mrb[218].mxu1 }
 0x2af   : >> { %v2928_v24 = vadd.f32 %v14945_v0, %v2914_v12  ;;  %v2915_v25 = vadd.f32 %v2880_v50, %v16287_v19  ;;  %14225 = vrot.lane.b32.xlu1 %v16130_v44, %s14878_s28  ;;  %14220 = vrot.lane.b32.xlu0 %v14219_v63, %s14880_s27  ;;  %v13304_v45 = vpop.f32.mrb[219].mxu1 }
 0x2b1   : >> { %v2929_v29 = vadd.f32 %v14945_v0, %v2915_v25  ;;  %v2942_v21 = vmax.f32 %v2928_v24, 0.0 }
 0x2b3   : >> { %v2943_v14 = vmax.f32 %v2929_v29, 0.0  ;;  %14230 = vrot.lane.b32.xlu0 %v16225_v51, %s14879_s12  ;;  %v1193_v29 = vadd.f32 %v14945_v0, %v15753_v61  ;;  %v1194_v61 = vadd.f32 %v14945_v0, %v15767_v60 }
 0x2b4   : >> { %v2885_v10 = vpop.f32.mrb[220].mxu1 }
 0x2b5   : >> { %v14234_v48 = vpack.i.bf16 %v2943_v14, %v2942_v21  ;;  %v2916_v11 = vadd.f32 %v2885_v10, %v16289_v23  ;;  %v13307_v43 = vpop.f32.mrb[221].mxu1  ;;  %v14186_v14 = vpop.permute.xlu1 %14185  ;;  %v1208_v60 = vmax.f32 %v1194_v61, 0.0 }
 0x2b6   : >> { %v2888_v41 = vpop.f32.mrb[222].mxu1  ;;  %v14187_v28 = vunpack.i.l.bf16 %v14186_v14 }
 0x2b7   : >> { %v2930_v19 = vadd.f32 %v14945_v0, %v2916_v11  ;;  %v2917_v44 = vadd.f32 %v2888_v41, %v16291_v27  ;;  %14240 = vrot.lane.b32.xlu0 %v16145_v37, %s14878_s28  ;;  %14235 = vrot.lane.b32.xlu1 %v14234_v48, %s14880_s27  ;;  %v13308_v22 = vpop.f32.mrb[223].mxu1 }
 0x2b9   : >> { %v2931_v53 = vadd.f32 %v14945_v0, %v2917_v44  ;;  %v2944_v55 = vmax.f32 %v2930_v19, 0.0  ;;  %v1207_v19 = vmax.f32 %v1193_v29, 0.0 }
 0x2bb   : >> { %v2945_v51 = vmax.f32 %v2931_v53, 0.0  ;;  %14245 = vrot.lane.b32.xlu1 %v16235_v56, %s14879_s12 }
 0x2bc   : >> { %v2893_v23 = vpop.f32.mrb[224].mxu1 }
 0x2bd   : >> { %v14249_v26 = vpack.i.bf16 %v2945_v51, %v2944_v55  ;;  %v2918_v13 = vadd.f32 %v2893_v23, %v16301_v18  ;;  %v13311_v33 = vpop.f32.mrb[225].mxu1 }
 0x2be   : >> { %v2896_v40 = vpop.f32.mrb[226].mxu1 }
 0x2bf   : >> { %v2932_v27 = vadd.f32 %v14945_v0, %v2918_v13  ;;  %v2919_v37 = vadd.f32 %v2896_v40, %v16305_v36  ;;  %14255 = vrot.lane.b32.xlu1 %v16156_v17, %s14878_s28  ;;  %14250 = vrot.lane.b32.xlu0 %v14249_v26, %s14880_s27  ;;  %v13312_v58 = vpop.f32.mrb[227].mxu1  ;;  %v2432_v36 = vadd.f32 %v14945_v0, %v16254_v47 }
 0x2c0   : >> { %v2433_v47 = vadd.f32 %v14945_v0, %v16265_v8  ;;  %v1192_v8 = vadd.f32 %v14945_v0, %v15746_v30  ;;  %v1195_v26 = vadd.f32 %v14945_v0, %v15777_v15  ;;  %v14188_v58 = vunpack.i.h.bf16 %v14186_v14  ;;  %v14354_v14 = vld [vmem:[%s18364_s3 + $0x68] sm:$0xff]  }
 0x2c1   : >> { %v2933_v56 = vadd.f32 %v14945_v0, %v2919_v37  ;;  %v2946_v49 = vmax.f32 %v2932_v27, 0.0  ;;  %v2446_v50 = vmax.f32 %v2432_v36, 0.0 }
 0x2c2   : >> { %v2447_v25 = vmax.f32 %v2433_v47, 0.0  ;;  %v1206_v41 = vmax.f32 %v1192_v8, 0.0 }
 0x2c3   : >> { %v2947_v62 = vmax.f32 %v2933_v56, 0.0  ;;  %14260 = vrot.lane.b32.xlu0 %v16251_v39, %s14879_s12  ;;  %v1756_v39 = vadd.f32 %v14945_v0, %v16164_v20  ;;  %v14181_v20 = vpop.permute.xlu0 %14180 }
 0x2c4   : >> { %v2901_v18 = vpop.f32.mrb[228].mxu1  ;;  %v14183_v10 = vunpack.i.h.bf16 %v14181_v20  ;;  %v14182_v48 = vunpack.i.l.bf16 %v14181_v20 }
 0x2c5   : >> { %v14264_v31 = vpack.i.bf16 %v2947_v62, %v2946_v49  ;;  %v2920_v17 = vadd.f32 %v2901_v18, %v16319_v9  ;;  %v13315_v34 = vpop.f32.mrb[229].mxu1  ;;  %v1770_v9 = vmax.f32 %v1756_v39, 0.0  ;;  %v1209_v62 = vmax.f32 %v1195_v26, 0.0  ;;  %v14358_v26 = vld [vmem:[%s18364_s3 + $0x70] sm:$0xff]  }
 0x2c6   : >> { %v2904_v63 = vpop.f32.mrb[230].mxu1  ;;  %v3120_v22 = vsel %vm3118_vm5, %v1207_v19, %v14183_v10  ;;  %v3119_v53 = vsel %vm3118_vm5, %v1206_v41, %v14182_v48  ;;  %v1197_v34 = vadd.f32 %v14945_v0, %v15808_v46  ;;  %v14351_v46 = vld [vmem:[%s18364_s3 + $0x60] sm:$0xff]  }
 0x2c7   : >> { %v2934_v12 = vadd.f32 %v14945_v0, %v2920_v17  ;;  %v2921_v32 = vadd.f32 %v2904_v63, %v16321_v35  ;;  %2988 = vrot.lane.b32.xlu0 %v1769_v42, %s14878_s28  ;;  %14265 = vrot.lane.b32.xlu1 %v14264_v31, %s14880_s27  ;;  %v13316_v52 = vpop.f32.mrb[231].mxu1  ;;  %v14191_v21 = vpop.permute.xlu0 %14190  ;;  %v3122_v15 = vsel %vm3118_vm5, %v1209_v62, %v14188_v58 }
 0x2c8   : >> { %v14193_v11 = vunpack.i.h.bf16 %v14191_v21  ;;  %v14192_v43 = vunpack.i.l.bf16 %v14191_v21  ;;  %v3121_v42 = vsel %vm3118_vm5, %v1208_v60, %v14187_v28  ;;  %v14360_v60 = vld [vmem:[%s18364_s3 + $0x78] sm:$0xff]  }
 0x2c9   : >> { %v2948_v24 = vmax.f32 %v2934_v12, 0.0  ;;  %v2935_v35 = vadd.f32 %v14945_v0, %v2921_v32  ;;  %v1196_v32 = vadd.f32 %v14945_v0, %v15795_v57 }
 0x2ca   : >> { %v3135_v51 = vsel %vm3133_vm6, %v3120_v22, %v14193_v11  ;;  %v3134_v23 = vsel %vm3133_vm6, %v3119_v53, %v14192_v43  ;;  %v1199_v22 = vadd.f32 %v14945_v0, %v15837_v16 }
 0x2cb   : >> { %3044 = vrot.lane.b32.xlu1 %v2446_v50, %s14879_s12  ;;  %3100 = vrot.lane.b32.xlu0 %v2948_v24, %s14880_s27  ;;  %v2949_v45 = vmax.f32 %v2935_v35, 0.0  ;;  %v14196_v13 = vpop.permute.xlu0 %14195  ;;  %v1210_v8 = vmax.f32 %v1196_v32, 0.0  ;;  %v1201_v32 = vadd.f32 %v14945_v0, %v15867_v38 }
 0x2cc   : >> { %v14198_v56 = vunpack.i.h.bf16 %v14196_v13  ;;  %v14197_v49 = vunpack.i.l.bf16 %v14196_v13 }
 0x2ce   : >> { %v3137_v63 = vsel %vm3133_vm6, %v3122_v15, %v14198_v56  ;;  %v3136_v12 = vsel %vm3133_vm6, %v3121_v42, %v14197_v49 }
 0x2cf   : >> { %2990 = vrot.lane.b32.xlu1 %v1770_v9, %s14878_s28  ;;  %3046 = vrot.lane.b32.xlu0 %v2447_v25, %s14879_s12  ;;  %v14211_v36 = vpop.permute.xlu0 %14210 }
 0x2d0   : >> { %v14213_v50 = vunpack.i.h.bf16 %v14211_v36  ;;  %v14212_v25 = vunpack.i.l.bf16 %v14211_v36  ;;  %v14349_v36 = vld [vmem:[%s18364_s3 + $0x40] sm:$0xff]  }
 0x2d2   : >> { %v3123_v10 = vsel %vm3118_vm5, %v1210_v8, %v14212_v25  ;;  %v1215_v8 = vmax.f32 %v1201_v32, 0.0  ;;  %v1205_v32 = vadd.f32 %v14945_v0, %v15928_v5 }
 0x2d3   : >> { %3102 = vrot.lane.b32.xlu1 %v2949_v45, %s14880_s27  ;;  %v1211_v45 = vmax.f32 %v1197_v34, 0.0 }
 0x2d5   : >> { %v3124_v29 = vsel %vm3118_vm5, %v1211_v45, %v14213_v50 }
 0x311   : >> { %v14201_v44 = vpop.permute.xlu1 %14200 }
 0x312   : >> { %v14203_v30 = vunpack.i.h.bf16 %v14201_v44  ;;  %v14202_v55 = vunpack.i.l.bf16 %v14201_v44 }
 0x314   : >> { %v3150_v33 = vsel %vm3148_vm7, %v3135_v51, %v14203_v30  ;;  %v3149_v40 = vsel %vm3148_vm7, %v3134_v23, %v14202_v55  ;;  %v1198_v55 = vadd.f32 %v14945_v0, %v15824_v7 }
 0x315   : >> { %v12158_v27 = vpack.c.bf16 %v3150_v33, %v3150_v33  ;;  %v12157_v37 = vpack.c.bf16 %v3149_v40, %v3149_v40 }
 0x316   : >> { %v1212_v56 = vmax.f32 %v1198_v55, 0.0  ;;  %v1202_v55 = vadd.f32 %v14945_v0, %v15883_v6  ;;  %v14361_v6 = vld [vmem:[%s18364_s3 + $0x58] sm:$0xff]  }
 0x317   : >> { %3221 = vst.msk [vmem:[#allocation2 + $0x4] sm:$0xf] %vm3219_vm8, %v12158_v27  ;;  %3220 = vst.msk [vmem:[#allocation2] sm:$0xf] %vm3219_vm8, %v12157_v37  ;;  %v1213_v27 = vmax.f32 %v1199_v22, 0.0 }
 0x319   : >> { %v14206_v18 = vpop.permute.xlu1 %14205 }
 0x31a   : >> { %v14208_v31 = vunpack.i.h.bf16 %v14206_v18  ;;  %v14207_v17 = vunpack.i.l.bf16 %v14206_v18 }
 0x31c   : >> { %v3152_v52 = vsel %vm3148_vm7, %v3137_v63, %v14208_v31  ;;  %v3151_v39 = vsel %vm3148_vm7, %v3136_v12, %v14207_v17  ;;  %v1200_v31 = vadd.f32 %v14945_v0, %v15853_v59  ;;  %v14353_v59 = vld [vmem:[%s18364_s3 + $0x48] sm:$0xff]  }
 0x31d   : >> { %v12160_v47 = vpack.c.bf16 %v3152_v52, %v3152_v52  ;;  %v12159_v24 = vpack.c.bf16 %v3151_v39, %v3151_v39  ;;  %v14216_v9 = vpop.permute.xlu1 %14215 }
 0x31e   : >> { %v14347_v35 = vld [vmem:[#allocation2] sm:$0xff]   ;;  %v14218_v57 = vunpack.i.h.bf16 %v14216_v9  ;;  %v14217_v20 = vunpack.i.l.bf16 %v14216_v9 }
 0x31f   : >> { %3223 = vst.msk [vmem:[#allocation2 + $0xc] sm:$0xf] %vm3219_vm8, %v12160_v47  ;;  %3222 = vst.msk [vmem:[#allocation2 + $0x8] sm:$0xf] %vm3219_vm8, %v12159_v24  ;;  %13362 = vmatmul.mubr.msk.bf16.vlgmr.msra.gmra.mrb[232].mxu1 %vm3380_vm9, %v14347_v35  ;;  %v3305_v43 = vshll.u32 %v14347_v35, 16  ;;  %v3303_v28 = vshrl.u32 %v14347_v35, 16 }
 0x320   : >> { %13365 = vmatprep.mubr.msk.bf16.mxu1 %vm14877_vm0, %v14876_v4  ;;  %13426 = vmatpush3.bf16.msra.mxu1 %v14351_v46  ;;  %v3139_v41 = vsel %vm3133_vm6, %v3124_v29, %v14218_v57  ;;  %v3138_v19 = vsel %vm3133_vm6, %v3123_v10, %v14217_v20  ;;  %v1214_v20 = vmax.f32 %v1200_v31, 0.0 }
 0x321   : >> { %v14221_v21 = vpop.permute.xlu0 %14220  ;;  %13427 = vmatprep.subr.bf16.mxu1 %v14876_v4  ;;  %v14226_v44 = vpop.permute.xlu1 %14225  ;;  %v3307_v40 = vrot.slane %v3305_v43, 1 }
 0x322   : >> { %v14223_v48 = vunpack.i.h.bf16 %v14221_v21  ;;  %v14222_v11 = vunpack.i.l.bf16 %v14221_v21  ;;  %v14228_v13 = vunpack.i.h.bf16 %v14226_v44  ;;  %v14227_v16 = vunpack.i.l.bf16 %v14226_v44 }
 0x323   : >> { %v3308_v42 = vor.u32 %v3307_v40, %v3303_v28 }
 0x324   : >> { %v3154_v53 = vsel %vm3148_vm7, %v3139_v41, %v14223_v48  ;;  %v3153_v30 = vsel %vm3148_vm7, %v3138_v19, %v14222_v11  ;;  %13428 = vmatpush3.bf16.msra.mxu1 %v14354_v14  ;;  %v3126_v62 = vsel %vm3118_vm5, %v1213_v27, %v14228_v13  ;;  %v3125_v17 = vsel %vm3118_vm5, %v1212_v56, %v14227_v16 }
 0x325   : >> { %v12162_v61 = vpack.c.bf16 %v3154_v53, %v3154_v53  ;;  %v12161_v51 = vpack.c.bf16 %v3153_v30, %v3153_v30  ;;  %v14231_v23 = vpop.permute.xlu0 %14230  ;;  %13429 = vmatprep.subr.bf16.mxu1 %v14876_v4  ;;  %v14357_v30 = vld [vmem:[%s18364_s3 + $0x50] sm:$0xff]  }
 0x326   : >> { %v16428_v33 = vld [vmem:[#allocation2 + $0x8] sm:$0xff]   ;;  %v14233_v7 = vunpack.i.h.bf16 %v14231_v23  ;;  %v14232_v37 = vunpack.i.l.bf16 %v14231_v23 }
 0x327   : >> { %3225 = vst.msk [vmem:[#allocation2 + $0x14] sm:$0xf] %vm3219_vm8, %v12162_v61  ;;  %3224 = vst.msk [vmem:[#allocation2 + $0x10] sm:$0xf] %vm3219_vm8, %v12161_v51  ;;  %v3310_v58 = vshll.u32 %v16428_v33, 16  ;;  %13366 = vmatmul.mubr.msk.bf16.gmra.mrb[236].mxu1 %vm3380_vm9, %v16428_v33  ;;  %v3314_v14 = vshrl.u32 %v16428_v33, 16  ;;  %v1203_v61 = vadd.f32 %v14945_v0, %v15896_v3 }
 0x328   : >> { %13369 = vmatprep.mubr.msk.bf16.mxu1 %vm14877_vm0, %v14876_v4  ;;  %13430 = vmatpush3.bf16.msra.mxu1 %v14358_v26  ;;  %v3141_v34 = vsel %vm3133_vm6, %v3126_v62, %v14233_v7  ;;  %v3140_v52 = vsel %vm3133_vm6, %v3125_v17, %v14232_v37  ;;  %v1204_v26 = vadd.f32 %v14945_v0, %v15914_v54  ;;  %v14443_v0 = vld [vmem:[%s18368_s7 + $0x8] sm:$0xff] (%p342_p5)  }
 0x329   : >> { %v14236_v49 = vpop.permute.xlu1 %14235  ;;  %v3312_v18 = vrot.slane %v3310_v58, 1  ;;  %13431 = vmatprep.subr.bf16.mxu1 %v14876_v4  ;;  %v14241_v63 = vpop.permute.xlu0 %14240  ;;  %v1216_v58 = vmax.f32 %v1202_v55, 0.0  ;;  %v1217_v28 = vmax.f32 %v1203_v61, 0.0 }
 0x32a   : >> { %v14238_v15 = vunpack.i.h.bf16 %v14236_v49  ;;  %v14237_v12 = vunpack.i.l.bf16 %v14236_v49  ;;  %v14243_v46 = vunpack.i.h.bf16 %v14241_v63  ;;  %v14242_v25 = vunpack.i.l.bf16 %v14241_v63 }
 0x32b   : >> { %v3313_v50 = vsel %vm1220_vm2, %v3308_v42, %v3312_v18  ;;  %v3316_v22 = vor.u32 %v3314_v14, %v3312_v18  ;;  %v1218_v56 = vmax.f32 %v1204_v26, 0.0 }
 0x32c   : >> { %v3156_v39 = vsel %vm3148_vm7, %v3141_v34, %v14238_v15  ;;  %v3155_v24 = vsel %vm3148_vm7, %v3140_v52, %v14237_v12  ;;  %13326 = vmatmul.mubr.msk.bf16.vlgmr.msra.gmra.mrb[216].mxu0 %vm3380_vm9, %v3313_v50  ;;  %13432 = vmatpush3.bf16.msra.mxu1 %v14360_v60  ;;  %v3128_v10 = vsel %vm3118_vm5, %v1215_v8, %v14243_v46 }
 0x32d   : >> { %v12164_v47 = vpack.c.bf16 %v3156_v39, %v3156_v39  ;;  %v14246_v9 = vpop.permute.xlu1 %14245  ;;  %v12163_v38 = vpack.c.bf16 %v3155_v24, %v3155_v24  ;;  %13390 = vmatpush3.bf16.msra.mxu0 %v14349_v36  ;;  %13329 = vmatprep.mubr.msk.bf16.mxu0 %vm14877_vm0, %v14876_v4  ;;  %v3127_v48 = vsel %vm3118_vm5, %v1214_v20, %v14242_v25 }
 0x32e   : >> { %v16460_v35 = vld [vmem:[#allocation2 + $0x10] sm:$0xff]   ;;  %v14248_v45 = vunpack.i.h.bf16 %v14246_v9  ;;  %v14247_v57 = vunpack.i.l.bf16 %v14246_v9  ;;  %13391 = vmatprep.subr.bf16.mxu0 %v14876_v4  ;;  %13493 = vmatprep.subr.bf16.mxu1 %v14876_v4 }
 0x32f   : >> { %3227 = vst.msk [vmem:[#allocation2 + $0x1c] sm:$0xf] %vm3219_vm8, %v12164_v47  ;;  %3226 = vst.msk [vmem:[#allocation2 + $0x18] sm:$0xf] %vm3219_vm8, %v12163_v38  ;;  %13370 = vmatmul.mubr.msk.bf16.gmra.mrb[240].mxu1 %vm3380_vm9, %v16460_v35  ;;  %v3318_v29 = vshll.u32 %v16460_v35, 16  ;;  %v3322_v62 = vshrl.u32 %v16460_v35, 16 }
 0x330   : >> { %13373 = vmatprep.mubr.msk.bf16.mxu1 %vm14877_vm0, %v14876_v4  ;;  %v3143_v41 = vsel %vm3133_vm6, %v3128_v10, %v14248_v45  ;;  %v3142_v19 = vsel %vm3133_vm6, %v3127_v48, %v14247_v57  ;;  %v1219_v35 = vmax.f32 %v1205_v32, 0.0 }
 0x331   : >> { %v14251_v21 = vpop.permute.xlu0 %14250  ;;  %13392 = vmatpush3.bf16.msra.mxu0 %v14353_v59  ;;  %v14256_v44 = vpop.permute.xlu1 %14255  ;;  %v3320_v53 = vrot.slane %v3318_v29, 1 }
 0x332   : >> { %v14253_v11 = vunpack.i.h.bf16 %v14251_v21  ;;  %v14252_v43 = vunpack.i.l.bf16 %v14251_v21  ;;  %13393 = vmatprep.subr.bf16.mxu0 %v14876_v4  ;;  %v14258_v7 = vunpack.i.h.bf16 %v14256_v44  ;;  %v14257_v27 = vunpack.i.l.bf16 %v14256_v44 }
 0x333   : >> { %v3321_v16 = vsel %vm1220_vm2, %v3316_v22, %v3320_v53  ;;  %v3324_v63 = vor.u32 %v3322_v62, %v3320_v53 }
 0x334   : >> { %v3158_v51 = vsel %vm3148_vm7, %v3143_v41, %v14253_v11  ;;  %v3157_v23 = vsel %vm3148_vm7, %v3142_v19, %v14252_v43  ;;  %13330 = vmatmul.mubr.msk.bf16.gmra.mrb[220].mxu0 %vm3380_vm9, %v3321_v16  ;;  %v3130_v15 = vsel %vm3118_vm5, %v1217_v28, %v14258_v7  ;;  %v3129_v42 = vsel %vm3118_vm5, %v1216_v58, %v14257_v27  ;;  %v3236_v43 = vld [vmem:[#allocation2 + $0x34] sm:$0x7]  ;;  %v14362_v16 = vld [vmem:[#allocation2 + $0xc] sm:$0xff]   ;;  %v3616_v28 = vld [vmem:[#allocation2 + $0x4] sm:$0xe] }
 0x335   : >> { %v12166_v13 = vpack.c.bf16 %v3158_v51, %v3158_v51  ;;  %v12165_v33 = vpack.c.bf16 %v3157_v23, %v3157_v23  ;;  %v14261_v40 = vpop.permute.xlu0 %14260  ;;  %13333 = vmatprep.mubr.msk.bf16.mxu0 %vm14877_vm0, %v14876_v4  ;;  %13394 = vmatpush3.bf16.msra.mxu0 %v14357_v30  ;;  %v3680_v62 = vshrl.u32 %v14362_v16, 16 }
 0x336   : >> { %v14263_v3 = vunpack.i.h.bf16 %v14261_v40  ;;  %v14262_v37 = vunpack.i.l.bf16 %v14261_v40  ;;  %v14352_v54 = vld [vmem:[#allocation2 + $0x18] sm:$0xff]   ;;  %13395 = vmatprep.subr.bf16.mxu0 %v14876_v4  ;;  %v3617_v40 = vld [vmem:[#allocation2 + $0x8] sm:$0xf] }
 0x337   : >> { %3229 = vst.msk [vmem:[#allocation2 + $0x24] sm:$0xf] %vm3219_vm8, %v12166_v13  ;;  %3228 = vst.msk [vmem:[#allocation2 + $0x20] sm:$0xf] %vm3219_vm8, %v12165_v33  ;;  %13374 = vmatmul.mubr.msk.bf16.gmra.mrb[244].mxu1 %vm3380_vm9, %v14352_v54  ;;  %v3326_v18 = vshll.u32 %v14352_v54, 16  ;;  %v3330_v57 = vshrl.u32 %v14352_v54, 16 }
 0x338   : >> { %13377 = vmatprep.mubr.msk.bf16.mxu1 %vm14877_vm0, %v14876_v4  ;;  %v3145_v17 = vsel %vm3133_vm6, %v3130_v15, %v14263_v3  ;;  %v3144_v34 = vsel %vm3133_vm6, %v3129_v42, %v14262_v37  ;;  %v3897_v37 = vrot.slane %v14362_v16, 2 }
 0x339   : >> { %v2989_v49 = vpop.permute.xlu0 %2988  ;;  %v14266_v60 = vpop.permute.xlu1 %14265  ;;  %v3328_v12 = vrot.slane %v3326_v18, 1  ;;  %13396 = vmatpush3.bf16.msra.mxu0 %v14361_v6  ;;  %v3879_v6 = vld [vmem:[#allocation2 + $0x4] sm:$0xc]  ;;  %v3683_v18 = vshll.u32 %v14362_v16, 16 }
 0x33a   : >> { %v14268_v36 = vunpack.i.h.bf16 %v14266_v60  ;;  %v14267_v31 = vunpack.i.l.bf16 %v14266_v60  ;;  %13461 = vmatprep.subr.bf16.mxu0 %v14876_v4  ;;  %v3131_v50 = vsel %vm3118_vm5, %v1218_v56, %v2989_v49  ;;  %v11176_v3 = vcombine.low %v3879_v6, %v3617_v40  ;;  %v14364_v60 = vld [vmem:[#allocation2 + $0x14] sm:$0xff]  }
 0x33b   : >> { %v3329_v46 = vsel %vm1220_vm2, %v3324_v63, %v3328_v12  ;;  %v3332_v14 = vor.u32 %v3330_v57, %v3328_v12  ;;  %v11150_v56 = vcombine.low %v3616_v28, %v3617_v40 }
 0x33c   : >> { %v3160_v52 = vsel %vm3148_vm7, %v3145_v17, %v14268_v36  ;;  %v3159_v39 = vsel %vm3148_vm7, %v3144_v34, %v14267_v31  ;;  %13334 = vmatmul.mubr.msk.bf16.gmra.mrb[224].mxu0 %vm3380_vm9, %v3329_v46  ;;  %v3896_v58 = vrot.slane %v11176_v3, 2  ;;  %v3899_v31 = vrot.slane %v14364_v60, 2 }
 0x33d   : >> { %v12168_v47 = vpack.c.bf16 %v3160_v52, %v3160_v52  ;;  %v12167_v24 = vpack.c.bf16 %v3159_v39, %v3159_v39  ;;  %v3045_v9 = vpop.permute.xlu1 %3044  ;;  %v3101_v59 = vpop.permute.xlu0 %3100  ;;  %13337 = vmatprep.mubr.msk.bf16.mxu0 %vm14877_vm0, %v14876_v4  ;;  %v3672_v15 = vshrl.u32 %v11150_v56, 16  ;;  %v3675_v42 = vshll.u32 %v11150_v56, 16 }
 0x33e   : >> { %v3146_v25 = vsel %vm3133_vm6, %v3131_v50, %v3045_v9  ;;  %v14355_v38 = vld [vmem:[#allocation2 + $0x20] sm:$0xff]   ;;  %v3898_v49 = vsel %vm2782_vm4, %v3896_v58, %v3897_v37  ;;  %v3682_v17 = vrot.slane %v3680_v62, 1  ;;  %v3685_v34 = vrot.slane %v3683_v18, 2 }
 0x33f   : >> { %3231 = vst.msk [vmem:[#allocation2 + $0x2c] sm:$0xf] %vm3219_vm8, %v12168_v47  ;;  %3230 = vst.msk [vmem:[#allocation2 + $0x28] sm:$0xf] %vm3219_vm8, %v12167_v24  ;;  %v3161_v5 = vsel %vm3148_vm7, %v3146_v25, %v3101_v59  ;;  %v3334_v20 = vshll.u32 %v14355_v38, 16  ;;  %13378 = vmatmul.mubr.msk.bf16.gmra.mrb[248].mxu1 %vm3380_vm9, %v14355_v38  ;;  %v3338_v53 = vshrl.u32 %v14355_v38, 16  ;;  %v3900_v32 = vsel %vm2782_vm4, %v3897_v37, %v3899_v31 }
 0x340   : >> { %v12169_v45 = vpack.c.bf16 %v3161_v5, %v3161_v5  ;;  %13381 = vmatprep.mubr.msk.bf16.mxu1 %vm14877_vm0, %v14876_v4  ;;  %v3674_v63 = vrot.slane %v3672_v15, 1  ;;  %v3677_v12 = vrot.slane %v3675_v42, 2  ;;  %v14366_v52 = vld [vmem:[#allocation2 + $0x1c] sm:$0xff]   ;;  %v3686_v39 = vor.u32 %v3685_v34, %v3682_v17 }
 0x341   : >> { %v2991_v8 = vpop.permute.xlu1 %2990  ;;  %v3047_v21 = vpop.permute.xlu0 %3046  ;;  %v3336_v10 = vrot.slane %v3334_v20, 1  ;;  %v3689_v50 = vshrl.u32 %v14364_v60, 16  ;;  %v3692_v47 = vshll.u32 %v14364_v60, 16  ;;  %v3901_v9 = vrot.slane %v14366_v52, 2 }
 0x342   : >> { %3232 = vst.msk [vmem:[#allocation2 + $0x30] sm:$0xf] %vm3219_vm8, %v12169_v45  ;;  %v3132_v29 = vsel %vm3118_vm5, %v1219_v35, %v2991_v8  ;;  %v3678_v24 = vor.u32 %v3677_v12, %v3674_v63  ;;  %v3698_v45 = vshrl.u32 %v14366_v52, 16  ;;  %v3701_v57 = vshll.u32 %v14366_v52, 16 }
 0x343   : >> { %v3337_v48 = vsel %vm1220_vm2, %v3332_v14, %v3336_v10  ;;  %v3147_v11 = vsel %vm3133_vm6, %v3132_v29, %v3047_v21  ;;  %v3340_v51 = vor.u32 %v3338_v53, %v3336_v10  ;;  %v3691_v46 = vrot.slane %v3689_v50, 1 }
 0x344   : >> { %13338 = vmatmul.mubr.msk.bf16.gmra.mrb[228].mxu0 %vm3380_vm9, %v3337_v48  ;;  %v3687_v59 = vsel %vm1998_vm3, %v3678_v24, %v3686_v39  ;;  %v3694_v25 = vrot.slane %v3692_v47, 2  ;;  %v3902_v38 = vsel %vm2782_vm4, %v3899_v31, %v3901_v9  ;;  %v3700_v29 = vrot.slane %v3698_v45, 1 }
 0x345   : >> { %v3103_v41 = vpop.permute.xlu1 %3102  ;;  %13341 = vmatprep.mubr.msk.bf16.mxu0 %vm14877_vm0, %v14876_v4  ;;  %v3703_v21 = vrot.slane %v3701_v57, 2  ;;  %vm4803_vm5 = vcmask 1042432  }
 0x346   : >> { %v3162_v19 = vsel %vm3148_vm7, %v3147_v11, %v3103_v41  ;;  %v14356_v44 = vld [vmem:[#allocation2 + $0x28] sm:$0xff]   ;;  %v3695_v35 = vor.u32 %v3694_v25, %v3691_v46  ;;  %vm14883_vm7 = vmmov (%p342_p5), 0  }
 0x347   : >> { %v12170_v22 = vpack.c.bf16 %v3162_v19, %v3162_v19  ;;  %v3342_v30 = vshll.u32 %v14356_v44, 16  ;;  %13382 = vmatmul.mubr.msk.bf16.gmra.mrb[252].mxu1 %vm3380_vm9, %v14356_v44  ;;  %v3346_v33 = vshrl.u32 %v14356_v44, 16  ;;  %v14367_v5 = vld [vmem:[#allocation2 + $0x24] sm:$0xff]   ;;  %v3704_v48 = vor.u32 %v3703_v21, %v3700_v29 }
 0x348   : >> { %13385 = vmatprep.mubr.msk.bf16.mxu1 %vm14877_vm0, %v14876_v4  ;;  %v3903_v20 = vrot.slane %v14367_v5, 2  ;;  %v3696_v8 = vsel %vm1998_vm3, %v3686_v39, %v3695_v35  ;;  %v3707_v11 = vshrl.u32 %v14367_v5, 16 }
 0x349   : >> { %v3237_v55 = vsel %vm3235_vm12, %v12170_v22, %v3236_v43  ;;  %v14359_v61 = vld [vmem:[#allocation2 + $0x30] ss:$0 sps:$4 sm:$0x11]   ;;  %v3344_v23 = vrot.slane %v3342_v30, 1  ;;  %v3710_v43 = vshll.u32 %v14367_v5, 16  ;;  %v3705_v19 = vsel %vm1998_vm3, %v3695_v35, %v3704_v48 }
 0x34a   : >> { %3238 = vst [vmem:[#allocation2 + $0x34] sm:$0x7] %v3237_v55  ;;  %v3350_v13 = vshll.u32 %v14359_v61, 16  ;;  %v3354_v36 = vshrl.u32 %v14359_v61, 16  ;;  %v3904_v14 = vsel %vm2782_vm4, %v3901_v9, %v3903_v20  ;;  %v14368_v10 = vld [vmem:[#allocation2 + $0x2c] sm:$0xff]   ;;  %v3709_v44 = vrot.slane %v3707_v11, 1 }
 0x34b   : >> { %v3345_v26 = vsel %vm1220_vm2, %v3340_v51, %v3344_v23  ;;  %v3348_v7 = vor.u32 %v3346_v33, %v3344_v23  ;;  %v3905_v41 = vrot.slane %v14368_v10, 2  ;;  %v3712_v22 = vrot.slane %v3710_v43, 2 }
 0x34c   : >> { %13342 = vmatmul.mubr.msk.bf16.gmra.mrb[232].mxu0 %vm3380_vm9, %v3345_v26  ;;  %v3352_v27 = vrot.slane %v3350_v13, 1  ;;  %v3719_v51 = vshll.u32 %v14368_v10, 16  ;;  %vm5155_vm12 = vcmask (%p342_p5), 1044484  }
 0x34d   : >> { %13345 = vmatprep.mubr.msk.bf16.mxu0 %vm14877_vm0, %v14876_v4  ;;  %v3906_v53 = vsel %vm2782_vm4, %v3903_v20, %v3905_v41  ;;  %v3713_v55 = vor.u32 %v3712_v22, %v3709_v44 }
 0x34e   : >> { %v3353_v54 = vsel %vm1220_vm2, %v3348_v7, %v3352_v27  ;;  %v3721_v33 = vrot.slane %v3719_v51, 2 }
 0x34f   : >> { %13386 = vmatmul.mubr.msk.bf16.gmra.mrb[0].mxu1 %vm3380_vm9, %v14359_v61  ;;  %v3716_v61 = vshrl.u32 %v14368_v10, 16  ;;  %v3714_v26 = vsel %vm1998_vm3, %v3704_v48, %v3713_v55 }
 0x350   : >> { %13433 = vmatprep.mubr.msk.bf16.mxu1 %vm14877_vm0, %v14876_v4 }
 0x351   : >> { %v14369_v30 = vld [vmem:[#allocation2 + $0x34] ss:$0 sps:$4 sm:$0x77]   ;;  %v3718_v13 = vrot.slane %v3716_v61, 1 }
 0x352   : >> { %v3907_v23 = vrot.slane %v14369_v30, 2  ;;  %v14370_v40 = vld [vmem:[#allocation2 + $0x34] ss:$0 sps:$4 sm:$0x33]  }
 0x353   : >> { %v3722_v7 = vor.u32 %v3721_v33, %v3718_v13  ;;  %v3725_v27 = vshrl.u32 %v14370_v40, 16  ;;  %v3728_v6 = vshll.u32 %v14370_v40, 16 }
 0x354   : >> { %13346 = vmatmul.mubr.msk.bf16.gmra.mrb[236].mxu0 %vm3380_vm9, %v3353_v54  ;;  %v3908_v16 = vsel %vm2782_vm4, %v3905_v41, %v3907_v23  ;;  %vm16757_vm4 = vmand %vm4153_vm15, %vm4154_vm1  ;;  %vm5164_vm15 = vcmask (%p342_p5), 1047559  }
 0x355   : >> { %13349 = vmatprep.mubr.msk.bf16.mxu0 %vm14877_vm0, %v14876_v4  ;;  %v3723_v3 = vsel %vm1998_vm3, %v3713_v55, %v3722_v7  ;;  %v3727_v37 = vrot.slane %v3725_v27, 1  ;;  %v3730_v54 = vrot.slane %v3728_v6, 2 }
 0x357   : >> { %13434 = vmatmul.mubr.msk.bf16.vlgmr.msra.gmra.mrb[4].mxu1 %vm3380_vm9, %v3898_v49  ;;  %v3731_v58 = vor.u32 %v3730_v54, %v3727_v37 }
 0x358   : >> { %13437 = vmatprep.mubr.msk.bf16.mxu1 %vm14877_vm0, %v14876_v4 }
 0x359   : >> { %v3732_v28 = vsel %vm1998_vm3, %v3722_v7, %v3731_v58  ;;  %v14393_v58 = vld [vmem:[%s18366_s5 + $0x30] sm:$0xff]  }
 0x35c   : >> { %13350 = vmatmul.mubr.msk.bf16.gmra.mrb[240].mxu0 %vm3380_vm9, %v3354_v36 }
 0x35d   : >> { %13397 = vmatprep.mubr.msk.bf16.mxu0 %vm14877_vm0, %v14876_v4 }
 0x35f   : >> { %13438 = vmatmul.mubr.msk.bf16.gmra.mrb[8].mxu1 %vm3380_vm9, %v3900_v32 }
 0x360   : >> { %13441 = vmatprep.mubr.msk.bf16.mxu1 %vm14877_vm0, %v14876_v4 }
 0x364   : >> { %13398 = vmatmul.mubr.msk.bf16.vlgmr.msra.gmra.mrb[244].mxu0 %vm3380_vm9, %v3687_v59 }
 0x365   : >> { %13401 = vmatprep.mubr.msk.bf16.mxu0 %vm14877_vm0, %v14876_v4  ;;  %13462 = vmatpush3.bf16.msra.mxu0 %v14393_v58 }
 0x366   : >> { %13463 = vmatprep.subr.bf16.mxu0 %v14876_v4 }
 0x367   : >> { %13442 = vmatmul.mubr.msk.bf16.gmra.mrb[12].mxu1 %vm3380_vm9, %v3902_v38 }
 0x368   : >> { %13445 = vmatprep.mubr.msk.bf16.mxu1 %vm14877_vm0, %v14876_v4 }
 0x36c   : >> { %13402 = vmatmul.mubr.msk.bf16.gmra.mrb[248].mxu0 %vm3380_vm9, %v3696_v8 }
 0x36d   : >> { %13405 = vmatprep.mubr.msk.bf16.mxu0 %vm14877_vm0, %v14876_v4 }
 0x36f   : >> { %13446 = vmatmul.mubr.msk.bf16.gmra.mrb[16].mxu1 %vm3380_vm9, %v3904_v14 }
 0x370   : >> { %13449 = vmatprep.mubr.msk.bf16.mxu1 %vm14877_vm0, %v14876_v4 }
 0x374   : >> { %13406 = vmatmul.mubr.msk.bf16.gmra.mrb[252].mxu0 %vm3380_vm9, %v3705_v19 }
 0x375   : >> { %13409 = vmatprep.mubr.msk.bf16.mxu0 %vm14877_vm0, %v14876_v4 }
 0x377   : >> { %13450 = vmatmul.mubr.msk.bf16.gmra.mrb[20].mxu1 %vm3380_vm9, %v3906_v53 }
 0x378   : >> { %13453 = vmatprep.mubr.msk.bf16.mxu1 %vm14877_vm0, %v14876_v4 }
 0x37c   : >> { %13410 = vmatmul.mubr.msk.bf16.gmra.mrb[0].mxu0 %vm3380_vm9, %v3714_v26 }
 0x37d   : >> { %13413 = vmatprep.mubr.msk.bf16.mxu0 %vm14877_vm0, %v14876_v4 }
 0x37f   : >> { %13454 = vmatmul.mubr.msk.bf16.gmra.mrb[24].mxu1 %vm3380_vm9, %v3908_v16 }
 0x380   : >> { %13457 = vmatprep.mubr.msk.bf16.mxu1 %vm14877_vm0, %v14876_v4 }
 0x384   : >> { %13414 = vmatmul.mubr.msk.bf16.gmra.mrb[4].mxu0 %vm3380_vm9, %v3723_v3 }
 0x385   : >> { %13417 = vmatprep.mubr.msk.bf16.mxu0 %vm14877_vm0, %v14876_v4 }
 0x387   : >> { %13458 = vmatmul.mubr.msk.bf16.gmra.mrb[28].mxu1 %vm3380_vm9, %v3907_v23 }
 0x388   : >> { %13505 = vmatprep.mubr.msk.bf16.mxu1 %vm14877_vm0, %v14876_v4 }
 0x38c   : >> { %13418 = vmatmul.mubr.msk.bf16.gmra.mrb[8].mxu0 %vm3380_vm9, %v3732_v28 }
 0x38d   : >> { %13421 = vmatprep.mubr.msk.bf16.mxu0 %vm14877_vm0, %v14876_v4 }
 0x394   : >> { %13422 = vmatmul.mubr.msk.bf16.gmra.mrb[12].mxu0 %vm3380_vm9, %v3727_v37 }
 0x395   : >> { %13473 = vmatprep.mubr.msk.bf16.mxu0 %vm14877_vm0, %v14876_v4 }
 0x3f2   : >> { %v3562_v56 = vpop.f32.mrb[232].mxu1 }
 0x3f3   : >> { %v13363_v49 = vpop.f32.mrb[233].mxu1 }
 0x3f4   : >> { %v3565_v60 = vpop.f32.mrb[234].mxu1 }
 0x3f5   : >> { %v13364_v62 = vpop.f32.mrb[235].mxu1 }
 0x3fa   : >> { %v3570_v18 = vpop.f32.mrb[236].mxu1 }
 0x3fb   : >> { %v13367_v15 = vpop.f32.mrb[237].mxu1 }
 0x3fc   : >> { %v3573_v42 = vpop.f32.mrb[238].mxu1 }
 0x3fd   : >> { %v13368_v36 = vpop.f32.mrb[239].mxu1 }
 0x3ff   : >> { %v3436_v31 = vpop.f32.mrb[216].mxu0 }
 0x400   : >> { %v16604_v17 = vadd.f32 %v3562_v56, %v3436_v31  ;;  %v13327_v34 = vpop.f32.mrb[217].mxu0  ;;  %v14394_v56 = vld [vmem:[%s18366_s5 + $0x38] sm:$0xff]   ;;  %v14395_v31 = vld [vmem:[%s18366_s5 + $0x40] sm:$0xff]  }
 0x401   : >> { %v3439_v63 = vpop.f32.mrb[218].mxu0  ;;  %13464 = vmatpush3.bf16.msra.mxu0 %v14394_v56 }
 0x402   : >> { %v16606_v12 = vadd.f32 %v3565_v60, %v3439_v63  ;;  %v13328_v32 = vpop.f32.mrb[219].mxu0  ;;  %v3578_v52 = vpop.f32.mrb[240].mxu1  ;;  %13465 = vmatprep.subr.bf16.mxu0 %v14876_v4 }
 0x403   : >> { %v13371_v39 = vpop.f32.mrb[241].mxu1 }
 0x404   : >> { %v3581_v50 = vpop.f32.mrb[242].mxu1 }
 0x405   : >> { %v13372_v47 = vpop.f32.mrb[243].mxu1  ;;  %13466 = vmatpush3.bf16.msra.mxu0 %v14395_v31 }
 0x406   : >> { %13467 = vmatprep.subr.bf16.mxu0 %v14876_v4 }
 0x407   : >> { %v3444_v24 = vpop.f32.mrb[220].mxu0 }
 0x408   : >> { %v16608_v9 = vadd.f32 %v3570_v18, %v3444_v24  ;;  %v13331_v59 = vpop.f32.mrb[221].mxu0 }
 0x409   : >> { %v3447_v46 = vpop.f32.mrb[222].mxu0 }
 0x40a   : >> { %v16610_v25 = vadd.f32 %v3573_v42, %v3447_v46  ;;  %v13332_v38 = vpop.f32.mrb[223].mxu0  ;;  %v3586_v5 = vpop.f32.mrb[244].mxu1 }
 0x40b   : >> { %v13375_v35 = vpop.f32.mrb[245].mxu1 }
 0x40c   : >> { %v3589_v45 = vpop.f32.mrb[246].mxu1 }
 0x40d   : >> { %v13376_v57 = vpop.f32.mrb[247].mxu1 }
 0x40f   : >> { %v3452_v20 = vpop.f32.mrb[224].mxu0 }
 0x410   : >> { %v16612_v8 = vadd.f32 %v3578_v52, %v3452_v20  ;;  %v13335_v29 = vpop.f32.mrb[225].mxu0  ;;  %v14396_v52 = vld [vmem:[%s18366_s5 + $0x48] sm:$0xff]  }
 0x411   : >> { %v3455_v21 = vpop.f32.mrb[226].mxu0  ;;  %13468 = vmatpush3.bf16.msra.mxu0 %v14396_v52 }
 0x412   : >> { %v16614_v14 = vadd.f32 %v3581_v50, %v3455_v21  ;;  %v13336_v10 = vpop.f32.mrb[227].mxu0  ;;  %v3594_v48 = vpop.f32.mrb[248].mxu1  ;;  %13469 = vmatprep.subr.bf16.mxu0 %v14876_v4 }
 0x413   : >> { %v13379_v11 = vpop.f32.mrb[249].mxu1 }
 0x414   : >> { %v3597_v43 = vpop.f32.mrb[250].mxu1 }
 0x415   : >> { %v13380_v41 = vpop.f32.mrb[251].mxu1 }
 0x417   : >> { %v3460_v19 = vpop.f32.mrb[228].mxu0 }
 0x418   : >> { %v16616_v44 = vadd.f32 %v3586_v5, %v3460_v19  ;;  %v13339_v22 = vpop.f32.mrb[229].mxu0 }
 0x419   : >> { %v3463_v53 = vpop.f32.mrb[230].mxu0 }
 0x41a   : >> { %v16618_v30 = vadd.f32 %v3589_v45, %v3463_v53  ;;  %v13340_v55 = vpop.f32.mrb[231].mxu0  ;;  %v3602_v61 = vpop.f32.mrb[252].mxu1 }
 0x41b   : >> { %v13383_v51 = vpop.f32.mrb[253].mxu1 }
 0x41c   : >> { %v3605_v23 = vpop.f32.mrb[254].mxu1 }
 0x41d   : >> { %v13384_v26 = vpop.f32.mrb[255].mxu1 }
 0x41f   : >> { %v3468_v13 = vpop.f32.mrb[232].mxu0 }
 0x420   : >> { %v16620_v33 = vadd.f32 %v3594_v48, %v3468_v13  ;;  %v13343_v40 = vpop.f32.mrb[233].mxu0 }
 0x421   : >> { %v3471_v16 = vpop.f32.mrb[234].mxu0 }
 0x422   : >> { %v16622_v7 = vadd.f32 %v3597_v43, %v3471_v16  ;;  %v13344_v27 = vpop.f32.mrb[235].mxu0  ;;  %v3610_v6 = vpop.f32.mrb[0].mxu1 }
 0x423   : >> { %v13387_v3 = vpop.f32.mrb[1].mxu1 }
 0x424   : >> { %v3613_v37 = vpop.f32.mrb[2].mxu1 }
 0x425   : >> { %v13388_v54 = vpop.f32.mrb[3].mxu1 }
 0x427   : >> { %v3476_v28 = vpop.f32.mrb[236].mxu0 }
 0x428   : >> { %v16630_v49 = vadd.f32 %v3602_v61, %v3476_v28  ;;  %v13347_v60 = vpop.f32.mrb[237].mxu0 }
 0x429   : >> { %v3479_v62 = vpop.f32.mrb[238].mxu0 }
 0x42a   : >> { %v16633_v18 = vadd.f32 %v3605_v23, %v3479_v62  ;;  %v13348_v15 = vpop.f32.mrb[239].mxu0  ;;  %v3988_v42 = vpop.f32.mrb[4].mxu1 }
 0x42b   : >> { %v13435_v36 = vpop.f32.mrb[5].mxu1 }
 0x42c   : >> { %v3991_v34 = vpop.f32.mrb[6].mxu1 }
 0x42d   : >> { %v13436_v63 = vpop.f32.mrb[7].mxu1 }
 0x42f   : >> { %v3484_v32 = vpop.f32.mrb[240].mxu0 }
 0x430   : >> { %v16642_v39 = vadd.f32 %v3610_v6, %v3484_v32  ;;  %v13351_v50 = vpop.f32.mrb[241].mxu0 }
 0x431   : >> { %v3487_v47 = vpop.f32.mrb[242].mxu0 }
 0x432   : >> { %v13352_v24 = vpop.f32.mrb[243].mxu0  ;;  %v3996_v59 = vpop.f32.mrb[8].mxu1 }
 0x433   : >> { %v13439_v46 = vpop.f32.mrb[9].mxu1 }
 0x434   : >> { %v3999_v38 = vpop.f32.mrb[10].mxu1 }
 0x435   : >> { %v13440_v5 = vpop.f32.mrb[11].mxu1 }
 0x437   : >> { %v3812_v35 = vpop.f32.mrb[244].mxu0 }
 0x438   : >> { %v3866_v45 = vadd.f32 %v3812_v35, %v16604_v17  ;;  %v13399_v57 = vpop.f32.mrb[245].mxu0 }
 0x439   : >> { %v3815_v20 = vpop.f32.mrb[246].mxu0 }
 0x43a   : >> { %v4042_v29 = vadd.f32 %v3988_v42, %v3866_v45  ;;  %v3867_v21 = vadd.f32 %v3815_v20, %v16606_v12  ;;  %v13400_v10 = vpop.f32.mrb[247].mxu0  ;;  %v4004_v48 = vpop.f32.mrb[12].mxu1 }
 0x43b   : >> { %v13443_v11 = vpop.f32.mrb[13].mxu1 }
 0x43c   : >> { %v4061_v43 = vadd.f32 %v14950_v1, %v4042_v29  ;;  %v4043_v41 = vadd.f32 %v3991_v34, %v3867_v21  ;;  %v4007_v19 = vpop.f32.mrb[14].mxu1 }
 0x43d   : >> { %v13444_v22 = vpop.f32.mrb[15].mxu1 }
 0x43e   : >> { %v4074_v53 = vmax.f32 %v4061_v43, 0.0  ;;  %v4062_v55 = vadd.f32 %v14950_v1, %v4043_v41 }
 0x43f   : >> { %v3820_v61 = vpop.f32.mrb[248].mxu0 }
 0x440   : >> { %v12171_v51 = vpack.c.bf16 %v4074_v53, %v4074_v53  ;;  %v4075_v17 = vmax.f32 %v4062_v55, 0.0  ;;  %v3868_v23 = vadd.f32 %v3820_v61, %v16608_v9  ;;  %v13403_v26 = vpop.f32.mrb[249].mxu0  ;;  %v14398_v61 = vld [vmem:[%s18366_s5 + $0x50] sm:$0xff]  }
 0x441   : >> { %v3823_v13 = vpop.f32.mrb[250].mxu0  ;;  %13470 = vmatpush3.bf16.msra.mxu0 %v14398_v61 }
 0x442   : >> { %4141 = vst.msk [vmem:[#allocation3] sm:$0xf] %vm4140_vm13, %v12171_v51  ;;  %v12172_v12 = vpack.c.bf16 %v4075_v17, %v4075_v17  ;;  %v4044_v40 = vadd.f32 %v3996_v59, %v3868_v23  ;;  %v3869_v16 = vadd.f32 %v3823_v13, %v16610_v25  ;;  %v13404_v27 = vpop.f32.mrb[251].mxu0  ;;  %v4012_v6 = vpop.f32.mrb[16].mxu1  ;;  %13471 = vmatprep.subr.bf16.mxu0 %v14876_v4 }
 0x443   : >> { %v13447_v3 = vpop.f32.mrb[17].mxu1 }
 0x444   : >> { %4142 = vst.msk [vmem:[#allocation3 + $0x4] sm:$0xf] %vm4140_vm13, %v12172_v12  ;;  %v4063_v37 = vadd.f32 %v14950_v1, %v4044_v40  ;;  %v4045_v54 = vadd.f32 %v3999_v38, %v3869_v16  ;;  %v4015_v58 = vpop.f32.mrb[18].mxu1 }
 0x445   : >> { %v13448_v28 = vpop.f32.mrb[19].mxu1 }
 0x446   : >> { %v4076_v56 = vmax.f32 %v4063_v37, 0.0  ;;  %v4064_v9 = vadd.f32 %v14950_v1, %v4045_v54 }
 0x447   : >> { %v3828_v60 = vpop.f32.mrb[252].mxu0 }
 0x448   : >> { %v12173_v62 = vpack.c.bf16 %v4076_v56, %v4076_v56  ;;  %v4077_v15 = vmax.f32 %v4064_v9, 0.0  ;;  %v3870_v42 = vadd.f32 %v3828_v60, %v16612_v8  ;;  %v13407_v36 = vpop.f32.mrb[253].mxu0 }
 0x449   : >> { %v3831_v25 = vpop.f32.mrb[254].mxu0 }
 0x44a   : >> { %4143 = vst.msk [vmem:[#allocation3 + $0x8] sm:$0xf] %vm4140_vm13, %v12173_v62  ;;  %v12174_v31 = vpack.c.bf16 %v4077_v15, %v4077_v15  ;;  %v4046_v34 = vadd.f32 %v4004_v48, %v3870_v42  ;;  %v3871_v63 = vadd.f32 %v3831_v25, %v16614_v14  ;;  %v13408_v32 = vpop.f32.mrb[255].mxu0  ;;  %v4020_v52 = vpop.f32.mrb[20].mxu1 }
 0x44b   : >> { %v13451_v50 = vpop.f32.mrb[21].mxu1  ;;  %v4306_v21 = vld [vmem:[#allocation3 + $0x4] sm:$0xc] }
 0x44c   : >> { %4144 = vst.msk [vmem:[#allocation3 + $0xc] sm:$0xf] %vm4140_vm13, %v12174_v31  ;;  %v4065_v47 = vadd.f32 %v14950_v1, %v4046_v34  ;;  %v4047_v24 = vadd.f32 %v4007_v19, %v3871_v63  ;;  %v4023_v59 = vpop.f32.mrb[22].mxu1 }
 0x44d   : >> { %v13452_v46 = vpop.f32.mrb[23].mxu1 }
 0x44e   : >> { %v4078_v38 = vmax.f32 %v4065_v47, 0.0  ;;  %v4066_v8 = vadd.f32 %v14950_v1, %v4047_v24 }
 0x44f   : >> { %v3836_v5 = vpop.f32.mrb[0].mxu0 }
 0x450   : >> { %v12175_v35 = vpack.c.bf16 %v4078_v38, %v4078_v38  ;;  %v4079_v45 = vmax.f32 %v4066_v8, 0.0  ;;  %v3872_v57 = vadd.f32 %v3836_v5, %v16616_v44  ;;  %v13411_v20 = vpop.f32.mrb[1].mxu0 }
 0x451   : >> { %v3839_v14 = vpop.f32.mrb[2].mxu0  ;;  %v16663_v29 = vld [vmem:[#allocation3 + $0x8] sm:$0xf] }
 0x452   : >> { %4145 = vst.msk [vmem:[#allocation3 + $0x10] sm:$0xf] %vm4140_vm13, %v12175_v35  ;;  %v12176_v10 = vpack.c.bf16 %v4079_v45, %v4079_v45  ;;  %v4048_v48 = vadd.f32 %v4012_v6, %v3872_v57  ;;  %v3873_v11 = vadd.f32 %v3839_v14, %v16618_v30  ;;  %v13412_v43 = vpop.f32.mrb[3].mxu0  ;;  %v4028_v41 = vpop.f32.mrb[24].mxu1  ;;  %v16668_v19 = vcombine.low %v4306_v21, %v16663_v29  ;;  %v14399_v30 = vld [vmem:[%s18366_s5] sm:$0xff]  }
 0x453   : >> { %v13455_v22 = vpop.f32.mrb[25].mxu1  ;;  %13494 = vmatpush3.bf16.msra.mxu1 %v14399_v30  ;;  %v16683_v3 = vld [vmem:[#allocation3 + $0xc] sm:$0xf] }
 0x454   : >> { %4146 = vst.msk [vmem:[#allocation3 + $0x14] sm:$0xf] %vm4140_vm13, %v12176_v10  ;;  %v4067_v44 = vadd.f32 %v14950_v1, %v4048_v48  ;;  %v4049_v53 = vadd.f32 %v4015_v58, %v3873_v11  ;;  %v4031_v55 = vpop.f32.mrb[26].mxu1  ;;  %v4328_v17 = vshll.u32 %v16668_v19, 16  ;;  %13495 = vmatprep.subr.bf16.mxu1 %v14876_v4  ;;  %v4326_v25 = vshrl.u32 %v16668_v19, 16 }
 0x455   : >> { %v13456_v51 = vpop.f32.mrb[27].mxu1  ;;  %v4374_v35 = vrot.slane %v16668_v19, 1 }
 0x456   : >> { %v4080_v23 = vmax.f32 %v4067_v44, 0.0  ;;  %v4068_v26 = vadd.f32 %v14950_v1, %v4049_v53  ;;  %v4330_v54 = vrot.slane %v4328_v17, 1  ;;  %v14400_v51 = vld [vmem:[%s18366_s5 + $0x58] sm:$0xff]  }
 0x457   : >> { %v3844_v13 = vpop.f32.mrb[4].mxu0  ;;  %13472 = vmatpush3.bf16.msra.mxu0 %v14400_v51 }
 0x458   : >> { %v12177_v12 = vpack.c.bf16 %v4080_v23, %v4080_v23  ;;  %v4081_v40 = vmax.f32 %v4068_v26, 0.0  ;;  %v3874_v16 = vadd.f32 %v3844_v13, %v16620_v33  ;;  %v13415_v27 = vpop.f32.mrb[5].mxu0  ;;  %v4331_v32 = vor.u32 %v4330_v54, %v4326_v25  ;;  %13525 = vmatprep.subr.bf16.mxu0 %v14876_v4  ;;  %v4156_v25 = vld [vmem:[#allocation3 + $0x30] sm:$0x1] }
 0x459   : >> { %v3847_v6 = vpop.f32.mrb[6].mxu0  ;;  %v16685_v37 = vld [vmem:[#allocation3 + $0x10] sm:$0xf] }
 0x45a   : >> { %4147 = vst.msk [vmem:[#allocation3 + $0x18] sm:$0xf] %vm4140_vm13, %v12177_v12  ;;  %v12178_v58 = vpack.c.bf16 %v4081_v40, %v4081_v40  ;;  %v4050_v28 = vadd.f32 %v4020_v52, %v3874_v16  ;;  %v3875_v56 = vadd.f32 %v3847_v6, %v16622_v7  ;;  %v13416_v9 = vpop.f32.mrb[7].mxu0  ;;  %v4036_v60 = vpop.f32.mrb[28].mxu1  ;;  %v16691_v62 = vcombine.low %v16683_v3, %v16685_v37 }
 0x45b   : >> { %v13459_v33 = vpop.f32.mrb[29].mxu1  ;;  %v16703_v45 = vld [vmem:[#allocation3 + $0x14] sm:$0xf] }
 0x45c   : >> { %4148 = vst.msk [vmem:[#allocation3 + $0x1c] sm:$0xf] %vm4140_vm13, %v12178_v58  ;;  %v4069_v15 = vadd.f32 %v14950_v1, %v4050_v28  ;;  %v4051_v42 = vadd.f32 %v4023_v59, %v3875_v56  ;;  %v4039_v36 = vpop.f32.mrb[30].mxu1  ;;  %v4333_v31 = vshll.u32 %v16691_v62, 16  ;;  %v4375_v47 = vrot.slane %v16691_v62, 1 }
 0x45d   : >> { %v13460_v34 = vpop.f32.mrb[31].mxu1  ;;  %v4337_v48 = vshrl.u32 %v16691_v62, 16 }
 0x45e   : >> { %v4082_v63 = vmax.f32 %v4069_v15, 0.0  ;;  %v4070_v7 = vadd.f32 %v14950_v1, %v4051_v42  ;;  %v4335_v52 = vrot.slane %v4333_v31, 1  ;;  %v4376_v19 = vsel %vm4251_vm14, %v4374_v35, %v4375_v47  ;;  %v16748_v15 = vld [vmem:[#allocation3 + $0x14] sm:$0xf]  ;;  %v14403_v42 = vld [vmem:[%s18366_s5 + $0x10] sm:$0xff]  }
 0x45f   : >> { %v3852_v50 = vpop.f32.mrb[8].mxu0 }
 0x460   : >> { %v12179_v24 = vpack.c.bf16 %v4082_v63, %v4082_v63  ;;  %v4083_v46 = vmax.f32 %v4070_v7, 0.0  ;;  %v3876_v38 = vadd.f32 %v3852_v50, %v16630_v49  ;;  %v13419_v8 = vpop.f32.mrb[9].mxu0  ;;  %v4336_v59 = vsel %vm1220_vm2, %v4331_v32, %v4335_v52  ;;  %v16753_v63 = vld [vmem:[#allocation3 + $0xc] sm:$0xf]  ;;  %v16761_v32 = vld [vmem:[#allocation3 + $0x10] sm:$0xf] }
 0x461   : >> { %v3855_v5 = vpop.f32.mrb[10].mxu0  ;;  %4364 = vrot.lane.b32.xlu0 %v4336_v59, %s14879_s12  ;;  %v16705_v57 = vld [vmem:[#allocation3 + $0x18] sm:$0xf]  ;;  %v4339_v44 = vor.u32 %v4337_v48, %v4335_v52 }
 0x462   : >> { %4149 = vst.msk [vmem:[#allocation3 + $0x20] sm:$0xf] %vm4140_vm13, %v12179_v24  ;;  %v12180_v20 = vpack.c.bf16 %v4083_v46, %v4083_v46  ;;  %v4052_v14 = vadd.f32 %v4028_v41, %v3876_v38  ;;  %v3877_v21 = vadd.f32 %v3855_v5, %v16633_v18  ;;  %v13420_v10 = vpop.f32.mrb[11].mxu0  ;;  %v16711_v49 = vcombine.low %v16703_v45, %v16705_v57  ;;  %v4711_v38 = vld [vmem:[#allocation3 + $0x8] sm:$0x8] }
 0x463   : >> { %v16730_v16 = vld [vmem:[#allocation3 + $0x1c] sm:$0xf]  ;;  %v16769_v46 = vcombine.low %v16761_v32, %v16748_v15  ;;  %v16776_v5 = vld [vmem:[#allocation3 + $0x18] sm:$0xf]  ;;  %v16779_v35 = vcombine.low %v4711_v38, %v16753_v63  ;;  %v4160_v10 = vld [vmem:[#allocation3 + $0x4] sm:$0xf] }
 0x464   : >> { %4150 = vst.msk [vmem:[#allocation3 + $0x24] sm:$0xf] %vm4140_vm13, %v12180_v20  ;;  %v4071_v11 = vadd.f32 %v14950_v1, %v4052_v14  ;;  %v4053_v43 = vadd.f32 %v4031_v55, %v3877_v21  ;;  %v4341_v22 = vshll.u32 %v16711_v49, 16  ;;  %v4377_v30 = vrot.slane %v16711_v49, 1  ;;  %v14401_v55 = vld [vmem:[%s18366_s5 + $0x8] sm:$0xff]  }
 0x465   : >> { %4383 = vrot.lane.b32.xlu0 %v4376_v19, %s14881_s24  ;;  %13496 = vmatpush3.bf16.msra.mxu1 %v14401_v55  ;;  %v16763_v52 = vld [vmem:[#allocation3 + $0x1c] sm:$0xf]  ;;  %v4755_v19 = vshll.u32 %v16769_v46, 16 }
 0x466   : >> { %v4084_v18 = vmax.f32 %v4071_v11, 0.0  ;;  %v4072_v41 = vadd.f32 %v14950_v1, %v4053_v43  ;;  %v4343_v53 = vrot.slane %v4341_v22, 1  ;;  %13497 = vmatprep.subr.bf16.mxu1 %v14876_v4  ;;  %v4378_v9 = vsel %vm4251_vm14, %v4375_v47, %v4377_v30  ;;  %v4159_v22 = vld [vmem:[#allocation3] sm:$0xf] }
 0x467   : >> { %v3860_v61 = vpop.f32.mrb[12].mxu0  ;;  %v16786_v21 = vcombine.low %v16776_v5, %v16763_v52  ;;  %v4757_v55 = vrot.slane %v4755_v19, 1 }
 0x468   : >> { %v12181_v17 = vpack.c.bf16 %v4084_v18, %v4084_v18  ;;  %v4085_v23 = vmax.f32 %v4072_v41, 0.0  ;;  %v3878_v26 = vadd.f32 %v3860_v61, %v16642_v39  ;;  %v13423_v13 = vpop.f32.mrb[13].mxu0  ;;  %v4344_v12 = vsel %vm1220_vm2, %v4339_v44, %v4343_v53 }
 0x469   : >> { %v3863_v40 = vpop.f32.mrb[14].mxu0  ;;  %4366 = vrot.lane.b32.xlu1 %v4344_v12, %s14879_s12  ;;  %v16732_v27 = vld [vmem:[#allocation3 + $0x20] sm:$0xf]  ;;  %v4345_v39 = vshrl.u32 %v16711_v49, 16  ;;  %13498 = vmatpush3.bf16.msra.mxu1 %v14403_v42  ;;  %v4750_v18 = vshll.u32 %v16779_v35, 16  ;;  %v16791_v41 = vcombine.low %v4159_v22, %v4160_v10  ;;  %v4759_v13 = vshrl.u32 %v16769_v46, 16 }
 0x46a   : >> { %4151 = vst.msk [vmem:[#allocation3 + $0x28] sm:$0xf] %vm4140_vm13, %v12181_v17  ;;  %v12182_v6 = vpack.c.bf16 %v4085_v23, %v4085_v23  ;;  %v4054_v54 = vadd.f32 %v4036_v60, %v3878_v26  ;;  %v13424_v58 = vpop.f32.mrb[15].mxu0  ;;  %v16737_v28 = vcombine.low %v16730_v16, %v16732_v27  ;;  %13499 = vmatprep.subr.bf16.mxu1 %v14876_v4  ;;  %v14405_v23 = vld [vmem:[%s18366_s5 + $0x18] sm:$0xff]  }
 0x46b   : >> { %v4347_v31 = vor.u32 %v4345_v39, %v4343_v53  ;;  %v16774_v8 = vld [vmem:[#allocation3 + $0x24] sm:$0xf]  ;;  %v16799_v17 = vcombine.low %v16663_v29, %v16683_v3  ;;  %v4752_v40 = vrot.slane %v4750_v18, 1  ;;  %v4761_v58 = vor.u32 %v4759_v13, %v4757_v55 }
 0x46c   : >> { %4152 = vst.msk [vmem:[#allocation3 + $0x2c] sm:$0xf] %vm4140_vm13, %v12182_v6  ;;  %v4073_v56 = vadd.f32 %v14950_v1, %v4054_v54  ;;  %v4379_v60 = vrot.slane %v16737_v28, 1  ;;  %v4349_v33 = vshll.u32 %v16737_v28, 16  ;;  %v4353_v11 = vshrl.u32 %v16737_v28, 16  ;;  %v14407_v54 = vld [vmem:[%s18366_s5 + $0x20] sm:$0xff]  }
 0x46d   : >> { %4385 = vrot.lane.b32.xlu1 %v4378_v9, %s14881_s24  ;;  %v4199_v6 = vshll.u32 %v16791_v41, 16  ;;  %13500 = vmatpush3.bf16.msra.mxu1 %v14405_v23  ;;  %v4748_v39 = vshrl.u32 %v16779_v35, 16  ;;  %v11256_v9 = vcombine.low %v16753_v63, %v16761_v32  ;;  %v11257_v63 = vcombine.low %v16748_v15, %v16776_v5  ;;  %v4717_v32 = vld [vmem:[#allocation3 + $0x20] sm:$0xf]  ;;  %v4168_v13 = vld [vmem:[#allocation3 + $0x24] sm:$0x1] }
 0x46e   : >> { %v4086_v36 = vmax.f32 %v4073_v56, 0.0  ;;  %v4351_v34 = vrot.slane %v4349_v33, 1  ;;  %v4380_v47 = vsel %vm4251_vm14, %v4377_v30, %v4379_v60  ;;  %v4763_v30 = vshll.u32 %v16786_v21, 16  ;;  %13501 = vmatprep.subr.bf16.mxu1 %v14876_v4  ;;  %v14444_v1 = vld [vmem:[%s18368_s7 + $0x30] sm:$0xff] (%p342_p5)  }
 0x46f   : >> { %v4204_v56 = vshll.u32 %v16799_v17, 16  ;;  %v4753_v42 = vor.u32 %v4752_v40, %v4748_v39  ;;  %v4805_v15 = vrot.slane %v11257_v63, 5  ;;  %v16847_v22 = vcombine.low %v16705_v57, %v16730_v16  ;;  %v4170_v63 = vld [vmem:[#allocation3 + $0x24] sm:$0x3] }
 0x470   : >> { %v12183_v50 = vpack.c.bf16 %v4086_v36, %v4086_v36  ;;  %v4352_v24 = vsel %vm1220_vm2, %v4347_v31, %v4351_v34  ;;  %v4355_v53 = vor.u32 %v4353_v11, %v4351_v34  ;;  %v4765_v12 = vrot.slane %v4763_v30, 1  ;;  %v14409_v34 = vld [vmem:[%s18366_s5 + $0x28] sm:$0xff]  }
 0x471   : >> { %4387 = vrot.lane.b32.xlu1 %v4380_v47, %s14881_s24  ;;  %4368 = vrot.lane.b32.xlu0 %v4352_v24, %s14879_s12  ;;  %v4307_v59 = vld [vmem:[#allocation3 + $0x28] sm:$0x7]  ;;  %v4201_v36 = vrot.slane %v4199_v6, 1  ;;  %v16822_v31 = vcombine.low %v16685_v37, %v16703_v45  ;;  %v4197_v47 = vshrl.u32 %v16791_v41, 16  ;;  %v4206_v37 = vrot.slane %v4204_v56, 1 }
 0x472   : >> { %v4157_v20 = vsel %vm16757_vm4, %v12183_v50, %v4156_v25  ;;  %v11216_v14 = vcombine.low %v16774_v8, %v4307_v59  ;;  %v4766_v33 = vsel %vm1220_vm2, %v4761_v58, %v4765_v12  ;;  %v4169_v25 = vld [vmem:[#allocation3] sm:$0xe]  ;;  %13502 = vmatpush3.bf16.msra.mxu1 %v14407_v54  ;;  %v4758_v50 = vsel %vm1220_vm2, %v4753_v42, %v4757_v55 }
 0x473   : >> { %4158 = vst [vmem:[#allocation3 + $0x30] sm:$0x1] %v4157_v20  ;;  %v11208_v7 = vcombine.low %v4169_v25, %v4160_v10  ;;  %13503 = vmatprep.subr.bf16.mxu1 %v14876_v4  ;;  %v4804_v24 = vrot.slane %v11256_v9, 5  ;;  %v4202_v38 = vor.u32 %v4201_v36, %v4197_v47  ;;  %v4253_v59 = vrot.slane %v16799_v17, 1  ;;  %v4720_v11 = vld [vmem:[#allocation3 + $0x2c] sm:$0xf] }
 0x474   : >> { %v4381_v48 = vrot.slane %v11216_v14, 1  ;;  %v4357_v43 = vshll.u32 %v11216_v14, 16  ;;  %v4361_v26 = vshrl.u32 %v11216_v14, 16  ;;  %v4212_v20 = vshll.u32 %v16822_v31, 16 }
 0x475   : >> { %v4207_v5 = vsel %vm1220_vm2, %v4202_v38, %v4206_v37  ;;  %v4252_v14 = vrot.slane %v11208_v7, 1  ;;  %v4806_v18 = vsel %vm4803_vm5, %v4804_v24, %v4805_v15  ;;  %v4255_v57 = vrot.slane %v16822_v31, 1 }
 0x476   : >> { %v4382_v44 = vsel %vm4251_vm14, %v4379_v60, %v4381_v48  ;;  %v4359_v61 = vrot.slane %v4357_v43, 1  ;;  %v16817_v60 = vld [vmem:[#allocation3 + $0x24] sm:$0xf]  ;;  %13504 = vmatpush3.bf16.msra.mxu1 %v14409_v34  ;;  %v4214_v19 = vrot.slane %v4212_v20, 1  ;;  %v4220_v16 = vshll.u32 %v16847_v22, 16 }
 0x477   : >> { %4389 = vrot.lane.b32.xlu1 %v4382_v44, %s14881_s24  ;;  %v16834_v45 = vcombine.low %v4717_v32, %v16817_v60  ;;  %v4254_v43 = vsel %vm4251_vm14, %v4252_v14, %v4253_v59  ;;  %v4257_v34 = vrot.slane %v16847_v22, 1  ;;  %v11209_v38 = vcombine.low %v16732_v27, %v4170_v63 }
 0x478   : >> { %v4360_v51 = vsel %vm1220_vm2, %v4355_v53, %v4359_v61  ;;  %v4363_v3 = vor.u32 %v4361_v26, %v4359_v61  ;;  %v4719_v53 = vld [vmem:[#allocation3 + $0x28] sm:$0xf]  ;;  %v4767_v61 = vshrl.u32 %v16786_v21, 16  ;;  %v4222_v58 = vrot.slane %v4220_v16, 1 }
 0x479   : >> { %4370 = vrot.lane.b32.xlu0 %v4360_v51, %s14879_s12  ;;  %v4771_v10 = vshll.u32 %v16834_v45, 16  ;;  %v11258_v51 = vcombine.low %v16763_v52, %v4717_v32  ;;  %v16853_v55 = vcombine.low %v4719_v53, %v4720_v11  ;;  %v4216_v52 = vshrl.u32 %v16822_v31, 16 }
 0x47a   : >> { %v4769_v26 = vor.u32 %v4767_v61, %v4765_v12  ;;  %v16866_v12 = vcombine.low %v16732_v27, %v4168_v13  ;;  %v4775_v9 = vshrl.u32 %v16834_v45, 16  ;;  %v11259_v42 = vcombine.low %v16817_v60, %v4719_v53  ;;  %v4721_v47 = vld [vmem:[#allocation3 + $0x30] sm:$0x1]  ;;  %v4303_v53 = vld [vmem:[#allocation3 + $0x4] sm:$0xe] }
 0x47b   : >> { %4391 = vrot.lane.b32.xlu1 %v4381_v48, %s14881_s24  ;;  %v4208_v48 = vshrl.u32 %v16799_v17, 16  ;;  %v4773_v30 = vrot.slane %v4771_v10, 1  ;;  %v4807_v6 = vrot.slane %v11258_v51, 5  ;;  %v4779_v54 = vshll.u32 %v16853_v55, 16 }
 0x47c   : >> { %v4218_v39 = vor.u32 %v4216_v52, %v4214_v19  ;;  %v4228_v7 = vshll.u32 %v16866_v12, 16  ;;  %v4258_v60 = vsel %vm4251_vm14, %v4255_v57, %v4257_v34  ;;  %v4259_v10 = vrot.slane %v11209_v38, 1 }
 0x47d   : >> { %4372 = vrot.lane.b32.xlu0 %v4363_v3, %s14879_s12  ;;  %v4210_v44 = vor.u32 %v4208_v48, %v4206_v37  ;;  %v4774_v40 = vsel %vm1220_vm2, %v4769_v26, %v4773_v30  ;;  %v4256_v3 = vsel %vm4251_vm14, %v4253_v59, %v4255_v57  ;;  %v4808_v56 = vsel %vm4803_vm5, %v4805_v15, %v4807_v6 }
 0x47e   : >> { %v4223_v36 = vsel %vm1220_vm2, %v4218_v39, %v4222_v58  ;;  %v4777_v25 = vor.u32 %v4775_v9, %v4773_v30  ;;  %v4224_v37 = vshrl.u32 %v16847_v22, 16  ;;  %v11260_v15 = vcombine.low %v4720_v11, %v4721_v47 }
 0x47f   : >> { %4788 = vrot.lane.b32.xlu1 %v4766_v33, %s14879_s12  ;;  %v4215_v23 = vsel %vm1220_vm2, %v4210_v44, %v4214_v19  ;;  %v4781_v33 = vrot.slane %v4779_v54, 1  ;;  %v4260_v27 = vsel %vm4251_vm14, %v4257_v34, %v4259_v10  ;;  %v4232_v11 = vshrl.u32 %v16866_v12, 16 }
 0x480   : >> { %v4226_v20 = vor.u32 %v4224_v37, %v4222_v58  ;;  %v11210_v61 = vcombine.low %v4303_v53, %v16663_v29  ;;  %vm5158_vm13 = vcmask (%p342_p5), 1045509   ;;  %vm5161_vm14 = vcmask (%p342_p5), 1046534  }
 0x481   : >> { %4786 = vrot.lane.b32.xlu0 %v4758_v50, %s14879_s12  ;;  %v4782_v32 = vsel %vm1220_vm2, %v4777_v25, %v4781_v33  ;;  %v4809_v50 = vrot.slane %v11259_v42, 5 }
 0x483   : >> { %4813 = vrot.lane.b32.xlu1 %v4804_v24, %s14881_s24  ;;  %v4230_v24 = vrot.slane %v4228_v7, 1  ;;  %v4810_v59 = vsel %vm4803_vm5, %v4807_v6, %v4809_v50 }
 0x485   : >> { %4235 = vrot.lane.b32.xlu0 %v4207_v5, %s14879_s12  ;;  %v4783_v5 = vshrl.u32 %v16853_v55, 16  ;;  %v4231_v14 = vsel %vm1220_vm2, %v4226_v20, %v4230_v24  ;;  %vm4503_vm2 = vcmask 785408  }
 0x487   : >> { %4261 = vrot.lane.b32.xlu1 %v4254_v43, %s14881_s24  ;;  %v4785_v48 = vor.u32 %v4783_v5, %v4781_v33  ;;  %v4811_v43 = vrot.slane %v11260_v15, 5  ;;  %v14408_v15 = vld [vmem:[%s18366_s5 + $0x70] sm:$0xff]  }
 0x489   : >> { %4815 = vrot.lane.b32.xlu0 %v4806_v18, %s14881_s24  ;;  %v4812_v19 = vsel %vm4803_vm5, %v4809_v50, %v4811_v43  ;;  %v4234_v18 = vor.u32 %v4232_v11, %v4230_v24  ;;  %v4305_v24 = vld [vmem:[#allocation3 + $0x28] sm:$0x3] }
 0x48b   : >> { %4237 = vrot.lane.b32.xlu1 %v4215_v23, %s14879_s12 }
 0x48d   : >> { %4790 = vrot.lane.b32.xlu0 %v4774_v40, %s14879_s12 }
 0x48f   : >> { %4263 = vrot.lane.b32.xlu1 %v4256_v3, %s14881_s24 }
 0x491   : >> { %4817 = vrot.lane.b32.xlu0 %v4808_v56, %s14881_s24 }
 0x493   : >> { %4239 = vrot.lane.b32.xlu1 %v4223_v36, %s14879_s12 }
 0x495   : >> { %4792 = vrot.lane.b32.xlu0 %v4782_v32, %s14879_s12 }
 0x497   : >> { %4265 = vrot.lane.b32.xlu1 %v4258_v60, %s14881_s24 }
 0x499   : >> { %4819 = vrot.lane.b32.xlu0 %v4810_v59, %s14881_s24 }
 0x49b   : >> { %4241 = vrot.lane.b32.xlu1 %v4231_v14, %s14879_s12 }
 0x49d   : >> { %4794 = vrot.lane.b32.xlu0 %v4785_v48, %s14879_s12 }
 0x49f   : >> { %4267 = vrot.lane.b32.xlu1 %v4260_v27, %s14881_s24 }
 0x4a1   : >> { %4821 = vrot.lane.b32.xlu0 %v4812_v19, %s14881_s24 }
 0x4a3   : >> { %4269 = vrot.lane.b32.xlu1 %v4259_v10, %s14881_s24  ;;  %v11214_v10 = vcombine.low %v16774_v8, %v4305_v24  ;;  %v14410_v8 = vld [vmem:[%s18366_s5 + $0x78] sm:$0xff]  }
 0x4a5   : >> { %4243 = vrot.lane.b32.xlu0 %v4234_v18, %s14879_s12 }
 0x4d3   : >> { %v4365_v44 = vpop.permute.xlu0 %4364 }
 0x4d4   : >> { %v4395_v51 = vsel %vm3133_vm6, %v11210_v61, %v4365_v44 }
 0x4d7   : >> { %v4384_v30 = vpop.permute.xlu0 %4383 }
 0x4d8   : >> { %v4406_v23 = vsel %vm3380_vm9, %v4395_v51, %v4384_v30 }
 0x4d9   : >> { %v4428_v57 = vshrl.u32 %v4406_v23, 16  ;;  %v4431_v16 = vshll.u32 %v4406_v23, 16  ;;  %v14411_v23 = vld [vmem:[%s18366_s5 + $0x80] sm:$0xff]  }
 0x4db   : >> { %v4367_v26 = vpop.permute.xlu1 %4366  ;;  %v4430_v54 = vrot.slane %v4428_v57, 1  ;;  %v4433_v52 = vrot.slane %v4431_v16, 2 }
 0x4dc   : >> { %v4397_v13 = vsel %vm3133_vm6, %v16691_v62, %v4367_v26  ;;  %v14402_v62 = vld [vmem:[%s18366_s5 + $0x60] sm:$0xff]  }
 0x4dd   : >> { %v4434_v42 = vor.u32 %v4433_v52, %v4430_v54  ;;  %v14412_v54 = vld [vmem:[%s18366_s5 + $0x88] sm:$0xff]  }
 0x4df   : >> { %v4386_v40 = vpop.permute.xlu1 %4385 }
 0x4e0   : >> { %v4408_v6 = vsel %vm3380_vm9, %v4397_v13, %v4386_v40 }
 0x4e1   : >> { %v4435_v3 = vshrl.u32 %v4408_v6, 16  ;;  %v4438_v58 = vshll.u32 %v4408_v6, 16 }
 0x4e3   : >> { %v4437_v39 = vrot.slane %v4435_v3, 1  ;;  %v4440_v29 = vrot.slane %v4438_v58, 2  ;;  %v4388_v56 = vpop.permute.xlu1 %4387  ;;  %v4369_v9 = vpop.permute.xlu0 %4368 }
 0x4e4   : >> { %v4399_v33 = vsel %vm3133_vm6, %v16711_v49, %v4369_v9  ;;  %v14406_v49 = vld [vmem:[%s18366_s5 + $0x68] sm:$0xff]  }
 0x4e5   : >> { %v4441_v36 = vor.u32 %v4440_v29, %v4437_v39  ;;  %v4410_v25 = vsel %vm3380_vm9, %v4399_v33, %v4388_v56 }
 0x4e6   : >> { %v4443_v34 = vshrl.u32 %v4410_v25, 16  ;;  %v4446_v7 = vshll.u32 %v4410_v25, 16 }
 0x4e7   : >> { %v4442_v63 = vsel %vm1998_vm3, %v4434_v42, %v4441_v36 }
 0x4e8   : >> { %v4445_v32 = vrot.slane %v4443_v34, 1  ;;  %v4448_v50 = vrot.slane %v4446_v7, 2  ;;  %13474 = vmatmul.mubr.msk.bf16.vlgmr.msra.gmra.mrb[16].mxu0 %vm4503_vm2, %v4442_v63 }
 0x4e9   : >> { %13526 = vmatpush3.bf16.msra.mxu0 %v14402_v62  ;;  %v4390_v47 = vpop.permute.xlu1 %4389  ;;  %13477 = vmatprep.mubr.msk.bf16.mxu0 %vm14877_vm0, %v14876_v4 }
 0x4ea   : >> { %13527 = vmatprep.subr.bf16.mxu0 %v14876_v4  ;;  %v4449_v60 = vor.u32 %v4448_v50, %v4445_v32 }
 0x4eb   : >> { %v4371_v37 = vpop.permute.xlu0 %4370 }
 0x4ec   : >> { %v4401_v38 = vsel %vm3133_vm6, %v16737_v28, %v4371_v37  ;;  %v4450_v48 = vsel %vm1998_vm3, %v4441_v36, %v4449_v60 }
 0x4ed   : >> { %v4412_v59 = vsel %vm3380_vm9, %v4401_v38, %v4390_v47  ;;  %v4392_v20 = vpop.permute.xlu1 %4391  ;;  %13528 = vmatpush3.bf16.msra.mxu0 %v14406_v49 }
 0x4ee   : >> { %v4451_v5 = vshrl.u32 %v4412_v59, 16  ;;  %v4454_v14 = vshll.u32 %v4412_v59, 16  ;;  %13529 = vmatprep.subr.bf16.mxu0 %v14876_v4 }
 0x4ef   : >> { %v4373_v43 = vpop.permute.xlu0 %4372 }
 0x4f0   : >> { %v4453_v27 = vrot.slane %v4451_v5, 1  ;;  %v4456_v19 = vrot.slane %v4454_v14, 2  ;;  %v4404_v28 = vsel %vm3133_vm6, %v11214_v10, %v4373_v43  ;;  %13478 = vmatmul.mubr.msk.bf16.gmra.mrb[20].mxu0 %vm4503_vm2, %v4450_v48 }
 0x4f1   : >> { %v4414_v11 = vsel %vm3380_vm9, %v4404_v28, %v4392_v20  ;;  %v4789_v18 = vpop.permute.xlu1 %4788  ;;  %13481 = vmatprep.mubr.msk.bf16.mxu0 %vm14877_vm0, %v14876_v4  ;;  %13530 = vmatpush3.bf16.msra.mxu0 %v14408_v15 }
 0x4f2   : >> { %13531 = vmatprep.subr.bf16.mxu0 %v14876_v4  ;;  %v4457_v44 = vor.u32 %v4456_v19, %v4453_v27  ;;  %v4459_v53 = vshrl.u32 %v4414_v11, 16  ;;  %v4462_v61 = vshll.u32 %v4414_v11, 16  ;;  %v4826_v25 = vsel %vm3133_vm6, %v16769_v46, %v4789_v18 }
 0x4f3   : >> { %v4787_v30 = vpop.permute.xlu0 %4786 }
 0x4f4   : >> { %v4458_v26 = vsel %vm1998_vm3, %v4449_v60, %v4457_v44  ;;  %v4461_v57 = vrot.slane %v4459_v53, 1  ;;  %v4464_v16 = vrot.slane %v4462_v61, 2  ;;  %v4824_v62 = vsel %vm3133_vm6, %v16779_v35, %v4787_v30 }
 0x4f5   : >> { %v4814_v51 = vpop.permute.xlu1 %4813  ;;  %13532 = vmatpush3.bf16.msra.mxu0 %v14410_v8 }
 0x4f6   : >> { %13533 = vmatprep.subr.bf16.mxu0 %v14876_v4  ;;  %v4465_v3 = vor.u32 %v4464_v16, %v4461_v57  ;;  %v4834_v32 = vsel %vm3380_vm9, %v4824_v62, %v4814_v51 }
 0x4f7   : >> { %v4236_v13 = vpop.permute.xlu0 %4235  ;;  %v4862_v47 = vrot.slane %v4834_v32, 3 }
 0x4f8   : >> { %v4272_v40 = vsel %vm3133_vm6, %v16791_v41, %v4236_v13  ;;  %13482 = vmatmul.mubr.msk.bf16.gmra.mrb[24].mxu0 %vm4503_vm2, %v4458_v26  ;;  %v4466_v39 = vsel %vm1998_vm3, %v4457_v44, %v4465_v3  ;;  %vm4861_vm3 = vcmask 1044480  }
 0x4f9   : >> { %v4262_v6 = vpop.permute.xlu1 %4261  ;;  %13485 = vmatprep.mubr.msk.bf16.mxu0 %vm14877_vm0, %v14876_v4  ;;  %13534 = vmatpush3.bf16.msra.mxu0 %v14411_v23 }
 0x4fa   : >> { %v4282_v52 = vsel %vm3380_vm9, %v4272_v40, %v4262_v6  ;;  %13535 = vmatprep.subr.bf16.mxu0 %v14876_v4 }
 0x4fb   : >> { %13506 = vmatmul.mubr.msk.bf16.vlgmr.msra.gmra.mrb[32].mxu1 %vm4503_vm2, %v4282_v52  ;;  %v4816_v58 = vpop.permute.xlu0 %4815 }
 0x4fc   : >> { %13509 = vmatprep.mubr.msk.bf16.mxu1 %vm14877_vm0, %v14876_v4  ;;  %v4836_v34 = vsel %vm3380_vm9, %v4826_v25, %v4816_v58 }
 0x4fd   : >> { %v4238_v41 = vpop.permute.xlu1 %4237  ;;  %13536 = vmatpush3.bf16.msra.mxu0 %v14412_v54  ;;  %v4863_v46 = vrot.slane %v4836_v34, 3 }
 0x4fe   : >> { %v4274_v56 = vsel %vm3133_vm6, %v16799_v17, %v4238_v41 }
 0x4ff   : >> { %v4791_v29 = vpop.permute.xlu0 %4790 }
 0x500   : >> { %13486 = vmatmul.mubr.msk.bf16.gmra.mrb[28].mxu0 %vm4503_vm2, %v4466_v39  ;;  %v4828_v60 = vsel %vm3133_vm6, %v16786_v21, %v4791_v29 }
 0x501   : >> { %v4264_v9 = vpop.permute.xlu1 %4263  ;;  %13489 = vmatprep.mubr.msk.bf16.mxu0 %vm14877_vm0, %v14876_v4 }
 0x502   : >> { %v4284_v33 = vsel %vm3380_vm9, %v4274_v56, %v4264_v9 }
 0x503   : >> { %13510 = vmatmul.mubr.msk.bf16.gmra.mrb[36].mxu1 %vm4503_vm2, %v4284_v33  ;;  %v4818_v42 = vpop.permute.xlu0 %4817 }
 0x504   : >> { %13513 = vmatprep.mubr.msk.bf16.mxu1 %vm14877_vm0, %v14876_v4  ;;  %v4838_v24 = vsel %vm3380_vm9, %v4828_v60, %v4818_v42 }
 0x505   : >> { %v4240_v36 = vpop.permute.xlu1 %4239  ;;  %v4865_v15 = vrot.slane %v4838_v24, 3 }
 0x506   : >> { %v4276_v7 = vsel %vm3133_vm6, %v16822_v31, %v4240_v36  ;;  %v4864_v31 = vsel %vm4861_vm3, %v4862_v47, %v4863_v46 }
 0x507   : >> { %v4793_v17 = vpop.permute.xlu0 %4792  ;;  %v4866_v21 = vsel %vm4861_vm3, %v4863_v46, %v4865_v15 }
 0x508   : >> { %13490 = vmatmul.mubr.msk.bf16.gmra.mrb[32].mxu0 %vm4503_vm2, %v4465_v3  ;;  %v4830_v14 = vsel %vm3133_vm6, %v16834_v45, %v4793_v17 }
 0x509   : >> { %v4266_v63 = vpop.permute.xlu1 %4265  ;;  %13537 = vmatprep.mubr.msk.bf16.mxu0 %vm14877_vm0, %v14876_v4 }
 0x50a   : >> { %v4286_v50 = vsel %vm3380_vm9, %v4276_v7, %v4266_v63 }
 0x50b   : >> { %13514 = vmatmul.mubr.msk.bf16.gmra.mrb[40].mxu1 %vm4503_vm2, %v4286_v50  ;;  %v4820_v35 = vpop.permute.xlu0 %4819 }
 0x50c   : >> { %13517 = vmatprep.mubr.msk.bf16.mxu1 %vm14877_vm0, %v14876_v4 }
 0x50d   : >> { %v4242_v49 = vpop.permute.xlu1 %4241 }
 0x50e   : >> { %v4278_v38 = vsel %vm3133_vm6, %v16847_v22, %v4242_v49  ;;  %v4840_v22 = vsel %vm3380_vm9, %v4830_v14, %v4820_v35 }
 0x50f   : >> { %v4795_v37 = vpop.permute.xlu0 %4794  ;;  %v4867_v19 = vrot.slane %v4840_v22, 3 }
 0x510   : >> { %13538 = vmatmul.mubr.msk.bf16.vlgmr.msra.gmra.mrb[36].mxu0 %vm4503_vm2, %v4864_v31  ;;  %v4832_v45 = vsel %vm3133_vm6, %v16853_v55, %v4795_v37 }
 0x511   : >> { %v4268_v59 = vpop.permute.xlu1 %4267  ;;  %13541 = vmatprep.mubr.msk.bf16.mxu0 %vm14877_vm0, %v14876_v4  ;;  %v4868_v28 = vsel %vm4861_vm3, %v4865_v15, %v4867_v19 }
 0x512   : >> { %v4288_v20 = vsel %vm3380_vm9, %v4278_v38, %v4268_v59 }
 0x513   : >> { %13518 = vmatmul.mubr.msk.bf16.gmra.mrb[44].mxu1 %vm4503_vm2, %v4288_v20  ;;  %v4822_v5 = vpop.permute.xlu0 %4821 }
 0x514   : >> { %13521 = vmatprep.mubr.msk.bf16.mxu1 %vm14877_vm0, %v14876_v4  ;;  %v4842_v11 = vsel %vm3380_vm9, %v4832_v45, %v4822_v5 }
 0x515   : >> { %v4270_v48 = vpop.permute.xlu1 %4269 }
 0x517   : >> { %v4244_v10 = vpop.permute.xlu0 %4243 }
 0x518   : >> { %v4280_v43 = vsel %vm3133_vm6, %v16866_v12, %v4244_v10  ;;  %13542 = vmatmul.mubr.msk.bf16.gmra.mrb[40].mxu0 %vm4503_vm2, %v4866_v21  ;;  %v4869_v12 = vrot.slane %v4842_v11, 3 }
 0x519   : >> { %v4290_v27 = vsel %vm3380_vm9, %v4280_v43, %v4270_v48  ;;  %13545 = vmatprep.mubr.msk.bf16.mxu0 %vm14877_vm0, %v14876_v4 }
 0x51a   : >> { %v4870_v18 = vsel %vm4861_vm3, %v4867_v19, %v4869_v12 }
 0x51b   : >> { %13522 = vmatmul.mubr.msk.bf16.gmra.mrb[48].mxu1 %vm4503_vm2, %v4290_v27 }
 0x520   : >> { %13546 = vmatmul.mubr.msk.bf16.gmra.mrb[44].mxu0 %vm4503_vm2, %v4868_v28 }
 0x521   : >> { %13549 = vmatprep.mubr.msk.bf16.mxu0 %vm14877_vm0, %v14876_v4 }
 0x528   : >> { %13550 = vmatmul.mubr.msk.bf16.gmra.mrb[48].mxu0 %vm4503_vm2, %v4870_v18 }
 0x529   : >> { %13553 = vmatprep.mubr.msk.bf16.mxu0 %vm14877_vm0, %v14876_v4  ;;  %vm5083_vm0 = vcmask 516096  }
 0x52a   : >> { %vm5084_vm6 = vmand %vm5083_vm0, %vm4154_vm1 }
 0x530   : >> { %13554 = vmatmul.mubr.msk.bf16.gmra.mrb[52].mxu0 %vm4503_vm2, %v4869_v12 }
 0x5bb   : >> { %v4553_v8 = vpop.f32.mrb[16].mxu0 }
 0x5bc   : >> { %v13475_v44 = vpop.f32.mrb[17].mxu0 }
 0x5bd   : >> { %v4556_v55 = vpop.f32.mrb[18].mxu0 }
 0x5be   : >> { %v13476_v53 = vpop.f32.mrb[19].mxu0 }
 0x5c3   : >> { %v4561_v61 = vpop.f32.mrb[20].mxu0 }
 0x5c4   : >> { %v13479_v30 = vpop.f32.mrb[21].mxu0 }
 0x5c5   : >> { %v4564_v51 = vpop.f32.mrb[22].mxu0 }
 0x5c6   : >> { %v13480_v23 = vpop.f32.mrb[23].mxu0 }
 0x5cb   : >> { %v4569_v26 = vpop.f32.mrb[24].mxu0 }
 0x5cc   : >> { %v13483_v57 = vpop.f32.mrb[25].mxu0 }
 0x5cd   : >> { %v4572_v16 = vpop.f32.mrb[26].mxu0 }
 0x5ce   : >> { %v13484_v13 = vpop.f32.mrb[27].mxu0  ;;  %v4672_v40 = vpop.f32.mrb[32].mxu1 }
 0x5cf   : >> { %v4673_v6 = vadd.f32 %v4672_v40, %v4553_v8  ;;  %v13507_v54 = vpop.f32.mrb[33].mxu1 }
 0x5d0   : >> { %v4675_v52 = vpop.f32.mrb[34].mxu1 }
 0x5d1   : >> { %v4676_v3 = vadd.f32 %v4675_v52, %v4556_v55  ;;  %v13508_v4 = vpop.f32.mrb[35].mxu1 }
 0x5d3   : >> { %v4577_v58 = vpop.f32.mrb[28].mxu0 }
 0x5d4   : >> { %v13487_v41 = vpop.f32.mrb[29].mxu0 }
 0x5d5   : >> { %v4580_v39 = vpop.f32.mrb[30].mxu0 }
 0x5d6   : >> { %v13488_v29 = vpop.f32.mrb[31].mxu0  ;;  %v4680_v56 = vpop.f32.mrb[36].mxu1 }
 0x5d7   : >> { %v4681_v9 = vadd.f32 %v4680_v56, %v4561_v61  ;;  %v13511_v33 = vpop.f32.mrb[37].mxu1 }
 0x5d8   : >> { %v4683_v42 = vpop.f32.mrb[38].mxu1 }
 0x5d9   : >> { %v4684_v36 = vadd.f32 %v4683_v42, %v4564_v51  ;;  %v13512_v25 = vpop.f32.mrb[39].mxu1 }
 0x5db   : >> { %v4585_v62 = vpop.f32.mrb[32].mxu0 }
 0x5dc   : >> { %v13491_v17 = vpop.f32.mrb[33].mxu0 }
 0x5dd   : >> { %v4588_v34 = vpop.f32.mrb[34].mxu0 }
 0x5de   : >> { %v13492_v7 = vpop.f32.mrb[35].mxu0  ;;  %v4688_v63 = vpop.f32.mrb[40].mxu1 }
 0x5df   : >> { %v4689_v32 = vadd.f32 %v4688_v63, %v4569_v26  ;;  %v13515_v50 = vpop.f32.mrb[41].mxu1 }
 0x5e0   : >> { %v4691_v46 = vpop.f32.mrb[42].mxu1 }
 0x5e1   : >> { %v4692_v35 = vadd.f32 %v4691_v46, %v4572_v16  ;;  %v13516_v47 = vpop.f32.mrb[43].mxu1 }
 0x5e3   : >> { %v4956_v49 = vpop.f32.mrb[36].mxu0 }
 0x5e4   : >> { %v4995_v31 = vadd.f32 %v4956_v49, %v4673_v6  ;;  %v13539_v60 = vpop.f32.mrb[37].mxu0 }
 0x5e5   : >> { %v4959_v37 = vpop.f32.mrb[38].mxu0 }
 0x5e6   : >> { %v5011_v24 = vadd.f32 %v14955_v2, %v4995_v31  ;;  %v4996_v38 = vadd.f32 %v4959_v37, %v4676_v3  ;;  %v4696_v59 = vpop.f32.mrb[44].mxu1  ;;  %v13540_v20 = vpop.f32.mrb[39].mxu0 }
 0x5e7   : >> { %v4697_v15 = vadd.f32 %v4696_v59, %v4577_v58  ;;  %v13519_v5 = vpop.f32.mrb[45].mxu1 }
 0x5e8   : >> { %v5021_v21 = vmax.f32 %v5011_v24, 0.0  ;;  %v5012_v14 = vadd.f32 %v14955_v2, %v4996_v38  ;;  %v4699_v10 = vpop.f32.mrb[46].mxu1 }
 0x5e9   : >> { %v4700_v22 = vadd.f32 %v4699_v10, %v4580_v39  ;;  %v13520_v48 = vpop.f32.mrb[47].mxu1 }
 0x5ea   : >> { %v12184_v43 = vpack.c.bf16 %v5021_v21, %v5021_v21  ;;  %v5022_v27 = vmax.f32 %v5012_v14, 0.0  ;;  %v5085_v21 = vld [vmem:[%s17016_s16 + $0x24] sm:$0x1]  ;;  %v14882_v48 = vmov (%p342_p5), 0.0  }
 0x5eb   : >> { %v4964_v19 = vpop.f32.mrb[40].mxu0  ;;  %13557 = vmatprep.subr.bf16.mxu0 (%p342_p5), %v14882_v48  ;;  %13569 = vmatprep.subr.bf16.mxu1 (%p342_p5), %v14882_v48 }
 0x5ec   : >> { %5074 = vst.msk [vmem:[%s17016_s16] sm:$0xf] %vm3219_vm8, %v12184_v43  ;;  %v12185_v28 = vpack.c.bf16 %v5022_v27, %v5022_v27  ;;  %v4997_v45 = vadd.f32 %v4964_v19, %v4681_v9  ;;  %v13543_v11 = vpop.f32.mrb[41].mxu0  ;;  %v14441_v43 = vld [vmem:[%s18368_s7] sm:$0xff] (%p342_p5)   ;;  %v14442_v27 = vld [vmem:[%s18368_s7 + $0x28] sm:$0xff] (%p342_p5)   ;;  %13565 = vmatprep.mubr.msk.bf16.mxu0 (%p342_p5), %vm14883_vm7, %v14882_v48  ;;  %13577 = vmatprep.mubr.msk.bf16.mxu1 (%p342_p5), %vm14883_vm7, %v14882_v48  ;;  %v14446_v19 = vld [vmem:[%s18368_s7 + $0x38] sm:$0xff] (%p342_p5)  }
 0x5ed   : >> { %v4967_v12 = vpop.f32.mrb[42].mxu0  ;;  %13570 = vmatpush3.bf16.msra.mxu1 (%p342_p5), %v14441_v43 }
 0x5ee   : >> { %5075 = vst.msk [vmem:[%s17016_s16 + $0x4] sm:$0xf] %vm3219_vm8, %v12185_v28  ;;  %v5013_v18 = vadd.f32 %v14955_v2, %v4997_v45  ;;  %v4998_v8 = vadd.f32 %v4967_v12, %v4684_v36  ;;  %v4704_v44 = vpop.f32.mrb[48].mxu1  ;;  %v13544_v55 = vpop.f32.mrb[43].mxu0  ;;  %13571 = vmatprep.subr.bf16.mxu1 (%p342_p5), %v14882_v48  ;;  %v14447_v28 = vld [vmem:[%s18368_s7 + $0x18] sm:$0xff] (%p342_p5)  }
 0x5ef   : >> { %v4705_v53 = vadd.f32 %v4704_v44, %v4585_v62  ;;  %v13523_v61 = vpop.f32.mrb[49].mxu1 }
 0x5f0   : >> { %v5023_v30 = vmax.f32 %v5013_v18, 0.0  ;;  %v5014_v51 = vadd.f32 %v14955_v2, %v4998_v8  ;;  %v4707_v23 = vpop.f32.mrb[50].mxu1 }
 0x5f1   : >> { %v4708_v26 = vadd.f32 %v4707_v23, %v4588_v34  ;;  %v13524_v57 = vpop.f32.mrb[51].mxu1  ;;  %13572 = vmatpush3.bf16.msra.mxu1 (%p342_p5), %v14443_v0 }
 0x5f2   : >> { %v12186_v16 = vpack.c.bf16 %v5023_v30, %v5023_v30  ;;  %v5024_v13 = vmax.f32 %v5014_v51, 0.0  ;;  %13573 = vmatprep.subr.bf16.mxu1 (%p342_p5), %v14882_v48 }
 0x5f3   : >> { %v4972_v40 = vpop.f32.mrb[44].mxu0 }
 0x5f4   : >> { %5076 = vst.msk [vmem:[%s17016_s16 + $0x8] sm:$0xf] %vm3219_vm8, %v12186_v16  ;;  %v12187_v6 = vpack.c.bf16 %v5024_v13, %v5024_v13  ;;  %v4999_v54 = vadd.f32 %v4972_v40, %v4689_v32  ;;  %v13547_v52 = vpop.f32.mrb[45].mxu0 }
 0x5f5   : >> { %v4975_v3 = vpop.f32.mrb[46].mxu0 }
 0x5f6   : >> { %5077 = vst.msk [vmem:[%s17016_s16 + $0xc] sm:$0xf] %vm3219_vm8, %v12187_v6  ;;  %v5015_v4 = vadd.f32 %v14955_v2, %v4999_v54  ;;  %v5000_v58 = vadd.f32 %v4975_v3, %v4692_v35  ;;  %v13548_v41 = vpop.f32.mrb[47].mxu0 }
 0x5f8   : >> { %v5025_v39 = vmax.f32 %v5015_v4, 0.0  ;;  %v5016_v29 = vadd.f32 %v14955_v2, %v5000_v58 }
 0x5fa   : >> { %v12188_v56 = vpack.c.bf16 %v5025_v39, %v5025_v39  ;;  %v5026_v9 = vmax.f32 %v5016_v29, 0.0 }
 0x5fb   : >> { %v4980_v33 = vpop.f32.mrb[48].mxu0 }
 0x5fc   : >> { %5078 = vst.msk [vmem:[%s17016_s16 + $0x10] sm:$0xf] %vm3219_vm8, %v12188_v56  ;;  %v12189_v42 = vpack.c.bf16 %v5026_v9, %v5026_v9  ;;  %v5001_v36 = vadd.f32 %v4980_v33, %v4697_v15  ;;  %v13551_v25 = vpop.f32.mrb[49].mxu0 }
 0x5fd   : >> { %v4983_v62 = vpop.f32.mrb[50].mxu0 }
 0x5fe   : >> { %5079 = vst.msk [vmem:[%s17016_s16 + $0x14] sm:$0xf] %vm3219_vm8, %v12189_v42  ;;  %v5017_v17 = vadd.f32 %v14955_v2, %v5001_v36  ;;  %v5002_v34 = vadd.f32 %v4983_v62, %v4700_v22  ;;  %v13552_v7 = vpop.f32.mrb[51].mxu0  ;;  %v14440_v22 = vld [vmem:[%s18368_s7 + $0x20] sm:$0xff] (%p342_p5)  }
 0x5ff   : > { %13558 = vmatpush3.bf16.msra.mxu0 (%p342_p5), %v14440_v22 }
 0x600   : >> { %v5027_v63 = vmax.f32 %v5017_v17, 0.0  ;;  %v5018_v32 = vadd.f32 %v14955_v2, %v5002_v34  ;;  %13559 = vmatprep.subr.bf16.mxu0 (%p342_p5), %v14882_v48 }
 0x602   : >> { %v12190_v50 = vpack.c.bf16 %v5027_v63, %v5027_v63  ;;  %v5028_v46 = vmax.f32 %v5018_v32, 0.0 }
 0x603   : >> { %v4988_v35 = vpop.f32.mrb[52].mxu0  ;;  %13560 = vmatpush3.bf16.msra.mxu0 (%p342_p5), %v14442_v27 }
 0x604   : >> { %5080 = vst.msk [vmem:[%s17016_s16 + $0x18] sm:$0xf] %vm3219_vm8, %v12190_v50  ;;  %v12191_v47 = vpack.c.bf16 %v5028_v46, %v5028_v46  ;;  %v5003_v49 = vadd.f32 %v4988_v35, %v4705_v53  ;;  %v13555_v31 = vpop.f32.mrb[53].mxu0  ;;  %13561 = vmatprep.subr.bf16.mxu0 (%p342_p5), %v14882_v48 }
 0x605   : >> { %v4991_v60 = vpop.f32.mrb[54].mxu0 }
 0x606   : >> { %5081 = vst.msk [vmem:[%s17016_s16 + $0x1c] sm:$0xf] %vm3219_vm8, %v12191_v47  ;;  %v5019_v37 = vadd.f32 %v14955_v2, %v5003_v49  ;;  %v5004_v24 = vadd.f32 %v4991_v60, %v4708_v26  ;;  %v13556_v38 = vpop.f32.mrb[55].mxu0  ;;  %v14456_v49 = vld [vmem:[%s18368_s7 + $0x40] sm:$0xff] (%p342_p5)  }
 0x607   : > { %13562 = vmatpush3.bf16.msra.mxu0 (%p342_p5), %v14444_v1  ;;  %v14458_v38 = vld [vmem:[%s18368_s7 + $0x48] sm:$0xff] (%p342_p5)  }
 0x608   : >> { %v5029_v59 = vmax.f32 %v5019_v37, 0.0  ;;  %v5020_v20 = vadd.f32 %v14955_v2, %v5004_v24  ;;  %v14445_v2 = vld [vmem:[%s18368_s7 + $0x10] sm:$0xff] (%p342_p5)   ;;  %13563 = vmatprep.subr.bf16.mxu0 (%p342_p5), %v14882_v48  ;;  %v14457_v37 = vld [vmem:[%s18368_s7 + $0x60] sm:$0xff] (%p342_p5)  }
 0x609   : > { %344 = sbr.rel (!%p342_p5) target bundleno = 16 (0x10), region = 154  ;;  %13574 = vmatpush3.bf16.msra.mxu1 (%p342_p5), %v14445_v2 }
 0x60a   : >> { %v12192_v15 = vpack.c.bf16 %v5029_v59, %v5029_v59  ;;  %v5030_v5 = vmax.f32 %v5020_v20, 0.0  ;;  %13575 = vmatprep.subr.bf16.mxu1 (%p342_p5), %v14882_v48  ;;  %v14459_v20 = vld [vmem:[%s18368_s7 + $0x68] sm:$0xff] (%p342_p5)  }
 0x60b   : > { %13564 = vmatpush3.bf16.msra.mxu0 (%p342_p5), %v14446_v19 }
 0x60c   : >> { %5082 = vst.msk [vmem:[%s17016_s16 + $0x20] sm:$0xf] %vm3219_vm8, %v12192_v15  ;;  %v12193_v14 = vpack.c.bf16 %v5030_v5, %v5030_v5  ;;  %vm5146_vm8 = vcmask (%p342_p5), 1041409   ;;  %13581 = vmatprep.subr.bf16.mxu0 (%p342_p5), %v14882_v48 }
 0x60d   : > { %13576 = vmatpush3.bf16.msra.mxu1 (%p342_p5), %v14447_v28 }
 0x60e   : >> { %v5086_v10 = vsel %vm5084_vm6, %v12193_v14, %v5085_v21  ;;  %13593 = vmatprep.subr.bf16.mxu1 (%p342_p5), %v14882_v48 }
 0x60f   : >> { %5087 = vst [vmem:[%s17016_s16 + $0x24] sm:$0x1] %v5086_v10  ;;  %v14460_v10 = vld [vmem:[%s18368_s7 + $0x50] sm:$0xff] (%p342_p5)  }
 0x616   : > { %v14448_v45 = vld [vmem:[#allocation4] ss:$0 sps:$4 sm:$0x11]   ;;  %v14449_v11 = vld [vmem:[#allocation4 + $0x28] ss:$0 sps:$4 sm:$0x11]  }
 0x617   : > { %v14450_v12 = vld [vmem:[#allocation4 + $0x50] ss:$0 sps:$4 sm:$0x11]   ;;  %v14451_v18 = vld [vmem:[#allocation4 + $0x78] ss:$0 sps:$4 sm:$0x11]   ;;  %v5137_v55 = vunpack.c.l.b16 %v14448_v45  ;;  %v5138_v53 = vunpack.c.l.b16 %v14449_v11 }
 0x618   : > { %v14452_v8 = vld [vmem:[#allocation4 + $0xa0] ss:$0 sps:$4 sm:$0x11]   ;;  %v14453_v44 = vld [vmem:[#allocation4 + $0xc8] ss:$0 sps:$4 sm:$0x11]   ;;  %v5139_v51 = vunpack.c.l.b16 %v14450_v12  ;;  %v5140_v23 = vunpack.c.l.b16 %v14451_v18 }
 0x619   : > { %v14454_v61 = vld [vmem:[#allocation4 + $0xf0] ss:$0 sps:$4 sm:$0x11]   ;;  %v14455_v30 = vld [vmem:[#allocation4 + $0x118] ss:$0 sps:$4 sm:$0x11]   ;;  %v5141_v26 = vunpack.c.l.b16 %v14452_v8  ;;  %v5142_v57 = vunpack.c.l.b16 %v14453_v44 }
 0x61a   : > { %v5145_v16 = vrot.slane %v5137_v55, 1  ;;  %v5235_v13 = vrot.slane %v5138_v53, 7  ;;  %v5143_v40 = vunpack.c.l.b16 %v14454_v61  ;;  %v5144_v6 = vunpack.c.l.b16 %v14455_v30  ;;  %v14464_v15 = vld [vmem:[#allocation4] ss:$0 sps:$4 sm:$0x22]   ;;  %v14461_v61 = vld [vmem:[%s18368_s7 + $0x70] sm:$0xff]  }
 0x61b   : > { %v5148_v54 = vrot.slane %v5139_v51, 7  ;;  %v5151_v52 = vrot.slane %v5140_v23, 6  ;;  %v5154_v4 = vrot.slane %v5141_v26, 5  ;;  %v5157_v58 = vrot.slane %v5142_v57, 4 }
 0x61c   : > { %v5147_v3 = vsel %vm5146_vm8, %v5138_v53, %v5145_v16  ;;  %v5236_v41 = vsel %vm5146_vm8, %v5235_v13, %v5137_v55  ;;  %v5160_v29 = vrot.slane %v5143_v40, 3  ;;  %v5163_v56 = vrot.slane %v5144_v6, 2  ;;  %v14465_v5 = vld [vmem:[#allocation4 + $0x28] ss:$0 sps:$4 sm:$0x22]  }
 0x61d   : > { %v5150_v39 = vsel %vm5149_vm10, %v5148_v54, %v5147_v3  ;;  %v5237_v9 = vrot.slane %v5139_v51, 6  ;;  %v5239_v42 = vrot.slane %v5140_v23, 5  ;;  %v5241_v36 = vrot.slane %v5141_v26, 4  ;;  %v14466_v21 = vld [vmem:[#allocation4 + $0x50] ss:$0 sps:$4 sm:$0x22]  }
 0x61e   : > { %v5153_v33 = vsel %vm5152_vm11, %v5151_v52, %v5150_v39  ;;  %v5243_v25 = vrot.slane %v5142_v57, 3  ;;  %v5245_v34 = vrot.slane %v5143_v40, 2  ;;  %v5247_v7 = vrot.slane %v5144_v6, 1  ;;  %v14467_v14 = vld [vmem:[#allocation4 + $0x78] ss:$0 sps:$4 sm:$0x22]  }
 0x61f   : > { %v5156_v62 = vsel %vm5155_vm12, %v5154_v4, %v5153_v33  ;;  %v5238_v17 = vsel %vm5149_vm10, %v5237_v9, %v5236_v41  ;;  %v14468_v22 = vld [vmem:[#allocation4 + $0xa0] ss:$0 sps:$4 sm:$0x22]   ;;  %v14469_v43 = vld [vmem:[#allocation4 + $0xc8] ss:$0 sps:$4 sm:$0x22]   ;;  %v5358_v27 = vunpack.c.l.b16 %v14464_v15  ;;  %v5359_v0 = vunpack.c.l.b16 %v14465_v5 }
 0x620   : > { %v5159_v63 = vsel %vm5158_vm13, %v5157_v58, %v5156_v62  ;;  %v5240_v32 = vsel %vm5152_vm11, %v5239_v42, %v5238_v17  ;;  %v14470_v1 = vld [vmem:[#allocation4 + $0xf0] ss:$0 sps:$4 sm:$0x22]   ;;  %v14471_v2 = vld [vmem:[#allocation4 + $0x118] ss:$0 sps:$4 sm:$0x22]   ;;  %v5360_v19 = vunpack.c.l.b16 %v14466_v21  ;;  %v5361_v28 = vunpack.c.l.b16 %v14467_v14 }
 0x621   : > { %v5162_v50 = vsel %vm5161_vm14, %v5160_v29, %v5159_v63  ;;  %v5242_v46 = vsel %vm5155_vm12, %v5241_v36, %v5240_v32  ;;  %v5362_v45 = vunpack.c.l.b16 %v14468_v22  ;;  %v5363_v11 = vunpack.c.l.b16 %v14469_v43  ;;  %v14462_v57 = vld [vmem:[%s18368_s7 + $0x58] sm:$0xff]   ;;  %v14472_v62 = vld [vmem:[%s18368_s7 + $0x80] sm:$0xff]  }
 0x622   : > { %v5165_v35 = vsel %vm5164_vm15, %v5163_v56, %v5162_v50  ;;  %v5244_v47 = vsel %vm5158_vm13, %v5243_v25, %v5242_v46  ;;  %v5366_v12 = vrot.slane %v5358_v27, 2  ;;  %v5367_v18 = vrot.slane %v5359_v0, 1  ;;  %v14463_v29 = vld [vmem:[%s18368_s7 + $0x78] sm:$0xff]   ;;  %v14473_v63 = vld [vmem:[%s18368_s7 + $0xa0] sm:$0xff]   ;;  %v14474_v50 = vld [vmem:[%s18368_s7 + $0x88] sm:$0xff]  }
 0x623   : > { %v5166_v31 = vpack.c.b16 %v5165_v35, %v5165_v35  ;;  %v5246_v60 = vsel %vm5161_vm14, %v5245_v34, %v5244_v47  ;;  %v5364_v8 = vunpack.c.l.b16 %v14470_v1  ;;  %v5365_v44 = vunpack.c.l.b16 %v14471_v2  ;;  %v14475_v35 = vld [vmem:[%s18368_s7 + $0xa8] sm:$0xff]   ;;  %v14487_v21 = vld [vmem:[#allocation4 + $0x118] ss:$0 sps:$4 sm:$0x44]   ;;  %v14477_v2 = vld [vmem:[%s18368_s7 + $0xb0] sm:$0xff]  }
 0x624   : > { %v5248_v24 = vsel %vm5164_vm15, %v5247_v7, %v5246_v60  ;;  %v5370_v55 = vrot.slane %v5361_v28, 7  ;;  %v5458_v53 = vrot.slane %v5358_v27, 3  ;;  %v5368_v30 = vsel %vm5146_vm8, %v5367_v18, %v5366_v12  ;;  %v14480_v47 = vld [vmem:[#allocation4] ss:$0 sps:$4 sm:$0x44]   ;;  %v14476_v60 = vld [vmem:[%s18368_s7 + $0x90] sm:$0xff]  }
 0x625   : > { %13566 = vmatmul.mubr.msk.bf16.vlgmr.msra.gmra.mrb[0].mxu0 %vm3380_vm9, %v5166_v31  ;;  %v5249_v59 = vpack.c.b16 %v5248_v24, %v5248_v24  ;;  %v5372_v51 = vrot.slane %v5362_v45, 6  ;;  %v5374_v23 = vrot.slane %v5363_v11, 5  ;;  %v5459_v26 = vrot.slane %v5359_v0, 2  ;;  %v14482_v31 = vld [vmem:[#allocation4 + $0x50] ss:$0 sps:$4 sm:$0x44]  }
 0x626   : > { %13582 = vmatpush3.bf16.msra.mxu0 %v14456_v49  ;;  %13589 = vmatprep.mubr.msk.bf16.mxu0 %vm14883_vm7, %v14882_v48  ;;  %v5369_v16 = vsel %vm5149_vm10, %v5360_v19, %v5368_v30  ;;  %v5376_v13 = vrot.slane %v5364_v8, 4  ;;  %v5378_v40 = vrot.slane %v5365_v44, 3  ;;  %v5461_v6 = vrot.slane %v5360_v19, 1  ;;  %v14481_v49 = vld [vmem:[#allocation4 + $0x28] ss:$0 sps:$4 sm:$0x44]  }
 0x627   : > { %13578 = vmatmul.mubr.msk.bf16.vlgmr.msra.gmra.mrb[0].mxu1 %vm3380_vm9, %v5249_v59  ;;  %13583 = vmatprep.subr.bf16.mxu0 %v14882_v48  ;;  %v5371_v54 = vsel %vm5152_vm11, %v5370_v55, %v5369_v16  ;;  %v5460_v52 = vsel %vm5146_vm8, %v5459_v26, %v5458_v53  ;;  %v5464_v3 = vrot.slane %v5362_v45, 7  ;;  %v5466_v4 = vrot.slane %v5363_v11, 6  ;;  %v14484_v24 = vld [vmem:[#allocation4 + $0xa0] ss:$0 sps:$4 sm:$0x44]   ;;  %v14478_v12 = vld [vmem:[%s18368_s7 + $0x98] sm:$0xff]  }
 0x628   : > { %13594 = vmatpush3.bf16.msra.mxu1 %v14457_v37  ;;  %13601 = vmatprep.mubr.msk.bf16.mxu1 %vm14883_vm7, %v14882_v48  ;;  %v5373_v58 = vsel %vm5155_vm12, %v5372_v51, %v5371_v54  ;;  %v5462_v41 = vsel %vm5149_vm10, %v5461_v6, %v5460_v52  ;;  %v5468_v39 = vrot.slane %v5364_v8, 5  ;;  %v5470_v33 = vrot.slane %v5365_v44, 4  ;;  %v14483_v37 = vld [vmem:[#allocation4 + $0x78] ss:$0 sps:$4 sm:$0x44]  }
 0x629   : > { %13595 = vmatprep.subr.bf16.mxu1 %v14882_v48  ;;  %v5375_v56 = vsel %vm5158_vm13, %v5374_v23, %v5373_v58  ;;  %v5463_v9 = vsel %vm5152_vm11, %v5361_v28, %v5462_v41  ;;  %v14485_v59 = vld [vmem:[#allocation4 + $0xc8] ss:$0 sps:$4 sm:$0x44]   ;;  %v5583_v15 = vunpack.c.l.b16 %v14481_v49  ;;  %v5584_v5 = vunpack.c.l.b16 %v14482_v31  ;;  %v14488_v58 = vld [vmem:[%s18368_s7 + $0xc0] sm:$0xff]  }
 0x62a   : > { %13584 = vmatpush3.bf16.msra.mxu0 %v14458_v38  ;;  %v5377_v42 = vsel %vm5161_vm14, %v5376_v13, %v5375_v56  ;;  %v5465_v36 = vsel %vm5155_vm12, %v5464_v3, %v5463_v9  ;;  %v5582_v38 = vunpack.c.l.b16 %v14480_v47  ;;  %v5585_v14 = vunpack.c.l.b16 %v14483_v37  ;;  %v14479_v13 = vld [vmem:[%s18368_s7 + $0xb8] sm:$0xff]   ;;  %v14489_v56 = vld [vmem:[%s18368_s7 + $0xe0] sm:$0xff]   ;;  %v14493_v31 = vld [vmem:[%s18368_s7 + $0xf0] sm:$0xff]  }
 0x62b   : > { %13585 = vmatprep.subr.bf16.mxu0 %v14882_v48  ;;  %v5379_v25 = vsel %vm5164_vm15, %v5378_v40, %v5377_v42  ;;  %v5467_v17 = vsel %vm5158_vm13, %v5466_v4, %v5465_v36  ;;  %v5587_v43 = vunpack.c.l.b16 %v14485_v59  ;;  %v5591_v0 = vrot.slane %v5583_v15, 3  ;;  %v14490_v36 = vld [vmem:[%s18368_s7 + $0xc8] sm:$0xff]  }
 0x62c   : > { %13596 = vmatpush3.bf16.msra.mxu1 %v14459_v20  ;;  %v5380_v34 = vpack.c.b16 %v5379_v25, %v5379_v25  ;;  %v5469_v7 = vsel %vm5161_vm14, %v5468_v39, %v5467_v17  ;;  %v14486_v20 = vld [vmem:[#allocation4 + $0xf0] ss:$0 sps:$4 sm:$0x44]   ;;  %v5590_v22 = vrot.slane %v5582_v38, 4  ;;  %v5593_v1 = vrot.slane %v5584_v5, 2  ;;  %v14491_v25 = vld [vmem:[%s18368_s7 + $0xe8] sm:$0xff]  }
 0x62d   : > { %13597 = vmatprep.subr.bf16.mxu1 %v14882_v48  ;;  %v5471_v32 = vsel %vm5164_vm15, %v5470_v33, %v5469_v7  ;;  %v5588_v27 = vunpack.c.l.b16 %v14486_v20  ;;  %v5589_v19 = vunpack.c.l.b16 %v14487_v21  ;;  %v5595_v28 = vrot.slane %v5585_v14, 1  ;;  %v14497_v17 = vld [vmem:[#allocation4 + $0x28] ss:$0 sps:$4 sm:$0x88]  }
 0x62e   : > { %13586 = vmatpush3.bf16.msra.mxu0 %v14460_v10  ;;  %v5472_v46 = vpack.c.b16 %v5471_v32, %v5471_v32  ;;  %v5586_v10 = vunpack.c.l.b16 %v14484_v24  ;;  %v5682_v45 = vrot.slane %v5582_v38, 5  ;;  %v5683_v11 = vrot.slane %v5583_v15, 4  ;;  %v14499_v7 = vld [vmem:[#allocation4 + $0x78] ss:$0 sps:$4 sm:$0x88]  }
 0x62f   : > { %13587 = vmatprep.subr.bf16.mxu0 %v14882_v48  ;;  %v5592_v18 = vsel %vm5146_vm8, %v5591_v0, %v5590_v22  ;;  %v5598_v8 = vrot.slane %v5587_v43, 7  ;;  %v5600_v44 = vrot.slane %v5588_v27, 6  ;;  %v5685_v55 = vrot.slane %v5584_v5, 3 }
 0x630   : > { %13598 = vmatpush3.bf16.msra.mxu1 %v14461_v61  ;;  %v5594_v53 = vsel %vm5149_vm10, %v5593_v1, %v5592_v18  ;;  %v5602_v61 = vrot.slane %v5589_v19, 5  ;;  %v5684_v30 = vsel %vm5146_vm8, %v5683_v11, %v5682_v45  ;;  %v5687_v51 = vrot.slane %v5585_v14, 2  ;;  %v14506_v11 = vld [vmem:[#allocation4 + $0x2c] ss:$0 sps:$4 sm:$0x22]  }
 0x631   : > { %13599 = vmatprep.subr.bf16.mxu1 %v14882_v48  ;;  %v5596_v23 = vsel %vm5152_vm11, %v5595_v28, %v5594_v53  ;;  %v5686_v26 = vsel %vm5149_vm10, %v5685_v55, %v5684_v30  ;;  %v5692_v16 = vrot.slane %v5588_v27, 7  ;;  %v5694_v54 = vrot.slane %v5589_v19, 6  ;;  %v14495_v27 = vld [vmem:[%s18368_s7 + $0xf8] sm:$0xff]   ;;  %v14505_v28 = vld [vmem:[#allocation4 + $0x4] ss:$0 sps:$4 sm:$0x22]  }
 0x632   : > { %13588 = vmatpush3.bf16.msra.mxu0 %v14462_v57  ;;  %v5689_v57 = vrot.slane %v5586_v10, 1  ;;  %v5597_v40 = vsel %vm5155_vm12, %v5586_v10, %v5596_v23  ;;  %v5688_v6 = vsel %vm5152_vm11, %v5687_v51, %v5686_v26  ;;  %v5807_v47 = vunpack.c.l.b16 %v14497_v17  ;;  %v14494_v10 = vld [vmem:[%s18368_s7 + $0xd8] sm:$0xff]   ;;  %v14509_v55 = vld [vmem:[#allocation4 + $0xa4] ss:$0 sps:$4 sm:$0x22]  }
 0x633   : > { %13605 = vmatprep.subr.bf16.mxu0 %v14882_v48  ;;  %v5599_v52 = vsel %vm5158_vm13, %v5598_v8, %v5597_v40  ;;  %v5809_v37 = vunpack.c.l.b16 %v14499_v7  ;;  %v14504_v8 = vld [vmem:[%s18368_s7 + $0x100] sm:$0xff]   ;;  %v5938_v53 = vunpack.c.l.b16 %v14505_v28  ;;  %v14510_v30 = vld [vmem:[#allocation4 + $0xcc] ss:$0 sps:$4 sm:$0x22]   ;;  %v5939_v23 = vunpack.c.l.b16 %v14506_v11  ;;  %v14516_v7 = vld [vmem:[%s18368_s7 + $0x110] sm:$0xff]  }
 0x634   : > { %13600 = vmatpush3.bf16.msra.mxu1 %v14463_v29  ;;  %v5690_v3 = vsel %vm5155_vm12, %v5689_v57, %v5688_v6  ;;  %v5601_v4 = vsel %vm5161_vm14, %v5600_v44, %v5599_v52  ;;  %v5815_v20 = vrot.slane %v5807_v47, 5  ;;  %v14508_v44 = vld [vmem:[#allocation4 + $0x7c] ss:$0 sps:$4 sm:$0x22]   ;;  %v5942_v40 = vunpack.c.l.b16 %v14509_v55 }
 0x635   : > { %13590 = vmatmul.mubr.msk.bf16.vlgmr.msra.gmra.mrb[4].mxu0 %vm3380_vm9, %v5380_v34  ;;  %13617 = vmatprep.subr.bf16.mxu1 %v14882_v48  ;;  %v5691_v41 = vsel %vm5158_vm13, %v5587_v43, %v5690_v3  ;;  %v5603_v39 = vsel %vm5164_vm15, %v5602_v61, %v5601_v4  ;;  %v14498_v34 = vld [vmem:[#allocation4 + $0x50] ss:$0 sps:$4 sm:$0x88]   ;;  %v5819_v21 = vrot.slane %v5809_v37, 3  ;;  %v5946_v6 = vrot.slane %v5938_v53, 3 }
 0x636   : > { %13606 = vmatpush3.bf16.msra.mxu0 %v14472_v62  ;;  %13613 = vmatprep.mubr.msk.bf16.mxu0 %vm14883_vm7, %v14882_v48  ;;  %v5693_v29 = vsel %vm5161_vm14, %v5692_v16, %v5691_v41  ;;  %v5604_v9 = vpack.c.b16 %v5603_v39, %v5603_v39  ;;  %v14496_v62 = vld [vmem:[#allocation4] ss:$0 sps:$4 sm:$0x88]   ;;  %v5808_v49 = vunpack.c.l.b16 %v14498_v34  ;;  %v14511_v51 = vld [vmem:[#allocation4 + $0xf4] ss:$0 sps:$4 sm:$0x22]   ;;  %v5943_v52 = vunpack.c.l.b16 %v14510_v30 }
 0x637   : > { %13602 = vmatmul.mubr.msk.bf16.vlgmr.msra.gmra.mrb[4].mxu1 %vm3380_vm9, %v5472_v46  ;;  %13607 = vmatprep.subr.bf16.mxu0 %v14882_v48  ;;  %v5695_v33 = vsel %vm5164_vm15, %v5694_v54, %v5693_v29  ;;  %v5806_v32 = vunpack.c.l.b16 %v14496_v62  ;;  %v14501_v46 = vld [vmem:[#allocation4 + $0xc8] ss:$0 sps:$4 sm:$0x88]   ;;  %v14512_v16 = vld [vmem:[#allocation4 + $0x11c] ss:$0 sps:$4 sm:$0x22]   ;;  %v5944_v3 = vunpack.c.l.b16 %v14511_v51 }
 0x638   : > { %13618 = vmatpush3.bf16.msra.mxu1 %v14473_v63  ;;  %13625 = vmatprep.mubr.msk.bf16.mxu1 %vm14883_vm7, %v14882_v48  ;;  %v5696_v42 = vpack.c.b16 %v5695_v33, %v5695_v33  ;;  %v14500_v63 = vld [vmem:[#allocation4 + $0xa0] ss:$0 sps:$4 sm:$0x88]   ;;  %v5811_v59 = vunpack.c.l.b16 %v14501_v46  ;;  %v5817_v15 = vrot.slane %v5808_v49, 4  ;;  %v5947_v4 = vrot.slane %v5939_v23, 2  ;;  %v14513_v34 = vld [vmem:[%s18368_s7 + $0x120] sm:$0xff]  }
 0x639   : > { %13619 = vmatprep.subr.bf16.mxu1 %v14882_v48  ;;  %v5810_v24 = vunpack.c.l.b16 %v14500_v63  ;;  %v5814_v38 = vrot.slane %v5806_v32, 6  ;;  %v5952_v39 = vrot.slane %v5942_v40, 7  ;;  %v14518_v46 = vld [vmem:[%s18368_s7 + $0x118] sm:$0xff]   ;;  %v14515_v49 = vld [vmem:[%s18368_s7 + $0x128] sm:$0xff]  }
 0x63a   : > { %13608 = vmatpush3.bf16.msra.mxu0 %v14474_v50  ;;  %v14492_v50 = vld [vmem:[%s18368_s7 + $0xd0] sm:$0xff]   ;;  %v5823_v43 = vrot.slane %v5811_v59, 1  ;;  %v5948_v29 = vsel %vm5146_vm8, %v5947_v4, %v5946_v6  ;;  %v14521_v47 = vld [vmem:[#allocation4 + $0x2c] ss:$0 sps:$4 sm:$0x44]   ;;  %v14528_v4 = vld [vmem:[%s18368_s7 + $0x140] sm:$0xff]  }
 0x63b   : > { %13609 = vmatprep.subr.bf16.mxu0 %v14882_v48  ;;  %v5821_v14 = vrot.slane %v5810_v24, 2  ;;  %v5816_v22 = vsel %vm5146_vm8, %v5815_v20, %v5814_v38  ;;  %v14524_v37 = vld [vmem:[#allocation4 + $0xa4] ss:$0 sps:$4 sm:$0x44]   ;;  %v6071_v59 = vunpack.c.l.b16 %v14521_v47  ;;  %v14519_v6 = vld [vmem:[%s18368_s7 + $0x138] sm:$0xff]  }
 0x63c   : > { %13620 = vmatpush3.bf16.msra.mxu1 %v14475_v35  ;;  %v14502_v35 = vld [vmem:[#allocation4 + $0xf0] ss:$0 sps:$4 sm:$0x88]   ;;  %v5818_v1 = vsel %vm5149_vm10, %v5817_v15, %v5816_v22  ;;  %v14525_v24 = vld [vmem:[#allocation4 + $0xcc] ss:$0 sps:$4 sm:$0x44]  }
 0x63d   : > { %13621 = vmatprep.subr.bf16.mxu1 %v14882_v48  ;;  %v5812_v0 = vunpack.c.l.b16 %v14502_v35  ;;  %v14520_v35 = vld [vmem:[#allocation4 + $0x4] ss:$0 sps:$4 sm:$0x44]   ;;  %v14526_v20 = vld [vmem:[#allocation4 + $0xf4] ss:$0 sps:$4 sm:$0x44]  }
 0x63e   : > { %13610 = vmatpush3.bf16.msra.mxu0 %v14476_v60  ;;  %v14503_v60 = vld [vmem:[#allocation4 + $0x118] ss:$0 sps:$4 sm:$0x88]   ;;  %v6070_v38 = vunpack.c.l.b16 %v14520_v35  ;;  %v14527_v15 = vld [vmem:[#allocation4 + $0x11c] ss:$0 sps:$4 sm:$0x44]  }
 0x63f   : > { %13611 = vmatprep.subr.bf16.mxu0 %v14882_v48  ;;  %v5813_v5 = vunpack.c.l.b16 %v14503_v60  ;;  %v14523_v60 = vld [vmem:[#allocation4 + $0x7c] ss:$0 sps:$4 sm:$0x44]   ;;  %v6171_v11 = vrot.slane %v6071_v59, 4 }
 0x640   : > { %13622 = vmatpush3.bf16.msra.mxu1 %v14477_v2  ;;  %v5820_v2 = vsel %vm5152_vm11, %v5819_v21, %v5818_v1  ;;  %v6073_v21 = vunpack.c.l.b16 %v14523_v60  ;;  %v6078_v22 = vrot.slane %v6070_v38, 4  ;;  %v14543_v47 = vld [vmem:[#allocation4 + $0x11c] ss:$0 sps:$4 sm:$0x88]  }
 0x641   : > { %13623 = vmatprep.subr.bf16.mxu1 %v14882_v48  ;;  %v5826_v19 = vrot.slane %v5813_v5, 7  ;;  %v5822_v45 = vsel %vm5155_vm12, %v5821_v14, %v5820_v2  ;;  %v6074_v14 = vunpack.c.l.b16 %v14524_v37 }
 0x642   : > { %13612 = vmatpush3.bf16.msra.mxu0 %v14478_v12  ;;  %v14507_v12 = vld [vmem:[#allocation4 + $0x54] ss:$0 sps:$4 sm:$0x22]   ;;  %v5824_v18 = vsel %vm5158_vm13, %v5823_v43, %v5822_v45  ;;  %v6079_v43 = vrot.slane %v6071_v59, 3  ;;  %v6083_v2 = vrot.slane %v6073_v21, 1  ;;  %v6170_v45 = vrot.slane %v6070_v38, 5 }
 0x643   : > { %13629 = vmatprep.subr.bf16.mxu0 %v14882_v48  ;;  %v5825_v61 = vsel %vm5161_vm14, %v5812_v0, %v5824_v18  ;;  %v5940_v26 = vunpack.c.l.b16 %v14507_v12  ;;  %v6077_v0 = vunpack.c.l.b16 %v14527_v15  ;;  %v14517_v12 = vld [vmem:[%s18368_s7 + $0x130] sm:$0xff]   ;;  %v6175_v30 = vrot.slane %v6073_v21, 2 }
 0x644   : > { %13624 = vmatpush3.bf16.msra.mxu1 %v14479_v13  ;;  %v5827_v57 = vsel %vm5164_vm15, %v5826_v19, %v5825_v61  ;;  %v5941_v13 = vunpack.c.l.b16 %v14508_v44  ;;  %v6080_v19 = vsel %vm5146_vm8, %v6079_v43, %v6078_v22  ;;  %v6172_v61 = vsel %vm5146_vm8, %v6171_v11, %v6170_v45 }
 0x645   : > { %13641 = vmatprep.subr.bf16.mxu1 %v14882_v48  ;;  %13614 = vmatmul.mubr.msk.bf16.vlgmr.msra.gmra.mrb[8].mxu0 %vm3380_vm9, %v5604_v9  ;;  %v5828_v54 = vpack.c.b16 %v5827_v57, %v5827_v57  ;;  %v5949_v41 = vrot.slane %v5940_v26, 1  ;;  %v14514_v9 = vld [vmem:[%s18368_s7 + $0x108] sm:$0xff]   ;;  %v6090_v44 = vrot.slane %v6077_v0, 5  ;;  %v6177_v51 = vrot.slane %v6074_v14, 1 }
 0x646   : > { %13630 = vmatpush3.bf16.msra.mxu0 %v14488_v58  ;;  %13637 = vmatprep.mubr.msk.bf16.mxu0 %vm14883_vm7, %v14882_v48  ;;  %v5945_v58 = vunpack.c.l.b16 %v14512_v16  ;;  %v6182_v40 = vrot.slane %v6077_v0, 6  ;;  %v14534_v0 = vld [vmem:[%s18368_s7 + $0x158] sm:$0xff]  }
 0x647   : > { %13626 = vmatmul.mubr.msk.bf16.vlgmr.msra.gmra.mrb[8].mxu1 %vm3380_vm9, %v5696_v42  ;;  %13631 = vmatprep.subr.bf16.mxu0 %v14882_v48  ;;  %v5950_v33 = vsel %vm5149_vm10, %v5949_v41, %v5948_v29  ;;  %v5956_v42 = vrot.slane %v5944_v3, 5  ;;  %v14529_v29 = vld [vmem:[%s18368_s7 + $0x160] sm:$0xff]  }
 0x648   : > { %13642 = vmatpush3.bf16.msra.mxu1 %v14489_v56  ;;  %13649 = vmatprep.mubr.msk.bf16.mxu1 %vm14883_vm7, %v14882_v48  ;;  %v5954_v56 = vrot.slane %v5943_v52, 6 }
 0x649   : > { %13643 = vmatprep.subr.bf16.mxu1 %v14882_v48 }
 0x64a   : > { %13632 = vmatpush3.bf16.msra.mxu0 %v14490_v36  ;;  %v5958_v36 = vrot.slane %v5945_v58, 4 }
 0x64b   : > { %13633 = vmatprep.subr.bf16.mxu0 %v14882_v48 }
 0x64c   : > { %13644 = vmatpush3.bf16.msra.mxu1 %v14491_v25  ;;  %v5951_v25 = vsel %vm5152_vm11, %v5941_v13, %v5950_v33  ;;  %v14530_v33 = vld [vmem:[%s18368_s7 + $0x148] sm:$0xff]  }
 0x64d   : > { %13645 = vmatprep.subr.bf16.mxu1 %v14882_v48  ;;  %v5953_v62 = vsel %vm5155_vm12, %v5952_v39, %v5951_v25  ;;  %v14537_v25 = vld [vmem:[#allocation4 + $0x2c] ss:$0 sps:$4 sm:$0x88]  }
 0x64e   : > { %13634 = vmatpush3.bf16.msra.mxu0 %v14492_v50  ;;  %v5955_v17 = vsel %vm5158_vm13, %v5954_v56, %v5953_v62  ;;  %v14538_v62 = vld [vmem:[#allocation4 + $0x54] ss:$0 sps:$4 sm:$0x88]  }
 0x64f   : > { %13635 = vmatprep.subr.bf16.mxu0 %v14882_v48  ;;  %v5957_v63 = vsel %vm5161_vm14, %v5956_v42, %v5955_v17  ;;  %v14536_v42 = vld [vmem:[#allocation4 + $0x4] ss:$0 sps:$4 sm:$0x88]   ;;  %v6296_v35 = vunpack.c.l.b16 %v14538_v62 }
 0x650   : > { %13646 = vmatpush3.bf16.msra.mxu1 %v14493_v31  ;;  %v5959_v32 = vsel %vm5164_vm15, %v5958_v36, %v5957_v63  ;;  %v14522_v31 = vld [vmem:[#allocation4 + $0x54] ss:$0 sps:$4 sm:$0x44]   ;;  %v14531_v36 = vld [vmem:[%s18368_s7 + $0x168] sm:$0xff]   ;;  %v14532_v17 = vld [vmem:[%s18368_s7 + $0x150] sm:$0xff]   ;;  %v6294_v63 = vunpack.c.l.b16 %v14536_v42 }
 0x651   : > { %13647 = vmatprep.subr.bf16.mxu1 %v14882_v48  ;;  %v5960_v50 = vpack.c.b16 %v5959_v32, %v5959_v32  ;;  %v6072_v5 = vunpack.c.l.b16 %v14522_v31  ;;  %v14541_v32 = vld [vmem:[#allocation4 + $0xcc] ss:$0 sps:$4 sm:$0x88]   ;;  %v6305_v59 = vrot.slane %v6296_v35, 4 }
 0x652   : > { %13636 = vmatpush3.bf16.msra.mxu0 %v14494_v10  ;;  %v6075_v10 = vunpack.c.l.b16 %v14525_v24  ;;  %v6302_v60 = vrot.slane %v6294_v63, 6  ;;  %v6299_v37 = vunpack.c.l.b16 %v14541_v32  ;;  %v6394_v21 = vrot.slane %v6294_v63, 7  ;;  %v14558_v42 = vld [vmem:[#allocation4 + $0xf8] ss:$0 sps:$4 sm:$0x11]  }
 0x653   : > { %13653 = vmatprep.subr.bf16.mxu0 %v14882_v48  ;;  %v6081_v1 = vrot.slane %v6072_v5, 2  ;;  %v6173_v55 = vrot.slane %v6072_v5, 3 }
 0x654   : > { %13648 = vmatpush3.bf16.msra.mxu1 %v14495_v27  ;;  %v6076_v27 = vunpack.c.l.b16 %v14526_v20  ;;  %v6086_v28 = vrot.slane %v6075_v10, 7  ;;  %v6301_v20 = vunpack.c.l.b16 %v14543_v47  ;;  %v6311_v22 = vrot.slane %v6299_v37, 1 }
 0x655   : > { %13665 = vmatprep.subr.bf16.mxu1 %v14882_v48  ;;  %13638 = vmatmul.mubr.msk.bf16.vlgmr.msra.gmra.mrb[12].mxu0 %vm3380_vm9, %v5828_v54  ;;  %v6082_v18 = vsel %vm5149_vm10, %v6081_v1, %v6080_v19  ;;  %v6174_v26 = vsel %vm5149_vm10, %v6173_v55, %v6172_v61  ;;  %v14535_v55 = vld [vmem:[%s18368_s7 + $0x178] sm:$0xff]  }
 0x656   : > { %13654 = vmatpush3.bf16.msra.mxu0 %v14504_v8  ;;  %13661 = vmatprep.mubr.msk.bf16.mxu0 %vm14883_vm7, %v14882_v48  ;;  %v6088_v8 = vrot.slane %v6076_v27, 6  ;;  %v6084_v53 = vsel %vm5152_vm11, %v6083_v2, %v6082_v18  ;;  %v6180_v57 = vrot.slane %v6076_v27, 7  ;;  %v6176_v13 = vsel %vm5152_vm11, %v6175_v30, %v6174_v26 }
 0x657   : > { %13655 = vmatprep.subr.bf16.mxu0 %v14882_v48  ;;  %13650 = vmatmul.mubr.msk.bf16.vlgmr.msra.gmra.mrb[12].mxu1 %vm3380_vm9, %v5960_v50  ;;  %v6085_v23 = vsel %vm5155_vm12, %v6074_v14, %v6084_v53  ;;  %v6178_v52 = vsel %vm5155_vm12, %v6177_v51, %v6176_v13  ;;  %v14542_v50 = vld [vmem:[#allocation4 + $0xf4] ss:$0 sps:$4 sm:$0x88]   ;;  %v14533_v14 = vld [vmem:[%s18368_s7 + $0x170] sm:$0xff]   ;;  %v6397_v27 = vrot.slane %v6296_v35, 5  ;;  %v6314_v45 = vrot.slane %v6301_v20, 7 }
 0x658   : > { %13666 = vmatpush3.bf16.msra.mxu1 %v14513_v34  ;;  %13673 = vmatprep.mubr.msk.bf16.mxu1 %vm14883_vm7, %v14882_v48  ;;  %v6087_v16 = vsel %vm5158_vm13, %v6086_v28, %v6085_v23  ;;  %v6179_v58 = vsel %vm5158_vm13, %v6075_v10, %v6178_v52  ;;  %v14539_v34 = vld [vmem:[#allocation4 + $0x7c] ss:$0 sps:$4 sm:$0x88]   ;;  %v6300_v24 = vunpack.c.l.b16 %v14542_v50  ;;  %v14544_v51 = vld [vmem:[%s18368_s7 + $0x180] sm:$0xff]  }
 0x659   : > { %13667 = vmatprep.subr.bf16.mxu1 %v14882_v48  ;;  %v6089_v54 = vsel %vm5161_vm14, %v6088_v8, %v6087_v16  ;;  %v6181_v39 = vsel %vm5161_vm14, %v6180_v57, %v6179_v58  ;;  %v14545_v16 = vld [vmem:[%s18368_s7 + $0x1a0] sm:$0xff]   ;;  %v14553_v58 = vld [vmem:[#allocation4 + $0x30] ss:$0 sps:$4 sm:$0x11]  }
 0x65a   : > { %13656 = vmatpush3.bf16.msra.mxu0 %v14514_v9  ;;  %v6091_v3 = vsel %vm5164_vm15, %v6090_v44, %v6089_v54  ;;  %v6183_v56 = vsel %vm5164_vm15, %v6182_v40, %v6181_v39  ;;  %v6405_v44 = vrot.slane %v6300_v24, 1  ;;  %v14546_v54 = vld [vmem:[%s18368_s7 + $0x188] sm:$0xff]  }
 0x65b   : > { %13657 = vmatprep.subr.bf16.mxu0 %v14882_v48  ;;  %v6092_v41 = vpack.c.b16 %v6091_v3, %v6091_v3  ;;  %v6184_v9 = vpack.c.b16 %v6183_v56, %v6183_v56  ;;  %v14547_v3 = vld [vmem:[%s18368_s7 + $0x1a8] sm:$0xff]   ;;  %v14557_v56 = vld [vmem:[#allocation4 + $0xd0] ss:$0 sps:$4 sm:$0x11]  }
 0x65c   : > { %13668 = vmatpush3.bf16.msra.mxu1 %v14515_v49  ;;  %v6297_v49 = vunpack.c.l.b16 %v14539_v34  ;;  %v14555_v39 = vld [vmem:[#allocation4 + $0x80] ss:$0 sps:$4 sm:$0x11]   ;;  %v14549_v34 = vld [vmem:[%s18368_s7 + $0x1b0] sm:$0xff]   ;;  %v6523_v63 = vunpack.c.l.b16 %v14557_v56 }
 0x65d   : > { %13669 = vmatprep.subr.bf16.mxu1 %v14882_v48  ;;  %v6521_v62 = vunpack.c.l.b16 %v14555_v39 }
 0x65e   : > { %13658 = vmatpush3.bf16.msra.mxu0 %v14516_v7  ;;  %v14540_v7 = vld [vmem:[#allocation4 + $0xa4] ss:$0 sps:$4 sm:$0x88]   ;;  %v6307_v15 = vrot.slane %v6297_v49, 3  ;;  %v6399_v2 = vrot.slane %v6297_v49, 4 }
 0x65f   : > { %13659 = vmatprep.subr.bf16.mxu0 %v14882_v48  ;;  %v6298_v31 = vunpack.c.l.b16 %v14540_v7  ;;  %v6530_v49 = vrot.slane %v6521_v62, 5 }
 0x660   : > { %13670 = vmatpush3.bf16.msra.mxu1 %v14517_v12  ;;  %v6403_v12 = vrot.slane %v6299_v37, 2  ;;  %v6534_v37 = vrot.slane %v6523_v63, 3 }
 0x661   : > { %13671 = vmatprep.subr.bf16.mxu1 %v14882_v48  ;;  %v6309_v5 = vrot.slane %v6298_v31, 2  ;;  %v6401_v19 = vrot.slane %v6298_v31, 3 }
 0x662   : > { %13660 = vmatpush3.bf16.msra.mxu0 %v14518_v46  ;;  %v6295_v46 = vunpack.c.l.b16 %v14537_v25 }
 0x663   : > { %13677 = vmatprep.subr.bf16.mxu0 %v14882_v48 }
 0x664   : > { %13672 = vmatpush3.bf16.msra.mxu1 %v14519_v6  ;;  %v6303_v38 = vrot.slane %v6295_v46, 5  ;;  %v6395_v43 = vrot.slane %v6295_v46, 6  ;;  %v6524_v46 = vunpack.c.l.b16 %v14558_v42 }
 0x665   : > { %13662 = vmatmul.mubr.msk.bf16.vlgmr.msra.gmra.mrb[16].mxu0 %vm3380_vm9, %v6092_v41  ;;  %13689 = vmatprep.subr.bf16.mxu1 %v14882_v48  ;;  %v14554_v41 = vld [vmem:[#allocation4 + $0x58] ss:$0 sps:$4 sm:$0x11]  }
 0x666   : > { %13678 = vmatpush3.bf16.msra.mxu0 %v14528_v4  ;;  %13685 = vmatprep.mubr.msk.bf16.mxu0 %vm14883_vm7, %v14882_v48  ;;  %v6304_v10 = vsel %vm5146_vm8, %v6303_v38, %v6302_v60  ;;  %v6396_v11 = vsel %vm5146_vm8, %v6395_v43, %v6394_v21  ;;  %v14552_v4 = vld [vmem:[#allocation4 + $0x8] ss:$0 sps:$4 sm:$0x11]   ;;  %v6520_v25 = vunpack.c.l.b16 %v14554_v41 }
 0x667   : > { %13679 = vmatprep.subr.bf16.mxu0 %v14882_v48  ;;  %13674 = vmatmul.mubr.msk.bf16.vlgmr.msra.gmra.mrb[16].mxu1 %vm3380_vm9, %v6184_v9  ;;  %v6306_v1 = vsel %vm5149_vm10, %v6305_v59, %v6304_v10  ;;  %v6398_v8 = vsel %vm5149_vm10, %v6397_v27, %v6396_v11  ;;  %v6518_v9 = vunpack.c.l.b16 %v14552_v4  ;;  %v6536_v59 = vrot.slane %v6524_v46, 2  ;;  %v14574_v4 = vld [vmem:[#allocation4 + $0xf8] ss:$0 sps:$4 sm:$0x88]  }
 0x668   : > { %13690 = vmatpush3.bf16.msra.mxu1 %v14529_v29  ;;  %13697 = vmatprep.mubr.msk.bf16.mxu1 %vm14883_vm7, %v14882_v48  ;;  %v6308_v28 = vsel %vm5152_vm11, %v6307_v15, %v6306_v1  ;;  %v6400_v61 = vsel %vm5152_vm11, %v6399_v2, %v6398_v8  ;;  %v14556_v29 = vld [vmem:[#allocation4 + $0xa8] ss:$0 sps:$4 sm:$0x11]   ;;  %v6528_v47 = vrot.slane %v6520_v25, 6  ;;  %v6620_v15 = vrot.slane %v6520_v25, 7  ;;  %v14551_v1 = vld [vmem:[%s18368_s7 + $0x1b8] sm:$0xff]  }
 0x669   : > { %13691 = vmatprep.subr.bf16.mxu1 %v14882_v48  ;;  %v6310_v18 = vsel %vm5155_vm12, %v6309_v5, %v6308_v28  ;;  %v6402_v23 = vsel %vm5155_vm12, %v6401_v19, %v6400_v61  ;;  %v6522_v7 = vunpack.c.l.b16 %v14556_v29  ;;  %v6618_v50 = vrot.slane %v6518_v9, 1  ;;  %v14550_v5 = vld [vmem:[%s18368_s7 + $0x198] sm:$0xff]  }
 0x66a   : > { %13680 = vmatpush3.bf16.msra.mxu0 %v14530_v33  ;;  %v6312_v53 = vsel %vm5158_vm13, %v6311_v22, %v6310_v18  ;;  %v6404_v57 = vsel %vm5158_vm13, %v6403_v12, %v6402_v23  ;;  %v6519_v33 = vunpack.c.l.b16 %v14553_v58  ;;  %v6626_v22 = vrot.slane %v6523_v63, 4  ;;  %v14560_v18 = vld [vmem:[%s18368_s7 + $0x1c0] sm:$0xff]   ;;  %v14563_v23 = vld [vmem:[%s18368_s7 + $0x1e8] sm:$0xff]  }
 0x66b   : > { %13681 = vmatprep.subr.bf16.mxu0 %v14882_v48  ;;  %v6313_v30 = vsel %vm5161_vm14, %v6300_v24, %v6312_v53  ;;  %v6406_v40 = vsel %vm5161_vm14, %v6405_v44, %v6404_v57  ;;  %v6532_v60 = vrot.slane %v6522_v7, 4  ;;  %v6624_v10 = vrot.slane %v6522_v7, 5  ;;  %v14561_v53 = vld [vmem:[%s18368_s7 + $0x1e0] sm:$0xff]   ;;  %v14569_v57 = vld [vmem:[#allocation4 + $0x30] ss:$0 sps:$4 sm:$0x88]  }
 0x66c   : > { %13692 = vmatpush3.bf16.msra.mxu1 %v14531_v36  ;;  %v6315_v26 = vsel %vm5164_vm15, %v6314_v45, %v6313_v30  ;;  %v6407_v6 = vsel %vm5164_vm15, %v6301_v20, %v6406_v40  ;;  %v14559_v36 = vld [vmem:[#allocation4 + $0x120] ss:$0 sps:$4 sm:$0x11]   ;;  %v6526_v32 = vrot.slane %v6519_v33, 7  ;;  %v6619_v24 = vsel %vm5146_vm8, %v6519_v33, %v6618_v50  ;;  %v14564_v40 = vld [vmem:[%s18368_s7 + $0x1d0] sm:$0xff]   ;;  %v14566_v50 = vld [vmem:[%s18368_s7 + $0x1d8] sm:$0xff]  }
 0x66d   : > { %13693 = vmatprep.subr.bf16.mxu1 %v14882_v48  ;;  %v6316_v13 = vpack.c.b16 %v6315_v26, %v6315_v26  ;;  %v6408_v52 = vpack.c.b16 %v6407_v6, %v6407_v6  ;;  %v6525_v35 = vunpack.c.l.b16 %v14559_v36  ;;  %v6621_v27 = vsel %vm5149_vm10, %v6620_v15, %v6619_v24  ;;  %v14562_v30 = vld [vmem:[%s18368_s7 + $0x1c8] sm:$0xff]   ;;  %v14568_v26 = vld [vmem:[#allocation4 + $0x8] ss:$0 sps:$4 sm:$0x88]  }
 0x66e   : > { %13682 = vmatpush3.bf16.msra.mxu0 %v14532_v17  ;;  %v14548_v17 = vld [vmem:[%s18368_s7 + $0x190] sm:$0xff]   ;;  %v6527_v31 = vsel %vm5146_vm8, %v6526_v32, %v6518_v9  ;;  %v14575_v58 = vld [vmem:[#allocation4 + $0x120] ss:$0 sps:$4 sm:$0x88]   ;;  %v6748_v42 = vunpack.c.l.b16 %v14574_v4 }
 0x66f   : > { %13683 = vmatprep.subr.bf16.mxu0 %v14882_v48  ;;  %v6529_v38 = vsel %vm5149_vm10, %v6528_v47, %v6527_v31  ;;  %v6538_v20 = vrot.slane %v6525_v35, 1  ;;  %v6630_v28 = vrot.slane %v6525_v35, 2  ;;  %v14572_v6 = vld [vmem:[#allocation4 + $0xa8] ss:$0 sps:$4 sm:$0x88]   ;;  %v6749_v36 = vunpack.c.l.b16 %v14575_v58 }
 0x670   : > { %13694 = vmatpush3.bf16.msra.mxu1 %v14533_v14  ;;  %v6531_v21 = vsel %vm5152_vm11, %v6530_v49, %v6529_v38  ;;  %v6622_v14 = vrot.slane %v6521_v62, 6  ;;  %v6746_v29 = vunpack.c.l.b16 %v14572_v6  ;;  %v14567_v49 = vld [vmem:[%s18368_s7 + $0x1f8] sm:$0xff]   ;;  %v6853_v15 = vrot.slane %v6748_v42, 1 }
 0x671   : > { %13695 = vmatprep.subr.bf16.mxu1 %v14882_v48  ;;  %v6533_v43 = vsel %vm5155_vm12, %v6532_v60, %v6531_v21  ;;  %v6762_v60 = vrot.slane %v6749_v36, 7 }
 0x672   : > { %13684 = vmatpush3.bf16.msra.mxu0 %v14534_v0  ;;  %v6628_v0 = vrot.slane %v6524_v46, 3  ;;  %v6535_v2 = vsel %vm5158_vm13, %v6534_v37, %v6533_v43  ;;  %v6623_v19 = vsel %vm5152_vm11, %v6622_v14, %v6621_v27  ;;  %v6757_v7 = vrot.slane %v6746_v29, 2  ;;  %v14576_v43 = vld [vmem:[%s18368_s7 + $0x200] sm:$0xff]  }
 0x673   : > { %13701 = vmatprep.subr.bf16.mxu0 %v14882_v48  ;;  %v6537_v45 = vsel %vm5161_vm14, %v6536_v59, %v6535_v2  ;;  %v6625_v11 = vsel %vm5155_vm12, %v6624_v10, %v6623_v19  ;;  %v6849_v24 = vrot.slane %v6746_v29, 3  ;;  %v14577_v2 = vld [vmem:[%s18368_s7 + $0x220] sm:$0xff]  }
 0x674   : > { %13696 = vmatpush3.bf16.msra.mxu1 %v14535_v55  ;;  %v6539_v12 = vsel %vm5164_vm15, %v6538_v20, %v6537_v45  ;;  %v6627_v8 = vsel %vm5158_vm13, %v6626_v22, %v6625_v11 }
 0x675   : > { %13686 = vmatmul.mubr.msk.bf16.vlgmr.msra.gmra.mrb[20].mxu0 %vm3380_vm9, %v6316_v13  ;;  %13713 = vmatprep.subr.bf16.mxu1 %v14882_v48  ;;  %v6540_v44 = vpack.c.b16 %v6539_v12, %v6539_v12  ;;  %v6629_v55 = vsel %vm5161_vm14, %v6628_v0, %v6627_v8  ;;  %v14571_v13 = vld [vmem:[#allocation4 + $0x80] ss:$0 sps:$4 sm:$0x88]   ;;  %v14584_v12 = vld [vmem:[#allocation4 + $0xc] ss:$0 sps:$4 sm:$0x11]  }
 0x676   : > { %13702 = vmatpush3.bf16.msra.mxu0 %v14544_v51  ;;  %13709 = vmatprep.mubr.msk.bf16.mxu0 %vm14883_vm7, %v14882_v48  ;;  %v6631_v61 = vsel %vm5164_vm15, %v6630_v28, %v6629_v55  ;;  %v6745_v39 = vunpack.c.l.b16 %v14571_v13  ;;  %v14578_v28 = vld [vmem:[%s18368_s7 + $0x208] sm:$0xff]   ;;  %v14587_v55 = vld [vmem:[#allocation4 + $0x84] ss:$0 sps:$4 sm:$0x11]  }
 0x677   : > { %13698 = vmatmul.mubr.msk.bf16.vlgmr.msra.gmra.mrb[20].mxu1 %vm3380_vm9, %v6408_v52  ;;  %13703 = vmatprep.subr.bf16.mxu0 %v14882_v48  ;;  %v6632_v51 = vpack.c.b16 %v6631_v61, %v6631_v61  ;;  %v6742_v52 = vunpack.c.l.b16 %v14568_v26  ;;  %v14579_v8 = vld [vmem:[%s18368_s7 + $0x228] sm:$0xff]   ;;  %v14589_v61 = vld [vmem:[#allocation4 + $0xd4] ss:$0 sps:$4 sm:$0x11]   ;;  %v14580_v13 = vld [vmem:[%s18368_s7 + $0x210] sm:$0xff]  }
 0x678   : > { %13714 = vmatpush3.bf16.msra.mxu1 %v14545_v16  ;;  %13721 = vmatprep.mubr.msk.bf16.mxu1 %vm14883_vm7, %v14882_v48  ;;  %v14570_v16 = vld [vmem:[#allocation4 + $0x58] ss:$0 sps:$4 sm:$0x88]   ;;  %v6755_v62 = vrot.slane %v6745_v39, 3  ;;  %v6847_v37 = vrot.slane %v6745_v39, 4  ;;  %v6971_v6 = vunpack.c.l.b16 %v14589_v61 }
 0x679   : > { %13715 = vmatprep.subr.bf16.mxu1 %v14882_v48  ;;  %v6744_v41 = vunpack.c.l.b16 %v14570_v16  ;;  %v6750_v9 = vrot.slane %v6742_v52, 6  ;;  %v6842_v32 = vrot.slane %v6742_v52, 7  ;;  %v14591_v26 = vld [vmem:[#allocation4 + $0x124] ss:$0 sps:$4 sm:$0x11]   ;;  %v6969_v16 = vunpack.c.l.b16 %v14587_v55 }
 0x67a   : > { %13704 = vmatpush3.bf16.msra.mxu0 %v14546_v54  ;;  %v14573_v54 = vld [vmem:[#allocation4 + $0xd0] ss:$0 sps:$4 sm:$0x88]  }
 0x67b   : > { %13705 = vmatprep.subr.bf16.mxu0 %v14882_v48  ;;  %v6747_v56 = vunpack.c.l.b16 %v14573_v54  ;;  %v6753_v25 = vrot.slane %v6744_v41, 4  ;;  %v6845_v47 = vrot.slane %v6744_v41, 5  ;;  %v6978_v58 = vrot.slane %v6969_v16, 5  ;;  %v14581_v41 = vld [vmem:[%s18368_s7 + $0x230] sm:$0xff]  }
 0x67c   : > { %13716 = vmatpush3.bf16.msra.mxu1 %v14547_v3  ;;  %v6743_v3 = vunpack.c.l.b16 %v14569_v57 }
 0x67d   : > { %13717 = vmatprep.subr.bf16.mxu1 %v14882_v48  ;;  %v6759_v63 = vrot.slane %v6747_v56, 1  ;;  %v6851_v20 = vrot.slane %v6747_v56, 2  ;;  %v6982_v56 = vrot.slane %v6971_v6, 3 }
 0x67e   : > { %13706 = vmatpush3.bf16.msra.mxu0 %v14548_v17  ;;  %v6751_v33 = vrot.slane %v6743_v3, 5  ;;  %v14565_v17 = vld [vmem:[%s18368_s7 + $0x1f0] sm:$0xff]   ;;  %v6843_v35 = vrot.slane %v6743_v3, 6  ;;  %v6973_v3 = vunpack.c.l.b16 %v14591_v26 }
 0x67f   : > { %13707 = vmatprep.subr.bf16.mxu0 %v14882_v48 }
 0x680   : > { %13718 = vmatpush3.bf16.msra.mxu1 %v14549_v34  ;;  %v6752_v34 = vsel %vm5146_vm8, %v6751_v33, %v6750_v9  ;;  %v6844_v59 = vsel %vm5146_vm8, %v6843_v35, %v6842_v32  ;;  %v14582_v33 = vld [vmem:[%s18368_s7 + $0x218] sm:$0xff]  }
 0x681   : > { %13719 = vmatprep.subr.bf16.mxu1 %v14882_v48  ;;  %v6754_v46 = vsel %vm5149_vm10, %v6753_v25, %v6752_v34  ;;  %v6846_v21 = vsel %vm5149_vm10, %v6845_v47, %v6844_v59  ;;  %v6986_v25 = vrot.slane %v6973_v3, 1  ;;  %v14583_v47 = vld [vmem:[%s18368_s7 + $0x238] sm:$0xff]   ;;  %v14592_v59 = vld [vmem:[%s18368_s7 + $0x240] sm:$0xff]  }
 0x682   : > { %13708 = vmatpush3.bf16.msra.mxu0 %v14550_v5  ;;  %v6756_v31 = vsel %vm5152_vm11, %v6755_v62, %v6754_v46  ;;  %v6848_v10 = vsel %vm5152_vm11, %v6847_v37, %v6846_v21  ;;  %v7074_v46 = vrot.slane %v6971_v6, 4  ;;  %v14593_v21 = vld [vmem:[%s18368_s7 + $0x260] sm:$0xff]  }
 0x683   : > { %13725 = vmatprep.subr.bf16.mxu0 %v14882_v48  ;;  %v6758_v38 = vsel %vm5155_vm12, %v6757_v7, %v6756_v31  ;;  %v6850_v27 = vsel %vm5155_vm12, %v6849_v24, %v6848_v10  ;;  %v7070_v7 = vrot.slane %v6969_v16, 6  ;;  %v14594_v10 = vld [vmem:[%s18368_s7 + $0x248] sm:$0xff]  }
 0x684   : > { %13720 = vmatpush3.bf16.msra.mxu1 %v14551_v1  ;;  %v6760_v5 = vsel %vm5158_vm13, %v6759_v63, %v6758_v38  ;;  %v6852_v1 = vsel %vm5158_vm13, %v6851_v20, %v6850_v27  ;;  %v14601_v27 = vld [vmem:[#allocation4 + $0x34] ss:$0 sps:$4 sm:$0x22]  }
 0x685   : > { %13710 = vmatmul.mubr.msk.bf16.vlgmr.msra.gmra.mrb[24].mxu0 %vm3380_vm9, %v6540_v44  ;;  %13737 = vmatprep.subr.bf16.mxu1 %v14882_v48  ;;  %v6761_v14 = vsel %vm5161_vm14, %v6748_v42, %v6760_v5  ;;  %v6854_v19 = vsel %vm5161_vm14, %v6853_v15, %v6852_v1  ;;  %v14586_v44 = vld [vmem:[#allocation4 + $0x5c] ss:$0 sps:$4 sm:$0x11]  }
 0x686   : > { %13726 = vmatpush3.bf16.msra.mxu0 %v14560_v18  ;;  %13733 = vmatprep.mubr.msk.bf16.mxu0 %vm14883_vm7, %v14882_v48  ;;  %v6763_v22 = vsel %vm5164_vm15, %v6762_v60, %v6761_v14  ;;  %v6855_v45 = vsel %vm5164_vm15, %v6749_v36, %v6854_v19  ;;  %v14585_v18 = vld [vmem:[#allocation4 + $0x34] ss:$0 sps:$4 sm:$0x11]   ;;  %v6968_v57 = vunpack.c.l.b16 %v14586_v44  ;;  %v7078_v60 = vrot.slane %v6973_v3, 2  ;;  %v14596_v19 = vld [vmem:[%s18368_s7 + $0x250] sm:$0xff]   ;;  %v14598_v3 = vld [vmem:[%s18368_s7 + $0x258] sm:$0xff]  }
 0x687   : > { %13722 = vmatmul.mubr.msk.bf16.vlgmr.msra.gmra.mrb[24].mxu1 %vm3380_vm9, %v6632_v51  ;;  %13727 = vmatprep.subr.bf16.mxu0 %v14882_v48  ;;  %v6764_v0 = vpack.c.b16 %v6763_v22, %v6763_v22  ;;  %v6856_v11 = vpack.c.b16 %v6855_v45, %v6855_v45  ;;  %v6967_v51 = vunpack.c.l.b16 %v14585_v18  ;;  %v14602_v1 = vld [vmem:[#allocation4 + $0x5c] ss:$0 sps:$4 sm:$0x22]   ;;  %v14605_v45 = vld [vmem:[#allocation4 + $0xd4] ss:$0 sps:$4 sm:$0x22]  }
 0x688   : > { %13738 = vmatpush3.bf16.msra.mxu1 %v14561_v53  ;;  %13745 = vmatprep.mubr.msk.bf16.mxu1 %vm14883_vm7, %v14882_v48  ;;  %v14588_v53 = vld [vmem:[#allocation4 + $0xac] ss:$0 sps:$4 sm:$0x11]   ;;  %v6976_v4 = vrot.slane %v6968_v57, 6  ;;  %v7068_v62 = vrot.slane %v6968_v57, 7  ;;  %v7192_v44 = vunpack.c.l.b16 %v14602_v1  ;;  %v7195_v61 = vunpack.c.l.b16 %v14605_v45 }
 0x689   : > { %13739 = vmatprep.subr.bf16.mxu1 %v14882_v48  ;;  %v6974_v54 = vrot.slane %v6967_v51, 7  ;;  %v14606_v18 = vld [vmem:[#allocation4 + $0xfc] ss:$0 sps:$4 sm:$0x22]  }
 0x68a   : > { %13728 = vmatpush3.bf16.msra.mxu0 %v14562_v30  ;;  %v6966_v30 = vunpack.c.l.b16 %v14584_v12  ;;  %v7191_v12 = vunpack.c.l.b16 %v14601_v27  ;;  %v14623_v1 = vld [vmem:[#allocation4 + $0x124] ss:$0 sps:$4 sm:$0x44]  }
 0x68b   : > { %13729 = vmatprep.subr.bf16.mxu0 %v14882_v48 }
 0x68c   : > { %13740 = vmatpush3.bf16.msra.mxu1 %v14563_v23  ;;  %v14590_v23 = vld [vmem:[#allocation4 + $0xfc] ss:$0 sps:$4 sm:$0x11]   ;;  %v6975_v39 = vsel %vm5146_vm8, %v6974_v54, %v6966_v30  ;;  %v7066_v9 = vrot.slane %v6966_v30, 1  ;;  %v7206_v54 = vrot.slane %v7195_v61, 5 }
 0x68d   : > { %13741 = vmatprep.subr.bf16.mxu1 %v14882_v48  ;;  %v6972_v52 = vunpack.c.l.b16 %v14590_v23  ;;  %v6977_v42 = vsel %vm5149_vm10, %v6976_v4, %v6975_v39  ;;  %v7196_v23 = vunpack.c.l.b16 %v14606_v18  ;;  %v7293_v39 = vrot.slane %v7192_v44, 1 }
 0x68e   : > { %13730 = vmatpush3.bf16.msra.mxu0 %v14564_v40  ;;  %v6970_v40 = vunpack.c.l.b16 %v14588_v53  ;;  %v7067_v34 = vsel %vm5146_vm8, %v6967_v51, %v7066_v9  ;;  %v7199_v51 = vrot.slane %v7191_v12, 1 }
 0x68f   : > { %13731 = vmatprep.subr.bf16.mxu0 %v14882_v48  ;;  %v6984_v36 = vrot.slane %v6972_v52, 2  ;;  %v7076_v35 = vrot.slane %v6972_v52, 3  ;;  %v7291_v52 = vrot.slane %v7191_v12, 2 }
 0x690   : > { %13742 = vmatpush3.bf16.msra.mxu1 %v14565_v17  ;;  %v6980_v29 = vrot.slane %v6970_v40, 4  ;;  %v6979_v17 = vsel %vm5152_vm11, %v6978_v58, %v6977_v42  ;;  %v7072_v63 = vrot.slane %v6970_v40, 5  ;;  %v7208_v58 = vrot.slane %v7196_v23, 4 }
 0x691   : > { %13743 = vmatprep.subr.bf16.mxu1 %v14882_v48 }
 0x692   : > { %13732 = vmatpush3.bf16.msra.mxu0 %v14566_v50  ;;  %v6981_v32 = vsel %vm5155_vm12, %v6980_v29, %v6979_v17  ;;  %v7069_v50 = vsel %vm5149_vm10, %v7068_v62, %v7067_v34 }
 0x693   : > { %13749 = vmatprep.subr.bf16.mxu0 %v14882_v48  ;;  %v7071_v31 = vsel %vm5152_vm11, %v7070_v7, %v7069_v50  ;;  %v14599_v7 = vld [vmem:[%s18368_s7 + $0x278] sm:$0xff]  }
 0x694   : > { %13744 = vmatpush3.bf16.msra.mxu1 %v14567_v49  ;;  %v6983_v49 = vsel %vm5158_vm13, %v6982_v56, %v6981_v32  ;;  %v7073_v24 = vsel %vm5155_vm12, %v7072_v63, %v7071_v31  ;;  %v14609_v31 = vld [vmem:[%s18368_s7 + $0x2a0] sm:$0xff]  }
 0x695   : > { %13734 = vmatmul.mubr.msk.bf16.vlgmr.msra.gmra.mrb[28].mxu0 %vm3380_vm9, %v6764_v0  ;;  %13761 = vmatprep.subr.bf16.mxu1 %v14882_v48  ;;  %v6985_v37 = vsel %vm5161_vm14, %v6984_v36, %v6983_v49  ;;  %v7075_v20 = vsel %vm5158_vm13, %v7074_v46, %v7073_v24  ;;  %v14595_v0 = vld [vmem:[%s18368_s7 + $0x268] sm:$0xff]   ;;  %v14608_v46 = vld [vmem:[%s18368_s7 + $0x280] sm:$0xff]  }
 0x696   : > { %13750 = vmatpush3.bf16.msra.mxu0 %v14576_v43  ;;  %13757 = vmatprep.mubr.msk.bf16.mxu0 %vm14883_vm7, %v14882_v48  ;;  %v6987_v38 = vsel %vm5164_vm15, %v6986_v25, %v6985_v37  ;;  %v7077_v5 = vsel %vm5161_vm14, %v7076_v35, %v7075_v20  ;;  %v14600_v43 = vld [vmem:[#allocation4 + $0xc] ss:$0 sps:$4 sm:$0x22]   ;;  %v7300_v25 = vrot.slane %v7196_v23, 5  ;;  %v14610_v24 = vld [vmem:[%s18368_s7 + $0x288] sm:$0xff]  }
 0x697   : > { %13751 = vmatprep.subr.bf16.mxu0 %v14882_v48  ;;  %13746 = vmatmul.mubr.msk.bf16.vlgmr.msra.gmra.mrb[28].mxu1 %vm3380_vm9, %v6856_v11  ;;  %v6988_v15 = vpack.c.b16 %v6987_v38, %v6987_v38  ;;  %v7079_v14 = vsel %vm5164_vm15, %v7078_v60, %v7077_v5  ;;  %v7190_v11 = vunpack.c.l.b16 %v14600_v43  ;;  %v14616_v38 = vld [vmem:[#allocation4 + $0xc] ss:$0 sps:$4 sm:$0x44]   ;;  %v14617_v20 = vld [vmem:[#allocation4 + $0x34] ss:$0 sps:$4 sm:$0x44]  }
 0x698   : > { %13762 = vmatpush3.bf16.msra.mxu1 %v14577_v2  ;;  %13769 = vmatprep.mubr.msk.bf16.mxu1 %vm14883_vm7, %v14882_v48  ;;  %v7080_v22 = vpack.c.b16 %v7079_v14, %v7079_v14  ;;  %v14603_v2 = vld [vmem:[#allocation4 + $0x84] ss:$0 sps:$4 sm:$0x22]   ;;  %v14620_v14 = vld [vmem:[#allocation4 + $0xac] ss:$0 sps:$4 sm:$0x44]   ;;  %v7415_v27 = vunpack.c.l.b16 %v14617_v20 }
 0x699   : > { %13763 = vmatprep.subr.bf16.mxu1 %v14882_v48  ;;  %v7193_v55 = vunpack.c.l.b16 %v14603_v2  ;;  %v7198_v30 = vrot.slane %v7190_v11, 2  ;;  %v7290_v16 = vrot.slane %v7190_v11, 3  ;;  %v14612_v5 = vld [vmem:[%s18368_s7 + $0x290] sm:$0xff]   ;;  %v14622_v43 = vld [vmem:[#allocation4 + $0xfc] ss:$0 sps:$4 sm:$0x44]   ;;  %v7418_v18 = vunpack.c.l.b16 %v14620_v14 }
 0x69a   : > { %13752 = vmatpush3.bf16.msra.mxu0 %v14578_v28  ;;  %v14604_v28 = vld [vmem:[#allocation4 + $0xac] ss:$0 sps:$4 sm:$0x22]   ;;  %v7420_v45 = vunpack.c.l.b16 %v14622_v43  ;;  %v7423_v11 = vrot.slane %v7415_v27, 3 }
 0x69b   : > { %13753 = vmatprep.subr.bf16.mxu0 %v14882_v48  ;;  %v7194_v53 = vunpack.c.l.b16 %v14604_v28  ;;  %v7202_v57 = vrot.slane %v7193_v55, 7  ;;  %v7200_v40 = vsel %vm5146_vm8, %v7199_v51, %v7198_v30  ;;  %v7292_v56 = vsel %vm5146_vm8, %v7291_v52, %v7290_v16  ;;  %v14614_v30 = vld [vmem:[%s18368_s7 + $0x298] sm:$0xff]  }
 0x69c   : > { %13764 = vmatpush3.bf16.msra.mxu1 %v14579_v8  ;;  %v14607_v8 = vld [vmem:[#allocation4 + $0x124] ss:$0 sps:$4 sm:$0x22]   ;;  %v7201_v4 = vsel %vm5149_vm10, %v7192_v44, %v7200_v40  ;;  %v7294_v36 = vsel %vm5149_vm10, %v7293_v39, %v7292_v56  ;;  %v7432_v23 = vrot.slane %v7420_v45, 6  ;;  %v14638_v43 = vld [vmem:[%s18368_s7 + $0x2d8] sm:$0xff]  }
 0x69d   : > { %13765 = vmatprep.subr.bf16.mxu1 %v14882_v48  ;;  %v7197_v26 = vunpack.c.l.b16 %v14607_v8  ;;  %v7204_v6 = vrot.slane %v7194_v53, 6  ;;  %v7203_v29 = vsel %vm5152_vm11, %v7202_v57, %v7201_v4  ;;  %v7296_v9 = vrot.slane %v7194_v53, 7  ;;  %v14628_v4 = vld [vmem:[#allocation4 + $0x88] ss:$0 sps:$4 sm:$0x11]  }
 0x69e   : > { %13754 = vmatpush3.bf16.msra.mxu0 %v14580_v13  ;;  %v14597_v13 = vld [vmem:[%s18368_s7 + $0x270] sm:$0xff]   ;;  %v7295_v17 = vsel %vm5152_vm11, %v7193_v55, %v7294_v36  ;;  %v7421_v8 = vunpack.c.l.b16 %v14623_v1  ;;  %v14631_v56 = vld [vmem:[#allocation4 + $0x100] ss:$0 sps:$4 sm:$0x11]  }
 0x69f   : > { %13755 = vmatprep.subr.bf16.mxu0 %v14882_v48  ;;  %v7205_v42 = vsel %vm5155_vm12, %v7204_v6, %v7203_v29  ;;  %v7302_v34 = vrot.slane %v7197_v26, 4  ;;  %v7297_v32 = vsel %vm5155_vm12, %v7296_v9, %v7295_v17  ;;  %v14613_v55 = vld [vmem:[%s18368_s7 + $0x2b0] sm:$0xff]   ;;  %v14626_v6 = vld [vmem:[#allocation4 + $0x38] ss:$0 sps:$4 sm:$0x11]  }
 0x6a0   : > { %13766 = vmatpush3.bf16.msra.mxu1 %v14581_v41  ;;  %v7210_v41 = vrot.slane %v7197_v26, 3  ;;  %v7207_v62 = vsel %vm5158_vm13, %v7206_v54, %v7205_v42  ;;  %v14615_v26 = vld [vmem:[%s18368_s7 + $0x2b8] sm:$0xff]   ;;  %v7434_v16 = vrot.slane %v7421_v8, 5  ;;  %v14627_v54 = vld [vmem:[#allocation4 + $0x60] ss:$0 sps:$4 sm:$0x11]   ;;  %v7547_v9 = vunpack.c.l.b16 %v14626_v6 }
 0x6a1   : > { %13767 = vmatprep.subr.bf16.mxu1 %v14882_v48  ;;  %v7209_v63 = vsel %vm5161_vm14, %v7208_v58, %v7207_v62  ;;  %v14629_v58 = vld [vmem:[#allocation4 + $0xb0] ss:$0 sps:$4 sm:$0x11]   ;;  %v14630_v29 = vld [vmem:[#allocation4 + $0xd8] ss:$0 sps:$4 sm:$0x11]  }
 0x6a2   : > { %13756 = vmatpush3.bf16.msra.mxu0 %v14582_v33  ;;  %v7298_v33 = vrot.slane %v7195_v61, 6  ;;  %v7211_v50 = vsel %vm5164_vm15, %v7210_v41, %v7209_v63  ;;  %v14632_v36 = vld [vmem:[#allocation4 + $0x128] ss:$0 sps:$4 sm:$0x11]   ;;  %v7550_v62 = vunpack.c.l.b16 %v14629_v58  ;;  %v7552_v63 = vunpack.c.l.b16 %v14631_v56 }
 0x6a3   : > { %13773 = vmatprep.subr.bf16.mxu0 %v14882_v48  ;;  %v14640_v27 = vld [vmem:[#allocation4 + $0x10] ss:$0 sps:$4 sm:$0x22]   ;;  %v14642_v1 = vld [vmem:[#allocation4 + $0x60] ss:$0 sps:$4 sm:$0x22]  }
 0x6a4   : > { %13768 = vmatpush3.bf16.msra.mxu1 %v14583_v47  ;;  %v7299_v35 = vsel %vm5158_vm13, %v7298_v33, %v7297_v32  ;;  %v7212_v47 = vpack.c.b16 %v7211_v50, %v7211_v50  ;;  %v7548_v33 = vunpack.c.l.b16 %v14627_v54  ;;  %v7553_v50 = vunpack.c.l.b16 %v14632_v36  ;;  %v14639_v36 = vld [vmem:[%s18368_s7 + $0x2f8] sm:$0xff]  }
 0x6a5   : > { %13758 = vmatmul.mubr.msk.bf16.vlgmr.msra.gmra.mrb[32].mxu0 %vm3380_vm9, %v6988_v15  ;;  %13785 = vmatprep.subr.bf16.mxu1 %v14882_v48  ;;  %v7301_v49 = vsel %vm5161_vm14, %v7300_v25, %v7299_v35  ;;  %v14618_v15 = vld [vmem:[#allocation4 + $0x5c] ss:$0 sps:$4 sm:$0x44]   ;;  %v7549_v25 = vunpack.c.l.b16 %v14628_v4  ;;  %v7678_v45 = vunpack.c.l.b16 %v14640_v27  ;;  %v7680_v8 = vunpack.c.l.b16 %v14642_v1  ;;  %v14663_v27 = vld [vmem:[#allocation4 + $0x128] ss:$0 sps:$4 sm:$0x44]  }
 0x6a6   : > { %13774 = vmatpush3.bf16.msra.mxu0 %v14592_v59  ;;  %13781 = vmatprep.mubr.msk.bf16.mxu0 %vm14883_vm7, %v14882_v48  ;;  %v7303_v60 = vsel %vm5164_vm15, %v7302_v34, %v7301_v49  ;;  %v14611_v59 = vld [vmem:[%s18368_s7 + $0x2a8] sm:$0xff]   ;;  %v7556_v32 = vrot.slane %v7548_v33, 7 }
 0x6a7   : > { %13775 = vmatprep.subr.bf16.mxu0 %v14882_v48  ;;  %13770 = vmatmul.mubr.msk.bf16.vlgmr.msra.gmra.mrb[32].mxu1 %vm3380_vm9, %v7080_v22  ;;  %v7304_v37 = vpack.c.b16 %v7303_v60, %v7303_v60  ;;  %v14621_v22 = vld [vmem:[#allocation4 + $0xd4] ss:$0 sps:$4 sm:$0x44]   ;;  %v7558_v35 = vrot.slane %v7549_v25, 6  ;;  %v7564_v60 = vrot.slane %v7552_v63, 3  ;;  %v7781_v58 = vrot.slane %v7680_v8, 1 }
 0x6a8   : > { %13786 = vmatpush3.bf16.msra.mxu1 %v14593_v21  ;;  %13793 = vmatprep.mubr.msk.bf16.mxu1 %vm14883_vm7, %v14882_v48  ;;  %v14619_v21 = vld [vmem:[#allocation4 + $0x84] ss:$0 sps:$4 sm:$0x44]   ;;  %v7419_v28 = vunpack.c.l.b16 %v14621_v22  ;;  %v14635_v22 = vld [vmem:[%s18368_s7 + $0x2e8] sm:$0xff]  }
 0x6a9   : > { %13787 = vmatprep.subr.bf16.mxu1 %v14882_v48  ;;  %v7417_v2 = vunpack.c.l.b16 %v14619_v21  ;;  %v14636_v21 = vld [vmem:[%s18368_s7 + $0x2d0] sm:$0xff]  }
 0x6aa   : > { %13776 = vmatpush3.bf16.msra.mxu0 %v14594_v10  ;;  %v7414_v10 = vunpack.c.l.b16 %v14616_v38  ;;  %v7430_v61 = vrot.slane %v7419_v28, 7  ;;  %v14634_v38 = vld [vmem:[%s18368_s7 + $0x2c8] sm:$0xff]   ;;  %v14645_v28 = vld [vmem:[#allocation4 + $0xd8] ss:$0 sps:$4 sm:$0x22]  }
 0x6ab   : > { %13777 = vmatprep.subr.bf16.mxu0 %v14882_v48  ;;  %v7427_v44 = vrot.slane %v7417_v2, 1  ;;  %v14643_v2 = vld [vmem:[#allocation4 + $0x88] ss:$0 sps:$4 sm:$0x22]  }
 0x6ac   : > { %13788 = vmatpush3.bf16.msra.mxu1 %v14595_v0  ;;  %v7416_v0 = vunpack.c.l.b16 %v14618_v15  ;;  %v14633_v15 = vld [vmem:[%s18368_s7 + $0x2e0] sm:$0xff]  }
 0x6ad   : > { %13789 = vmatprep.subr.bf16.mxu1 %v14882_v48 }
 0x6ae   : > { %13778 = vmatpush3.bf16.msra.mxu0 %v14596_v19  ;;  %v7422_v19 = vrot.slane %v7414_v10, 4  ;;  %v7425_v12 = vrot.slane %v7416_v0, 2  ;;  %v14641_v0 = vld [vmem:[#allocation4 + $0x38] ss:$0 sps:$4 sm:$0x22]  }
 0x6af   : > { %13779 = vmatprep.subr.bf16.mxu0 %v14882_v48 }
 0x6b0   : > { %13790 = vmatpush3.bf16.msra.mxu1 %v14597_v13  ;;  %v7424_v53 = vsel %vm5146_vm8, %v7423_v11, %v7422_v19  ;;  %v14625_v13 = vld [vmem:[#allocation4 + $0x10] ss:$0 sps:$4 sm:$0x11]   ;;  %v7679_v11 = vunpack.c.l.b16 %v14641_v0 }
 0x6b1   : > { %13791 = vmatprep.subr.bf16.mxu1 %v14882_v48  ;;  %v7426_v51 = vsel %vm5149_vm10, %v7425_v12, %v7424_v53  ;;  %v7546_v41 = vunpack.c.l.b16 %v14625_v13  ;;  %v14644_v19 = vld [vmem:[#allocation4 + $0xb0] ss:$0 sps:$4 sm:$0x22]   ;;  %v14646_v12 = vld [vmem:[#allocation4 + $0x100] ss:$0 sps:$4 sm:$0x22]   ;;  %v7683_v53 = vunpack.c.l.b16 %v14645_v28 }
 0x6b2   : > { %13780 = vmatpush3.bf16.msra.mxu0 %v14598_v3  ;;  %v7428_v57 = vsel %vm5152_vm11, %v7427_v44, %v7426_v51  ;;  %v14624_v3 = vld [vmem:[%s18368_s7 + $0x2c0] sm:$0xff]   ;;  %v7681_v44 = vunpack.c.l.b16 %v14643_v2  ;;  %v7684_v51 = vunpack.c.l.b16 %v14646_v12  ;;  %v7779_v54 = vrot.slane %v7679_v11, 2  ;;  %v14653_v12 = vld [vmem:[%s18368_s7 + $0x330] sm:$0xff]  }
 0x6b3   : > { %13797 = vmatprep.subr.bf16.mxu0 %v14882_v48  ;;  %v7429_v40 = vsel %vm5155_vm12, %v7418_v18, %v7428_v57  ;;  %v7554_v17 = vrot.slane %v7546_v41, 1  ;;  %v14647_v18 = vld [vmem:[#allocation4 + $0x128] ss:$0 sps:$4 sm:$0x22]   ;;  %v7778_v57 = vrot.slane %v7678_v45, 3  ;;  %v7694_v6 = vrot.slane %v7683_v53, 5 }
 0x6b4   : > { %13792 = vmatpush3.bf16.msra.mxu1 %v14599_v7  ;;  %v7431_v52 = vsel %vm5158_vm13, %v7430_v61, %v7429_v40  ;;  %v7551_v7 = vunpack.c.l.b16 %v14630_v29  ;;  %v7686_v61 = vrot.slane %v7678_v45, 2  ;;  %v7786_v56 = vrot.slane %v7683_v53, 6  ;;  %v14654_v53 = vld [vmem:[%s18368_s7 + $0x318] sm:$0xff]  }
 0x6b5   : > { %13782 = vmatmul.mubr.msk.bf16.vlgmr.msra.gmra.mrb[36].mxu0 %vm3380_vm9, %v7212_v47  ;;  %13809 = vmatprep.subr.bf16.mxu1 %v14882_v48  ;;  %v7433_v39 = vsel %vm5161_vm14, %v7432_v23, %v7431_v52  ;;  %v7560_v47 = vrot.slane %v7550_v62, 5  ;;  %v7685_v23 = vunpack.c.l.b16 %v14647_v18  ;;  %v7909_v18 = vunpack.c.l.b16 %v14663_v27 }
 0x6b6   : > { %13798 = vmatpush3.bf16.msra.mxu0 %v14608_v46  ;;  %13805 = vmatprep.mubr.msk.bf16.mxu0 %vm14883_vm7, %v14882_v48  ;;  %v7435_v42 = vsel %vm5164_vm15, %v7434_v16, %v7433_v39  ;;  %v7555_v46 = vsel %vm5146_vm8, %v7547_v9, %v7554_v17  ;;  %v14637_v16 = vld [vmem:[%s18368_s7 + $0x2f0] sm:$0xff]   ;;  %v7780_v39 = vsel %vm5146_vm8, %v7779_v54, %v7778_v57 }
 0x6b7   : > { %13799 = vmatprep.subr.bf16.mxu0 %v14882_v48  ;;  %13794 = vmatmul.mubr.msk.bf16.vlgmr.msra.gmra.mrb[36].mxu1 %vm3380_vm9, %v7304_v37  ;;  %v7436_v34 = vpack.c.b16 %v7435_v42, %v7435_v42  ;;  %v7557_v49 = vsel %vm5149_vm10, %v7556_v32, %v7555_v46  ;;  %v7698_v4 = vrot.slane %v7685_v23, 3  ;;  %v7782_v33 = vsel %vm5149_vm10, %v7781_v58, %v7780_v39  ;;  %v14648_v32 = vld [vmem:[%s18368_s7 + $0x300] sm:$0xff]  }
 0x6b8   : > { %13810 = vmatpush3.bf16.msra.mxu1 %v14609_v31  ;;  %13817 = vmatprep.mubr.msk.bf16.mxu1 %vm14883_vm7, %v14882_v48  ;;  %v7562_v31 = vrot.slane %v7551_v7, 4  ;;  %v7559_v37 = vsel %vm5152_vm11, %v7558_v35, %v7557_v49  ;;  %v7788_v42 = vrot.slane %v7684_v51, 5  ;;  %v7783_v62 = vsel %vm5152_vm11, %v7681_v44, %v7782_v33 }
 0x6b9   : > { %13811 = vmatprep.subr.bf16.mxu1 %v14882_v48  ;;  %v7790_v17 = vrot.slane %v7685_v23, 4  ;;  %v7922_v57 = vrot.slane %v7909_v18, 5 }
 0x6ba   : > { %13800 = vmatpush3.bf16.msra.mxu0 %v14610_v24  ;;  %v7566_v24 = vrot.slane %v7553_v50, 2 }
 0x6bb   : > { %13801 = vmatprep.subr.bf16.mxu0 %v14882_v48 }
 0x6bc   : > { %13812 = vmatpush3.bf16.msra.mxu1 %v14611_v59  ;;  %v7561_v59 = vsel %vm5155_vm12, %v7560_v47, %v7559_v37  ;;  %v14649_v47 = vld [vmem:[%s18368_s7 + $0x320] sm:$0xff]   ;;  %v14651_v37 = vld [vmem:[%s18368_s7 + $0x328] sm:$0xff]  }
 0x6bd   : > { %13813 = vmatprep.subr.bf16.mxu1 %v14882_v48  ;;  %v7563_v20 = vsel %vm5158_vm13, %v7562_v31, %v7561_v59  ;;  %v14650_v31 = vld [vmem:[%s18368_s7 + $0x308] sm:$0xff]  }
 0x6be   : > { %13802 = vmatpush3.bf16.msra.mxu0 %v14612_v5  ;;  %v7565_v5 = vsel %vm5161_vm14, %v7564_v60, %v7563_v20  ;;  %v14658_v59 = vld [vmem:[#allocation4 + $0x60] ss:$0 sps:$4 sm:$0x44]   ;;  %v14652_v20 = vld [vmem:[%s18368_s7 + $0x310] sm:$0xff]  }
 0x6bf   : > { %13803 = vmatprep.subr.bf16.mxu0 %v14882_v48  ;;  %v7567_v14 = vsel %vm5164_vm15, %v7566_v24, %v7565_v5  ;;  %v14656_v24 = vld [vmem:[#allocation4 + $0x10] ss:$0 sps:$4 sm:$0x44]  }
 0x6c0   : > { %13814 = vmatpush3.bf16.msra.mxu1 %v14613_v55  ;;  %v7568_v10 = vpack.c.b16 %v7567_v14, %v7567_v14  ;;  %v7682_v55 = vunpack.c.l.b16 %v14644_v19  ;;  %v14660_v5 = vld [vmem:[#allocation4 + $0xb0] ss:$0 sps:$4 sm:$0x44]   ;;  %v14661_v14 = vld [vmem:[#allocation4 + $0xd8] ss:$0 sps:$4 sm:$0x44]  }
 0x6c1   : > { %13815 = vmatprep.subr.bf16.mxu1 %v14882_v48  ;;  %v7906_v1 = vunpack.c.l.b16 %v14660_v5  ;;  %v7907_v19 = vunpack.c.l.b16 %v14661_v14 }
 0x6c2   : > { %13804 = vmatpush3.bf16.msra.mxu0 %v14614_v30  ;;  %v7687_v30 = vrot.slane %v7679_v11, 1  ;;  %v7692_v40 = vrot.slane %v7682_v55, 6  ;;  %v7784_v29 = vrot.slane %v7682_v55, 7 }
 0x6c3   : > { %13821 = vmatprep.subr.bf16.mxu0 %v14882_v48  ;;  %v8009_v54 = vrot.slane %v7906_v1, 1 }
 0x6c4   : > { %13816 = vmatpush3.bf16.msra.mxu1 %v14615_v26  ;;  %v7690_v26 = vrot.slane %v7681_v44, 7  ;;  %v7688_v13 = vsel %vm5146_vm8, %v7687_v30, %v7686_v61  ;;  %v7785_v7 = vsel %vm5155_vm12, %v7784_v29, %v7783_v62  ;;  %v7918_v30 = vrot.slane %v7907_v19, 7 }
 0x6c5   : > { %13806 = vmatmul.mubr.msk.bf16.vlgmr.msra.gmra.mrb[40].mxu0 %vm3380_vm9, %v7436_v34  ;;  %13833 = vmatprep.subr.bf16.mxu1 %v14882_v48  ;;  %v7689_v52 = vsel %vm5149_vm10, %v7680_v8, %v7688_v13  ;;  %v7787_v50 = vsel %vm5158_vm13, %v7786_v56, %v7785_v7  ;;  %v14666_v7 = vld [vmem:[%s18368_s7 + $0x348] sm:$0xff]  }
 0x6c6   : > { %13822 = vmatpush3.bf16.msra.mxu0 %v14624_v3  ;;  %13829 = vmatprep.mubr.msk.bf16.mxu0 %vm14883_vm7, %v14882_v48  ;;  %v7696_v3 = vrot.slane %v7684_v51, 4  ;;  %v7691_v41 = vsel %vm5152_vm11, %v7690_v26, %v7689_v52  ;;  %v7789_v35 = vsel %vm5161_vm14, %v7788_v42, %v7787_v50  ;;  %v14673_v50 = vld [vmem:[#allocation4 + $0x38] ss:$0 sps:$4 sm:$0x88]  }
 0x6c7   : > { %13823 = vmatprep.subr.bf16.mxu0 %v14882_v48  ;;  %13818 = vmatmul.mubr.msk.bf16.vlgmr.msra.gmra.mrb[40].mxu1 %vm3380_vm9, %v7568_v10  ;;  %v7693_v9 = vsel %vm5155_vm12, %v7692_v40, %v7691_v41  ;;  %v7791_v49 = vsel %vm5164_vm15, %v7790_v17, %v7789_v35  ;;  %v14662_v10 = vld [vmem:[#allocation4 + $0x100] ss:$0 sps:$4 sm:$0x44]   ;;  %v8014_v41 = vrot.slane %v7909_v18, 6 }
 0x6c8   : > { %13834 = vmatpush3.bf16.msra.mxu1 %v14633_v15  ;;  %13841 = vmatprep.mubr.msk.bf16.mxu1 %vm14883_vm7, %v14882_v48  ;;  %v7695_v25 = vsel %vm5158_vm13, %v7694_v6, %v7693_v9  ;;  %v7792_v60 = vpack.c.b16 %v7791_v49, %v7791_v49  ;;  %v14659_v15 = vld [vmem:[#allocation4 + $0x88] ss:$0 sps:$4 sm:$0x44]   ;;  %v7908_v28 = vunpack.c.l.b16 %v14662_v10  ;;  %v14664_v9 = vld [vmem:[%s18368_s7 + $0x340] sm:$0xff]  }
 0x6c9   : > { %13835 = vmatprep.subr.bf16.mxu1 %v14882_v48  ;;  %v7697_v34 = vsel %vm5161_vm14, %v7696_v3, %v7695_v25  ;;  %v7905_v0 = vunpack.c.l.b16 %v14659_v15  ;;  %v14655_v3 = vld [vmem:[%s18368_s7 + $0x338] sm:$0xff]   ;;  %v14665_v25 = vld [vmem:[%s18368_s7 + $0x360] sm:$0xff]   ;;  %v14675_v35 = vld [vmem:[#allocation4 + $0x88] ss:$0 sps:$4 sm:$0x88]  }
 0x6ca   : > { %13824 = vmatpush3.bf16.msra.mxu0 %v14634_v38  ;;  %v7699_v63 = vsel %vm5164_vm15, %v7698_v4, %v7697_v34  ;;  %v14657_v38 = vld [vmem:[#allocation4 + $0x38] ss:$0 sps:$4 sm:$0x44]   ;;  %v7920_v51 = vrot.slane %v7908_v28, 6  ;;  %v8012_v52 = vrot.slane %v7908_v28, 7 }
 0x6cb   : > { %13825 = vmatprep.subr.bf16.mxu0 %v14882_v48  ;;  %v7700_v46 = vpack.c.b16 %v7699_v63, %v7699_v63  ;;  %v7915_v8 = vrot.slane %v7905_v0, 1  ;;  %v8007_v13 = vrot.slane %v7905_v0, 2  ;;  %v14667_v63 = vld [vmem:[%s18368_s7 + $0x368] sm:$0xff]  }
 0x6cc   : > { %13836 = vmatpush3.bf16.msra.mxu1 %v14635_v22  ;;  %v7903_v22 = vunpack.c.l.b16 %v14657_v38 }
 0x6cd   : > { %13837 = vmatprep.subr.bf16.mxu1 %v14882_v48 }
 0x6ce   : > { %13826 = vmatpush3.bf16.msra.mxu0 %v14636_v21  ;;  %v7902_v21 = vunpack.c.l.b16 %v14656_v24  ;;  %v7911_v45 = vrot.slane %v7903_v22, 3  ;;  %v8003_v55 = vrot.slane %v7903_v22, 4  ;;  %v8127_v24 = vunpack.c.l.b16 %v14673_v50  ;;  %v14689_v50 = vld [vmem:[#allocation4 + $0x3c] ss:$0 sps:$4 sm:$0x44]  }
 0x6cf   : > { %13827 = vmatprep.subr.bf16.mxu0 %v14882_v48 }
 0x6d0   : > { %13838 = vmatpush3.bf16.msra.mxu1 %v14637_v16  ;;  %v7910_v2 = vrot.slane %v7902_v21, 4  ;;  %v8002_v44 = vrot.slane %v7902_v21, 5  ;;  %v14669_v21 = vld [vmem:[%s18368_s7 + $0x370] sm:$0xff]   ;;  %v8135_v22 = vrot.slane %v8127_v24, 5 }
 0x6d1   : > { %13839 = vmatprep.subr.bf16.mxu1 %v14882_v48 }
 0x6d2   : > { %13828 = vmatpush3.bf16.msra.mxu0 %v14638_v43  ;;  %v7904_v43 = vunpack.c.l.b16 %v14658_v59  ;;  %v7912_v61 = vsel %vm5146_vm8, %v7911_v45, %v7910_v2  ;;  %v8004_v16 = vsel %vm5146_vm8, %v8003_v55, %v8002_v44  ;;  %v14679_v59 = vld [vmem:[#allocation4 + $0x128] ss:$0 sps:$4 sm:$0x88]   ;;  %v14670_v44 = vld [vmem:[%s18368_s7 + $0x358] sm:$0xff]  }
 0x6d3   : > { %13845 = vmatprep.subr.bf16.mxu0 %v14882_v48  ;;  %v8133_v0 = vunpack.c.l.b16 %v14679_v59 }
 0x6d4   : > { %13840 = vmatpush3.bf16.msra.mxu1 %v14639_v36  ;;  %v7913_v11 = vrot.slane %v7904_v43, 2  ;;  %v8005_v23 = vrot.slane %v7904_v43, 3 }
 0x6d5   : > { %13830 = vmatmul.mubr.msk.bf16.vlgmr.msra.gmra.mrb[44].mxu0 %vm3380_vm9, %v7700_v46  ;;  %13857 = vmatprep.subr.bf16.mxu1 %v14882_v48  ;;  %v14674_v46 = vld [vmem:[#allocation4 + $0x60] ss:$0 sps:$4 sm:$0x88]  }
 0x6d6   : > { %13846 = vmatpush3.bf16.msra.mxu0 %v14648_v32  ;;  %13853 = vmatprep.mubr.msk.bf16.mxu0 %vm14883_vm7, %v14882_v48  ;;  %v7914_v26 = vsel %vm5149_vm10, %v7913_v11, %v7912_v61  ;;  %v8006_v6 = vsel %vm5149_vm10, %v8005_v23, %v8004_v16  ;;  %v14672_v32 = vld [vmem:[#allocation4 + $0x10] ss:$0 sps:$4 sm:$0x88]   ;;  %v8128_v38 = vunpack.c.l.b16 %v14674_v46  ;;  %v14684_v46 = vld [vmem:[%s18368_s7 + $0x390] sm:$0xff]  }
 0x6d7   : > { %13842 = vmatmul.mubr.msk.bf16.vlgmr.msra.gmra.mrb[44].mxu1 %vm3380_vm9, %v7792_v60  ;;  %13847 = vmatprep.subr.bf16.mxu0 %v14882_v48  ;;  %v7916_v40 = vsel %vm5152_vm11, %v7915_v8, %v7914_v26  ;;  %v8008_v58 = vsel %vm5152_vm11, %v8007_v13, %v8006_v6  ;;  %v8126_v49 = vunpack.c.l.b16 %v14672_v32  ;;  %v14677_v60 = vld [vmem:[#allocation4 + $0xd8] ss:$0 sps:$4 sm:$0x88]   ;;  %v8146_v26 = vrot.slane %v8133_v0, 7 }
 0x6d8   : > { %13858 = vmatpush3.bf16.msra.mxu1 %v14649_v47  ;;  %13865 = vmatprep.mubr.msk.bf16.mxu1 %vm14883_vm7, %v14882_v48  ;;  %v7917_v4 = vsel %vm5155_vm12, %v7906_v1, %v7916_v40  ;;  %v8010_v29 = vsel %vm5155_vm12, %v8009_v54, %v8008_v58  ;;  %v14676_v47 = vld [vmem:[#allocation4 + $0xb0] ss:$0 sps:$4 sm:$0x88]   ;;  %v8131_v14 = vunpack.c.l.b16 %v14677_v60  ;;  %v8137_v43 = vrot.slane %v8128_v38, 4 }
 0x6d9   : > { %13859 = vmatprep.subr.bf16.mxu1 %v14882_v48  ;;  %v7919_v39 = vsel %vm5158_vm13, %v7918_v30, %v7917_v4  ;;  %v8011_v33 = vsel %vm5158_vm13, %v7907_v19, %v8010_v29  ;;  %v8130_v15 = vunpack.c.l.b16 %v14676_v47  ;;  %v8134_v5 = vrot.slane %v8126_v49, 6  ;;  %v14688_v32 = vld [vmem:[#allocation4 + $0x14] ss:$0 sps:$4 sm:$0x44]  }
 0x6da   : > { %13848 = vmatpush3.bf16.msra.mxu0 %v14650_v31  ;;  %v7921_v56 = vsel %vm5161_vm14, %v7920_v51, %v7919_v39  ;;  %v8013_v36 = vsel %vm5161_vm14, %v8012_v52, %v8011_v33  ;;  %v14668_v31 = vld [vmem:[%s18368_s7 + $0x350] sm:$0xff]   ;;  %v8226_v19 = vrot.slane %v8126_v49, 7  ;;  %v8143_v11 = vrot.slane %v8131_v14, 1  ;;  %v14671_v51 = vld [vmem:[%s18368_s7 + $0x378] sm:$0xff]   ;;  %v14680_v33 = vld [vmem:[%s18368_s7 + $0x380] sm:$0xff]  }
 0x6db   : > { %13849 = vmatprep.subr.bf16.mxu0 %v14882_v48  ;;  %v7923_v42 = vsel %vm5164_vm15, %v7922_v57, %v7921_v56  ;;  %v8015_v17 = vsel %vm5164_vm15, %v8014_v41, %v8013_v36  ;;  %v8141_v2 = vrot.slane %v8130_v15, 2  ;;  %v8136_v45 = vsel %vm5146_vm8, %v8135_v22, %v8134_v5  ;;  %v14691_v47 = vld [vmem:[#allocation4 + $0x8c] ss:$0 sps:$4 sm:$0x44]  }
 0x6dc   : > { %13860 = vmatpush3.bf16.msra.mxu1 %v14651_v37  ;;  %v7924_v62 = vpack.c.b16 %v7923_v42, %v7923_v42  ;;  %v8016_v34 = vpack.c.b16 %v8015_v17, %v8015_v17  ;;  %v14678_v37 = vld [vmem:[#allocation4 + $0x100] ss:$0 sps:$4 sm:$0x88]   ;;  %v8229_v18 = vrot.slane %v8128_v38, 5  ;;  %v8138_v55 = vsel %vm5149_vm10, %v8137_v43, %v8136_v45 }
 0x6dd   : > { %13861 = vmatprep.subr.bf16.mxu1 %v14882_v48  ;;  %v8132_v10 = vunpack.c.l.b16 %v14678_v37  ;;  %v8233_v61 = vrot.slane %v8130_v15, 3  ;;  %v8235_v16 = vrot.slane %v8131_v14, 2  ;;  %v14692_v49 = vld [vmem:[#allocation4 + $0xb4] ss:$0 sps:$4 sm:$0x44]   ;;  %v8350_v60 = vunpack.c.l.b16 %v14688_v32  ;;  %v14685_v15 = vld [vmem:[%s18368_s7 + $0x3b0] sm:$0xff]  }
 0x6de   : > { %13850 = vmatpush3.bf16.msra.mxu0 %v14652_v20  ;;  %v8129_v20 = vunpack.c.l.b16 %v14675_v35  ;;  %v14690_v35 = vld [vmem:[#allocation4 + $0x64] ss:$0 sps:$4 sm:$0x44]   ;;  %v8351_v37 = vunpack.c.l.b16 %v14689_v50  ;;  %v14695_v38 = vld [vmem:[#allocation4 + $0x12c] ss:$0 sps:$4 sm:$0x44]   ;;  %v8354_v5 = vunpack.c.l.b16 %v14692_v49 }
 0x6df   : > { %13851 = vmatprep.subr.bf16.mxu0 %v14882_v48  ;;  %v8237_v54 = vrot.slane %v8132_v10, 1  ;;  %v8352_v59 = vunpack.c.l.b16 %v14690_v35  ;;  %v8358_v14 = vrot.slane %v8350_v60, 4  ;;  %v8450_v45 = vrot.slane %v8350_v60, 5  ;;  %v14699_v32 = vld [vmem:[%s18368_s7 + $0x3e8] sm:$0xff]   ;;  %v14700_v35 = vld [vmem:[%s18368_s7 + $0x3d0] sm:$0xff]  }
 0x6e0   : > { %13862 = vmatpush3.bf16.msra.mxu1 %v14653_v12  ;;  %v8139_v1 = vrot.slane %v8129_v20, 3  ;;  %v8227_v12 = vrot.slane %v8127_v24, 6  ;;  %v14694_v24 = vld [vmem:[#allocation4 + $0x104] ss:$0 sps:$4 sm:$0x44]  }
 0x6e1   : > { %13863 = vmatprep.subr.bf16.mxu1 %v14882_v48  ;;  %v8356_v43 = vunpack.c.l.b16 %v14694_v24  ;;  %v14704_v50 = vld [vmem:[#allocation4 + $0x14] ss:$0 sps:$4 sm:$0x88]   ;;  %v14707_v49 = vld [vmem:[#allocation4 + $0x8c] ss:$0 sps:$4 sm:$0x88]  }
 0x6e2   : > { %13852 = vmatpush3.bf16.msra.mxu0 %v14654_v53  ;;  %v8231_v53 = vrot.slane %v8129_v20, 4  ;;  %v8140_v23 = vsel %vm5152_vm11, %v8139_v1, %v8138_v55  ;;  %v8228_v57 = vsel %vm5146_vm8, %v8227_v12, %v8226_v19  ;;  %v8353_v20 = vunpack.c.l.b16 %v14691_v47  ;;  %v14706_v47 = vld [vmem:[#allocation4 + $0x64] ss:$0 sps:$4 sm:$0x88]  }
 0x6e3   : > { %13869 = vmatprep.subr.bf16.mxu0 %v14882_v48  ;;  %v8142_v40 = vsel %vm5155_vm12, %v8141_v2, %v8140_v23  ;;  %v8230_v6 = vsel %vm5149_vm10, %v8229_v18, %v8228_v57  ;;  %v14686_v2 = vld [vmem:[%s18368_s7 + $0x398] sm:$0xff]   ;;  %v14709_v60 = vld [vmem:[#allocation4 + $0xdc] ss:$0 sps:$4 sm:$0x88]  }
 0x6e4   : > { %13864 = vmatpush3.bf16.msra.mxu1 %v14655_v3  ;;  %v8144_v4 = vsel %vm5158_vm13, %v8143_v11, %v8142_v40  ;;  %v8232_v58 = vsel %vm5152_vm11, %v8231_v53, %v8230_v6  ;;  %v8363_v1 = vrot.slane %v8353_v20, 1  ;;  %v8451_v11 = vrot.slane %v8351_v37, 4 }
 0x6e5   : > { %13881 = vmatprep.subr.bf16.mxu1 %v14882_v48  ;;  %13854 = vmatmul.mubr.msk.bf16.vlgmr.msra.gmra.mrb[48].mxu0 %vm3380_vm9, %v7924_v62  ;;  %v8145_v39 = vsel %vm5161_vm14, %v8132_v10, %v8144_v4  ;;  %v8234_v29 = vsel %vm5155_vm12, %v8233_v61, %v8232_v58  ;;  %v14681_v62 = vld [vmem:[%s18368_s7 + $0x3a0] sm:$0xff]   ;;  %v8359_v10 = vrot.slane %v8351_v37, 3  ;;  %v8453_v53 = vrot.slane %v8352_v59, 3 }
 0x6e6   : > { %13870 = vmatpush3.bf16.msra.mxu0 %v14664_v9  ;;  %13877 = vmatprep.mubr.msk.bf16.mxu0 %vm14883_vm7, %v14882_v48  ;;  %v8147_v9 = vsel %vm5164_vm15, %v8146_v26, %v8145_v39  ;;  %v8236_v42 = vsel %vm5158_vm13, %v8235_v16, %v8234_v29  ;;  %v8455_v23 = vrot.slane %v8353_v20, 2  ;;  %v8457_v26 = vrot.slane %v8354_v5, 1  ;;  %v14687_v16 = vld [vmem:[%s18368_s7 + $0x3b8] sm:$0xff]  }
 0x6e7   : > { %13866 = vmatmul.mubr.msk.bf16.vlgmr.msra.gmra.mrb[48].mxu1 %vm3380_vm9, %v8016_v34  ;;  %13871 = vmatprep.subr.bf16.mxu0 %v14882_v48  ;;  %v8148_v36 = vpack.c.b16 %v8147_v9, %v8147_v9  ;;  %v14682_v34 = vld [vmem:[%s18368_s7 + $0x388] sm:$0xff]   ;;  %v8360_v19 = vsel %vm5146_vm8, %v8359_v10, %v8358_v14  ;;  %v8460_v6 = vrot.slane %v8356_v43, 7  ;;  %v8574_v37 = vunpack.c.l.b16 %v14704_v50 }
 0x6e8   : > { %13882 = vmatpush3.bf16.msra.mxu1 %v14665_v25  ;;  %13889 = vmatprep.mubr.msk.bf16.mxu1 %vm14883_vm7, %v14882_v48  ;;  %v8238_v25 = vsel %vm5161_vm14, %v8237_v54, %v8236_v42  ;;  %v8576_v20 = vunpack.c.l.b16 %v14706_v47  ;;  %v14715_v50 = vld [vmem:[%s18368_s7 + $0x428] sm:$0xff]  }
 0x6e9   : > { %13883 = vmatprep.subr.bf16.mxu1 %v14882_v48  ;;  %v8239_v17 = vsel %vm5164_vm15, %v8133_v0, %v8238_v25  ;;  %v8361_v0 = vrot.slane %v8352_v59, 2  ;;  %v17858_v59 = vld [vmem:[#allocation4 + $0x12c] ss:$0 sps:$4 sm:$0x88]   ;;  %v8582_v14 = vrot.slane %v8574_v37, 6 }
 0x6ea   : > { %13872 = vmatpush3.bf16.msra.mxu0 %v14666_v7  ;;  %v8240_v7 = vpack.c.b16 %v8239_v17, %v8239_v17  ;;  %v14697_v17 = vld [vmem:[%s18368_s7 + $0x3e0] sm:$0xff]   ;;  %v14721_v47 = vld [vmem:[#allocation4 + $0x40] ss:$0 sps:$4 sm:$0x11]  }
 0x6eb   : > { %13873 = vmatprep.subr.bf16.mxu0 %v14882_v48 }
 0x6ec   : > { %13884 = vmatpush3.bf16.msra.mxu1 %v14667_v63  ;;  %v14683_v63 = vld [vmem:[%s18368_s7 + $0x3a8] sm:$0xff]  }
 0x6ed   : > { %13885 = vmatprep.subr.bf16.mxu1 %v14882_v48 }
 0x6ee   : > { %13874 = vmatpush3.bf16.msra.mxu0 %v14668_v31  ;;  %v14693_v31 = vld [vmem:[#allocation4 + $0xdc] ss:$0 sps:$4 sm:$0x44]  }
 0x6ef   : > { %13875 = vmatprep.subr.bf16.mxu0 %v14882_v48 }
 0x6f0   : > { %13886 = vmatpush3.bf16.msra.mxu1 %v14669_v21  ;;  %v8355_v21 = vunpack.c.l.b16 %v14693_v31  ;;  %v14708_v31 = vld [vmem:[#allocation4 + $0xb4] ss:$0 sps:$4 sm:$0x88]  }
 0x6f1   : > { %13887 = vmatprep.subr.bf16.mxu1 %v14882_v48 }
 0x6f2   : > { %13876 = vmatpush3.bf16.msra.mxu0 %v14670_v44  ;;  %v8368_v44 = vrot.slane %v8356_v43, 6 }
 0x6f3   : > { %13893 = vmatprep.subr.bf16.mxu0 %v14882_v48 }
 0x6f4   : > { %13888 = vmatpush3.bf16.msra.mxu1 %v14671_v51  ;;  %v8452_v51 = vsel %vm5146_vm8, %v8451_v11, %v8450_v45  ;;  %v8674_v11 = vrot.slane %v8574_v37, 7 }
 0x6f5   : > { %13905 = vmatprep.subr.bf16.mxu1 %v14882_v48  ;;  %13878 = vmatmul.mubr.msk.bf16.vlgmr.msra.gmra.mrb[52].mxu0 %vm3380_vm9, %v8148_v36  ;;  %v8454_v40 = vsel %vm5149_vm10, %v8453_v53, %v8452_v51 }
 0x6f6   : > { %13894 = vmatpush3.bf16.msra.mxu0 %v14680_v33  ;;  %13901 = vmatprep.mubr.msk.bf16.mxu0 %vm14883_vm7, %v14882_v48  ;;  %v14696_v33 = vld [vmem:[%s18368_s7 + $0x3c0] sm:$0xff]  }
 0x6f7   : > { %13890 = vmatmul.mubr.msk.bf16.vlgmr.msra.gmra.mrb[52].mxu1 %vm3380_vm9, %v8240_v7  ;;  %13895 = vmatprep.subr.bf16.mxu0 %v14882_v48  ;;  %v14698_v7 = vld [vmem:[%s18368_s7 + $0x3c8] sm:$0xff]  }
 0x6f8   : > { %v5229_v27 = vpop.f32.mrb[0].mxu0  ;;  %13906 = vmatpush3.bf16.msra.mxu1 %v14681_v62  ;;  %13913 = vmatprep.mubr.msk.bf16.mxu1 %vm14883_vm7, %v14882_v48 }
 0x6f9   : > { %v13567_v28 = vpop.f32.mrb[1].mxu0  ;;  %13907 = vmatprep.subr.bf16.mxu1 %v14882_v48 }
 0x6fa   : > { %v5311_v8 = vpop.f32.mrb[0].mxu1  ;;  %v5232_v30 = vpop.f32.mrb[2].mxu0  ;;  %13896 = vmatpush3.bf16.msra.mxu0 %v14682_v34  ;;  %v8366_v28 = vrot.slane %v8355_v21, 7 }
 0x6fb   : > { %v13568_v13 = vpop.f32.mrb[3].mxu0  ;;  %v17767_v52 = vadd.f32 %v5311_v8, %v5229_v27  ;;  %v13579_v3 = vpop.f32.mrb[1].mxu1  ;;  %13897 = vmatprep.subr.bf16.mxu0 %v14882_v48  ;;  %v8357_v27 = vunpack.c.l.b16 %v14695_v38  ;;  %v8362_v8 = vsel %vm5149_vm10, %v8361_v0, %v8360_v19  ;;  %v14710_v38 = vld [vmem:[#allocation4 + $0x104] ss:$0 sps:$4 sm:$0x88]   ;;  %v8585_v0 = vrot.slane %v8576_v20, 4 }
 0x6fc   : > { %v5314_v41 = vpop.f32.mrb[2].mxu1  ;;  %13908 = vmatpush3.bf16.msra.mxu1 %v14683_v63  ;;  %v8364_v30 = vsel %vm5152_vm11, %v8363_v1, %v8362_v8  ;;  %v8456_v3 = vsel %vm5152_vm11, %v8455_v23, %v8454_v40  ;;  %v8580_v43 = vunpack.c.l.b16 %v14710_v38  ;;  %v14726_v38 = vld [vmem:[#allocation4 + $0x108] ss:$0 sps:$4 sm:$0x11]  }
 0x6fd   : > { %v13580_v56 = vpop.f32.mrb[3].mxu1  ;;  %13909 = vmatprep.subr.bf16.mxu1 %v14882_v48  ;;  %v8370_v55 = vrot.slane %v8357_v27, 5  ;;  %v8365_v13 = vsel %vm5155_vm12, %v8354_v5, %v8364_v30  ;;  %v8462_v4 = vrot.slane %v8357_v27, 6  ;;  %v8458_v29 = vsel %vm5155_vm12, %v8457_v26, %v8456_v3 }
 0x6fe   : > { %13898 = vmatpush3.bf16.msra.mxu0 %v14684_v46  ;;  %v8367_v54 = vsel %vm5158_vm13, %v8366_v28, %v8365_v13  ;;  %v8459_v42 = vsel %vm5158_vm13, %v8355_v21, %v8458_v29  ;;  %v14705_v46 = vld [vmem:[#allocation4 + $0x3c] ss:$0 sps:$4 sm:$0x88]   ;;  %v8578_v5 = vunpack.c.l.b16 %v14708_v31  ;;  %v8579_v21 = vunpack.c.l.b16 %v14709_v60  ;;  %v14723_v31 = vld [vmem:[#allocation4 + $0x90] ss:$0 sps:$4 sm:$0x11]  }
 0x6ff   : > { %13899 = vmatprep.subr.bf16.mxu0 %v14882_v48  ;;  %v8369_v39 = vsel %vm5161_vm14, %v8368_v44, %v8367_v54  ;;  %v8461_v62 = vsel %vm5161_vm14, %v8460_v6, %v8459_v42  ;;  %v8575_v24 = vunpack.c.l.b16 %v14705_v46  ;;  %v8581_v27 = vunpack.c.l.b16 %v17858_v59  ;;  %v14712_v42 = vld [vmem:[%s18368_s7 + $0x400] sm:$0xff]  }
 0x700   : > { %13910 = vmatpush3.bf16.msra.mxu1 %v14685_v15  ;;  %v8371_v9 = vsel %vm5164_vm15, %v8370_v55, %v8369_v39  ;;  %v8463_v34 = vsel %vm5164_vm15, %v8462_v4, %v8461_v62  ;;  %v8577_v15 = vunpack.c.l.b16 %v14707_v49  ;;  %v8589_v28 = vrot.slane %v8578_v5, 2  ;;  %v14720_v46 = vld [vmem:[#allocation4 + $0x18] ss:$0 sps:$4 sm:$0x11]  }
 0x701   : > { %13911 = vmatprep.subr.bf16.mxu1 %v14882_v48  ;;  %v8372_v25 = vpack.c.b16 %v8371_v9, %v8371_v9  ;;  %v8464_v63 = vpack.c.b16 %v8463_v34, %v8463_v34  ;;  %v8583_v10 = vrot.slane %v8575_v24, 5  ;;  %v8591_v45 = vrot.slane %v8579_v21, 1  ;;  %v14722_v49 = vld [vmem:[#allocation4 + $0x68] ss:$0 sps:$4 sm:$0x11]  }
 0x702   : > { %13900 = vmatpush3.bf16.msra.mxu0 %v14686_v2  ;;  %v8587_v1 = vrot.slane %v8577_v15, 3  ;;  %v8675_v44 = vrot.slane %v8575_v24, 6  ;;  %v8677_v55 = vrot.slane %v8576_v20, 5  ;;  %v8594_v51 = vrot.slane %v8581_v27, 7 }
 0x703   : > { %13917 = vmatprep.subr.bf16.mxu0 %v14882_v48  ;;  %v8584_v19 = vsel %vm5146_vm8, %v8583_v10, %v8582_v14  ;;  %v8679_v23 = vrot.slane %v8577_v15, 4  ;;  %v8681_v26 = vrot.slane %v8578_v5, 3  ;;  %v8683_v40 = vrot.slane %v8579_v21, 2  ;;  %v14724_v60 = vld [vmem:[#allocation4 + $0xb8] ss:$0 sps:$4 sm:$0x11]  }
 0x704   : > { %13912 = vmatpush3.bf16.msra.mxu1 %v14687_v16  ;;  %v8586_v8 = vsel %vm5149_vm10, %v8585_v0, %v8584_v19  ;;  %v8676_v13 = vsel %vm5146_vm8, %v8675_v44, %v8674_v11  ;;  %v8798_v37 = vunpack.c.l.b16 %v14720_v46  ;;  %v14725_v24 = vld [vmem:[#allocation4 + $0xe0] ss:$0 sps:$4 sm:$0x11]   ;;  %v8799_v59 = vunpack.c.l.b16 %v14721_v47  ;;  %v14717_v15 = vld [vmem:[%s18368_s7 + $0x430] sm:$0xff]  }
 0x705   : > { %13929 = vmatprep.subr.bf16.mxu1 %v14882_v48  ;;  %13902 = vmatmul.mubr.msk.bf16.vlgmr.msra.gmra.mrb[56].mxu0 %vm3380_vm9, %v8372_v25  ;;  %v8588_v30 = vsel %vm5152_vm11, %v8587_v1, %v8586_v8  ;;  %v8678_v4 = vsel %vm5149_vm10, %v8677_v55, %v8676_v13  ;;  %v8800_v20 = vunpack.c.l.b16 %v14722_v49  ;;  %v14727_v5 = vld [vmem:[#allocation4 + $0x130] ss:$0 sps:$4 sm:$0x11]   ;;  %v8801_v21 = vunpack.c.l.b16 %v14723_v31  ;;  %v14731_v46 = vld [vmem:[%s18368_s7 + $0x468] sm:$0xff]   ;;  %v14732_v31 = vld [vmem:[%s18368_s7 + $0x450] sm:$0xff]  }
 0x706   : > { %13918 = vmatpush3.bf16.msra.mxu0 %v14696_v33  ;;  %13925 = vmatprep.mubr.msk.bf16.mxu0 %vm14883_vm7, %v14882_v48  ;;  %v8590_v16 = vsel %vm5155_vm12, %v8589_v28, %v8588_v30  ;;  %v8680_v29 = vsel %vm5152_vm11, %v8679_v23, %v8678_v4  ;;  %v8802_v14 = vunpack.c.l.b16 %v14724_v60  ;;  %v8898_v10 = vrot.slane %v8798_v37, 1  ;;  %v14737_v47 = vld [vmem:[#allocation4 + $0x40] ss:$0 sps:$4 sm:$0x22]  }
 0x707   : > { %13914 = vmatmul.mubr.msk.bf16.vlgmr.msra.gmra.mrb[56].mxu1 %vm3380_vm9, %v8464_v63  ;;  %13919 = vmatprep.subr.bf16.mxu0 %v14882_v48  ;;  %v8592_v3 = vsel %vm5158_vm13, %v8591_v45, %v8590_v16  ;;  %v8806_v0 = vrot.slane %v8799_v59, 7  ;;  %v8808_v1 = vrot.slane %v8800_v20, 6  ;;  %v8805_v19 = vunpack.c.l.b16 %v14727_v5  ;;  %v14738_v49 = vld [vmem:[#allocation4 + $0x68] ss:$0 sps:$4 sm:$0x22]  }
 0x708   : > { %v5442_v22 = vpop.f32.mrb[4].mxu0  ;;  %13930 = vmatpush3.bf16.msra.mxu1 %v14697_v17  ;;  %13937 = vmatprep.mubr.msk.bf16.mxu1 %vm14883_vm7, %v14882_v48  ;;  %v8593_v39 = vsel %vm5161_vm14, %v8580_v43, %v8592_v3  ;;  %v14713_v17 = vld [vmem:[%s18368_s7 + $0x420] sm:$0xff]   ;;  %v8810_v28 = vrot.slane %v8801_v21, 5  ;;  %v8812_v45 = vrot.slane %v8802_v14, 4  ;;  %v8899_v11 = vsel %vm5146_vm8, %v8799_v59, %v8898_v10 }
 0x709   : > { %v13591_v12 = vpop.f32.mrb[5].mxu0  ;;  %v5448_v58 = vadd.f32 %v5442_v22, %v17767_v52  ;;  %13931 = vmatprep.subr.bf16.mxu1 %v14882_v48  ;;  %v14701_v22 = vld [vmem:[%s18368_s7 + $0x3f0] sm:$0xff]   ;;  %v8595_v33 = vsel %vm5164_vm15, %v8594_v51, %v8593_v39  ;;  %v8900_v44 = vrot.slane %v8800_v20, 7  ;;  %v8902_v30 = vrot.slane %v8801_v21, 6 }
 0x70a   : > { %v5534_v18 = vpop.f32.mrb[4].mxu1  ;;  %v5445_v61 = vpop.f32.mrb[6].mxu0  ;;  %13920 = vmatpush3.bf16.msra.mxu0 %v14698_v7  ;;  %v14702_v12 = vld [vmem:[%s18368_s7 + $0x3d8] sm:$0xff]   ;;  %v8596_v25 = vpack.c.b16 %v8595_v33, %v8595_v33  ;;  %v14714_v7 = vld [vmem:[%s18368_s7 + $0x408] sm:$0xff]   ;;  %v8904_v51 = vrot.slane %v8802_v14, 5  ;;  %v9024_v21 = vunpack.c.l.b16 %v14738_v49 }
 0x70b   : > { %v13592_v57 = vpop.f32.mrb[7].mxu0  ;;  %v13603_v41 = vpop.f32.mrb[5].mxu1  ;;  %v17833_v36 = vadd.f32 %v5534_v18, %v5448_v58  ;;  %13921 = vmatprep.subr.bf16.mxu0 %v14882_v48  ;;  %v14703_v18 = vld [vmem:[%s18368_s7 + $0x3f8] sm:$0xff]   ;;  %v8685_v58 = vrot.slane %v8580_v43, 1  ;;  %v8803_v43 = vunpack.c.l.b16 %v14725_v24  ;;  %v14754_v49 = vld [vmem:[%s18368_s7 + $0x488] sm:$0xff]  }
 0x70c   : > { %v5537_v56 = vpop.f32.mrb[6].mxu1  ;;  %13932 = vmatpush3.bf16.msra.mxu1 %v14699_v32  ;;  %v14739_v60 = vld [vmem:[#allocation4 + $0x90] ss:$0 sps:$4 sm:$0x22]  }
 0x70d   : > { %v13604_v52 = vpop.f32.mrb[7].mxu1  ;;  %13933 = vmatprep.subr.bf16.mxu1 %v14882_v48  ;;  %v8906_v16 = vrot.slane %v8803_v43, 4  ;;  %v14741_v59 = vld [vmem:[#allocation4 + $0xe0] ss:$0 sps:$4 sm:$0x22]   ;;  %v9025_v14 = vunpack.c.l.b16 %v14739_v60 }
 0x70e   : > { %13922 = vmatpush3.bf16.msra.mxu0 %v14700_v35  ;;  %v14716_v35 = vld [vmem:[%s18368_s7 + $0x410] sm:$0xff]   ;;  %v14743_v5 = vld [vmem:[#allocation4 + $0x130] ss:$0 sps:$4 sm:$0x22]  }
 0x70f   : > { %13923 = vmatprep.subr.bf16.mxu0 %v14882_v48  ;;  %v14742_v20 = vld [vmem:[#allocation4 + $0x108] ss:$0 sps:$4 sm:$0x22]  }
 0x710   : > { %13934 = vmatpush3.bf16.msra.mxu1 %v14701_v22  ;;  %v14718_v22 = vld [vmem:[%s18368_s7 + $0x418] sm:$0xff]  }
 0x711   : > { %13935 = vmatprep.subr.bf16.mxu1 %v14882_v48 }
 0x712   : > { %13924 = vmatpush3.bf16.msra.mxu0 %v14702_v12  ;;  %v8807_v12 = vsel %vm5146_vm8, %v8806_v0, %v8798_v37  ;;  %v14740_v37 = vld [vmem:[#allocation4 + $0xb8] ss:$0 sps:$4 sm:$0x22]  }
 0x713   : > { %13941 = vmatprep.subr.bf16.mxu0 %v14882_v48  ;;  %v9026_v10 = vunpack.c.l.b16 %v14740_v37 }
 0x714   : > { %13936 = vmatpush3.bf16.msra.mxu1 %v14703_v18  ;;  %v8814_v18 = vrot.slane %v8803_v43, 3  ;;  %v9027_v43 = vunpack.c.l.b16 %v14741_v59 }
 0x715   : > { %13953 = vmatprep.subr.bf16.mxu1 %v14882_v48  ;;  %13926 = vmatmul.mubr.msk.bf16.vlgmr.msra.gmra.mrb[60].mxu0 %vm3380_vm9, %v8596_v25 }
 0x716   : > { %13942 = vmatpush3.bf16.msra.mxu0 %v14712_v42  ;;  %13949 = vmatprep.mubr.msk.bf16.mxu0 %vm14883_vm7, %v14882_v48 }
 0x717   : > { %13943 = vmatprep.subr.bf16.mxu0 %v14882_v48 }
 0x718   : > { %v5666_v2 = vpop.f32.mrb[8].mxu0 }
 0x719   : > { %v13615_v53 = vpop.f32.mrb[9].mxu0  ;;  %v5672_v6 = vadd.f32 %v5666_v2, %v17833_v36  ;;  %v8682_v36 = vsel %vm5155_vm12, %v8681_v26, %v8680_v29 }
 0x71a   : > { %v5758_v61 = vpop.f32.mrb[8].mxu1  ;;  %v5669_v57 = vpop.f32.mrb[10].mxu0  ;;  %v8684_v62 = vsel %vm5158_vm13, %v8683_v40, %v8682_v36  ;;  %13944 = vmatpush3.bf16.msra.mxu0 %v14714_v7  ;;  %v8809_v53 = vsel %vm5149_vm10, %v8808_v1, %v8807_v12  ;;  %v14729_v7 = vld [vmem:[%s18368_s7 + $0x460] sm:$0xff]   ;;  %v14735_v12 = vld [vmem:[%s18368_s7 + $0x478] sm:$0xff]  }
 0x71b   : > { %v13616_v54 = vpop.f32.mrb[11].mxu0  ;;  %v13627_v41 = vpop.f32.mrb[9].mxu1  ;;  %v17884_v56 = vadd.f32 %v5758_v61, %v5672_v6  ;;  %v8686_v34 = vsel %vm5161_vm14, %v8685_v58, %v8684_v62  ;;  %13945 = vmatprep.subr.bf16.mxu0 %v14882_v48  ;;  %v8818_v61 = vrot.slane %v8805_v19, 1  ;;  %v8811_v26 = vsel %vm5152_vm11, %v8810_v28, %v8809_v53 }
 0x71c   : > { %v5761_v9 = vpop.f32.mrb[10].mxu1  ;;  %v8687_v63 = vsel %vm5164_vm15, %v8581_v27, %v8686_v34  ;;  %v8804_v27 = vunpack.c.l.b16 %v14726_v38  ;;  %v8901_v57 = vsel %vm5149_vm10, %v8900_v44, %v8899_v11  ;;  %v14719_v54 = vld [vmem:[%s18368_s7 + $0x438] sm:$0xff]   ;;  %v8813_v3 = vsel %vm5155_vm12, %v8812_v45, %v8811_v26  ;;  %v14733_v38 = vld [vmem:[%s18368_s7 + $0x470] sm:$0xff]   ;;  %v14746_v26 = vld [vmem:[#allocation4 + $0x40] ss:$0 sps:$4 sm:$0x88]  }
 0x71d   : > { %v13628_v52 = vpop.f32.mrb[11].mxu1  ;;  %v8688_v32 = vpack.c.b16 %v8687_v63, %v8687_v63  ;;  %v8903_v4 = vsel %vm5152_vm11, %v8902_v30, %v8901_v57  ;;  %v8910_v58 = vrot.slane %v8805_v19, 2  ;;  %v8815_v39 = vsel %vm5158_vm13, %v8814_v18, %v8813_v3  ;;  %v14745_v30 = vld [vmem:[#allocation4 + $0x18] ss:$0 sps:$4 sm:$0x88]  }
 0x71e   : > { %13946 = vmatpush3.bf16.msra.mxu0 %v14716_v35  ;;  %v8816_v8 = vrot.slane %v8804_v27, 2  ;;  %v8908_v13 = vrot.slane %v8804_v27, 3  ;;  %v8905_v29 = vsel %vm5155_vm12, %v8904_v51, %v8903_v4  ;;  %v14736_v35 = vld [vmem:[#allocation4 + $0x18] ss:$0 sps:$4 sm:$0x22]   ;;  %v9028_v27 = vunpack.c.l.b16 %v14742_v20 }
 0x71f   : > { %13938 = vmatmul.mubr.msk.bf16.vlgmr.msra.gmra.mrb[60].mxu1 %vm3380_vm9, %v8688_v32  ;;  %13947 = vmatprep.subr.bf16.mxu0 %v14882_v48  ;;  %v8907_v33 = vsel %vm5158_vm13, %v8906_v16, %v8905_v29  ;;  %v9022_v24 = vunpack.c.l.b16 %v14736_v35  ;;  %v9029_v19 = vunpack.c.l.b16 %v14743_v5  ;;  %v9034_v28 = vrot.slane %v9025_v14, 7  ;;  %v14747_v57 = vld [vmem:[#allocation4 + $0x68] ss:$0 sps:$4 sm:$0x88]  }
 0x720   : > { %13954 = vmatpush3.bf16.msra.mxu1 %v14713_v17  ;;  %13961 = vmatprep.mubr.msk.bf16.mxu1 %vm14883_vm7, %v14882_v48  ;;  %v8817_v9 = vsel %vm5161_vm14, %v8816_v8, %v8815_v39  ;;  %v8909_v25 = vsel %vm5161_vm14, %v8908_v13, %v8907_v33  ;;  %v9036_v45 = vrot.slane %v9026_v10, 6  ;;  %v9038_v8 = vrot.slane %v9027_v43, 5  ;;  %v14744_v13 = vld [vmem:[%s18368_s7 + $0x480] sm:$0xff]   ;;  %v14750_v4 = vld [vmem:[#allocation4 + $0xe0] ss:$0 sps:$4 sm:$0x88]  }
 0x721   : > { %13955 = vmatprep.subr.bf16.mxu1 %v14882_v48  ;;  %v8819_v52 = vsel %vm5164_vm15, %v8818_v61, %v8817_v9  ;;  %v8911_v34 = vsel %vm5164_vm15, %v8910_v58, %v8909_v25  ;;  %v9042_v53 = vrot.slane %v9029_v19, 3  ;;  %v14751_v58 = vld [vmem:[#allocation4 + $0x108] ss:$0 sps:$4 sm:$0x88]   ;;  %v9156_v39 = vunpack.c.l.b16 %v14747_v57 }
 0x722   : > { %13948 = vmatpush3.bf16.msra.mxu0 %v14718_v22  ;;  %v8820_v17 = vpack.c.b16 %v8819_v52, %v8819_v52  ;;  %v8912_v32 = vpack.c.b16 %v8911_v34, %v8911_v34  ;;  %v9030_v22 = vrot.slane %v9022_v24, 2  ;;  %v14752_v9 = vld [vmem:[#allocation4 + $0x130] ss:$0 sps:$4 sm:$0x88]   ;;  %v9160_v25 = vunpack.c.l.b16 %v14751_v58  ;;  %v14756_v10 = vld [vmem:[%s18368_s7 + $0x490] sm:$0xff]  }
 0x723   : > { %13965 = vmatprep.subr.bf16.mxu0 %v14882_v48  ;;  %v9161_v24 = vunpack.c.l.b16 %v14752_v9  ;;  %v14762_v19 = vld [vmem:[#allocation4 + $0x6c] ss:$0 sps:$4 sm:$0x11]  }
 0x724   : > { %13956 = vmatpush3.bf16.msra.mxu1 %v14715_v50  ;;  %v14730_v50 = vld [vmem:[%s18368_s7 + $0x448] sm:$0xff]   ;;  %v9173_v60 = vrot.slane %v9160_v25, 1 }
 0x725   : > { %13957 = vmatprep.subr.bf16.mxu1 %v14882_v48  ;;  %13950 = vmatmul.mubr.msk.bf16.vlgmr.msra.gmra.mrb[64].mxu0 %vm3380_vm9, %v8820_v17 }
 0x726   : > { %13973 = vmatprep.mubr.msk.bf16.mxu0 %vm14883_vm7, %v14882_v48 }
 0x728   : > { %v5890_v2 = vpop.f32.mrb[12].mxu0  ;;  %13958 = vmatpush3.bf16.msra.mxu1 %v14717_v15  ;;  %v9023_v15 = vunpack.c.l.b16 %v14737_v47 }
 0x729   : > { %v13639_v55 = vpop.f32.mrb[13].mxu0  ;;  %v5896_v41 = vadd.f32 %v5890_v2, %v17884_v56  ;;  %13959 = vmatprep.subr.bf16.mxu1 %v14882_v48  ;;  %v14728_v56 = vld [vmem:[%s18368_s7 + $0x440] sm:$0xff]   ;;  %v14734_v2 = vld [vmem:[%s18368_s7 + $0x458] sm:$0xff]  }
 0x72a   : > { %v5893_v23 = vpop.f32.mrb[14].mxu0  ;;  %v6022_v40 = vpop.f32.mrb[12].mxu1  ;;  %13966 = vmatpush3.bf16.msra.mxu0 %v14728_v56  ;;  %v9031_v0 = vrot.slane %v9023_v15, 1  ;;  %v9040_v55 = vrot.slane %v9028_v27, 4  ;;  %v9159_v56 = vunpack.c.l.b16 %v14750_v4  ;;  %v14755_v27 = vld [vmem:[%s18368_s7 + $0x4a8] sm:$0xff]  }
 0x72b   : > { %v13640_v6 = vpop.f32.mrb[15].mxu0  ;;  %v6028_v42 = vadd.f32 %v6022_v40, %v5896_v41  ;;  %v13651_v36 = vpop.f32.mrb[13].mxu1  ;;  %13967 = vmatprep.subr.bf16.mxu0 %v14882_v48  ;;  %v14748_v40 = vld [vmem:[#allocation4 + $0x90] ss:$0 sps:$4 sm:$0x88]   ;;  %v9155_v41 = vunpack.c.l.b16 %v14746_v26 }
 0x72c   : > { %v6025_v62 = vpop.f32.mrb[14].mxu1  ;;  %13960 = vmatpush3.bf16.msra.mxu1 %v14719_v54  ;;  %v9032_v18 = vsel %vm5146_vm8, %v9031_v0, %v9030_v22  ;;  %v14749_v6 = vld [vmem:[#allocation4 + $0xb8] ss:$0 sps:$4 sm:$0x88]   ;;  %v9154_v54 = vunpack.c.l.b16 %v14745_v30  ;;  %v9157_v33 = vunpack.c.l.b16 %v14748_v40  ;;  %v9171_v35 = vrot.slane %v9159_v56, 2  ;;  %v14758_v0 = vld [vmem:[%s18368_s7 + $0x498] sm:$0xff]  }
 0x72d   : > { %v13652_v63 = vpop.f32.mrb[15].mxu1  ;;  %13977 = vmatprep.subr.bf16.mxu1 %v14882_v48  ;;  %v9033_v44 = vsel %vm5149_vm10, %v9024_v21, %v9032_v18  ;;  %v9163_v62 = vrot.slane %v9155_v41, 6  ;;  %v14753_v21 = vld [vmem:[%s18368_s7 + $0x4a0] sm:$0xff]   ;;  %v14766_v18 = vld [vmem:[#allocation4 + $0x10c] ss:$0 sps:$4 sm:$0x11]  }
 0x72e   : > { %13968 = vmatpush3.bf16.msra.mxu0 %v14730_v50  ;;  %v9035_v61 = vsel %vm5152_vm11, %v9034_v28, %v9033_v44  ;;  %v9162_v36 = vrot.slane %v9154_v54, 7  ;;  %v9167_v63 = vrot.slane %v9157_v33, 4  ;;  %v14763_v28 = vld [vmem:[#allocation4 + $0x94] ss:$0 sps:$4 sm:$0x11]   ;;  %v9288_v44 = vunpack.c.l.b16 %v14762_v19  ;;  %v14772_v19 = vld [vmem:[%s18368_s7 + $0x4d0] sm:$0xff]  }
 0x72f   : > { %13962 = vmatmul.mubr.msk.bf16.vlgmr.msra.gmra.mrb[64].mxu1 %vm3380_vm9, %v8912_v32  ;;  %13969 = vmatprep.subr.bf16.mxu0 %v14882_v48  ;;  %v9037_v23 = vsel %vm5155_vm12, %v9036_v45, %v9035_v61  ;;  %v14764_v45 = vld [vmem:[#allocation4 + $0xbc] ss:$0 sps:$4 sm:$0x11]   ;;  %v9292_v26 = vunpack.c.l.b16 %v14766_v18  ;;  %v14782_v18 = vld [vmem:[#allocation4 + $0x10c] ss:$0 sps:$4 sm:$0x22]  }
 0x730   : > { %13978 = vmatpush3.bf16.msra.mxu1 %v14729_v7  ;;  %13985 = vmatprep.mubr.msk.bf16.mxu1 %vm14883_vm7, %v14882_v48  ;;  %v9039_v16 = vsel %vm5158_vm13, %v9038_v8, %v9037_v23  ;;  %v9165_v7 = vrot.slane %v9156_v39, 5  ;;  %v9290_v61 = vunpack.c.l.b16 %v14764_v45  ;;  %v9388_v39 = vrot.slane %v9288_v44, 7  ;;  %v14780_v45 = vld [vmem:[#allocation4 + $0xbc] ss:$0 sps:$4 sm:$0x22]  }
 0x731   : > { %13979 = vmatprep.subr.bf16.mxu1 %v14882_v48  ;;  %v9041_v3 = vsel %vm5161_vm14, %v9040_v55, %v9039_v16  ;;  %v14767_v55 = vld [vmem:[#allocation4 + $0x134] ss:$0 sps:$4 sm:$0x11]   ;;  %v9296_v16 = vrot.slane %v9288_v44, 6  ;;  %v9304_v41 = vrot.slane %v9292_v26, 2 }
 0x732   : > { %13970 = vmatpush3.bf16.msra.mxu0 %v14732_v31  ;;  %v9043_v29 = vsel %vm5164_vm15, %v9042_v53, %v9041_v3  ;;  %v9289_v53 = vunpack.c.l.b16 %v14763_v28  ;;  %v9293_v40 = vunpack.c.l.b16 %v14767_v55  ;;  %v9300_v54 = vrot.slane %v9290_v61, 4  ;;  %v14779_v28 = vld [vmem:[#allocation4 + $0x94] ss:$0 sps:$4 sm:$0x22]  }
 0x733   : > { %13971 = vmatprep.subr.bf16.mxu0 %v14882_v48  ;;  %v9044_v52 = vpack.c.b16 %v9043_v29, %v9043_v29  ;;  %v14783_v55 = vld [vmem:[#allocation4 + $0x134] ss:$0 sps:$4 sm:$0x22]  }
 0x734   : > { %13980 = vmatpush3.bf16.msra.mxu1 %v14731_v46  ;;  %v9164_v46 = vsel %vm5146_vm8, %v9163_v62, %v9162_v36  ;;  %v9390_v36 = vrot.slane %v9289_v53, 6 }
 0x735   : > { %13981 = vmatprep.subr.bf16.mxu1 %v14882_v48  ;;  %v9166_v31 = vsel %vm5149_vm10, %v9165_v7, %v9164_v46  ;;  %v9398_v46 = vrot.slane %v9293_v40, 2 }
 0x736   : > { %13972 = vmatpush3.bf16.msra.mxu0 %v14734_v2  ;;  %v14761_v2 = vld [vmem:[#allocation4 + $0x44] ss:$0 sps:$4 sm:$0x11]  }
 0x737   : > { %13989 = vmatprep.subr.bf16.mxu0 %v14882_v48  ;;  %v9287_v8 = vunpack.c.l.b16 %v14761_v2  ;;  %v14778_v2 = vld [vmem:[#allocation4 + $0x6c] ss:$0 sps:$4 sm:$0x22]  }
 0x738   : > { %v6154_v1 = vpop.f32.mrb[16].mxu0  ;;  %13982 = vmatpush3.bf16.msra.mxu1 %v14733_v38  ;;  %v9168_v38 = vsel %vm5152_vm11, %v9167_v63, %v9166_v31  ;;  %v14759_v63 = vld [vmem:[%s18368_s7 + $0x4b8] sm:$0xff]   ;;  %v9512_v44 = vunpack.c.l.b16 %v14778_v2  ;;  %v14793_v2 = vld [vmem:[#allocation4 + $0x44] ss:$0 sps:$4 sm:$0x44]  }
 0x739   : > { %v6160_v11 = vadd.f32 %v6154_v1, %v6028_v42  ;;  %v13663_v51 = vpop.f32.mrb[17].mxu0  ;;  %13983 = vmatprep.subr.bf16.mxu1 %v14882_v48  ;;  %v9158_v42 = vunpack.c.l.b16 %v14749_v6  ;;  %13974 = vmatmul.mubr.msk.bf16.vlgmr.msra.gmra.mrb[68].mxu0 %vm3380_vm9, %v9044_v52  ;;  %v14760_v1 = vld [vmem:[#allocation4 + $0x1c] ss:$0 sps:$4 sm:$0x11]   ;;  %v9294_v57 = vrot.slane %v9287_v8, 7  ;;  %v9298_v6 = vrot.slane %v9289_v53, 5 }
 0x73a   : > { %v6157_v17 = vpop.f32.mrb[18].mxu0  ;;  %v6246_v34 = vpop.f32.mrb[16].mxu1  ;;  %13990 = vmatpush3.bf16.msra.mxu0 %v14744_v13  ;;  %13997 = vmatprep.mubr.msk.bf16.mxu0 %vm14883_vm7, %v14882_v48  ;;  %v14757_v51 = vld [vmem:[%s18368_s7 + $0x4b0] sm:$0xff]   ;;  %v9392_v52 = vrot.slane %v9290_v61, 5  ;;  %v9513_v53 = vunpack.c.l.b16 %v14779_v28  ;;  %v9514_v61 = vunpack.c.l.b16 %v14780_v45 }
 0x73b   : > { %v9169_v32 = vrot.slane %v9158_v42, 3  ;;  %v13664_v50 = vpop.f32.mrb[19].mxu0  ;;  %v17996_v47 = vadd.f32 %v6246_v34, %v6160_v11  ;;  %v13675_v37 = vpop.f32.mrb[17].mxu1  ;;  %13991 = vmatprep.subr.bf16.mxu0 %v14882_v48  ;;  %v9286_v11 = vunpack.c.l.b16 %v14760_v1  ;;  %v9306_v42 = vrot.slane %v9293_v40, 1  ;;  %v14788_v28 = vld [vmem:[%s18368_s7 + $0x510] sm:$0xff]  }
 0x73c   : > { %13984 = vmatpush3.bf16.msra.mxu1 %v14735_v12  ;;  %v6249_v59 = vpop.f32.mrb[18].mxu1  ;;  %v14765_v12 = vld [vmem:[#allocation4 + $0xe4] ss:$0 sps:$4 sm:$0x11]   ;;  %v9396_v34 = vrot.slane %v9292_v26, 3  ;;  %v9516_v26 = vunpack.c.l.b16 %v14782_v18  ;;  %v9517_v40 = vunpack.c.l.b16 %v14783_v55 }
 0x73d   : > { %14001 = vmatprep.subr.bf16.mxu1 %v14882_v48  ;;  %v9170_v20 = vsel %vm5155_vm12, %v9169_v32, %v9168_v38  ;;  %v13676_v15 = vpop.f32.mrb[19].mxu1  ;;  %v9386_v30 = vrot.slane %v9286_v11, 1  ;;  %v9291_v23 = vunpack.c.l.b16 %v14765_v12  ;;  %v9295_v4 = vsel %vm5146_vm8, %v9294_v57, %v9286_v11  ;;  %v14777_v1 = vld [vmem:[#allocation4 + $0x44] ss:$0 sps:$4 sm:$0x22]  }
 0x73e   : > { %v9172_v5 = vsel %vm5158_vm13, %v9171_v35, %v9170_v20  ;;  %13992 = vmatpush3.bf16.msra.mxu0 %v14754_v49  ;;  %v9297_v33 = vsel %vm5149_vm10, %v9296_v16, %v9295_v4  ;;  %v14768_v20 = vld [vmem:[%s18368_s7 + $0x4c0] sm:$0xff]   ;;  %v14781_v12 = vld [vmem:[#allocation4 + $0xe4] ss:$0 sps:$4 sm:$0x22]  }
 0x73f   : > { %v9174_v14 = vsel %vm5161_vm14, %v9173_v60, %v9172_v5  ;;  %13993 = vmatprep.subr.bf16.mxu0 %v14882_v48  ;;  %v9387_v3 = vsel %vm5146_vm8, %v9287_v8, %v9386_v30  ;;  %v9302_v58 = vrot.slane %v9291_v23, 3  ;;  %v9299_v25 = vsel %vm5152_vm11, %v9298_v6, %v9297_v33  ;;  %v14774_v33 = vld [vmem:[%s18368_s7 + $0x4d8] sm:$0xff]   ;;  %v14795_v45 = vld [vmem:[#allocation4 + $0x94] ss:$0 sps:$4 sm:$0x44]  }
 0x740   : > { %v9175_v22 = vsel %vm5164_vm15, %v9161_v24, %v9174_v14  ;;  %v9389_v62 = vsel %vm5149_vm10, %v9388_v39, %v9387_v3  ;;  %v9394_v17 = vrot.slane %v9291_v23, 4  ;;  %v9301_v32 = vsel %vm5155_vm12, %v9300_v54, %v9299_v25  ;;  %v14769_v14 = vld [vmem:[%s18368_s7 + $0x4e0] sm:$0xff]   ;;  %v14797_v18 = vld [vmem:[#allocation4 + $0xe4] ss:$0 sps:$4 sm:$0x44]  }
 0x741   : > { %v9176_v43 = vpack.c.b16 %v9175_v22, %v9175_v22  ;;  %v9391_v50 = vsel %vm5152_vm11, %v9390_v36, %v9389_v62  ;;  %v9303_v49 = vsel %vm5158_vm13, %v9302_v58, %v9301_v32  ;;  %v9511_v8 = vunpack.c.l.b16 %v14777_v1  ;;  %v14775_v62 = vld [vmem:[%s18368_s7 + $0x4f8] sm:$0xff]   ;;  %v14792_v1 = vld [vmem:[#allocation4 + $0x1c] ss:$0 sps:$4 sm:$0x44]  }
 0x742   : > { %13994 = vmatpush3.bf16.msra.mxu0 %v14756_v10  ;;  %v9393_v31 = vsel %vm5155_vm12, %v9392_v52, %v9391_v50  ;;  %v9305_v60 = vsel %vm5161_vm14, %v9304_v41, %v9303_v49  ;;  %v9515_v23 = vunpack.c.l.b16 %v14781_v12  ;;  %v9522_v6 = vrot.slane %v9513_v53, 7 }
 0x743   : > { %13986 = vmatmul.mubr.msk.bf16.vlgmr.msra.gmra.mrb[68].mxu1 %vm3380_vm9, %v9176_v43  ;;  %13995 = vmatprep.subr.bf16.mxu0 %v14882_v48  ;;  %v9395_v37 = vsel %vm5158_vm13, %v9394_v17, %v9393_v31  ;;  %v9307_v59 = vsel %vm5164_vm15, %v9306_v42, %v9305_v60  ;;  %v14770_v43 = vld [vmem:[%s18368_s7 + $0x4c8] sm:$0xff]   ;;  %v9519_v57 = vrot.slane %v9511_v8, 1  ;;  %v9524_v54 = vrot.slane %v9514_v61, 6 }
 0x744   : > { %14002 = vmatpush3.bf16.msra.mxu1 %v14753_v21  ;;  %14009 = vmatprep.mubr.msk.bf16.mxu1 %vm14883_vm7, %v14882_v48  ;;  %v9308_v5 = vpack.c.b16 %v9307_v59, %v9307_v59  ;;  %v9611_v3 = vrot.slane %v9511_v8, 2  ;;  %v9526_v41 = vrot.slane %v9515_v23, 5  ;;  %v9528_v39 = vrot.slane %v9516_v26, 4  ;;  %v14798_v8 = vld [vmem:[#allocation4 + $0x10c] ss:$0 sps:$4 sm:$0x44]  }
 0x745   : > { %14003 = vmatprep.subr.bf16.mxu1 %v14882_v48  ;;  %v9530_v36 = vrot.slane %v9517_v40, 3  ;;  %v9734_v12 = vunpack.c.l.b16 %v14792_v1  ;;  %v14803_v1 = vld [vmem:[%s18368_s7 + $0x568] sm:$0xff]  }
 0x746   : > { %13996 = vmatpush3.bf16.msra.mxu0 %v14758_v0  ;;  %v14776_v0 = vld [vmem:[#allocation4 + $0x1c] ss:$0 sps:$4 sm:$0x22]  }
 0x747   : > { %14013 = vmatprep.subr.bf16.mxu0 %v14882_v48  ;;  %v9510_v11 = vunpack.c.l.b16 %v14776_v0  ;;  %v14787_v0 = vld [vmem:[%s18368_s7 + $0x528] sm:$0xff]  }
 0x748   : > { %v6378_v13 = vpop.f32.mrb[20].mxu0  ;;  %14004 = vmatpush3.bf16.msra.mxu1 %v14755_v27  ;;  %v14771_v27 = vld [vmem:[%s18368_s7 + $0x4e8] sm:$0xff]  }
 0x749   : > { %14005 = vmatprep.subr.bf16.mxu1 %v14882_v48  ;;  %v13687_v29 = vpop.f32.mrb[21].mxu0  ;;  %v6384_v35 = vadd.f32 %v6378_v13, %v17996_v47  ;;  %v9397_v47 = vsel %vm5161_vm14, %v9396_v34, %v9395_v37  ;;  %13998 = vmatmul.mubr.msk.bf16.vlgmr.msra.gmra.mrb[72].mxu0 %vm3380_vm9, %v9308_v5  ;;  %v9518_v30 = vrot.slane %v9510_v11, 2  ;;  %v9610_v16 = vrot.slane %v9510_v11, 3  ;;  %v14796_v11 = vld [vmem:[#allocation4 + $0xbc] ss:$0 sps:$4 sm:$0x44]  }
 0x74a   : > { %v6470_v9 = vpop.f32.mrb[20].mxu1  ;;  %v6381_v56 = vpop.f32.mrb[22].mxu0  ;;  %v9399_v21 = vsel %vm5164_vm15, %v9398_v46, %v9397_v47  ;;  %14014 = vmatpush3.bf16.msra.mxu0 %v14768_v20  ;;  %14021 = vmatprep.mubr.msk.bf16.mxu0 %vm14883_vm7, %v14882_v48  ;;  %v9613_v29 = vrot.slane %v9512_v44, 1 }
 0x74b   : > { %v13688_v7 = vpop.f32.mrb[23].mxu0  ;;  %v18049_v24 = vadd.f32 %v6470_v9, %v6384_v35  ;;  %v13699_v38 = vpop.f32.mrb[21].mxu1  ;;  %v9400_v22 = vpack.c.b16 %v9399_v21, %v9399_v21  ;;  %14015 = vmatprep.subr.bf16.mxu0 %v14882_v48  ;;  %v9520_v58 = vsel %vm5146_vm8, %v9519_v57, %v9518_v30  ;;  %v9612_v52 = vsel %vm5146_vm8, %v9611_v3, %v9610_v16 }
 0x74c   : > { %14006 = vmatpush3.bf16.msra.mxu1 %v14757_v51  ;;  %v6473_v15 = vpop.f32.mrb[22].mxu1  ;;  %v14773_v51 = vld [vmem:[%s18368_s7 + $0x4f0] sm:$0xff]   ;;  %v9521_v42 = vsel %vm5149_vm10, %v9512_v44, %v9520_v58  ;;  %v9616_v56 = vrot.slane %v9514_v61, 7  ;;  %v9614_v34 = vsel %vm5149_vm10, %v9613_v29, %v9612_v52  ;;  %v9618_v7 = vrot.slane %v9515_v23, 6 }
 0x74d   : > { %14007 = vmatprep.subr.bf16.mxu1 %v14882_v48  ;;  %v13700_v10 = vpop.f32.mrb[23].mxu1  ;;  %v9523_v17 = vsel %vm5152_vm11, %v9522_v6, %v9521_v42  ;;  %v9615_v46 = vsel %vm5152_vm11, %v9513_v53, %v9614_v34  ;;  %v9622_v35 = vrot.slane %v9517_v40, 4  ;;  %v9735_v44 = vunpack.c.l.b16 %v14793_v2  ;;  %v14799_v53 = vld [vmem:[#allocation4 + $0x134] ss:$0 sps:$4 sm:$0x44]   ;;  %v14789_v23 = vld [vmem:[%s18368_s7 + $0x530] sm:$0xff]  }
 0x74e   : > { %14016 = vmatpush3.bf16.msra.mxu0 %v14770_v43  ;;  %v9525_v50 = vsel %vm5155_vm12, %v9524_v54, %v9523_v17  ;;  %v9617_v60 = vsel %vm5155_vm12, %v9616_v56, %v9615_v46  ;;  %v14785_v10 = vld [vmem:[%s18368_s7 + $0x520] sm:$0xff]   ;;  %v9737_v61 = vunpack.c.l.b16 %v14795_v45  ;;  %v9738_v30 = vunpack.c.l.b16 %v14796_v11  ;;  %v14790_v42 = vld [vmem:[%s18368_s7 + $0x518] sm:$0xff]   ;;  %v14808_v2 = vld [vmem:[#allocation4 + $0x20] ss:$0 sps:$4 sm:$0x22]  }
 0x74f   : > { %14017 = vmatprep.subr.bf16.mxu0 %v14882_v48  ;;  %v9527_v31 = vsel %vm5158_vm13, %v9526_v41, %v9525_v50  ;;  %v9619_v38 = vsel %vm5158_vm13, %v9618_v7, %v9617_v60  ;;  %v9740_v57 = vunpack.c.l.b16 %v14798_v8  ;;  %v9743_v16 = vrot.slane %v9735_v44, 3  ;;  %v14791_v17 = vld [vmem:[%s18368_s7 + $0x538] sm:$0xff]   ;;  %v14804_v45 = vld [vmem:[%s18368_s7 + $0x550] sm:$0xff]   ;;  %v14811_v11 = vld [vmem:[#allocation4 + $0x98] ss:$0 sps:$4 sm:$0x22]  }
 0x750   : > { %14008 = vmatpush3.bf16.msra.mxu1 %v14759_v63  ;;  %v9620_v63 = vrot.slane %v9516_v26, 5  ;;  %v9529_v37 = vsel %vm5161_vm14, %v9528_v39, %v9527_v31  ;;  %v9739_v26 = vunpack.c.l.b16 %v14797_v18  ;;  %v9741_v6 = vunpack.c.l.b16 %v14799_v53  ;;  %v14813_v8 = vld [vmem:[#allocation4 + $0xe8] ss:$0 sps:$4 sm:$0x22]  }
 0x751   : > { %14025 = vmatprep.subr.bf16.mxu1 %v14882_v48  ;;  %v9531_v47 = vsel %vm5164_vm15, %v9530_v36, %v9529_v37  ;;  %v9747_v54 = vrot.slane %v9737_v61, 1  ;;  %v9834_v3 = vrot.slane %v9734_v12, 5  ;;  %v9752_v29 = vrot.slane %v9740_v57, 6 }
 0x752   : > { %14018 = vmatpush3.bf16.msra.mxu0 %v14772_v19  ;;  %v9621_v15 = vsel %vm5161_vm14, %v9620_v63, %v9619_v38  ;;  %v9532_v21 = vpack.c.b16 %v9531_v47, %v9531_v47  ;;  %v14794_v19 = vld [vmem:[#allocation4 + $0x6c] ss:$0 sps:$4 sm:$0x44]   ;;  %v9750_v39 = vrot.slane %v9739_v26, 7  ;;  %v9754_v52 = vrot.slane %v9741_v6, 5 }
 0x753   : > { %14010 = vmatmul.mubr.msk.bf16.vlgmr.msra.gmra.mrb[72].mxu1 %vm3380_vm9, %v9400_v22  ;;  %14019 = vmatprep.subr.bf16.mxu0 %v14882_v48  ;;  %v9736_v55 = vunpack.c.l.b16 %v14794_v19  ;;  %v9841_v63 = vrot.slane %v9738_v30, 1  ;;  %v14809_v19 = vld [vmem:[#allocation4 + $0x48] ss:$0 sps:$4 sm:$0x22]   ;;  %v9958_v18 = vunpack.c.l.b16 %v14808_v2  ;;  %v14819_v2 = vld [vmem:[%s18368_s7 + $0x5a8] sm:$0xff]  }
 0x754   : > { %14026 = vmatpush3.bf16.msra.mxu1 %v14769_v14  ;;  %14033 = vmatprep.mubr.msk.bf16.mxu1 %vm14883_vm7, %v14882_v48  ;;  %v9623_v14 = vsel %vm5164_vm15, %v9622_v35, %v9621_v15 }
 0x755   : > { %14027 = vmatprep.subr.bf16.mxu1 %v14882_v48  ;;  %v9624_v43 = vpack.c.b16 %v9623_v14, %v9623_v14 }
 0x756   : > { %14020 = vmatpush3.bf16.msra.mxu0 %v14774_v33 }
 0x757   : > { %14037 = vmatprep.subr.bf16.mxu0 %v14882_v48 }
 0x758   : > { %14028 = vmatpush3.bf16.msra.mxu1 %v14771_v27  ;;  %v6602_v13 = vpop.f32.mrb[24].mxu0  ;;  %v14786_v27 = vld [vmem:[%s18368_s7 + $0x508] sm:$0xff]  }
 0x759   : > { %14029 = vmatprep.subr.bf16.mxu1 %v14882_v48  ;;  %v13711_v4 = vpop.f32.mrb[25].mxu0  ;;  %v6608_v49 = vadd.f32 %v6602_v13, %v18049_v24  ;;  %v14784_v24 = vld [vmem:[%s18368_s7 + $0x500] sm:$0xff]   ;;  %14022 = vmatmul.mubr.msk.bf16.vlgmr.msra.gmra.mrb[76].mxu0 %vm3380_vm9, %v9532_v21  ;;  %v9745_v13 = vrot.slane %v9736_v55, 2 }
 0x75a   : > { %v6605_v9 = vpop.f32.mrb[26].mxu0  ;;  %v6694_v25 = vpop.f32.mrb[24].mxu1  ;;  %14038 = vmatpush3.bf16.msra.mxu0 %v14784_v24  ;;  %14045 = vmatprep.mubr.msk.bf16.mxu0 %vm14883_vm7, %v14882_v48  ;;  %v9835_v4 = vrot.slane %v9735_v44, 4  ;;  %v14814_v44 = vld [vmem:[#allocation4 + $0x110] ss:$0 sps:$4 sm:$0x22]  }
 0x75b   : > { %v13712_v32 = vpop.f32.mrb[27].mxu0  ;;  %v18103_v59 = vadd.f32 %v6694_v25, %v6608_v49  ;;  %v13723_v20 = vpop.f32.mrb[25].mxu1  ;;  %14039 = vmatprep.subr.bf16.mxu0 %v14882_v48  ;;  %v9837_v9 = vrot.slane %v9736_v55, 3  ;;  %v9839_v25 = vrot.slane %v9737_v61, 2  ;;  %v9846_v49 = vrot.slane %v9741_v6, 6 }
 0x75c   : > { %14030 = vmatpush3.bf16.msra.mxu1 %v14773_v51  ;;  %v6697_v5 = vpop.f32.mrb[26].mxu1  ;;  %v9742_v51 = vrot.slane %v9734_v12, 4  ;;  %v9836_v56 = vsel %vm5146_vm8, %v9835_v4, %v9834_v3  ;;  %v9844_v32 = vrot.slane %v9740_v57, 7  ;;  %v14812_v12 = vld [vmem:[#allocation4 + $0xc0] ss:$0 sps:$4 sm:$0x22]   ;;  %v9959_v55 = vunpack.c.l.b16 %v14809_v19 }
 0x75d   : > { %14031 = vmatprep.subr.bf16.mxu1 %v14882_v48  ;;  %v13724_v22 = vpop.f32.mrb[27].mxu1  ;;  %v9838_v7 = vsel %vm5149_vm10, %v9837_v9, %v9836_v56  ;;  %v14815_v61 = vld [vmem:[#allocation4 + $0x138] ss:$0 sps:$4 sm:$0x22]   ;;  %v9963_v57 = vunpack.c.l.b16 %v14813_v8 }
 0x75e   : > { %14040 = vmatpush3.bf16.msra.mxu0 %v14786_v27  ;;  %v9744_v41 = vsel %vm5146_vm8, %v9743_v16, %v9742_v51  ;;  %v9840_v35 = vsel %vm5152_vm11, %v9839_v25, %v9838_v7  ;;  %v14801_v22 = vld [vmem:[%s18368_s7 + $0x560] sm:$0xff]   ;;  %v9962_v51 = vunpack.c.l.b16 %v14812_v12  ;;  %v9964_v16 = vunpack.c.l.b16 %v14814_v44  ;;  %v14824_v19 = vld [vmem:[#allocation4 + $0x20] ss:$0 sps:$4 sm:$0x44]  }
 0x75f   : > { %14041 = vmatprep.subr.bf16.mxu0 %v14882_v48  ;;  %v9746_v36 = vsel %vm5149_vm10, %v9745_v13, %v9744_v41  ;;  %v9842_v37 = vsel %vm5155_vm12, %v9841_v63, %v9840_v35  ;;  %v9967_v13 = vrot.slane %v9959_v55, 1  ;;  %v14827_v12 = vld [vmem:[#allocation4 + $0x98] ss:$0 sps:$4 sm:$0x44]   ;;  %v10182_v8 = vunpack.c.l.b16 %v14824_v19  ;;  %v14835_v19 = vld [vmem:[%s18368_s7 + $0x5e8] sm:$0xff]  }
 0x760   : > { %14032 = vmatpush3.bf16.msra.mxu1 %v14775_v62  ;;  %v9748_v34 = vsel %vm5152_vm11, %v9747_v54, %v9746_v36  ;;  %v9843_v20 = vsel %vm5158_vm13, %v9739_v26, %v9842_v37  ;;  %v14805_v26 = vld [vmem:[%s18368_s7 + $0x570] sm:$0xff]   ;;  %v9965_v54 = vunpack.c.l.b16 %v14815_v61  ;;  %v9972_v4 = vrot.slane %v9962_v51, 6  ;;  %v14806_v36 = vld [vmem:[%s18368_s7 + $0x558] sm:$0xff]  }
 0x761   : > { %14049 = vmatprep.subr.bf16.mxu1 %v14882_v48  ;;  %v9749_v46 = vsel %vm5155_vm12, %v9738_v30, %v9748_v34  ;;  %v9845_v5 = vsel %vm5161_vm14, %v9844_v32, %v9843_v20  ;;  %v9961_v30 = vunpack.c.l.b16 %v14811_v11  ;;  %v9976_v9 = vrot.slane %v9964_v16, 4  ;;  %v14807_v34 = vld [vmem:[%s18368_s7 + $0x578] sm:$0xff]   ;;  %v14820_v11 = vld [vmem:[%s18368_s7 + $0x590] sm:$0xff]  }
 0x762   : > { %14042 = vmatpush3.bf16.msra.mxu0 %v14788_v28  ;;  %v9751_v60 = vsel %vm5158_vm13, %v9750_v39, %v9749_v46  ;;  %v14810_v28 = vld [vmem:[#allocation4 + $0x70] ss:$0 sps:$4 sm:$0x22]   ;;  %v9978_v56 = vrot.slane %v9965_v54, 3  ;;  %v10066_v32 = vrot.slane %v9963_v57, 6 }
 0x763   : > { %14034 = vmatmul.mubr.msk.bf16.vlgmr.msra.gmra.mrb[76].mxu1 %vm3380_vm9, %v9624_v43  ;;  %14043 = vmatprep.subr.bf16.mxu0 %v14882_v48  ;;  %v9753_v38 = vsel %vm5161_vm14, %v9752_v29, %v9751_v60  ;;  %v9960_v53 = vunpack.c.l.b16 %v14810_v28  ;;  %v9970_v3 = vrot.slane %v9961_v30, 7  ;;  %v9974_v29 = vrot.slane %v9963_v57, 5  ;;  %v14825_v28 = vld [vmem:[#allocation4 + $0x48] ss:$0 sps:$4 sm:$0x44]  }
 0x764   : > { %14050 = vmatpush3.bf16.msra.mxu1 %v14785_v10  ;;  %14057 = vmatprep.mubr.msk.bf16.mxu1 %vm14883_vm7, %v14882_v48  ;;  %v9755_v15 = vsel %vm5164_vm15, %v9754_v52, %v9753_v38  ;;  %v9847_v10 = vsel %vm5164_vm15, %v9846_v49, %v9845_v5  ;;  %v14829_v44 = vld [vmem:[#allocation4 + $0xe8] ss:$0 sps:$4 sm:$0x44]  }
 0x765   : > { %14051 = vmatprep.subr.bf16.mxu1 %v14882_v48  ;;  %v9756_v14 = vpack.c.b16 %v9755_v15, %v9755_v15  ;;  %v9848_v27 = vpack.c.b16 %v9847_v10, %v9847_v10  ;;  %v14821_v57 = vld [vmem:[%s18368_s7 + $0x5b0] sm:$0xff]  }
 0x766   : > { %14044 = vmatpush3.bf16.msra.mxu0 %v14790_v42 }
 0x767   : > { %14061 = vmatprep.subr.bf16.mxu0 %v14882_v48 }
 0x768   : > { %14052 = vmatpush3.bf16.msra.mxu1 %v14787_v0  ;;  %v6826_v40 = vpop.f32.mrb[28].mxu0  ;;  %v14802_v0 = vld [vmem:[%s18368_s7 + $0x548] sm:$0xff]  }
 0x769   : > { %14053 = vmatprep.subr.bf16.mxu1 %v14882_v48  ;;  %v13735_v58 = vpop.f32.mrb[29].mxu0  ;;  %v6832_v31 = vadd.f32 %v6826_v40, %v18103_v59  ;;  %v14800_v59 = vld [vmem:[%s18368_s7 + $0x540] sm:$0xff]   ;;  %14046 = vmatmul.mubr.msk.bf16.vlgmr.msra.gmra.mrb[80].mxu0 %vm3380_vm9, %v9756_v14  ;;  %v10058_v40 = vrot.slane %v9958_v18, 3 }
 0x76a   : > { %v6829_v33 = vpop.f32.mrb[30].mxu0  ;;  %v6918_v62 = vpop.f32.mrb[28].mxu1  ;;  %14062 = vmatpush3.bf16.msra.mxu0 %v14800_v59  ;;  %14069 = vmatprep.mubr.msk.bf16.mxu0 %vm14883_vm7, %v14882_v48  ;;  %v10059_v58 = vrot.slane %v9959_v55, 2  ;;  %v14830_v55 = vld [vmem:[#allocation4 + $0x110] ss:$0 sps:$4 sm:$0x44]  }
 0x76b   : > { %v13736_v50 = vpop.f32.mrb[31].mxu0  ;;  %v18158_v47 = vadd.f32 %v6918_v62, %v6832_v31  ;;  %v13747_v24 = vpop.f32.mrb[29].mxu1  ;;  %14063 = vmatprep.subr.bf16.mxu0 %v14882_v48  ;;  %v10061_v33 = vrot.slane %v9960_v53, 1  ;;  %v10064_v62 = vrot.slane %v9962_v51, 7  ;;  %v10070_v31 = vrot.slane %v9965_v54, 4 }
 0x76c   : > { %14054 = vmatpush3.bf16.msra.mxu1 %v14789_v23  ;;  %v6921_v21 = vpop.f32.mrb[30].mxu1  ;;  %v9966_v23 = vrot.slane %v9958_v18, 2  ;;  %v10060_v25 = vsel %vm5146_vm8, %v10059_v58, %v10058_v40  ;;  %v10068_v50 = vrot.slane %v9964_v16, 5  ;;  %v14828_v18 = vld [vmem:[#allocation4 + $0xc0] ss:$0 sps:$4 sm:$0x44]   ;;  %v10185_v51 = vunpack.c.l.b16 %v14827_v12 }
 0x76d   : > { %14055 = vmatprep.subr.bf16.mxu1 %v14882_v48  ;;  %v13748_v43 = vpop.f32.mrb[31].mxu1  ;;  %v10062_v63 = vsel %vm5149_vm10, %v10061_v33, %v10060_v25  ;;  %v10187_v16 = vunpack.c.l.b16 %v14829_v44  ;;  %v10282_v58 = vrot.slane %v10182_v8, 5  ;;  %v14836_v12 = vld [vmem:[%s18368_s7 + $0x5d0] sm:$0xff]  }
 0x76e   : > { %14064 = vmatpush3.bf16.msra.mxu0 %v14802_v0  ;;  %v9968_v39 = vsel %vm5146_vm8, %v9967_v13, %v9966_v23  ;;  %v10063_v49 = vsel %vm5152_vm11, %v9961_v30, %v10062_v63  ;;  %v14817_v43 = vld [vmem:[%s18368_s7 + $0x5a0] sm:$0xff]   ;;  %v10186_v23 = vunpack.c.l.b16 %v14828_v18  ;;  %v10188_v13 = vunpack.c.l.b16 %v14830_v55  ;;  %v14837_v55 = vld [vmem:[%s18368_s7 + $0x5f0] sm:$0xff]  }
 0x76f   : > { %14065 = vmatprep.subr.bf16.mxu0 %v14882_v48  ;;  %v9969_v52 = vsel %vm5149_vm10, %v9960_v53, %v9968_v39  ;;  %v10065_v38 = vsel %vm5155_vm12, %v10064_v62, %v10063_v49  ;;  %v10183_v53 = vunpack.c.l.b16 %v14825_v28  ;;  %v14831_v30 = vld [vmem:[#allocation4 + $0x138] ss:$0 sps:$4 sm:$0x44]   ;;  %v14840_v28 = vld [vmem:[#allocation4 + $0x20] ss:$0 sps:$4 sm:$0x88]  }
 0x770   : > { %14056 = vmatpush3.bf16.msra.mxu1 %v14791_v17  ;;  %v9971_v7 = vsel %vm5152_vm11, %v9970_v3, %v9969_v52  ;;  %v10067_v24 = vsel %vm5158_vm13, %v10066_v32, %v10065_v38  ;;  %v10189_v3 = vunpack.c.l.b16 %v14831_v30  ;;  %v10200_v33 = vrot.slane %v10188_v13, 6  ;;  %v14822_v52 = vld [vmem:[%s18368_s7 + $0x598] sm:$0xff]   ;;  %v14843_v18 = vld [vmem:[#allocation4 + $0x98] ss:$0 sps:$4 sm:$0x88]  }
 0x771   : > { %14073 = vmatprep.subr.bf16.mxu1 %v14882_v48  ;;  %v9973_v35 = vsel %vm5155_vm12, %v9972_v4, %v9971_v7  ;;  %v10069_v21 = vsel %vm5161_vm14, %v10068_v50, %v10067_v24  ;;  %v10191_v40 = vrot.slane %v10183_v53, 3  ;;  %v10195_v4 = vrot.slane %v10185_v51, 1  ;;  %v14823_v7 = vld [vmem:[%s18368_s7 + $0x5b8] sm:$0xff]  }
 0x772   : > { %14066 = vmatpush3.bf16.msra.mxu0 %v14804_v45  ;;  %v9975_v37 = vsel %vm5158_vm13, %v9974_v29, %v9973_v35  ;;  %v14826_v45 = vld [vmem:[#allocation4 + $0x70] ss:$0 sps:$4 sm:$0x44]   ;;  %v10202_v25 = vrot.slane %v10189_v3, 5  ;;  %v10289_v50 = vrot.slane %v10186_v23, 1  ;;  %v10406_v44 = vunpack.c.l.b16 %v14840_v28 }
 0x773   : > { %14058 = vmatmul.mubr.msk.bf16.vlgmr.msra.gmra.mrb[80].mxu1 %vm3380_vm9, %v9848_v27  ;;  %14067 = vmatprep.subr.bf16.mxu0 %v14882_v48  ;;  %v9977_v20 = vsel %vm5161_vm14, %v9976_v9, %v9975_v37  ;;  %v10184_v61 = vunpack.c.l.b16 %v14826_v45  ;;  %v10198_v9 = vrot.slane %v10187_v16, 7  ;;  %v14841_v45 = vld [vmem:[#allocation4 + $0x48] ss:$0 sps:$4 sm:$0x88]  }
 0x774   : > { %14074 = vmatpush3.bf16.msra.mxu1 %v14801_v22  ;;  %14081 = vmatprep.mubr.msk.bf16.mxu1 %vm14883_vm7, %v14882_v48  ;;  %v9979_v5 = vsel %vm5164_vm15, %v9978_v56, %v9977_v20  ;;  %v10071_v22 = vsel %vm5164_vm15, %v10070_v31, %v10069_v21  ;;  %v10407_v30 = vunpack.c.l.b16 %v14841_v45  ;;  %v14855_v28 = vld [vmem:[#allocation4 + $0x9c] ss:$0 sps:$4 sm:$0x11]  }
 0x775   : > { %14075 = vmatprep.subr.bf16.mxu1 %v14882_v48  ;;  %v9980_v10 = vpack.c.b16 %v9979_v5, %v9979_v5  ;;  %v10072_v0 = vpack.c.b16 %v10071_v22, %v10071_v22 }
 0x776   : > { %14068 = vmatpush3.bf16.msra.mxu0 %v14806_v36 }
 0x777   : > { %14085 = vmatprep.subr.bf16.mxu0 %v14882_v48 }
 0x778   : > { %14076 = vmatpush3.bf16.msra.mxu1 %v14803_v1  ;;  %v7050_v6 = vpop.f32.mrb[32].mxu0  ;;  %v14818_v1 = vld [vmem:[%s18368_s7 + $0x588] sm:$0xff]  }
 0x779   : > { %14077 = vmatprep.subr.bf16.mxu1 %v14882_v48  ;;  %v13759_v41 = vpop.f32.mrb[33].mxu0  ;;  %v7056_v60 = vadd.f32 %v7050_v6, %v18158_v47  ;;  %v14816_v47 = vld [vmem:[%s18368_s7 + $0x580] sm:$0xff]   ;;  %14070 = vmatmul.mubr.msk.bf16.vlgmr.msra.gmra.mrb[84].mxu0 %vm3380_vm9, %v9980_v10  ;;  %v10193_v6 = vrot.slane %v10184_v61, 2 }
 0x77a   : > { %v7053_v42 = vpop.f32.mrb[34].mxu0  ;;  %v7142_v17 = vpop.f32.mrb[32].mxu1  ;;  %14086 = vmatpush3.bf16.msra.mxu0 %v14816_v47  ;;  %14093 = vmatprep.mubr.msk.bf16.mxu0 %vm14883_vm7, %v14882_v48  ;;  %v10283_v41 = vrot.slane %v10183_v53, 4  ;;  %v14845_v53 = vld [vmem:[#allocation4 + $0xe8] ss:$0 sps:$4 sm:$0x88]  }
 0x77b   : > { %v13760_v46 = vpop.f32.mrb[35].mxu0  ;;  %v18213_v15 = vadd.f32 %v7142_v17, %v7056_v60  ;;  %v13771_v59 = vpop.f32.mrb[33].mxu1  ;;  %14087 = vmatprep.subr.bf16.mxu0 %v14882_v48  ;;  %v10285_v42 = vrot.slane %v10184_v61, 3  ;;  %v10287_v17 = vrot.slane %v10185_v51, 2  ;;  %v10294_v60 = vrot.slane %v10189_v3, 6 }
 0x77c   : > { %14078 = vmatpush3.bf16.msra.mxu1 %v14805_v26  ;;  %v7145_v14 = vpop.f32.mrb[34].mxu1  ;;  %v10190_v26 = vrot.slane %v10182_v8, 4  ;;  %v10284_v62 = vsel %vm5146_vm8, %v10283_v41, %v10282_v58  ;;  %v10292_v46 = vrot.slane %v10188_v13, 7  ;;  %v14844_v8 = vld [vmem:[#allocation4 + $0xc0] ss:$0 sps:$4 sm:$0x88]   ;;  %v10411_v13 = vunpack.c.l.b16 %v14845_v53 }
 0x77d   : > { %14079 = vmatprep.subr.bf16.mxu1 %v14882_v48  ;;  %v13772_v27 = vpop.f32.mrb[35].mxu1  ;;  %v10286_v32 = vsel %vm5149_vm10, %v10285_v42, %v10284_v62  ;;  %v14846_v61 = vld [vmem:[#allocation4 + $0x110] ss:$0 sps:$4 sm:$0x88]  }
 0x77e   : > { %14088 = vmatpush3.bf16.msra.mxu0 %v14818_v1  ;;  %v10192_v29 = vsel %vm5146_vm8, %v10191_v40, %v10190_v26  ;;  %v10288_v31 = vsel %vm5152_vm11, %v10287_v17, %v10286_v32  ;;  %v14833_v27 = vld [vmem:[%s18368_s7 + $0x5e0] sm:$0xff]   ;;  %v10409_v26 = vunpack.c.l.b16 %v14843_v18  ;;  %v10412_v40 = vunpack.c.l.b16 %v14846_v61  ;;  %v14839_v62 = vld [vmem:[%s18368_s7 + $0x5f8] sm:$0xff]  }
 0x77f   : > { %14089 = vmatprep.subr.bf16.mxu0 %v14882_v48  ;;  %v10194_v56 = vsel %vm5149_vm10, %v10193_v6, %v10192_v29  ;;  %v10290_v20 = vsel %vm5155_vm12, %v10289_v50, %v10288_v31  ;;  %v10415_v6 = vrot.slane %v10407_v30, 5  ;;  %v10506_v29 = vrot.slane %v10406_v44, 7 }
 0x780   : > { %14080 = vmatpush3.bf16.msra.mxu1 %v14807_v34  ;;  %v10196_v63 = vsel %vm5152_vm11, %v10195_v4, %v10194_v56  ;;  %v10291_v59 = vsel %vm5158_vm13, %v10187_v16, %v10290_v20  ;;  %v10414_v16 = vrot.slane %v10406_v44, 6  ;;  %v10419_v41 = vrot.slane %v10409_v26, 3  ;;  %v14858_v44 = vld [vmem:[#allocation4 + $0x114] ss:$0 sps:$4 sm:$0x11]  }
 0x781   : > { %14097 = vmatprep.subr.bf16.mxu1 %v14882_v48  ;;  %v10197_v49 = vsel %vm5155_vm12, %v10186_v23, %v10196_v63  ;;  %v10293_v14 = vsel %vm5161_vm14, %v10292_v46, %v10291_v59  ;;  %v14847_v23 = vld [vmem:[#allocation4 + $0x138] ss:$0 sps:$4 sm:$0x88]   ;;  %v10423_v42 = vrot.slane %v10411_v13, 1  ;;  %v10633_v61 = vunpack.c.l.b16 %v14855_v28 }
 0x782   : > { %14090 = vmatpush3.bf16.msra.mxu0 %v14820_v11  ;;  %v10199_v38 = vsel %vm5158_vm13, %v10198_v9, %v10197_v49  ;;  %v14842_v11 = vld [vmem:[#allocation4 + $0x70] ss:$0 sps:$4 sm:$0x88]   ;;  %v10413_v58 = vunpack.c.l.b16 %v14847_v23 }
 0x783   : > { %14082 = vmatmul.mubr.msk.bf16.vlgmr.msra.gmra.mrb[84].mxu1 %vm3380_vm9, %v10072_v0  ;;  %14091 = vmatprep.subr.bf16.mxu0 %v14882_v48  ;;  %v10201_v24 = vsel %vm5161_vm14, %v10200_v33, %v10199_v38  ;;  %v10408_v51 = vunpack.c.l.b16 %v14842_v11  ;;  %v10416_v33 = vsel %vm5146_vm8, %v10415_v6, %v10414_v16  ;;  %v14856_v11 = vld [vmem:[#allocation4 + $0xc4] ss:$0 sps:$4 sm:$0x11]   ;;  %v10636_v16 = vunpack.c.l.b16 %v14858_v44 }
 0x784   : > { %14098 = vmatpush3.bf16.msra.mxu1 %v14817_v43  ;;  %14105 = vmatprep.mubr.msk.bf16.mxu1 %vm14883_vm7, %v14882_v48  ;;  %v10203_v21 = vsel %vm5164_vm15, %v10202_v25, %v10201_v24  ;;  %v10295_v43 = vsel %vm5164_vm15, %v10294_v60, %v10293_v14  ;;  %v14838_v25 = vld [vmem:[%s18368_s7 + $0x5d8] sm:$0xff]   ;;  %v10426_v50 = vrot.slane %v10413_v58, 7  ;;  %v10517_v60 = vrot.slane %v10412_v40, 1 }
 0x785   : > { %14099 = vmatprep.subr.bf16.mxu1 %v14882_v48  ;;  %v10204_v22 = vpack.c.b16 %v10203_v21, %v10203_v21  ;;  %v10296_v1 = vpack.c.b16 %v10295_v43, %v10295_v43  ;;  %v10642_v6 = vrot.slane %v10633_v61, 5 }
 0x786   : > { %14092 = vmatpush3.bf16.msra.mxu0 %v14822_v52  ;;  %v10509_v52 = vrot.slane %v10408_v51, 5 }
 0x787   : > { %14109 = vmatprep.subr.bf16.mxu0 %v14882_v48 }
 0x788   : > { %14100 = vmatpush3.bf16.msra.mxu1 %v14819_v2  ;;  %v7274_v54 = vpop.f32.mrb[36].mxu0  ;;  %v14834_v2 = vld [vmem:[%s18368_s7 + $0x5c8] sm:$0xff]  }
 0x789   : > { %14101 = vmatprep.subr.bf16.mxu1 %v14882_v48  ;;  %v13783_v39 = vpop.f32.mrb[37].mxu0  ;;  %v7280_v37 = vadd.f32 %v7274_v54, %v18213_v15  ;;  %v14832_v15 = vld [vmem:[%s18368_s7 + $0x5c0] sm:$0xff]   ;;  %14094 = vmatmul.mubr.msk.bf16.vlgmr.msra.gmra.mrb[88].mxu0 %vm3380_vm9, %v10204_v22  ;;  %v10417_v54 = vrot.slane %v10408_v51, 4 }
 0x78a   : > { %v7277_v36 = vpop.f32.mrb[38].mxu0  ;;  %v7366_v34 = vpop.f32.mrb[36].mxu1  ;;  %14110 = vmatpush3.bf16.msra.mxu0 %v14832_v15  ;;  %14117 = vmatprep.mubr.msk.bf16.mxu0 %vm14883_vm7, %v14882_v48 }
 0x78b   : > { %v13784_v35 = vpop.f32.mrb[39].mxu0  ;;  %v18268_v5 = vadd.f32 %v7366_v34, %v7280_v37  ;;  %v13795_v47 = vpop.f32.mrb[37].mxu1  ;;  %14111 = vmatprep.subr.bf16.mxu0 %v14882_v48  ;;  %v10507_v36 = vrot.slane %v10407_v30, 6  ;;  %v10418_v17 = vsel %vm5149_vm10, %v10417_v54, %v10416_v33  ;;  %v10511_v34 = vrot.slane %v10409_v26, 4  ;;  %v14850_v33 = vld [vmem:[%s18368_s7 + $0x610] sm:$0xff]  }
 0x78c   : > { %14102 = vmatpush3.bf16.msra.mxu1 %v14821_v57  ;;  %v7369_v10 = vpop.f32.mrb[38].mxu1  ;;  %v10410_v57 = vunpack.c.l.b16 %v14844_v8  ;;  %v10420_v32 = vsel %vm5152_vm11, %v10419_v41, %v10418_v17  ;;  %v10515_v35 = vrot.slane %v10411_v13, 2  ;;  %v10634_v30 = vunpack.c.l.b16 %v14856_v11 }
 0x78d   : > { %14103 = vmatprep.subr.bf16.mxu1 %v14882_v48  ;;  %v13796_v0 = vpop.f32.mrb[39].mxu1  ;;  %v10508_v46 = vsel %vm5146_vm8, %v10507_v36, %v10506_v29  ;;  %v10648_v36 = vrot.slane %v10636_v16, 2 }
 0x78e   : > { %14112 = vmatpush3.bf16.msra.mxu0 %v14834_v2  ;;  %v10421_v39 = vrot.slane %v10410_v57, 2  ;;  %v10510_v31 = vsel %vm5149_vm10, %v10509_v52, %v10508_v46  ;;  %v14853_v0 = vld [vmem:[#allocation4 + $0x4c] ss:$0 sps:$4 sm:$0x11]   ;;  %v14849_v2 = vld [vmem:[%s18368_s7 + $0x608] sm:$0xff]  }
 0x78f   : > { %14113 = vmatprep.subr.bf16.mxu0 %v14882_v48  ;;  %v10512_v24 = vsel %vm5152_vm11, %v10511_v34, %v10510_v31  ;;  %v10631_v8 = vunpack.c.l.b16 %v14853_v0 }
 0x790   : > { %14104 = vmatpush3.bf16.msra.mxu1 %v14823_v7  ;;  %v10513_v7 = vrot.slane %v10410_v57, 3  ;;  %v10422_v49 = vsel %vm5155_vm12, %v10421_v39, %v10420_v32  ;;  %v14851_v32 = vld [vmem:[%s18368_s7 + $0x618] sm:$0xff]  }
 0x791   : > { %14121 = vmatprep.subr.bf16.mxu1 %v14882_v48  ;;  %v10424_v20 = vsel %vm5158_vm13, %v10423_v42, %v10422_v49  ;;  %v10638_v23 = vrot.slane %v10631_v8, 7 }
 0x792   : > { %14114 = vmatpush3.bf16.msra.mxu0 %v14836_v12  ;;  %v10425_v59 = vsel %vm5161_vm14, %v10412_v40, %v10424_v20  ;;  %v10514_v47 = vsel %vm5155_vm12, %v10513_v7, %v10512_v24  ;;  %v14857_v12 = vld [vmem:[#allocation4 + $0xec] ss:$0 sps:$4 sm:$0x11]  }
 0x793   : > { %14106 = vmatmul.mubr.msk.bf16.vlgmr.msra.gmra.mrb[88].mxu1 %vm3380_vm9, %v10296_v1  ;;  %14115 = vmatprep.subr.bf16.mxu0 %v14882_v48  ;;  %v10427_v15 = vsel %vm5164_vm15, %v10426_v50, %v10425_v59  ;;  %v10516_v14 = vsel %vm5158_vm13, %v10515_v35, %v10514_v47  ;;  %v10635_v51 = vunpack.c.l.b16 %v14857_v12 }
 0x794   : > { %14122 = vmatpush3.bf16.msra.mxu1 %v14833_v27  ;;  %14129 = vmatprep.mubr.msk.bf16.mxu1 %vm14883_vm7, %v14882_v48  ;;  %v10428_v22 = vpack.c.b16 %v10427_v15, %v10427_v15  ;;  %v10518_v43 = vsel %vm5161_vm14, %v10517_v60, %v10516_v14  ;;  %v14852_v27 = vld [vmem:[#allocation4 + $0x24] ss:$0 sps:$4 sm:$0x11]  }
 0x795   : > { %14123 = vmatprep.subr.bf16.mxu1 %v14882_v48  ;;  %v10519_v1 = vsel %vm5164_vm15, %v10413_v58, %v10518_v43  ;;  %v10630_v18 = vunpack.c.l.b16 %v14852_v27  ;;  %v10644_v58 = vrot.slane %v10634_v30, 4  ;;  %v10646_v41 = vrot.slane %v10635_v51, 3 }
 0x796   : > { %14116 = vmatpush3.bf16.msra.mxu0 %v14838_v25  ;;  %v10520_v45 = vpack.c.b16 %v10519_v1, %v10519_v1 }
 0x797   : > { %14133 = vmatprep.subr.bf16.mxu0 %v14882_v48 }
 0x798   : > { %14124 = vmatpush3.bf16.msra.mxu1 %v14835_v19  ;;  %v7498_v3 = vpop.f32.mrb[40].mxu0  ;;  %v14854_v19 = vld [vmem:[#allocation4 + $0x74] ss:$0 sps:$4 sm:$0x11]  }
 0x799   : > { %14125 = vmatprep.subr.bf16.mxu1 %v14882_v48  ;;  %v13807_v9 = vpop.f32.mrb[41].mxu0  ;;  %v7504_v37 = vadd.f32 %v7498_v3, %v18268_v5  ;;  %v14848_v5 = vld [vmem:[%s18368_s7 + $0x600] sm:$0xff]   ;;  %14118 = vmatmul.mubr.msk.bf16.vlgmr.msra.gmra.mrb[92].mxu0 %vm3380_vm9, %v10428_v22  ;;  %v10632_v53 = vunpack.c.l.b16 %v14854_v19 }
 0x79a   : > { %v7630_v4 = vpop.f32.mrb[40].mxu1  ;;  %v7501_v56 = vpop.f32.mrb[42].mxu0  ;;  %14134 = vmatpush3.bf16.msra.mxu0 %v14848_v5  ;;  %14141 = vmatprep.mubr.msk.bf16.mxu0 %vm14883_vm7, %v14882_v48 }
 0x79b   : > { %v13808_v63 = vpop.f32.mrb[43].mxu0  ;;  %v13819_v38 = vpop.f32.mrb[41].mxu1  ;;  %v7636_v21 = vadd.f32 %v7630_v4, %v7504_v37  ;;  %14135 = vmatprep.subr.bf16.mxu0 %v14882_v48  ;;  %v10640_v40 = vrot.slane %v10632_v53, 6  ;;  %v10639_v4 = vsel %vm5146_vm8, %v10638_v23, %v10630_v18 }
 0x79c   : > { %14126 = vmatpush3.bf16.msra.mxu1 %v14837_v55  ;;  %v7633_v10 = vpop.f32.mrb[42].mxu1  ;;  %v14859_v55 = vld [vmem:[#allocation4 + $0x13c] ss:$0 sps:$4 sm:$0x11]  }
 0x79d   : > { %14127 = vmatprep.subr.bf16.mxu1 %v14882_v48  ;;  %v13820_v26 = vpop.f32.mrb[43].mxu1  ;;  %v10637_v13 = vunpack.c.l.b16 %v14859_v55  ;;  %v10641_v42 = vsel %vm5149_vm10, %v10640_v40, %v10639_v4 }
 0x79e   : > { %14136 = vmatpush3.bf16.msra.mxu0 %v14849_v2  ;;  %v10643_v25 = vsel %vm5152_vm11, %v10642_v6, %v10641_v42 }
 0x79f   : > { %14137 = vmatprep.subr.bf16.mxu0 %v14882_v48  ;;  %v10645_v7 = vsel %vm5155_vm12, %v10644_v58, %v10643_v25 }
 0x7a0   : > { %14128 = vmatpush3.bf16.msra.mxu1 %v14839_v62  ;;  %v10650_v62 = vrot.slane %v10637_v13, 1  ;;  %v10647_v63 = vsel %vm5158_vm13, %v10646_v41, %v10645_v7 }
 0x7a1   : > { %v10649_v50 = vsel %vm5161_vm14, %v10648_v36, %v10647_v63 }
 0x7a2   : > { %14138 = vmatpush3.bf16.msra.mxu0 %v14850_v33  ;;  %v10651_v46 = vsel %vm5164_vm15, %v10650_v62, %v10649_v50 }
 0x7a3   : > { %14130 = vmatmul.mubr.msk.bf16.vlgmr.msra.gmra.mrb[92].mxu1 %vm3380_vm9, %v10520_v45  ;;  %14139 = vmatprep.subr.bf16.mxu0 %v14882_v48  ;;  %v10652_v35 = vpack.c.b16 %v10651_v46, %v10651_v46 }
 0x7a6   : > { %14140 = vmatpush3.bf16.msra.mxu0 %v14851_v32 }
 0x7a8   : > { %v7762_v57 = vpop.f32.mrb[44].mxu0 }
 0x7a9   : > { %v13831_v54 = vpop.f32.mrb[45].mxu0  ;;  %v7768_v39 = vadd.f32 %v7762_v57, %v7636_v21  ;;  %14142 = vmatmul.mubr.msk.bf16.vlgmr.msra.gmra.mrb[96].mxu0 %vm3380_vm9, %v10652_v35  ;;  %vm10729_vm9 = vcmask 48128  }
 0x7aa   : > { %v7854_v3 = vpop.f32.mrb[44].mxu1  ;;  %v7765_v29 = vpop.f32.mrb[46].mxu0 }
 0x7ab   : > { %v13843_v9 = vpop.f32.mrb[45].mxu1  ;;  %v13832_v52 = vpop.f32.mrb[47].mxu0  ;;  %v7860_v17 = vadd.f32 %v7854_v3, %v7768_v39 }
 0x7ac   : > { %v7857_v56 = vpop.f32.mrb[46].mxu1 }
 0x7ad   : > { %v13844_v34 = vpop.f32.mrb[47].mxu1 }
 0x7b8   : > { %v7986_v49 = vpop.f32.mrb[48].mxu0 }
 0x7b9   : > { %v7992_v31 = vadd.f32 %v7986_v49, %v7860_v17  ;;  %v13855_v60 = vpop.f32.mrb[49].mxu0 }
 0x7ba   : > { %v8078_v37 = vpop.f32.mrb[48].mxu1  ;;  %v7989_v38 = vpop.f32.mrb[50].mxu0 }
 0x7bb   : > { %v13867_v20 = vpop.f32.mrb[49].mxu1  ;;  %v8084_v24 = vadd.f32 %v8078_v37, %v7992_v31  ;;  %v13856_v59 = vpop.f32.mrb[51].mxu0 }
 0x7bc   : > { %v8081_v47 = vpop.f32.mrb[50].mxu1 }
 0x7bd   : > { %v13868_v21 = vpop.f32.mrb[51].mxu1 }
 0x7c8   : > { %v8210_v15 = vpop.f32.mrb[52].mxu0 }
 0x7c9   : > { %v8216_v5 = vadd.f32 %v8210_v15, %v8084_v24  ;;  %v13879_v14 = vpop.f32.mrb[53].mxu0 }
 0x7ca   : > { %v8213_v48 = vpop.f32.mrb[54].mxu0  ;;  %v8302_v10 = vpop.f32.mrb[52].mxu1 }
 0x7cb   : > { %v8308_v22 = vadd.f32 %v8302_v10, %v8216_v5  ;;  %v13880_v43 = vpop.f32.mrb[55].mxu0  ;;  %v13891_v27 = vpop.f32.mrb[53].mxu1 }
 0x7cc   : > { %v8305_v0 = vpop.f32.mrb[54].mxu1 }
 0x7cd   : > { %v13892_v1 = vpop.f32.mrb[55].mxu1 }
 0x7d8   : > { %v8434_v2 = vpop.f32.mrb[56].mxu0 }
 0x7d9   : > { %v8440_v19 = vadd.f32 %v8434_v2, %v8308_v22  ;;  %v13903_v28 = vpop.f32.mrb[57].mxu0 }
 0x7da   : > { %v8437_v45 = vpop.f32.mrb[58].mxu0  ;;  %v8526_v11 = vpop.f32.mrb[56].mxu1 }
 0x7db   : > { %v8532_v12 = vadd.f32 %v8526_v11, %v8440_v19  ;;  %v13904_v18 = vpop.f32.mrb[59].mxu0  ;;  %v13915_v8 = vpop.f32.mrb[57].mxu1 }
 0x7dc   : > { %v8529_v44 = vpop.f32.mrb[58].mxu1 }
 0x7dd   : > { %v13916_v55 = vpop.f32.mrb[59].mxu1 }
 0x7e8   : > { %v8658_v53 = vpop.f32.mrb[60].mxu0 }
 0x7e9   : > { %v8664_v61 = vadd.f32 %v8658_v53, %v8532_v12  ;;  %v13927_v30 = vpop.f32.mrb[61].mxu0 }
 0x7ea   : > { %v8661_v51 = vpop.f32.mrb[62].mxu0 }
 0x7eb   : > { %v13928_v26 = vpop.f32.mrb[63].mxu0 }
 0x7f2   : > { %v8750_v23 = vpop.f32.mrb[60].mxu1 }
 0x7f3   : > { %v8756_v57 = vadd.f32 %v8750_v23, %v8664_v61  ;;  %v13939_v16 = vpop.f32.mrb[61].mxu1 }
 0x7f4   : > { %v8753_v13 = vpop.f32.mrb[62].mxu1 }
 0x7f5   : > { %v13940_v40 = vpop.f32.mrb[63].mxu1 }
 0x7f8   : > { %v8882_v6 = vpop.f32.mrb[64].mxu0 }
 0x7f9   : > { %v8888_v54 = vadd.f32 %v8882_v6, %v8756_v57  ;;  %v13951_v3 = vpop.f32.mrb[65].mxu0 }
 0x7fa   : > { %v8885_v58 = vpop.f32.mrb[66].mxu0 }
 0x7fb   : > { %v13952_v29 = vpop.f32.mrb[67].mxu0 }
 0x802   : > { %v8974_v4 = vpop.f32.mrb[64].mxu1 }
 0x803   : > { %v13963_v41 = vpop.f32.mrb[65].mxu1  ;;  %v8980_v39 = vadd.f32 %v8974_v4, %v8888_v54 }
 0x804   : > { %v8977_v9 = vpop.f32.mrb[66].mxu1 }
 0x805   : > { %v13964_v33 = vpop.f32.mrb[67].mxu1 }
 0x80c   : > { %v9106_v42 = vpop.f32.mrb[68].mxu0 }
 0x80d   : > { %v9112_v36 = vadd.f32 %v9106_v42, %v8980_v39  ;;  %v13975_v52 = vpop.f32.mrb[69].mxu0 }
 0x80e   : > { %v9109_v56 = vpop.f32.mrb[70].mxu0 }
 0x80f   : > { %v13976_v25 = vpop.f32.mrb[71].mxu0 }
 0x816   : > { %v9238_v62 = vpop.f32.mrb[68].mxu1 }
 0x817   : > { %v9244_v17 = vadd.f32 %v9238_v62, %v9112_v36  ;;  %v13987_v34 = vpop.f32.mrb[69].mxu1 }
 0x818   : > { %v9241_v7 = vpop.f32.mrb[70].mxu1  ;;  %v12149_v34 = vld [vmem:[%s18369_s8] ss:$0 sm:$0xff] }
 0x819   : > { %v13988_v63 = vpop.f32.mrb[71].mxu1 }
 0x81c   : > { %v9370_v32 = vpop.f32.mrb[72].mxu0 }
 0x81d   : > { %v9376_v50 = vadd.f32 %v9370_v32, %v9244_v17  ;;  %v13999_v46 = vpop.f32.mrb[73].mxu0 }
 0x81e   : > { %v9373_v49 = vpop.f32.mrb[74].mxu0 }
 0x81f   : > { %v14000_v37 = vpop.f32.mrb[75].mxu0 }
 0x826   : > { %v9462_v35 = vpop.f32.mrb[72].mxu1 }
 0x827   : > { %v14011_v31 = vpop.f32.mrb[73].mxu1  ;;  %v9468_v60 = vadd.f32 %v9462_v35, %v9376_v50 }
 0x828   : > { %v9465_v38 = vpop.f32.mrb[74].mxu1 }
 0x829   : > { %v14012_v20 = vpop.f32.mrb[75].mxu1 }
 0x82c   : > { %v9594_v24 = vpop.f32.mrb[76].mxu0 }
 0x82d   : > { %v9600_v59 = vadd.f32 %v9594_v24, %v9468_v60  ;;  %v14023_v47 = vpop.f32.mrb[77].mxu0 }
 0x82e   : > { %v9597_v15 = vpop.f32.mrb[78].mxu0 }
 0x82f   : > { %v14024_v48 = vpop.f32.mrb[79].mxu0 }
 0x836   : > { %v9686_v21 = vpop.f32.mrb[76].mxu1 }
 0x837   : > { %v14035_v5 = vpop.f32.mrb[77].mxu1  ;;  %v9692_v14 = vadd.f32 %v9686_v21, %v9600_v59 }
 0x838   : > { %v9689_v10 = vpop.f32.mrb[78].mxu1 }
 0x839   : > { %v14036_v22 = vpop.f32.mrb[79].mxu1 }
 0x83c   : > { %v9818_v43 = vpop.f32.mrb[80].mxu0 }
 0x83d   : > { %v9824_v27 = vadd.f32 %v9818_v43, %v9692_v14  ;;  %v14047_v0 = vpop.f32.mrb[81].mxu0 }
 0x83e   : > { %v9821_v2 = vpop.f32.mrb[82].mxu0 }
 0x83f   : > { %v14048_v45 = vpop.f32.mrb[83].mxu0 }
 0x846   : > { %v9910_v1 = vpop.f32.mrb[80].mxu1 }
 0x847   : > { %v14059_v19 = vpop.f32.mrb[81].mxu1  ;;  %v9916_v28 = vadd.f32 %v9910_v1, %v9824_v27 }
 0x848   : > { %v9913_v11 = vpop.f32.mrb[82].mxu1 }
 0x849   : > { %v14060_v12 = vpop.f32.mrb[83].mxu1 }
 0x84c   : > { %v10042_v18 = vpop.f32.mrb[84].mxu0 }
 0x84d   : > { %v10048_v8 = vadd.f32 %v10042_v18, %v9916_v28  ;;  %v14071_v44 = vpop.f32.mrb[85].mxu0 }
 0x84e   : > { %v10045_v53 = vpop.f32.mrb[86].mxu0 }
 0x84f   : > { %v14072_v51 = vpop.f32.mrb[87].mxu0 }
 0x856   : > { %v10134_v55 = vpop.f32.mrb[84].mxu1 }
 0x857   : > { %v14083_v61 = vpop.f32.mrb[85].mxu1  ;;  %v10140_v30 = vadd.f32 %v10134_v55, %v10048_v8 }
 0x858   : > { %v10137_v23 = vpop.f32.mrb[86].mxu1 }
 0x859   : > { %v14084_v26 = vpop.f32.mrb[87].mxu1 }
 0x85c   : > { %v10266_v57 = vpop.f32.mrb[88].mxu0 }
 0x85d   : > { %v10272_v16 = vadd.f32 %v10266_v57, %v10140_v30  ;;  %v14095_v13 = vpop.f32.mrb[89].mxu0 }
 0x85e   : > { %v10269_v6 = vpop.f32.mrb[90].mxu0 }
 0x85f   : > { %v14096_v4 = vpop.f32.mrb[91].mxu0 }
 0x866   : > { %v10358_v40 = vpop.f32.mrb[88].mxu1 }
 0x867   : > { %v14107_v54 = vpop.f32.mrb[89].mxu1  ;;  %v10364_v3 = vadd.f32 %v10358_v40, %v10272_v16 }
 0x868   : > { %v10361_v58 = vpop.f32.mrb[90].mxu1 }
 0x869   : > { %v14108_v41 = vpop.f32.mrb[91].mxu1 }
 0x86c   : > { %v10490_v39 = vpop.f32.mrb[92].mxu0 }
 0x86d   : > { %v10496_v29 = vadd.f32 %v10490_v39, %v10364_v3  ;;  %v14119_v9 = vpop.f32.mrb[93].mxu0 }
 0x86e   : > { %v10493_v33 = vpop.f32.mrb[94].mxu0 }
 0x86f   : > { %v14120_v52 = vpop.f32.mrb[95].mxu0 }
 0x876   : > { %v10582_v42 = vpop.f32.mrb[92].mxu1 }
 0x877   : > { %v10588_v36 = vadd.f32 %v10582_v42, %v10496_v29  ;;  %v14131_v56 = vpop.f32.mrb[93].mxu1 }
 0x878   : > { %v10585_v25 = vpop.f32.mrb[94].mxu1 }
 0x879   : > { %v14132_v62 = vpop.f32.mrb[95].mxu1 }
 0x87c   : > { %v10714_v17 = vpop.f32.mrb[96].mxu0 }
 0x87d   : > { %v10720_v7 = vadd.f32 %v10714_v17, %v10588_v36  ;;  %v14143_v63 = vpop.f32.mrb[97].mxu0 }
 0x87e   : > { %v10717_v32 = vpop.f32.mrb[98].mxu0 }
 0x87f   : > { %v10728_v50 = vadd.f32 %v12149_v34, %v10720_v7  ;;  %v14144_v46 = vpop.f32.mrb[99].mxu0 }
 0x881   : > { %10730 = vst.msk [vmem:[%s14960_s22] sm:$0xff] %vm10729_vm9, %v10728_v50 }
 0x882 PF: > { %s19_s30 = sadd.s32 1, %s14870_s30  }
 0x883   : > { %p16_p6 = scmp.ge.s32.totalorder %s19_s30, 4  }
 0x885   :  { %18 = sbr.rel (!%p16_p6) target bundleno = 1 (0x1), region = 165 }

</bundles_post_ra>
